<compile_context>
chip_gen: v5e
topology: v5e:2x2
jax: 0.10.0
libtpu: 0.0.40
codegen_flags: <defaults>
</compile_context>

<pallas_src>
import math

import jax
import jax.numpy as jnp
from jax.experimental import pallas as pl
from jax.experimental.pallas import tpu as pltpu


# ---------------------------------------------------------------------------
# Kernels
# ---------------------------------------------------------------------------

def _layernorm_lastdim_kernel(x_ref, w_ref, b_ref, o_ref):
    """Fallback path: block (tile_r, C); reduce over the lane axis."""
    x = x_ref[...].astype(jnp.float32)
    mu = jnp.mean(x, axis=-1, keepdims=True)
    xc = x - mu
    var = jnp.mean(xc * xc, axis=-1, keepdims=True)      # torch.var(unbiased=False)
    inv = jax.lax.rsqrt(var + 1e-5)
    y = xc * inv * w_ref[...].astype(jnp.float32) + b_ref[...].astype(jnp.float32)
    o_ref[...] = y.astype(o_ref.dtype)


def _layernorm_packed_kernel(x_ref, w_ref, b_ref, p_ref, o_ref):
    """Lane-packed path: block (tile_r, L = k*C).  Each block row holds k independent
    LayerNorm groups of width C packed along lanes.  Group means (broadcast back to
    full width) come from one MXU matmul with the block-diagonal averaging matrix P."""
    x = x_ref[...].astype(jnp.float32)
    p = p_ref[...]
    mu = jnp.dot(x, p, preferred_element_type=jnp.float32,
                 precision=jax.lax.Precision.HIGHEST)
    xc = x - mu
    var = jnp.dot(xc * xc, p, preferred_element_type=jnp.float32,
                  precision=jax.lax.Precision.HIGHEST)
    inv = jax.lax.rsqrt(var + 1e-5)
    y = xc * inv * w_ref[...].astype(jnp.float32) + b_ref[...].astype(jnp.float32)
    o_ref[...] = y.astype(o_ref.dtype)


# ---------------------------------------------------------------------------
# Wrapper
# ---------------------------------------------------------------------------

def _pick_tile_rows(n_rows, lane, dtype_bytes, target_block_bytes, min_grid_steps):
    # Native sublane packing: 8 rows (f32), 16 (bf16/f16), 32 (int8/fp8).
    sub_mult = 8 * max(1, 4 // dtype_bytes)
    tr = max(1, target_block_bytes // max(1, lane * dtype_bytes))
    # Keep >= ~min_grid_steps grid steps so megacore sharding + pipelining engage (v7x).
    tr = min(tr, pl.cdiv(n_rows, min_grid_steps))
    tr = max(sub_mult, (tr // sub_mult) * sub_mult)
    return min(tr, n_rows)


def _compiler_params():
    return pltpu.CompilerParams(
        dimension_semantics=("parallel",),
        vmem_limit_bytes=48 * 1024 * 1024,
    )


def withbias_layernorm(x, weight, bias, *, tile_rows=None, target_block_bytes=None,
                       max_packed_lanes=512, min_grid_steps=8):
    """x: (..., C); weight, bias: (C,).  Normalizes over the last dim (f32 accumulate),
    matching torch: (x - mean) / sqrt(var_unbiased=False + 1e-5) * weight + bias."""
    orig_shape = x.shape
    C = orig_shape[-1]
    rows = math.prod(orig_shape[:-1])
    dtype_bytes = jnp.dtype(x.dtype).itemsize
    if target_block_bytes is None:
        # f32 intermediates dominate live VMEM; keep sub-f32 input blocks smaller.
        target_block_bytes = (4 << 20) if dtype_bytes >= 4 else (2 << 20)

    # Lane packing factor: smallest k with (k*C) % 128 == 0, grown by powers of two
    # while it still divides `rows` and stays under the lane cap.
    k = 128 // math.gcd(C, 128)
    use_packed = (k > 1) and (rows > 0) and (rows % k == 0) and (k * C <= max_packed_lanes)
    if use_packed:
        while (2 * k * C <= max_packed_lanes) and (rows % (2 * k) == 0):
            k *= 2

    if use_packed:
        L = k * C
        R = rows // k
        x2 = x.reshape(R, L)                                   # free contiguous reshape
        w2 = jnp.tile(weight.reshape(1, C), (1, k))            # (1, L)
        b2 = jnp.tile(bias.reshape(1, C), (1, k))              # (1, L)
        gids = jnp.arange(L, dtype=jnp.int32) // C
        P = (gids[:, None] == gids[None, :]).astype(jnp.float32) * (1.0 / C)  # (L, L)

        tr = tile_rows if tile_rows is not None else _pick_tile_rows(
            R, L, dtype_bytes, target_block_bytes, min_grid_steps)
        tr = min(tr, R)
        grid = (pl.cdiv(R, tr),)
        block_bytes = tr * L * dtype_bytes

        x_spec = pl.BlockSpec((tr, L), lambda i: (i, 0))
        if grid[0] >= 4 and block_bytes <= (1 << 20):
            # Many short steps -> deeper buffering hides DMA issue latency.
            x_spec = pl.BlockSpec((tr, L), lambda i: (i, 0), pipeline_mode=pl.Buffered(3))

        cost = pl.CostEstimate(
            flops=int(4 * R * L * L + 8 * rows * C),
            transcendentals=int(rows),
            bytes_accessed=int(2 * rows * C * dtype_bytes + 2 * C * dtype_bytes + 4 * L * L),
        )
        out = pl.pallas_call(
            _layernorm_packed_kernel,
            out_shape=jax.ShapeDtypeStruct((R, L), x.dtype),
            grid_spec=pltpu.PrefetchScalarGridSpec(
                num_scalar_prefetch=0,
                grid=grid,
                in_specs=[
                    x_spec,
                    pl.BlockSpec((1, L), lambda i: (0, 0)),    # resident (constant index_map)
                    pl.BlockSpec((1, L), lambda i: (0, 0)),    # resident
                    pl.BlockSpec((L, L), lambda i: (0, 0)),    # P resident (<= 1 MiB)
                ],
                out_specs=pl.BlockSpec((tr, L), lambda i: (i, 0)),
            ),
            compiler_params=_compiler_params(),
            cost_estimate=cost,
        )(x2, w2, b2, P)
        return out.reshape(orig_shape)

    # ---- Fallback: lane = C layout (C already a multiple of 128, or packing infeasible).
    x2 = x.reshape(rows, C)
    w2 = weight.reshape(1, C)
    b2 = bias.reshape(1, C)
    tr = tile_rows if tile_rows is not None else _pick_tile_rows(
        rows, C, dtype_bytes, target_block_bytes, min_grid_steps)
    tr = min(tr, rows)
    grid = (pl.cdiv(rows, tr),)
    block_bytes = tr * C * dtype_bytes

    x_spec = pl.BlockSpec((tr, C), lambda i: (i, 0))
    if grid[0] >= 4 and block_bytes <= (1 << 20):
        x_spec = pl.BlockSpec((tr, C), lambda i: (i, 0), pipeline_mode=pl.Buffered(3))

    cost = pl.CostEstimate(
        flops=int(10 * rows * C),
        transcendentals=int(rows),
        bytes_accessed=int(2 * rows * C * dtype_bytes + 2 * C * dtype_bytes),
    )
    out = pl.pallas_call(
        _layernorm_lastdim_kernel,
        out_shape=jax.ShapeDtypeStruct((rows, C), x.dtype),
        grid_spec=pltpu.PrefetchScalarGridSpec(
            num_scalar_prefetch=0,
            grid=grid,
            in_specs=[
                x_spec,
                pl.BlockSpec((1, C), lambda i: (0, 0)),
                pl.BlockSpec((1, C), lambda i: (0, 0)),
            ],
            out_specs=pl.BlockSpec((tr, C), lambda i: (i, 0)),
        ),
        compiler_params=_compiler_params(),
        cost_estimate=cost,
    )(x2, w2, b2)
    return out.reshape(orig_shape)


# ---------------------------------------------------------------------------
# Demo / self-test
# ---------------------------------------------------------------------------

if __name__ == "__main__":
    key = jax.random.PRNGKey(0)
    B, H, W, C = 2, 8, 8, 32                     # CFIN-style: x is (B, H*W, C), LN over C
    x = jax.random.normal(key, (B, H * W, C), dtype=jnp.float32)

    # Module __init__: weight = ones(C), bias = zeros(C)
    weight = jnp.ones((C,), dtype=jnp.float32)
    bias = jnp.zeros((C,), dtype=jnp.float32)

    def ref_ln(xx, w, b):
        xx = xx.astype(jnp.float32)
        mu = jnp.mean(xx, axis=-1, keepdims=True)
        var = jnp.mean((xx - mu) ** 2, axis=-1, keepdims=True)
        return (xx - mu) / jnp.sqrt(var + 1e-5) * w + b

    # 1) Lane-packed MXU path (C=32 -> 512 lanes), default module params.
    y = jax.block_until_ready(withbias_layernorm(x, weight, bias))
    assert jnp.allclose(y, ref_ln(x, weight, bias), atol=1e-4, rtol=1e-4)

    # 2) Non-trivial affine params; packed path with multiple grid steps and a masked
    #    partial final block (rows=400 -> 25 packed lane-rows, tile=8, grid=4).
    k1, k2, k3 = jax.random.split(jax.random.PRNGKey(1), 3)
    w_r = jax.random.normal(k1, (C,), dtype=jnp.float32)
    b_r = jax.random.normal(k2, (C,), dtype=jnp.float32)
    x2 = jax.random.normal(k3, (4, 100, C), dtype=jnp.float32)
    y2 = jax.block_until_ready(withbias_layernorm(x2, w_r, b_r))
    assert jnp.allclose(y2, ref_ln(x2, w_r, b_r), atol=1e-4, rtol=1e-4)

    # 3) Fallback lane=C path (rows=35 not divisible by the packing factor) with a
    #    masked partial final block.
    x3 = jax.random.normal(jax.random.PRNGKey(2), (5, 7, C), dtype=jnp.float32)
    y3 = jax.block_until_ready(withbias_layernorm(x3, w_r, b_r))
    assert jnp.allclose(y3, ref_ln(x3, w_r, b_r), atol=1e-4, rtol=1e-4)

    # 4) bf16 input (C=48 -> 384 lanes, 16-row sublane packing, 2 MiB block budget).
    x4 = jax.random.normal(jax.random.PRNGKey(3), (2, 64, 48), dtype=jnp.bfloat16)
    w4 = jnp.ones((48,), dtype=jnp.float32)
    b4 = jnp.zeros((48,), dtype=jnp.float32)
    y4 = jax.block_until_ready(withbias_layernorm(x4, w4, b4))
    assert jnp.allclose(y4.astype(jnp.float32), ref_ln(x4, w4, b4), atol=6e-2, rtol=6e-2)

    print("KERNEL_OK")
</pallas_src>

<mosaic_0001>
module attributes {stable_mosaic.version = 11 : i64} {
  func.func @_layernorm_packed_kernel(%arg0: i32, %arg1: memref<8x512xf32, #tpu.memory_space<vmem>>, %arg2: memref<1x512xf32, #tpu.memory_space<vmem>>, %arg3: memref<1x512xf32, #tpu.memory_space<vmem>>, %arg4: memref<512x512xf32, #tpu.memory_space<vmem>>, %arg5: memref<8x512xf32, #tpu.memory_space<vmem>>) attributes {dimension_semantics = [#tpu.dimension_semantics<parallel>], iteration_bounds = array<i64: 1>, scalar_prefetch = 0 : i64, scratch_operands = 0 : i64, tpu.core_type = #tpu.core_type<tc>, window_params = [{transform_indices = @transform_0, window_bounds = array<i64: 8, 512>}, {pipeline_mode = #tpu.pipeline_mode<synchronous>, transform_indices = @transform_1, window_bounds = array<i64: 1, 512>}, {pipeline_mode = #tpu.pipeline_mode<synchronous>, transform_indices = @transform_2, window_bounds = array<i64: 1, 512>}, {pipeline_mode = #tpu.pipeline_mode<synchronous>, transform_indices = @transform_3, window_bounds = array<i64: 512, 512>}, {transform_indices = @transform_4, window_bounds = array<i64: 8, 512>}]} {
    %c0 = arith.constant 0 : index
    %c0_0 = arith.constant 0 : index
    %0 = vector.load %arg1[%c0, %c0_0] : memref<8x512xf32, #tpu.memory_space<vmem>>, vector<8x512xf32>
    %c0_1 = arith.constant 0 : index
    %c0_2 = arith.constant 0 : index
    %1 = vector.load %arg4[%c0_1, %c0_2] : memref<512x512xf32, #tpu.memory_space<vmem>>, vector<512x512xf32>
    %cst = arith.constant dense<0.000000e+00> : vector<8x512xf32>
    %2 = tpu.matmul %0, %1, %cst {dimension_numbers = #tpu.dot_dimension_numbers<[1], [0], [0], [1], [0, 0, 1, 1], [], []>, precision = #tpu.contract_precision<fp32>} : vector<8x512xf32>, vector<512x512xf32>, vector<8x512xf32> -> vector<8x512xf32>
    %3 = arith.subf %0, %2 : vector<8x512xf32>
    %4 = arith.mulf %3, %3 : vector<8x512xf32>
    %cst_3 = arith.constant dense<0.000000e+00> : vector<8x512xf32>
    %5 = tpu.matmul %4, %1, %cst_3 {dimension_numbers = #tpu.dot_dimension_numbers<[1], [0], [0], [1], [0, 0, 1, 1], [], []>, precision = #tpu.contract_precision<fp32>} : vector<8x512xf32>, vector<512x512xf32>, vector<8x512xf32> -> vector<8x512xf32>
    %cst_4 = arith.constant 9.99999974E-6 : f32
    %6 = vector.broadcast %cst_4 : f32 to vector<8x512xf32>
    %7 = arith.addf %5, %6 : vector<8x512xf32>
    %8 = math.rsqrt %7 : vector<8x512xf32>
    %9 = arith.mulf %3, %8 : vector<8x512xf32>
    %c0_5 = arith.constant 0 : index
    %c0_6 = arith.constant 0 : index
    %10 = vector.load %arg2[%c0_5, %c0_6] : memref<1x512xf32, #tpu.memory_space<vmem>>, vector<1x512xf32>
    %11 = vector.broadcast %10 : vector<1x512xf32> to vector<8x512xf32>
    %12 = arith.mulf %9, %11 : vector<8x512xf32>
    %c0_7 = arith.constant 0 : index
    %c0_8 = arith.constant 0 : index
    %13 = vector.load %arg3[%c0_7, %c0_8] : memref<1x512xf32, #tpu.memory_space<vmem>>, vector<1x512xf32>
    %14 = vector.broadcast %13 : vector<1x512xf32> to vector<8x512xf32>
    %15 = arith.addf %12, %14 : vector<8x512xf32>
    %c0_9 = arith.constant 0 : index
    %c0_10 = arith.constant 0 : index
    %16 = vector.load %arg5[%c0_9, %c0_10] : memref<8x512xf32, #tpu.memory_space<vmem>>, vector<8x512xf32>
    tpu.vector_store %arg5[%c0_9, %c0_10], %15 {strides = array<i32>} : memref<8x512xf32, #tpu.memory_space<vmem>>, vector<8x512xf32>,
    return
  }
  func.func @transform_0(%arg0: i32) -> (i32, i32) {
    %c0_i32 = arith.constant 0 : i32
    %c0_i32_0 = arith.constant 0 : i32
    return %arg0, %c0_i32 : i32, i32
  }
  func.func @transform_1(%arg0: i32) -> (i32, i32) {
    %c0_i32 = arith.constant 0 : i32
    %c0_i32_0 = arith.constant 0 : i32
    %c0_i32_1 = arith.constant 0 : i32
    return %c0_i32, %c0_i32_0 : i32, i32
  }
  func.func @transform_2(%arg0: i32) -> (i32, i32) {
    %c0_i32 = arith.constant 0 : i32
    %c0_i32_0 = arith.constant 0 : i32
    %c0_i32_1 = arith.constant 0 : i32
    return %c0_i32, %c0_i32_0 : i32, i32
  }
  func.func @transform_3(%arg0: i32) -> (i32, i32) {
    %c0_i32 = arith.constant 0 : i32
    %c0_i32_0 = arith.constant 0 : i32
    %c0_i32_1 = arith.constant 0 : i32
    return %c0_i32, %c0_i32_0 : i32, i32
  }
  func.func @transform_4(%arg0: i32) -> (i32, i32) {
    %c0_i32 = arith.constant 0 : i32
    %c0_i32_0 = arith.constant 0 : i32
    return %arg0, %c0_i32 : i32, i32
  }
}

</mosaic_0001>

<bundles_post_ra>
// kernel: tpu_custom_call.1
= control target key start
LH: loop header
LB: loop body
LE: loop exit
PB: predicated region body
PF: predicated region fallthrough
CT: control target
= control target key end

     0   :  { %9 = vsyncpa [#allocation3], 0  ;;  %s18164_s0 = inlined_call_operand.hbm [shape: f32[8,512], index: 0, kind: input, shape index: {}]   ;;  %s18165_s1 = inlined_call_operand.hbm [shape: f32[1,512], index: 1, kind: input, shape index: {}]   ;;  %s18166_s2 = inlined_call_operand.hbm [shape: f32[1,512], index: 2, kind: input, shape index: {}]   ;;  %s18167_s3 = inlined_call_operand.hbm [shape: f32[512,512], index: 3, kind: input, shape index: {}]   ;;  %s18168_s4 = inlined_call_operand.hbm [shape: f32[8,512], index: 4, kind: output, shape index: {}]  }
   0x1   :  { %10 = vsyncpa [#allocation6], 0 }
   0x2   :  { %11 = vsyncpa [#allocation9], 0  ;;  %s29_s17 = sshll.u32 %s18165_s1, 4  ;;  %s30_s17 = int_to_ptr.hbm [resolvable:$true] %s29_s17 }
   0x3   :  { %12 = vsyncpa [#allocation4], 0  ;;  %s11499_s18 = smov [#allocation5]   ;;  %s18_s22 = sshll.u32 %s18164_s0, 4  ;;  %s19_s22 = int_to_ptr.hbm [resolvable:$true] %s18_s22 }
   0x4   :  { %s31_s19 = sshll.u32 %s11499_s18, 4  ;;  %s11500_s23 = smov [#allocation2]   ;;  %s32_s19 = int_to_ptr.vmem [resolvable:$true] %s31_s19 }
   0x5   :  { %34 = dma.hbm_to_vmem [thread:$0]  %s30_s17, 64, %s32_s19, [#allocation6]  }
   0x6   :  { %s20_s24 = sshll.u32 %s11500_s23, 4  ;;  %s40_s27 = sshll.u32 %s18166_s2, 4  ;;  %s21_s24 = int_to_ptr.vmem [resolvable:$true] %s20_s24  ;;  %s41_s27 = int_to_ptr.hbm [resolvable:$true] %s40_s27 }
   0x7   :  { %23 = dma.hbm_to_vmem [thread:$0]  %s19_s22, 512, %s21_s24, [#allocation3]  }
   0x8   :  { %s50_s29 = sshll.u32 %s18167_s3, 4  ;;  %s11501_s30 = smov [#allocation7]   ;;  %s51_s29 = int_to_ptr.hbm [resolvable:$true] %s50_s29 }
   0x9   :  { %s42_s5 = sshll.u32 %s11501_s30, 4  ;;  %s11502_s0 = smov [#allocation8]   ;;  %s43_s5 = int_to_ptr.vmem [resolvable:$true] %s42_s5 }
   0xa   :  { %45 = dma.hbm_to_vmem [thread:$0]  %s41_s27, 64, %s43_s5, [#allocation6]  }
   0xb   :  { %s52_s6 = sshll.u32 %s11502_s0, 4  ;;  %s11503_s7 = smov 512   ;;  %s53_s6 = int_to_ptr.vmem [resolvable:$true] %s52_s6 }
   0xc   :  { %s11504_s8 = smov 32  }
   0xd   :  { %58 = dma.hbm_to_vmem [thread:$0]  %s51_s29, 32768, %s53_s6, [#allocation9], %s11503_s7, %s11503_s7, %s11504_s8  }
   0xe   :  { %11491 = dma.done.wait [#allocation3], 512  }
   0xf   :  { %11492 = vsyncadd [#allocation3], 4294966784 }
  0x10   :  { %11493 = dma.done.wait [#allocation6], 128  }
  0x11   :  { %11494 = vsyncadd [#allocation6], 4294967168 }
  0x12   :  { %11495 = dma.done.wait [#allocation9], 32768  }
  0x13   :  { %11496 = vsyncadd [#allocation9], 4294934528  ;;  %v139_v0 = vld [vmem:[#allocation8 + $0x1e0] sm:$0xff]  ;;  %s11505_s2 = smov [#allocation10]   ;;  %s11338_s11 = sshll.u32 %s18168_s4, 4  ;;  %s11339_s11 = int_to_ptr.hbm [resolvable:$true] %s11338_s11 }
  0x14   :  { %v135_v1 = vld [vmem:[#allocation8 + $0x1c0] sm:$0xff]  ;;  %v11543_v3 = vand.u32 4294901760, %v139_v0  ;;  %s11336_s3 = sshll.u32 %s11505_s2, 4  ;;  %s11337_s3 = int_to_ptr.vmem [resolvable:$true] %s11336_s3 }
  0x15   :  { %v131_v2 = vld [vmem:[#allocation8 + $0x1a0] sm:$0xff]  ;;  %v11545_v4 = vand.u32 4294901760, %v135_v1 }
  0x16   :  { %19566 = vst [vmem:[#allocation15_spill] sm:$0xff] %v11543_v3  ;;  %v11547_v5 = vand.u32 4294901760, %v131_v2  ;;  %v127_v6 = vld [vmem:[#allocation8 + $0x180] sm:$0xff]  ;;  %336 = vmatpush.msra.mxu0 %v11543_v3  ;;  %532 = vmatpush.msra.mxu3 %v11543_v3  ;;  %v11558_v14 = vsub.f32 %v139_v0, %v11543_v3 }
  0x17   :  { %19567 = vst [vmem:[#allocation16_spill] sm:$0xff] %v11545_v4  ;;  %v123_v7 = vld [vmem:[#allocation8 + $0x160] sm:$0xff]  ;;  %v11549_v9 = vand.u32 4294901760, %v127_v6  ;;  %v11561_v15 = vsub.f32 %v135_v1, %v11545_v4 }
  0x18   :  { %19568 = vst [vmem:[#allocation17_spill] sm:$0xff] %v11547_v5  ;;  %v119_v8 = vld [vmem:[#allocation8 + $0x140] sm:$0xff]  ;;  %v11551_v10 = vand.u32 4294901760, %v123_v7  ;;  %v11564_v16 = vsub.f32 %v131_v2, %v11547_v5  ;;  %338 = vmatpush.msra.mxu0 %v11545_v4  ;;  %479 = vmatpush.msra.mxu2 %v11558_v14  ;;  %v11582_v23 = vand.u32 4294901760, %v11558_v14 }
  0x19   :  { %19569 = vst [vmem:[#allocation18_spill] sm:$0xff] %v11549_v9  ;;  %v11553_v11 = vand.u32 4294901760, %v119_v8  ;;  %v115_v12 = vld [vmem:[#allocation8 + $0x120] sm:$0xff]  ;;  %v11569_v19 = vsub.f32 %v127_v6, %v11549_v9  ;;  %v11585_v24 = vand.u32 4294901760, %v11561_v15  ;;  %534 = vmatpush.msra.mxu3 %v11545_v4 }
  0x1a   :  { %19570 = vst [vmem:[#allocation19_spill] sm:$0xff] %v11551_v10  ;;  %v111_v13 = vld [vmem:[#allocation8 + $0x100] sm:$0xff]  ;;  %v11566_v17 = vand.u32 4294901760, %v115_v12  ;;  %v11572_v20 = vsub.f32 %v123_v7, %v11551_v10  ;;  %v11588_v25 = vand.u32 4294901760, %v11564_v16  ;;  %340 = vmatpush.msra.mxu0 %v11547_v5  ;;  %482 = vmatpush.msra.mxu2 %v11561_v15  ;;  %v379_v30 = vsub.f32 %v11558_v14, %v11582_v23 }
  0x1b   :  { %19571 = vst [vmem:[#allocation20_spill] sm:$0xff] %v11553_v11  ;;  %v107_v18 = vld [vmem:[#allocation8 + $0xe0] sm:$0xff]  ;;  %v11575_v21 = vsub.f32 %v119_v8, %v11553_v11  ;;  %v11577_v22 = vand.u32 4294901760, %v111_v13  ;;  %v11592_v26 = vand.u32 4294901760, %v11569_v19  ;;  %v385_v31 = vsub.f32 %v11561_v15, %v11585_v24  ;;  %536 = vmatpush.msra.mxu3 %v11547_v5 }
  0x1c   :  { %19572 = vst [vmem:[#allocation21_spill] sm:$0xff] %v11558_v14  ;;  %v11595_v27 = vsub.f32 %v115_v12, %v11566_v17  ;;  %v11597_v28 = vand.u32 4294901760, %v107_v18  ;;  %v103_v29 = vld [vmem:[#allocation8 + $0xc0] sm:$0xff]  ;;  %v391_v32 = vsub.f32 %v11564_v16, %v11588_v25  ;;  %v11608_v33 = vand.u32 4294901760, %v11572_v20  ;;  %342 = vmatpush.msra.mxu0 %v11549_v9  ;;  %485 = vmatpush.msra.mxu2 %v11564_v16 }
  0x1d   :  { %19573 = vst [vmem:[#allocation22_spill] sm:$0xff] %v11561_v15  ;;  %v11612_v34 = vsub.f32 %v111_v13, %v11577_v22  ;;  %v11615_v35 = vand.u32 4294901760, %v11575_v21  ;;  %v99_v36 = vld [vmem:[#allocation8 + $0xa0] sm:$0xff]  ;;  %v11619_v37 = vand.u32 4294901760, %v379_v30  ;;  %v11621_v38 = vand.u32 4294901760, %v385_v31  ;;  %538 = vmatpush.msra.mxu3 %v11549_v9 }
  0x1e   :  { %19574 = vst [vmem:[#allocation23_spill] sm:$0xff] %v11564_v16  ;;  %v397_v39 = vsub.f32 %v11569_v19, %v11592_v26  ;;  %v11625_v40 = vand.u32 4294901760, %v103_v29  ;;  %v11629_v41 = vsub.f32 %v107_v18, %v11597_v28  ;;  %v11632_v42 = vand.u32 4294901760, %v11595_v27  ;;  %v95_v43 = vld [vmem:[#allocation8 + $0x80] sm:$0xff]  ;;  %344 = vmatpush.msra.mxu0 %v11551_v10  ;;  %488 = vmatpush.msra.mxu2 %v11569_v19 }
  0x1f   :  { %19575 = vst [vmem:[#allocation24_spill] sm:$0xff] %v11566_v17  ;;  %381 = vmatpush.msra.mxu1 %v11619_v37  ;;  %v11636_v44 = vand.u32 4294901760, %v391_v32  ;;  %v403_v45 = vsub.f32 %v11572_v20, %v11608_v33  ;;  %v11640_v46 = vand.u32 4294901760, %v99_v36  ;;  %540 = vmatpush.msra.mxu3 %v11551_v10  ;;  %v409_v47 = vsub.f32 %v11575_v21, %v11615_v35  ;;  %v91_v49 = vld [vmem:[#allocation8 + $0x60] sm:$0xff] }
  0x20   :  { %19576 = vst [vmem:[#allocation25_spill] sm:$0xff] %v11569_v19  ;;  %v11647_v48 = vand.u32 4294901760, %v11612_v34  ;;  %346 = vmatpush.msra.mxu0 %v11553_v11  ;;  %v11651_v50 = vand.u32 4294901760, %v397_v39  ;;  %v11654_v51 = vsub.f32 %v103_v29, %v11625_v40  ;;  %v11656_v52 = vand.u32 4294901760, %v95_v43  ;;  %491 = vmatpush.msra.mxu2 %v11572_v20  ;;  %v87_v55 = vld [vmem:[#allocation8 + $0x40] sm:$0xff] }
  0x21   :  { %19577 = vst [vmem:[#allocation26_spill] sm:$0xff] %v11572_v20  ;;  %387 = vmatpush.msra.mxu1 %v11621_v38  ;;  %542 = vmatpush.msra.mxu3 %v11553_v11  ;;  %v415_v53 = vsub.f32 %v11595_v27, %v11632_v42  ;;  %v11663_v54 = vand.u32 4294901760, %v11629_v41  ;;  %v203_v56 = vld [vmem:[#allocation8 + $0x3e0] sm:$0xff]  ;;  %v11667_v57 = vand.u32 4294901760, %v403_v45  ;;  %v11670_v58 = vsub.f32 %v99_v36, %v11640_v46 }
  0x22   :  { %19578 = vst [vmem:[#allocation27_spill] sm:$0xff] %v11575_v21  ;;  %348 = vmatpush.msra.mxu0 %v11566_v17  ;;  %v11672_v59 = vand.u32 4294901760, %v91_v49  ;;  %v199_v60 = vld [vmem:[#allocation8 + $0x3c0] sm:$0xff]  ;;  %494 = vmatpush.msra.mxu2 %v11575_v21  ;;  %v11676_v61 = vand.u32 4294901760, %v409_v47  ;;  %v421_v62 = vsub.f32 %v11612_v34, %v11647_v48  ;;  %v11683_v0 = vsub.f32 %v95_v43, %v11656_v52 }
  0x23   :  { %19579 = vst [vmem:[#allocation28_spill] sm:$0xff] %v11577_v22  ;;  %393 = vmatpush.msra.mxu1 %v11636_v44  ;;  %544 = vmatpush.msra.mxu3 %v11566_v17  ;;  %v83_v63 = vld [vmem:[#allocation8 + $0x20] sm:$0xff]  ;;  %v11685_v1 = vand.u32 4294901760, %v87_v55  ;;  %v11688_v2 = vand.u32 4294901760, %v11654_v51  ;;  %v11690_v6 = vand.u32 4294901760, %v203_v56  ;;  %v11694_v8 = vand.u32 4294901760, %v415_v53 }
  0x24   :  { %19580 = vst [vmem:[#allocation29_spill] sm:$0xff] %v11582_v23  ;;  %350 = vmatpush.msra.mxu0 %v11577_v22  ;;  %v195_v7 = vld [vmem:[#allocation8 + $0x3a0] sm:$0xff]  ;;  %497 = vmatpush.msra.mxu2 %v11595_v27  ;;  %v427_v12 = vsub.f32 %v11629_v41, %v11663_v54  ;;  %v11698_v18 = vand.u32 4294901760, %v199_v60  ;;  %v11703_v29 = vsub.f32 %v91_v49, %v11672_v59  ;;  %v11705_v30 = vand.u32 4294901760, %v83_v63 }
  0x25   :  { %19581 = vst [vmem:[#allocation30_spill] sm:$0xff] %v11585_v24  ;;  %399 = vmatpush.msra.mxu1 %v11651_v50  ;;  %546 = vmatpush.msra.mxu3 %v11577_v22  ;;  %v79_v13 = vld [vmem:[#allocation8] sm:$0xff]  ;;  %v11708_v31 = vand.u32 4294901760, %v11670_v58  ;;  %v11711_v32 = vsub.f32 %v203_v56, %v11690_v6  ;;  %v11715_v39 = vand.u32 4294901760, %v421_v62  ;;  %v11717_v43 = vand.u32 4294901760, %v195_v7 }
  0x26   :  { %19582 = vst [vmem:[#allocation31_spill] sm:$0xff] %v11588_v25  ;;  %352 = vmatpush.msra.mxu0 %v11597_v28  ;;  %v191_v36 = vld [vmem:[#allocation8 + $0x380] sm:$0xff]  ;;  %500 = vmatpush.msra.mxu2 %v11612_v34  ;;  %v433_v45 = vsub.f32 %v11654_v51, %v11688_v2  ;;  %v11724_v47 = vsub.f32 %v87_v55, %v11685_v1  ;;  %v11726_v49 = vand.u32 4294901760, %v79_v13  ;;  %v11729_v53 = vand.u32 4294901760, %v11683_v0 }
  0x27   :  { %19583 = vst [vmem:[#allocation32_spill] sm:$0xff] %v11592_v26  ;;  %405 = vmatpush.msra.mxu1 %v11667_v57  ;;  %548 = vmatpush.msra.mxu3 %v11597_v28  ;;  %v187_v56 = vld [vmem:[#allocation8 + $0x360] sm:$0xff]  ;;  %v11733_v62 = vand.u32 4294901760, %v427_v12  ;;  %v439_v55 = vsub.f32 %v11670_v58, %v11708_v31  ;;  %v11751_v12 = vand.u32 4294901760, %v11703_v29 }
  0x28   :  { %19584 = vst [vmem:[#allocation33_spill] sm:$0xff] %v11595_v27  ;;  %354 = vmatpush.msra.mxu0 %v11625_v40  ;;  %503 = vmatpush.msra.mxu2 %v11629_v41  ;;  %v445_v27 = vsub.f32 %v11683_v0, %v11729_v53  ;;  %v179_v21 = vld [vmem:[#allocation8 + $0x320] sm:$0xff] }
  0x29   :  { %19585 = vst [vmem:[#allocation34_spill] sm:$0xff] %v11597_v28  ;;  %411 = vmatpush.msra.mxu1 %v11676_v61  ;;  %550 = vmatpush.msra.mxu3 %v11625_v40  ;;  %v171_v15 = vld [vmem:[#allocation8 + $0x2e0] sm:$0xff] }
  0x2a   :  { %19586 = vst [vmem:[#allocation35_spill] sm:$0xff] %v11608_v33  ;;  %356 = vmatpush.msra.mxu0 %v11640_v46  ;;  %506 = vmatpush.msra.mxu2 %v11654_v51  ;;  %v11805_v19 = vand.u32 4294901760, %v445_v27 }
  0x2b   :  { %19587 = vst [vmem:[#allocation36_spill] sm:$0xff] %v11612_v34  ;;  %417 = vmatpush.msra.mxu1 %v11694_v8  ;;  %v11745_v34 = vsub.f32 %v83_v63, %v11705_v30  ;;  %552 = vmatpush.msra.mxu3 %v11640_v46  ;;  %v11762_v63 = vand.u32 4294901760, %v433_v45 }
  0x2c   :  { %19588 = vst [vmem:[#allocation37_spill] sm:$0xff] %v11615_v35  ;;  %358 = vmatpush.msra.mxu0 %v11656_v52  ;;  %509 = vmatpush.msra.mxu2 %v11670_v58 }
  0x2d   :  { %19589 = vst [vmem:[#allocation38_spill] sm:$0xff] %v11619_v37  ;;  %423 = vmatpush.msra.mxu1 %v11715_v39  ;;  %554 = vmatpush.msra.mxu3 %v11656_v52  ;;  %v11791_v20 = vand.u32 4294901760, %v11745_v34  ;;  %v175_v37 = vld [vmem:[#allocation8 + $0x300] sm:$0xff] }
  0x2e   :  { %19590 = vst [vmem:[#allocation39_spill] sm:$0xff] %v11621_v38  ;;  %360 = vmatpush.msra.mxu0 %v11672_v59  ;;  %512 = vmatpush.msra.mxu2 %v11683_v0 }
  0x2f   :  { %19591 = vst [vmem:[#allocation40_spill] sm:$0xff] %v11625_v40  ;;  %429 = vmatpush.msra.mxu1 %v11733_v62  ;;  %556 = vmatpush.msra.mxu3 %v11672_v59 }
  0x30   :  { %19592 = vst [vmem:[#allocation41_spill] sm:$0xff] %v11629_v41  ;;  %v11748_v41 = vand.u32 4294901760, %v11711_v32  ;;  %362 = vmatpush.msra.mxu0 %v11685_v1  ;;  %515 = vmatpush.msra.mxu2 %v11703_v29 }
  0x31   :  { %19593 = vst [vmem:[#allocation42_spill] sm:$0xff] %v11632_v42  ;;  %435 = vmatpush.msra.mxu1 %v11762_v63  ;;  %558 = vmatpush.msra.mxu3 %v11685_v1 }
  0x32   :  { %19594 = vst [vmem:[#allocation43_spill] sm:$0xff] %v11636_v44  ;;  %v11767_v44 = vsub.f32 %v79_v13, %v11726_v49  ;;  %v11784_v13 = vand.u32 4294901760, %v439_v55  ;;  %v720_v38 = vsub.f32 %v11711_v32, %v11748_v41  ;;  %364 = vmatpush.msra.mxu0 %v11705_v30  ;;  %518 = vmatpush.msra.mxu2 %v11724_v47 }
  0x33   :  { %19595 = vst [vmem:[#allocation44_spill] sm:$0xff] %v11640_v46  ;;  %560 = vmatpush.msra.mxu3 %v11705_v30 }
  0x34   :  { %19596 = vst [vmem:[#allocation45_spill] sm:$0xff] %v11647_v48  ;;  %441 = vmatpush.msra.mxu1 %v11784_v13  ;;  %366 = vmatpush.msra.mxu0 %v11726_v49 }
  0x35   :  { %19597 = vst [vmem:[#allocation46_spill] sm:$0xff] %v11651_v50  ;;  %v11756_v50 = vsub.f32 %v195_v7, %v11717_v43  ;;  %521 = vmatpush.msra.mxu2 %v11745_v34  ;;  %562 = vmatpush.msra.mxu3 %v11726_v49 }
  0x36   :  { %19598 = vst [vmem:[#allocation47_spill] sm:$0xff] %v11654_v51  ;;  %v11770_v51 = vand.u32 4294901760, %v11724_v47  ;;  %447 = vmatpush.msra.mxu1 %v11805_v19  ;;  %573 = vmatpush.msrb.mxu0 %v11582_v23 }
  0x37   :  { %19599 = vst [vmem:[#allocation48_spill] sm:$0xff] %v11656_v52  ;;  %524 = vmatpush.msra.mxu2 %v11767_v44 }
  0x38   :  { %19600 = vst [vmem:[#allocation49_spill] sm:$0xff] %v11663_v54  ;;  %v457_v16 = vsub.f32 %v11724_v47, %v11770_v51  ;;  %577 = vmatpush.msrb.mxu0 %v11585_v24 }
  0x39   :  { %19601 = vst [vmem:[#allocation50_spill] sm:$0xff] %v11667_v57  ;;  %v11738_v57 = vand.u32 4294901760, %v191_v36  ;;  %677 = vmatpush.msrb.mxu2 %v11690_v6 }
  0x3a   :  { %19602 = vst [vmem:[#allocation51_spill] sm:$0xff] %v11670_v58  ;;  %v451_v58 = vsub.f32 %v11703_v29, %v11751_v12  ;;  %581 = vmatpush.msrb.mxu0 %v11588_v25 }
  0x3b   :  { %19603 = vst [vmem:[#allocation52_spill] sm:$0xff] %v11672_v59  ;;  %v11778_v45 = vsub.f32 %v191_v36, %v11738_v57  ;;  %v11796_v36 = vand.u32 4294901760, %v11756_v50  ;;  %v11826_v59 = vand.u32 4294901760, %v720_v38  ;;  %v11842_v38 = vand.u32 4294901760, %v171_v15  ;;  %679 = vmatpush.msrb.mxu2 %v11698_v18 }
  0x3c   :  { %19604 = vst [vmem:[#allocation53_spill] sm:$0xff] %v11676_v61  ;;  %v11736_v61 = vsub.f32 %v199_v60, %v11698_v18  ;;  %v183_v60 = vld [vmem:[#allocation8 + $0x340] sm:$0xff]  ;;  %585 = vmatpush.msrb.mxu0 %v11592_v26 }
  0x3d   :  { %19605 = vst [vmem:[#allocation54_spill] sm:$0xff] %v11683_v0  ;;  %v11810_v0 = vand.u32 4294901760, %v11767_v44  ;;  %v11817_v14 = vand.u32 4294901760, %v11778_v45  ;;  %722 = vmatpush.msrb.mxu3 %v11826_v59  ;;  %v11880_v23 = vsub.f32 %v171_v15, %v11842_v38  ;;  %681 = vmatpush.msrb.mxu2 %v11717_v43 }
  0x3e   :  { %19606 = vst [vmem:[#allocation55_spill] sm:$0xff] %v11685_v1  ;;  %v11775_v7 = vand.u32 4294901760, %v11736_v61  ;;  %589 = vmatpush.msrb.mxu0 %v11608_v33  ;;  %v75_v33 = vld [vmem:[#allocation2] sm:$0xff] }
  0x3f   :  { %19607 = vst [vmem:[#allocation56_spill] sm:$0xff] %v11688_v2  ;;  %683 = vmatpush.msrb.mxu2 %v11738_v57 }
  0x40   :  { %19608 = vst [vmem:[#allocation57_spill] sm:$0xff] %v11690_v6  ;;  %593 = vmatpush.msrb.mxu0 %v11615_v35  ;;  %v11966_v35 = vand.u32 4294901760, %v75_v33 }
  0x41   :  { %19609 = vst [vmem:[#allocation58_spill] sm:$0xff] %v11694_v8  ;;  %v11758_v8 = vand.u32 4294901760, %v187_v56 }
  0x42   :  { %19610 = vst [vmem:[#allocation59_spill] sm:$0xff] %v11698_v18  ;;  %597 = vmatpush.msrb.mxu0 %v11632_v42 }
  0x43   :  { %19611 = vst [vmem:[#allocation60_spill] sm:$0xff] %v11703_v29  ;;  %v11799_v55 = vsub.f32 %v187_v56, %v11758_v8  ;;  %v726_v56 = vsub.f32 %v11736_v61, %v11775_v7  ;;  %v11828_v29 = vand.u32 4294901760, %v451_v58  ;;  %v163_v58 = vld [vmem:[#allocation8 + $0x2a0] sm:$0xff]  ;;  %685 = vmatpush.msrb.mxu2 %v11758_v8 }
  0x44   :  { %19612 = vst [vmem:[#allocation61_spill] sm:$0xff] %v11705_v30  ;;  %601 = vmatpush.msrb.mxu0 %v11647_v48 }
  0x45   :  { %19613 = vst [vmem:[#allocation62_spill] sm:$0xff] %v11708_v31  ;;  %v11837_v1 = vand.u32 4294901760, %v11799_v55  ;;  %453 = vmatpush.msra.mxu1 %v11828_v29 }
  0x46   :  { %19614 = vst [vmem:[#allocation63_spill] sm:$0xff] %v11711_v32  ;;  %605 = vmatpush.msrb.mxu0 %v11663_v54 }
  0x47   :  { %19615 = vst [vmem:[#allocation64_spill] sm:$0xff] %v11715_v39  ;;  %v11780_v39 = vand.u32 4294901760, %v183_v60 }
  0x48   :  { %19616 = vst [vmem:[#allocation65_spill] sm:$0xff] %v11717_v43  ;;  %609 = vmatpush.msrb.mxu0 %v11688_v2 }
  0x49   :  { %19617 = vst [vmem:[#allocation66_spill] sm:$0xff] %v11724_v47  ;;  %v11820_v27 = vsub.f32 %v183_v60, %v11780_v39  ;;  %v732_v60 = vsub.f32 %v11756_v50, %v11796_v36  ;;  %v469_v47 = vsub.f32 %v11767_v44, %v11810_v0  ;;  %687 = vmatpush.msrb.mxu2 %v11780_v39 }
  0x4a   :  { %19618 = vst [vmem:[#allocation67_spill] sm:$0xff] %v11726_v49  ;;  %v159_v49 = vld [vmem:[#allocation8 + $0x280] sm:$0xff]  ;;  %613 = vmatpush.msrb.mxu0 %v11708_v31 }
  0x4b   :  { %19619 = vst [vmem:[#allocation68_spill] sm:$0xff] %v11729_v53  ;;  %v11898_v24 = vand.u32 4294901760, %v159_v49 }
  0x4c   :  { %19620 = vst [vmem:[#allocation69_spill] sm:$0xff] %v11733_v62  ;;  %v11801_v62 = vand.u32 4294901760, %v179_v21  ;;  %617 = vmatpush.msrb.mxu0 %v11729_v53 }
  0x4d   :  { %19621 = vst [vmem:[#allocation70_spill] sm:$0xff] %v11736_v61  ;;  %v11928_v25 = vsub.f32 %v159_v49, %v11898_v24 }
  0x4e   :  { %19622 = vst [vmem:[#allocation71_spill] sm:$0xff] %v11738_v57  ;;  %v11840_v61 = vsub.f32 %v179_v21, %v11801_v62  ;;  %v11854_v21 = vand.u32 4294901760, %v726_v56  ;;  %v11872_v56 = vand.u32 4294901760, %v732_v60  ;;  %v155_v60 = vld [vmem:[#allocation8 + $0x260] sm:$0xff]  ;;  %689 = vmatpush.msrb.mxu2 %v11801_v62  ;;  %621 = vmatpush.msrb.mxu0 %v11751_v12 }
  0x4f   :  { %19623 = vst [vmem:[#allocation72_spill] sm:$0xff] %v11745_v34 }
  0x50   :  { %19624 = vst [vmem:[#allocation73_spill] sm:$0xff] %v11748_v41  ;;  %v167_v41 = vld [vmem:[#allocation8 + $0x2c0] sm:$0xff]  ;;  %728 = vmatpush.msrb.mxu3 %v11854_v21  ;;  %625 = vmatpush.msrb.mxu0 %v11770_v51 }
  0x51   :  { %19625 = vst [vmem:[#allocation74_spill] sm:$0xff] %v11751_v12  ;;  %v11850_v30 = vand.u32 4294901760, %v167_v41 }
  0x52   :  { %19626 = vst [vmem:[#allocation75_spill] sm:$0xff] %v11756_v50  ;;  %v11859_v50 = vand.u32 4294901760, %v11820_v27  ;;  %734 = vmatpush.msrb.mxu3 %v11872_v56  ;;  %629 = vmatpush.msrb.mxu0 %v11791_v20 }
  0x53   :  { %19627 = vst [vmem:[#allocation76_spill] sm:$0xff] %v11758_v8 }
  0x54   :  { %19628 = vst [vmem:[#allocation77_spill] sm:$0xff] %v11762_v63  ;;  %v11822_v63 = vand.u32 4294901760, %v175_v37  ;;  %v750_v15 = vsub.f32 %v11820_v27, %v11859_v50  ;;  %633 = vmatpush.msrb.mxu0 %v11810_v0 }
  0x55   :  { %19629 = vst [vmem:[#allocation78_spill] sm:$0xff] %v11767_v44 }
  0x56   :  { %19630 = vst [vmem:[#allocation79_spill] sm:$0xff] %v11770_v51  ;;  %691 = vmatpush.msrb.mxu2 %v11822_v63 }
  0x57   :  { %19631 = vst [vmem:[#allocation80_spill] sm:$0xff] %v11775_v7  ;;  %v463_v7 = vsub.f32 %v11745_v34, %v11791_v20  ;;  %v11868_v34 = vand.u32 4294901760, %v163_v58 }
  0x58   :  { %19632 = vst [vmem:[#allocation81_spill] sm:$0xff] %v11778_v45  ;;  %693 = vmatpush.msrb.mxu2 %v11842_v38 }
  0x59   :  { %19633 = vst [vmem:[#allocation82_spill] sm:$0xff] %v11780_v39 }
  0x5a   :  { %19634 = vst [vmem:[#allocation83_spill] sm:$0xff] %v11784_v13  ;;  %v11846_v13 = vand.u32 4294901760, %v457_v16  ;;  %v11862_v16 = vsub.f32 %v175_v37, %v11822_v63  ;;  %v11877_v37 = vand.u32 4294901760, %v11840_v61  ;;  %695 = vmatpush.msrb.mxu2 %v11850_v30 }
  0x5b   :  { %19635 = vst [vmem:[#allocation84_spill] sm:$0xff] %v11791_v20  ;;  %v19707_v20 = vld [vmem:[#allocation61_spill] sm:$0xff] }
  0x5c   :  { %19636 = vst [vmem:[#allocation85_spill] sm:$0xff] %v11796_v36  ;;  %v738_v36 = vsub.f32 %v11778_v45, %v11817_v14  ;;  %459 = vmatpush.msra.mxu1 %v11846_v13  ;;  %697 = vmatpush.msrb.mxu2 %v11868_v34 }
  0x5d   :  { %19637 = vst [vmem:[#allocation86_spill] sm:$0xff] %v11799_v55 }
  0x5e   :  { %19638 = vst [vmem:[#allocation87_spill] sm:$0xff] %v11801_v62  ;;  %v11891_v44 = vand.u32 4294901760, %v738_v36  ;;  %699 = vmatpush.msrb.mxu2 %v11898_v24 }
  0x5f   :  { %19639 = vst [vmem:[#allocation88_spill] sm:$0xff] %v11805_v19  ;;  %v11866_v19 = vand.u32 4294901760, %v463_v7  ;;  %v11884_v7 = vand.u32 4294901760, %v469_v47  ;;  %v151_v47 = vld [vmem:[#allocation8 + $0x240] sm:$0xff] }
  0x60   :  { %19640 = vst [vmem:[#allocation89_spill] sm:$0xff] %v11810_v0  ;;  %740 = vmatpush.msrb.mxu3 %v11891_v44  ;;  %v19704_v0 = vld [vmem:[#allocation55_spill] sm:$0xff] }
  0x61   :  { %19641 = vst [vmem:[#allocation90_spill] sm:$0xff] %v11817_v14  ;;  %v744_v14 = vsub.f32 %v11799_v55, %v11837_v1  ;;  %465 = vmatpush.msra.mxu1 %v11866_v19 }
  0x62   :  { %19642 = vst [vmem:[#allocation91_spill] sm:$0xff] %v11820_v27 }
  0x63   :  { %19643 = vst [vmem:[#allocation92_spill] sm:$0xff] %v11822_v63  ;;  %v11907_v36 = vand.u32 4294901760, %v744_v14  ;;  %471 = vmatpush.msra.mxu1 %v11884_v7  ;;  %v11923_v14 = vand.u32 4294901760, %v750_v15 }
  0x64   :  { %19644 = vst [vmem:[#allocation93_spill] sm:$0xff] %v11826_v59  ;;  %v11896_v59 = vand.u32 4294901760, %v11862_v16  ;;  %473 = vmatmul.f32.vlgmr.msra.gmra.mxu1 %v11966_v35 }
  0x65   :  { %19645 = vst [vmem:[#allocation94_spill] sm:$0xff] %v11828_v29  ;;  %v11887_v29 = vsub.f32 %v167_v41, %v11850_v30  ;;  %v11903_v41 = vsub.f32 %v163_v58, %v11868_v34  ;;  %640 = vmatpush.msrb.mxu1 %v11543_v3  ;;  %746 = vmatpush.msrb.mxu3 %v11907_v36 }
  0x66   :  { %19646 = vst [vmem:[#allocation95_spill] sm:$0xff] %v11837_v1 }
  0x67   :  { %19647 = vst [vmem:[#allocation96_spill] sm:$0xff] %v11840_v61  ;;  %v11919_v58 = vand.u32 4294901760, %v11887_v29  ;;  %v11935_v26 = vand.u32 4294901760, %v11903_v41  ;;  %642 = vmatpush.msrb.mxu1 %v11545_v4  ;;  %752 = vmatpush.msrb.mxu3 %v11923_v14 }
  0x68   :  { %19648 = vst [vmem:[#allocation97_spill] sm:$0xff] %v11842_v38 }
  0x69   :  { %19649 = vst [vmem:[#allocation98_spill] sm:$0xff] %v11846_v13  ;;  %v756_v13 = vsub.f32 %v11840_v61, %v11877_v37  ;;  %v774_v3 = vsub.f32 %v11887_v29, %v11919_v58  ;;  %644 = vmatpush.msrb.mxu1 %v11547_v5 }
  0x6a   :  { %19650 = vst [vmem:[#allocation99_spill] sm:$0xff] %v11850_v30 }
  0x6b   :  { %19651 = vst [vmem:[#allocation100_spill] sm:$0xff] %v11854_v21  ;;  %v11912_v21 = vand.u32 4294901760, %v11880_v23  ;;  %v11939_v15 = vand.u32 4294901760, %v756_v13  ;;  %646 = vmatpush.msrb.mxu1 %v11549_v9  ;;  %v311_v9 = vld [vmem:[#allocation8 + $0x740] sm:$0xff] }
  0x6c   :  { %19652 = vst [vmem:[#allocation101_spill] sm:$0xff] %v11859_v50  ;;  %v11914_v50 = vand.u32 4294901760, %v155_v60 }
  0x6d   :  { %19653 = vst [vmem:[#allocation102_spill] sm:$0xff] %v11862_v16  ;;  %v768_v49 = vsub.f32 %v11880_v23, %v11912_v21  ;;  %758 = vmatpush.msrb.mxu3 %v11939_v15  ;;  %648 = vmatpush.msrb.mxu1 %v11551_v10 }
  0x6e   :  { %19654 = vst [vmem:[#allocation103_spill] sm:$0xff] %v11866_v19  ;;  %v762_v19 = vsub.f32 %v11862_v16, %v11896_v59  ;;  %701 = vmatpush.msrb.mxu2 %v11914_v50 }
  0x6f   :  { %19655 = vst [vmem:[#allocation104_spill] sm:$0xff] %v11868_v34  ;;  %650 = vmatpush.msrb.mxu1 %v11553_v11 }
  0x70   :  { %19656 = vst [vmem:[#allocation105_spill] sm:$0xff] %v11872_v56  ;;  %v147_v56 = vld [vmem:[#allocation8 + $0x220] sm:$0xff]  ;;  %v11954_v13 = vand.u32 4294901760, %v762_v19  ;;  %v11970_v19 = vand.u32 4294901760, %v768_v49 }
  0x71   :  { %19657 = vst [vmem:[#allocation106_spill] sm:$0xff] %v11877_v37  ;;  %v11930_v37 = vand.u32 4294901760, %v151_v47  ;;  %652 = vmatpush.msrb.mxu1 %v11566_v17 }
  0x72   :  { %19658 = vst [vmem:[#allocation107_spill] sm:$0xff] %v11880_v23  ;;  %764 = vmatpush.msrb.mxu3 %v11954_v13 }
  0x73   :  { %19659 = vst [vmem:[#allocation108_spill] sm:$0xff] %v11884_v7  ;;  %v11944_v7 = vsub.f32 %v155_v60, %v11914_v50  ;;  %v11960_v60 = vsub.f32 %v151_v47, %v11930_v37  ;;  %654 = vmatpush.msrb.mxu1 %v11577_v22  ;;  %703 = vmatpush.msrb.mxu2 %v11930_v37  ;;  %v315_v22 = vld [vmem:[#allocation8 + $0x760] sm:$0xff] }
  0x74   :  { %19660 = vst [vmem:[#allocation109_spill] sm:$0xff] %v11887_v29  ;;  %770 = vmatpush.msrb.mxu3 %v11970_v19 }
  0x75   :  { %19661 = vst [vmem:[#allocation110_spill] sm:$0xff] %v11891_v44  ;;  %v143_v44 = vld [vmem:[#allocation8 + $0x200] sm:$0xff]  ;;  %v11975_v47 = vand.u32 4294901760, %v11944_v7  ;;  %v11989_v42 = vand.u32 4294901760, %v11960_v60  ;;  %656 = vmatpush.msrb.mxu1 %v11597_v28 }
  0x76   :  { %19662 = vst [vmem:[#allocation111_spill] sm:$0xff] %v11896_v59  ;;  %v11946_v59 = vand.u32 4294901760, %v147_v56 }
  0x77   :  { %19663 = vst [vmem:[#allocation112_spill] sm:$0xff] %v11898_v24  ;;  %658 = vmatpush.msrb.mxu1 %v11625_v40 }
  0x78   :  { %19664 = vst [vmem:[#allocation113_spill] sm:$0xff] %v11903_v41  ;;  %v11978_v4 = vsub.f32 %v147_v56, %v11946_v59  ;;  %v11997_v56 = vsub.f32 %v75_v33, %v11966_v35  ;;  %705 = vmatpush.msrb.mxu2 %v11946_v59 }
  0x79   :  { %19665 = vst [vmem:[#allocation114_spill] sm:$0xff] %v11907_v36  ;;  %v11957_v36 = vand.u32 4294901760, %v11928_v25  ;;  %660 = vmatpush.msrb.mxu1 %v11640_v46 }
  0x7a   :  { %19666 = vst [vmem:[#allocation115_spill] sm:$0xff] %v11912_v21  ;;  %v11962_v21 = vand.u32 4294901760, %v143_v44  ;;  %v12006_v48 = vand.u32 4294901760, %v11978_v4  ;;  %v12022_v2 = vand.u32 4294901760, %v11997_v56  ;;  %527 = vmatmul.f32.vlgmr.msra.gmra.mxu2 %v11997_v56 }
  0x7b   :  { %19667 = vst [vmem:[#allocation116_spill] sm:$0xff] %v11914_v50  ;;  %v786_v49 = vsub.f32 %v11928_v25, %v11957_v36  ;;  %662 = vmatpush.msrb.mxu1 %v11656_v52 }
  0x7c   :  { %19668 = vst [vmem:[#allocation117_spill] sm:$0xff] %v11919_v58  ;;  %v11992_v5 = vsub.f32 %v143_v44, %v11962_v21  ;;  %v798_v44 = vsub.f32 %v11960_v60, %v11989_v42  ;;  %566 = vmatmul.f32.vlgmr.msra.gmra.mxu3 %v12022_v2  ;;  %707 = vmatpush.msrb.mxu2 %v11962_v21 }
  0x7d   :  { %19669 = vst [vmem:[#allocation118_spill] sm:$0xff] %v11923_v14  ;;  %v780_v14 = vsub.f32 %v11903_v41, %v11935_v26  ;;  %v12012_v33 = vand.u32 4294901760, %v786_v49  ;;  %v804_v49 = vsub.f32 %v11978_v4, %v12006_v48 }
  0x7e   :  { %19670 = vst [vmem:[#allocation119_spill] sm:$0xff] %v11928_v25  ;;  %v12034_v31 = vand.u32 4294901760, %v798_v44 }
  0x7f   :  { %19671 = vst [vmem:[#allocation120_spill] sm:$0xff] %v11930_v37  ;;  %v12046_v53 = vand.u32 4294901760, %v804_v49  ;;  %v19702_v49 = vld [vmem:[#allocation70_spill] sm:$0xff] }
  0x80   :  { %19672 = vst [vmem:[#allocation121_spill] sm:$0xff] %v11935_v26 }
  0x81   :  { %19673 = vst [vmem:[#allocation122_spill] sm:$0xff] %v11939_v15  ;;  %v11984_v15 = vand.u32 4294901760, %v774_v3  ;;  %v12001_v3 = vand.u32 4294901760, %v780_v14  ;;  %v12017_v14 = vand.u32 4294901760, %v11992_v5 }
  0x82   :  { %19674 = vst [vmem:[#allocation123_spill] sm:$0xff] %v11944_v7 }
  0x83   :  { %19675 = vst [vmem:[#allocation124_spill] sm:$0xff] %v11946_v59  ;;  %776 = vmatpush.msrb.mxu3 %v11984_v15  ;;  %v810_v54 = vsub.f32 %v11992_v5, %v12017_v14 }
  0x84   :  { %19676 = vst [vmem:[#allocation125_spill] sm:$0xff] %v11954_v13  ;;  %v792_v13 = vsub.f32 %v11944_v7, %v11975_v47 }
  0x85   :  { %19677 = vst [vmem:[#allocation126_spill] sm:$0xff] %v11957_v36  ;;  %782 = vmatpush.msrb.mxu3 %v12001_v3  ;;  %v12052_v44 = vand.u32 4294901760, %v810_v54 }
  0x86   :  { %19678 = vst [vmem:[#allocation127_spill] sm:$0xff] %v11960_v60 }
  0x87   :  { %19679 = vst [vmem:[#allocation128_spill] sm:$0xff] %v11962_v21  ;;  %788 = vmatpush.msrb.mxu3 %v12012_v33 }
  0x88   :  { %19680 = vst [vmem:[#allocation129_spill] sm:$0xff] %v11966_v35 }
  0x89   :  { %19681 = vst [vmem:[#allocation130_spill] sm:$0xff] %v11970_v19  ;;  %v76_v19 = vld [vmem:[#allocation2 + $0x8] sm:$0xff] }
  0x8a   :  { %19682 = vst [vmem:[#allocation131_spill] sm:$0xff] %v11975_v47 }
  0x8b   :  { %19683 = vst [vmem:[#allocation132_spill] sm:$0xff] %v11978_v4 }
  0x8c   :  { %19684 = vst [vmem:[#allocation133_spill] sm:$0xff] %v11984_v15  ;;  %v12026_v15 = vand.u32 4294901760, %v792_v13  ;;  %v370_v13 = vsub.f32 %v11997_v56, %v12022_v2 }
  0x8d   :  { %19685 = vst [vmem:[#allocation134_spill] sm:$0xff] %v11989_v42 }
  0x8e   :  { %19686 = vst [vmem:[#allocation135_spill] sm:$0xff] %v11992_v5  ;;  %794 = vmatpush.msrb.mxu3 %v12026_v15  ;;  %v12056_v12 = vand.u32 4294901760, %v370_v13  ;;  %v19703_v13 = vld [vmem:[#allocation73_spill] sm:$0xff] }
  0x8f   :  { %19687 = vst [vmem:[#allocation136_spill] sm:$0xff] %v11997_v56  ;;  %914 = vmatpush.msra.mxu2 %v19703_v13  ;;  %v19708_v13 = vld [vmem:[#allocation85_spill] sm:$0xff]  ;;  %v12412_v56 = vand.u32 4294901760, %v311_v9 }
  0x90   :  { %19688 = vst [vmem:[#allocation137_spill] sm:$0xff] %v12001_v3  ;;  %v12042_v3 = vand.u32 4294901760, %v76_v19  ;;  %800 = vmatpush.msrb.mxu3 %v12034_v31  ;;  %372 = vmatmul.f32.vlgmr.msra.gmra.mxu0 %v12056_v12 }
  0x91   :  { %19689 = vst [vmem:[#allocation138_spill] sm:$0xff] %v12006_v48  ;;  %820 = vmatpush.msra.mxu0 %v11711_v32  ;;  %v19705_v32 = vld [vmem:[#allocation75_spill] sm:$0xff] }
  0x92   :  { %19690 = vst [vmem:[#allocation139_spill] sm:$0xff] %v12012_v33  ;;  %806 = vmatpush.msrb.mxu3 %v12046_v53 }
  0x93   :  { %19691 = vst [vmem:[#allocation140_spill] sm:$0xff] %v12017_v14  ;;  %823 = vmatpush.msra.mxu0 %v19702_v49 }
  0x94   :  { %19692 = vst [vmem:[#allocation141_spill] sm:$0xff] %v12022_v2  ;;  %812 = vmatpush.msrb.mxu3 %v12052_v44  ;;  %v303_v2 = vld [vmem:[#allocation8 + $0x700] sm:$0xff] }
  0x95   :  { %19693 = vst [vmem:[#allocation142_spill] sm:$0xff] %v12026_v15  ;;  %v12059_v15 = vsub.f32 %v76_v19, %v12042_v3  ;;  %v19701_v19 = vld [vmem:[#allocation52_spill] sm:$0xff]  ;;  %826 = vmatpush.msra.mxu0 %v19705_v32  ;;  %814 = vmatmul.f32.vlgmr.msrb.gmra.mxu3 %v12042_v3 }
  0x96   :  { %19694 = vst [vmem:[#allocation143_spill] sm:$0xff] %v12034_v31  ;;  %981 = vmatpush.msra.mxu3 %v11690_v6  ;;  %664 = vmatpush.msrb.mxu1 %v19701_v19  ;;  %v19710_v31 = vld [vmem:[#allocation67_spill] sm:$0xff] }
  0x97   :  { %19695 = vst [vmem:[#allocation144_spill] sm:$0xff] %v12042_v3  ;;  %v12070_v54 = vand.u32 4294901760, %v12059_v15  ;;  %829 = vmatpush.msra.mxu0 %v11778_v45  ;;  %v231_v45 = vld [vmem:[#allocation8 + $0x4c0] sm:$0xff] }
  0x98   :  { %19696 = vst [vmem:[#allocation145_spill] sm:$0xff] %v12046_v53  ;;  %983 = vmatpush.msra.mxu3 %v11698_v18  ;;  %666 = vmatpush.msrb.mxu1 %v19704_v0  ;;  %v19706_v53 = vld [vmem:[#allocation80_spill] sm:$0xff]  ;;  %v12238_v33 = vand.u32 4294901760, %v231_v45 }
  0x99   :  { %19697 = vst [vmem:[#allocation146_spill] sm:$0xff] %v12052_v44  ;;  %v711_v44 = vsub.f32 %v12059_v15, %v12070_v54  ;;  %918 = vmatpush.msra.mxu2 %v19706_v53  ;;  %832 = vmatpush.msra.mxu0 %v11799_v55  ;;  %v19711_v53 = vld [vmem:[#allocation90_spill] sm:$0xff]  ;;  %v235_v55 = vld [vmem:[#allocation8 + $0x4e0] sm:$0xff] }
  0x9a   :  { %19698 = vst [vmem:[#allocation147_spill] sm:$0xff] %v12056_v12  ;;  %985 = vmatpush.msra.mxu3 %v11717_v43  ;;  %668 = vmatpush.msrb.mxu1 %v19707_v20  ;;  %v211_v20 = vld [vmem:[#allocation8 + $0x420] sm:$0xff] }
  0x9b   :  { %19699 = vst [vmem:[#allocation148_spill] sm:$0xff] %v12059_v15  ;;  %922 = vmatpush.msra.mxu2 %v19708_v13  ;;  %v12090_v49 = vand.u32 4294901760, %v711_v44  ;;  %835 = vmatpush.msra.mxu0 %v11820_v27  ;;  %v19712_v44 = vld [vmem:[#allocation101_spill] sm:$0xff] }
  0x9c   :  { %19700 = vst [vmem:[#allocation149_spill] sm:$0xff] %v12070_v54  ;;  %987 = vmatpush.msra.mxu3 %v11738_v57  ;;  %670 = vmatpush.msrb.mxu1 %v19710_v31 }
  0x9d   :  { %19709 = vst [vmem:[#allocation150_spill] sm:$0xff] %v12090_v49  ;;  %926 = vmatpush.msra.mxu2 %v19711_v53  ;;  %635 = vmatmul.f32.vlgmr.msrb.gmra.mxu0 %v11966_v35 }
  0x9e   :  { %873 = vmatpush.msra.mxu1 %v11690_v6  ;;  %989 = vmatpush.msra.mxu3 %v11758_v8  ;;  %19741 = vst [vmem:[#allocation176_spill] sm:$0xff] %v12238_v33 }
  0x9f   :  { %713 = vmatmul.f32.vlgmr.msrb.gmra.mxu2 %v12090_v49  ;;  %838 = vmatpush.msra.mxu0 %v11840_v61  ;;  %v19714_v61 = vld [vmem:[#allocation111_spill] sm:$0xff]  ;;  %19787 = vst [vmem:[#allocation222_spill] sm:$0xff] %v12412_v56 }
  0xa0   :  { %875 = vmatpush.msra.mxu1 %v11698_v18  ;;  %930 = vmatpush.msra.mxu2 %v11837_v1  ;;  %v19713_v1 = vld [vmem:[#allocation106_spill] sm:$0xff] }
  0xa1   :  { %991 = vmatpush.msra.mxu3 %v11780_v39  ;;  %672 = vmatmul.f32.vlgmr.msrb.gmra.mxu1 %v11966_v35 }
  0xa2   :  { %877 = vmatpush.msra.mxu1 %v11717_v43  ;;  %934 = vmatpush.msra.mxu2 %v19712_v44  ;;  %v19715_v44 = vld [vmem:[#allocation115_spill] sm:$0xff] }
  0xa3   :  { %993 = vmatpush.msra.mxu3 %v11801_v62  ;;  %841 = vmatpush.msra.mxu0 %v11862_v16  ;;  %v239_v16 = vld [vmem:[#allocation8 + $0x500] sm:$0xff] }
  0xa4   :  { %879 = vmatpush.msra.mxu1 %v11738_v57  ;;  %938 = vmatpush.msra.mxu2 %v19713_v1  ;;  %v267_v1 = vld [vmem:[#allocation8 + $0x5e0] sm:$0xff]  ;;  %v12206_v13 = vand.u32 4294901760, %v239_v16 }
  0xa5   :  { %995 = vmatpush.msra.mxu3 %v11822_v63  ;;  %844 = vmatpush.msra.mxu0 %v11880_v23  ;;  %v243_v23 = vld [vmem:[#allocation8 + $0x520] sm:$0xff] }
  0xa6   :  { %881 = vmatpush.msra.mxu1 %v11758_v8  ;;  %942 = vmatpush.msra.mxu2 %v19714_v61  ;;  %v251_v61 = vld [vmem:[#allocation8 + $0x560] sm:$0xff]  ;;  %v12189_v27 = vand.u32 4294901760, %v243_v23  ;;  %19733 = vst [vmem:[#allocation168_spill] sm:$0xff] %v12206_v13 }
  0xa7   :  { %997 = vmatpush.msra.mxu3 %v11842_v38  ;;  %847 = vmatpush.msra.mxu0 %v11887_v29  ;;  %v263_v29 = vld [vmem:[#allocation8 + $0x5c0] sm:$0xff] }
  0xa8   :  { %883 = vmatpush.msra.mxu1 %v11780_v39  ;;  %946 = vmatpush.msra.mxu2 %v19715_v44  ;;  %v12130_v44 = vand.u32 4294901760, %v267_v1  ;;  %19729 = vst [vmem:[#allocation164_spill] sm:$0xff] %v12189_v27 }
  0xa9   :  { %999 = vmatpush.msra.mxu3 %v11850_v30  ;;  %850 = vmatpush.msra.mxu0 %v11903_v41  ;;  %v259_v41 = vld [vmem:[#allocation8 + $0x5a0] sm:$0xff] }
  0xaa   :  { %885 = vmatpush.msra.mxu1 %v11801_v62  ;;  %950 = vmatpush.msra.mxu2 %v11919_v58  ;;  %19716 = vst [vmem:[#allocation151_spill] sm:$0xff] %v12130_v44  ;;  %v12136_v58 = vand.u32 4294901760, %v263_v29 }
  0xab   :  { %1001 = vmatpush.msra.mxu3 %v11868_v34  ;;  %853 = vmatpush.msra.mxu0 %v11928_v25  ;;  %v255_v25 = vld [vmem:[#allocation8 + $0x580] sm:$0xff] }
  0xac   :  { %887 = vmatpush.msra.mxu1 %v11822_v63  ;;  %954 = vmatpush.msra.mxu2 %v11935_v26  ;;  %19717 = vst [vmem:[#allocation152_spill] sm:$0xff] %v12136_v58  ;;  %v12145_v26 = vand.u32 4294901760, %v259_v41 }
  0xad   :  { %1003 = vmatpush.msra.mxu3 %v11898_v24  ;;  %856 = vmatpush.msra.mxu0 %v11944_v7  ;;  %v12143_v7 = vsub.f32 %v267_v1, %v12130_v44  ;;  %v12158_v1 = vand.u32 4294901760, %v251_v61 }
  0xae   :  { %889 = vmatpush.msra.mxu1 %v11842_v38  ;;  %958 = vmatpush.msra.mxu2 %v11957_v36  ;;  %19719 = vst [vmem:[#allocation154_spill] sm:$0xff] %v12145_v26  ;;  %v12149_v36 = vand.u32 4294901760, %v255_v25 }
  0xaf   :  { %1005 = vmatpush.msra.mxu3 %v11914_v50  ;;  %859 = vmatpush.msra.mxu0 %v11960_v60  ;;  %19718 = vst [vmem:[#allocation153_spill] sm:$0xff] %v12143_v7  ;;  %v247_v60 = vld [vmem:[#allocation8 + $0x540] sm:$0xff] }
  0xb0   :  { %891 = vmatpush.msra.mxu1 %v11850_v30  ;;  %962 = vmatpush.msra.mxu2 %v11975_v47  ;;  %19720 = vst [vmem:[#allocation155_spill] sm:$0xff] %v12149_v36  ;;  %v12154_v47 = vsub.f32 %v263_v29, %v12136_v58  ;;  %v12171_v29 = vsub.f32 %v255_v25, %v12149_v36  ;;  %v77_v30 = vld [vmem:[#allocation2 + $0x10] sm:$0xff] }
  0xb1   :  { %1007 = vmatpush.msra.mxu3 %v11930_v37  ;;  %862 = vmatpush.msra.mxu0 %v11978_v4  ;;  %19722 = vst [vmem:[#allocation157_spill] sm:$0xff] %v12158_v1  ;;  %v12163_v4 = vsub.f32 %v259_v41, %v12145_v26  ;;  %v12272_v8 = vand.u32 4294901760, %v77_v30 }
  0xb2   :  { %893 = vmatpush.msra.mxu1 %v11868_v34  ;;  %966 = vmatpush.msra.mxu2 %v11989_v42  ;;  %19721 = vst [vmem:[#allocation156_spill] sm:$0xff] %v12154_v47  ;;  %v12166_v42 = vand.u32 4294901760, %v12143_v7  ;;  %v12178_v41 = vand.u32 4294901760, %v12154_v47  ;;  %v223_v34 = vld [vmem:[#allocation8 + $0x480] sm:$0xff] }
  0xb3   :  { %1009 = vmatpush.msra.mxu3 %v11946_v59  ;;  %865 = vmatpush.msra.mxu0 %v11992_v5  ;;  %19723 = vst [vmem:[#allocation158_spill] sm:$0xff] %v12163_v4  ;;  %v12173_v5 = vand.u32 4294901760, %v247_v60  ;;  %v12192_v53 = vand.u32 4294901760, %v12163_v4  ;;  %v12267_v62 = vand.u32 4294901760, %v223_v34 }
  0xb4   :  { %895 = vmatpush.msra.mxu1 %v11898_v24  ;;  %970 = vmatpush.msra.mxu2 %v12006_v48  ;;  %19724 = vst [vmem:[#allocation159_spill] sm:$0xff] %v12166_v42  ;;  %v12183_v48 = vsub.f32 %v251_v61, %v12158_v1  ;;  %v1061_v25 = vsub.f32 %v12143_v7, %v12166_v42 }
  0xb5   :  { %1011 = vmatpush.msra.mxu3 %v11962_v21  ;;  %868 = vmatmul.f32.vlgmr.msra.gmra.mxu0 %v12059_v15  ;;  %19725 = vst [vmem:[#allocation160_spill] sm:$0xff] %v12171_v29  ;;  %v12197_v61 = vsub.f32 %v247_v60, %v12173_v5  ;;  %v12303_v6 = vsub.f32 %v223_v34, %v12267_v62 }
  0xb6   :  { %19726 = vst [vmem:[#allocation161_spill] sm:$0xff] %v12173_v5  ;;  %1018 = vmatpush.msrb.mxu0 %v12130_v44  ;;  %897 = vmatpush.msra.mxu1 %v11914_v50  ;;  %v12211_v60 = vand.u32 4294901760, %v12183_v48  ;;  %v12215_v32 = vand.u32 4294901760, %v1061_v25  ;;  %v12222_v50 = vand.u32 4294901760, %v235_v55  ;;  %v227_v25 = vld [vmem:[#allocation8 + $0x4a0] sm:$0xff] }
  0xb7   :  { %1214 = vmatpush.msrb.mxu3 %v12130_v44  ;;  %19727 = vst [vmem:[#allocation162_spill] sm:$0xff] %v12178_v41  ;;  %974 = vmatpush.msra.mxu2 %v12017_v14  ;;  %v12200_v14 = vand.u32 4294901760, %v12171_v29  ;;  %v12229_v51 = vand.u32 4294901760, %v12197_v61  ;;  %v12346_v28 = vand.u32 4294901760, %v12303_v6 }
  0xb8   :  { %19728 = vst [vmem:[#allocation163_spill] sm:$0xff] %v12183_v48  ;;  %1020 = vmatpush.msrb.mxu0 %v12136_v58  ;;  %899 = vmatpush.msra.mxu1 %v11930_v37  ;;  %v1073_v37 = vsub.f32 %v12163_v4, %v12192_v53 }
  0xb9   :  { %1216 = vmatpush.msrb.mxu3 %v12136_v58  ;;  %1161 = vmatpush.msrb.mxu2 %v12143_v7  ;;  %19730 = vst [vmem:[#allocation165_spill] sm:$0xff] %v12192_v53  ;;  %v1067_v7 = vsub.f32 %v12154_v47, %v12178_v41  ;;  %v1127_v15 = vsub.f32 %v12303_v6, %v12346_v28 }
  0xba   :  { %976 = vmatmul.f32.vlgmr.msra.gmra.mxu2 %v12042_v3  ;;  %19731 = vst [vmem:[#allocation166_spill] sm:$0xff] %v12197_v61  ;;  %1022 = vmatpush.msrb.mxu0 %v12145_v26 }
  0xbb   :  { %19732 = vst [vmem:[#allocation167_spill] sm:$0xff] %v12200_v14  ;;  %1164 = vmatpush.msrb.mxu2 %v12154_v47  ;;  %1218 = vmatpush.msrb.mxu3 %v12145_v26  ;;  %v12220_v47 = vsub.f32 %v243_v23, %v12189_v27  ;;  %v12233_v24 = vand.u32 4294901760, %v1067_v7  ;;  %v12236_v23 = vsub.f32 %v239_v16, %v12206_v13  ;;  %v12246_v7 = vand.u32 4294901760, %v1073_v37  ;;  %v219_v37 = vld [vmem:[#allocation8 + $0x460] sm:$0xff] }
  0xbc   :  { %901 = vmatpush.msra.mxu1 %v11946_v59  ;;  %19734 = vst [vmem:[#allocation169_spill] sm:$0xff] %v12211_v60  ;;  %1013 = vmatmul.f32.vlgmr.msra.gmra.mxu3 %v12042_v3  ;;  %v1079_v59 = vsub.f32 %v12171_v29, %v12200_v14  ;;  %v12249_v16 = vsub.f32 %v235_v55, %v12222_v50  ;;  %v12287_v43 = vand.u32 4294901760, %v219_v37  ;;  %v307_v3 = vld [vmem:[#allocation8 + $0x720] sm:$0xff] }
  0xbd   :  { %1024 = vmatpush.msrb.mxu0 %v12149_v36  ;;  %19735 = vst [vmem:[#allocation170_spill] sm:$0xff] %v12215_v32  ;;  %1167 = vmatpush.msrb.mxu2 %v12163_v4  ;;  %v1085_v4 = vsub.f32 %v12183_v48, %v12211_v60  ;;  %v12254_v38 = vand.u32 4294901760, %v12220_v47  ;;  %v12265_v55 = vsub.f32 %v231_v45, %v12238_v33  ;;  %v12270_v39 = vand.u32 4294901760, %v12236_v23 }
  0xbe   :  { %19736 = vst [vmem:[#allocation171_spill] sm:$0xff] %v12220_v47  ;;  %1220 = vmatpush.msrb.mxu3 %v12149_v36  ;;  %903 = vmatpush.msra.mxu1 %v11962_v21  ;;  %v12251_v21 = vand.u32 4294901760, %v227_v25  ;;  %v12258_v63 = vand.u32 4294901760, %v1079_v59  ;;  %v327_v59 = vld [vmem:[#allocation8 + $0x7c0] sm:$0xff]  ;;  %v12290_v18 = vand.u32 4294901760, %v12249_v16  ;;  %v12325_v19 = vsub.f32 %v219_v37, %v12287_v43 }
  0xbf   :  { %19737 = vst [vmem:[#allocation172_spill] sm:$0xff] %v12222_v50  ;;  %1026 = vmatpush.msrb.mxu0 %v12158_v1  ;;  %907 = vmatmul.f32.vlgmr.msra.gmra.mxu1 %v12070_v54  ;;  %v1097_v45 = vsub.f32 %v12220_v47, %v12254_v38  ;;  %v12306_v31 = vand.u32 4294901760, %v12265_v55  ;;  %v12424_v12 = vand.u32 4294901760, %v307_v3 }
  0xc0   :  { %19738 = vst [vmem:[#allocation173_spill] sm:$0xff] %v12229_v51  ;;  %1170 = vmatpush.msrb.mxu2 %v12171_v29  ;;  %1063 = vmatpush.msrb.mxu1 %v12215_v32  ;;  %v331_v29 = vld [vmem:[#allocation8 + $0x7e0] sm:$0xff]  ;;  %v1091_v32 = vsub.f32 %v12197_v61, %v12229_v51  ;;  %v12285_v57 = vsub.f32 %v227_v25, %v12251_v21 }
  0xc1   :  { %19739 = vst [vmem:[#allocation174_spill] sm:$0xff] %v12233_v24  ;;  %1222 = vmatpush.msrb.mxu3 %v12158_v1  ;;  %1028 = vmatpush.msrb.mxu0 %v12173_v5  ;;  %v1103_v25 = vsub.f32 %v12236_v23, %v12270_v39  ;;  %v12320_v34 = vand.u32 4294901760, %v1097_v45  ;;  %v1115_v40 = vsub.f32 %v12265_v55, %v12306_v31 }
  0xc2   :  { %19740 = vst [vmem:[#allocation175_spill] sm:$0xff] %v12236_v23  ;;  %1173 = vmatpush.msrb.mxu2 %v12183_v48  ;;  %1069 = vmatpush.msrb.mxu1 %v12233_v24  ;;  %v12276_v48 = vand.u32 4294901760, %v1085_v4  ;;  %v12278_v24 = vand.u32 4294901760, %v331_v29  ;;  %v12294_v4 = vand.u32 4294901760, %v1091_v32  ;;  %v323_v32 = vld [vmem:[#allocation8 + $0x7a0] sm:$0xff]  ;;  %v12328_v52 = vand.u32 4294901760, %v12285_v57 }
  0xc3   :  { %19742 = vst [vmem:[#allocation177_spill] sm:$0xff] %v12246_v7  ;;  %1224 = vmatpush.msrb.mxu3 %v12173_v5  ;;  %1030 = vmatpush.msrb.mxu0 %v12189_v27  ;;  %v12337_v46 = vand.u32 4294901760, %v323_v32  ;;  %v12341_v37 = vand.u32 4294901760, %v1103_v25  ;;  %v12385_v54 = vand.u32 4294901760, %v1115_v40 }
  0xc4   :  { %19743 = vst [vmem:[#allocation178_spill] sm:$0xff] %v12249_v16  ;;  %1176 = vmatpush.msrb.mxu2 %v12197_v61  ;;  %1075 = vmatpush.msrb.mxu1 %v12246_v7  ;;  %v215_v61 = vld [vmem:[#allocation8 + $0x440] sm:$0xff]  ;;  %v12296_v7 = vand.u32 4294901760, %v327_v59  ;;  %v12316_v0 = vsub.f32 %v331_v29, %v12278_v24  ;;  %v12332_v29 = vand.u32 4294901760, %v211_v20  ;;  %v1121_v11 = vsub.f32 %v12285_v57, %v12328_v52 }
  0xc5   :  { %19744 = vst [vmem:[#allocation179_spill] sm:$0xff] %v12251_v21  ;;  %1226 = vmatpush.msrb.mxu3 %v12189_v27  ;;  %1032 = vmatpush.msrb.mxu0 %v12206_v13 }
  0xc6   :  { %19745 = vst [vmem:[#allocation180_spill] sm:$0xff] %v12254_v38  ;;  %1179 = vmatpush.msrb.mxu2 %v12220_v47  ;;  %1081 = vmatpush.msrb.mxu1 %v12258_v63  ;;  %v12309_v47 = vsub.f32 %v77_v30, %v12272_v8  ;;  %v1109_v30 = vsub.f32 %v12249_v16, %v12290_v18  ;;  %v12405_v49 = vand.u32 4294901760, %v1121_v11 }
  0xc7   :  { %19746 = vst [vmem:[#allocation181_spill] sm:$0xff] %v12258_v63  ;;  %1228 = vmatpush.msrb.mxu3 %v12206_v13  ;;  %1034 = vmatpush.msrb.mxu0 %v12222_v50  ;;  %v12313_v63 = vand.u32 4294901760, %v215_v61  ;;  %v12335_v45 = vsub.f32 %v327_v59, %v12296_v7 }
  0xc8   :  { %19747 = vst [vmem:[#allocation182_spill] sm:$0xff] %v12265_v55  ;;  %1182 = vmatpush.msrb.mxu2 %v12236_v23  ;;  %1087 = vmatpush.msrb.mxu1 %v12276_v48  ;;  %v319_v23 = vld [vmem:[#allocation8 + $0x780] sm:$0xff]  ;;  %v12363_v17 = vand.u32 4294901760, %v1109_v30  ;;  %v12381_v30 = vsub.f32 %v323_v32, %v12337_v46 }
  0xc9   :  { %19748 = vst [vmem:[#allocation183_spill] sm:$0xff] %v12267_v62  ;;  %1230 = vmatpush.msrb.mxu3 %v12222_v50  ;;  %1036 = vmatpush.msrb.mxu0 %v12238_v33  ;;  %v12354_v59 = vsub.f32 %v215_v61, %v12313_v63  ;;  %v12359_v25 = vand.u32 4294901760, %v319_v23  ;;  %v12370_v61 = vand.u32 4294901760, %v12325_v19 }
  0xca   :  { %19749 = vst [vmem:[#allocation184_spill] sm:$0xff] %v12270_v39  ;;  %1185 = vmatpush.msrb.mxu2 %v12249_v16  ;;  %1093 = vmatpush.msrb.mxu1 %v12294_v4  ;;  %v12349_v16 = vand.u32 4294901760, %v12309_v47 }
  0xcb   :  { %19750 = vst [vmem:[#allocation185_spill] sm:$0xff] %v12272_v8  ;;  %1232 = vmatpush.msrb.mxu3 %v12238_v33  ;;  %1038 = vmatpush.msrb.mxu0 %v12251_v21  ;;  %v12401_v40 = vsub.f32 %v319_v23, %v12359_v25  ;;  %v1133_v35 = vsub.f32 %v12325_v19, %v12370_v61 }
  0xcc   :  { %19751 = vst [vmem:[#allocation186_spill] sm:$0xff] %v12276_v48  ;;  %v207_v48 = vld [vmem:[#allocation8 + $0x400] sm:$0xff]  ;;  %1188 = vmatpush.msrb.mxu2 %v12265_v55  ;;  %1099 = vmatpush.msrb.mxu1 %v12320_v34  ;;  %v12375_v55 = vsub.f32 %v211_v20, %v12332_v29  ;;  %v1052_v20 = vsub.f32 %v12309_v47, %v12349_v16 }
  0xcd   :  { %19752 = vst [vmem:[#allocation187_spill] sm:$0xff] %v12278_v24  ;;  %1234 = vmatpush.msrb.mxu3 %v12251_v21  ;;  %v12367_v10 = vand.u32 4294901760, %v207_v48  ;;  %1040 = vmatpush.msrb.mxu0 %v12267_v62 }
  0xce   :  { %19753 = vst [vmem:[#allocation188_spill] sm:$0xff] %v12285_v57  ;;  %1191 = vmatpush.msrb.mxu2 %v12285_v57  ;;  %1105 = vmatpush.msrb.mxu1 %v12341_v37  ;;  %v12391_v57 = vand.u32 4294901760, %v315_v22  ;;  %v12422_v11 = vand.u32 4294901760, %v12375_v55 }
  0xcf   :  { %19754 = vst [vmem:[#allocation189_spill] sm:$0xff] %v12287_v43  ;;  %1236 = vmatpush.msrb.mxu3 %v12267_v62  ;;  %1042 = vmatpush.msrb.mxu0 %v12287_v43 }
  0xd0   :  { %19755 = vst [vmem:[#allocation190_spill] sm:$0xff] %v12290_v18  ;;  %1194 = vmatpush.msrb.mxu2 %v12303_v6  ;;  %1111 = vmatpush.msrb.mxu1 %v12363_v17 }
  0xd1   :  { %19756 = vst [vmem:[#allocation191_spill] sm:$0xff] %v12294_v4  ;;  %v12357_v4 = vand.u32 4294901760, %v12316_v0  ;;  %1238 = vmatpush.msrb.mxu3 %v12287_v43  ;;  %1044 = vmatpush.msrb.mxu0 %v12313_v63 }
  0xd2   :  { %19757 = vst [vmem:[#allocation192_spill] sm:$0xff] %v12296_v7  ;;  %1197 = vmatpush.msrb.mxu2 %v12325_v19  ;;  %1117 = vmatpush.msrb.mxu1 %v12385_v54 }
  0xd3   :  { %19758 = vst [vmem:[#allocation193_spill] sm:$0xff] %v12303_v6  ;;  %v1402_v32 = vsub.f32 %v12316_v0, %v12357_v4  ;;  %v12410_v6 = vsub.f32 %v207_v48, %v12367_v10  ;;  %1240 = vmatpush.msrb.mxu3 %v12313_v63  ;;  %v12428_v48 = vand.u32 4294901760, %v1127_v15  ;;  %1046 = vmatpush.msrb.mxu0 %v12332_v29  ;;  %v299_v15 = vld [vmem:[#allocation8 + $0x6e0] sm:$0xff] }
  0xd4   :  { %19759 = vst [vmem:[#allocation194_spill] sm:$0xff] %v12306_v31  ;;  %1200 = vmatpush.msrb.mxu2 %v12354_v59  ;;  %1123 = vmatpush.msrb.mxu1 %v12405_v49 }
  0xd5   :  { %19760 = vst [vmem:[#allocation195_spill] sm:$0xff] %v12309_v47  ;;  %1242 = vmatpush.msrb.mxu3 %v12332_v29  ;;  %1048 = vmatpush.msrb.mxu0 %v12367_v10 }
  0xd6   :  { %19761 = vst [vmem:[#allocation196_spill] sm:$0xff] %v12313_v63  ;;  %v12444_v63 = vand.u32 4294901760, %v303_v2  ;;  %1203 = vmatpush.msrb.mxu2 %v12375_v55  ;;  %1129 = vmatpush.msrb.mxu1 %v12428_v48 }
  0xd7   :  { %19762 = vst [vmem:[#allocation197_spill] sm:$0xff] %v12316_v0  ;;  %1244 = vmatpush.msrb.mxu3 %v12367_v10  ;;  %v12472_v0 = vand.u32 4294901760, %v299_v15  ;;  %1255 = vmatpush.msra.mxu0 %v12166_v42 }
  0xd8   :  { %19763 = vst [vmem:[#allocation198_spill] sm:$0xff] %v12320_v34  ;;  %v12378_v34 = vand.u32 4294901760, %v12335_v45  ;;  %1206 = vmatpush.msrb.mxu2 %v12410_v6  ;;  %1248 = vmatmul.f32.vlgmr.msrb.gmra.mxu3 %v12349_v16 }
  0xd9   :  { %19764 = vst [vmem:[#allocation199_spill] sm:$0xff] %v12325_v19  ;;  %v12433_v19 = vsub.f32 %v315_v22, %v12391_v57  ;;  %v12448_v22 = vand.u32 4294901760, %v1133_v35  ;;  %v12465_v35 = vsub.f32 %v307_v3, %v12424_v12  ;;  %1259 = vmatpush.msra.mxu0 %v12178_v41  ;;  %1209 = vmatmul.f32.vlgmr.msrb.gmra.mxu2 %v12309_v47 }
  0xda   :  { %19765 = vst [vmem:[#allocation200_spill] sm:$0xff] %v12328_v52  ;;  %v1408_v23 = vsub.f32 %v12335_v45, %v12378_v34  ;;  %1359 = vmatpush.msra.mxu2 %v12278_v24 }
  0xdb   :  { %19766 = vst [vmem:[#allocation201_spill] sm:$0xff] %v12332_v29  ;;  %v295_v29 = vld [vmem:[#allocation8 + $0x6c0] sm:$0xff]  ;;  %1135 = vmatpush.msrb.mxu1 %v12448_v22  ;;  %v12499_v42 = vand.u32 4294901760, %v12465_v35  ;;  %1263 = vmatpush.msra.mxu0 %v12192_v53 }
  0xdc   :  { %19767 = vst [vmem:[#allocation202_spill] sm:$0xff] %v12335_v45  ;;  %1361 = vmatpush.msra.mxu2 %v12296_v7  ;;  %v279_v53 = vld [vmem:[#allocation8 + $0x640] sm:$0xff] }
  0xdd   :  { %19768 = vst [vmem:[#allocation203_spill] sm:$0xff] %v12337_v46  ;;  %1267 = vmatpush.msra.mxu0 %v12200_v14 }
  0xde   :  { %19769 = vst [vmem:[#allocation204_spill] sm:$0xff] %v12341_v37  ;;  %v12398_v37 = vand.u32 4294901760, %v12354_v59  ;;  %1363 = vmatpush.msra.mxu2 %v12337_v46 }
  0xdf   :  { %19770 = vst [vmem:[#allocation205_spill] sm:$0xff] %v12346_v28  ;;  %1271 = vmatpush.msra.mxu0 %v12211_v60 }
  0xe0   :  { %19771 = vst [vmem:[#allocation206_spill] sm:$0xff] %v12349_v16  ;;  %v1139_v45 = vsub.f32 %v12354_v59, %v12398_v37  ;;  %v12558_v16 = vand.u32 4294901760, %v279_v53  ;;  %1365 = vmatpush.msra.mxu2 %v12359_v25 }
  0xe1   :  { %19772 = vst [vmem:[#allocation207_spill] sm:$0xff] %v12354_v59  ;;  %v12458_v59 = vand.u32 4294901760, %v1408_v23  ;;  %1275 = vmatpush.msra.mxu0 %v12229_v51 }
  0xe2   :  { %19773 = vst [vmem:[#allocation208_spill] sm:$0xff] %v12357_v4  ;;  %v12430_v4 = vand.u32 4294901760, %v1052_v20  ;;  %v12451_v20 = vand.u32 4294901760, %v12410_v6  ;;  %v12476_v23 = vand.u32 4294901760, %v1139_v45  ;;  %1367 = vmatpush.msra.mxu2 %v12391_v57 }
  0xe3   :  { %19774 = vst [vmem:[#allocation209_spill] sm:$0xff] %v12359_v25  ;;  %1279 = vmatpush.msra.mxu0 %v12254_v38 }
  0xe4   :  { %19775 = vst [vmem:[#allocation210_spill] sm:$0xff] %v12363_v17  ;;  %v12419_v17 = vand.u32 4294901760, %v12381_v30  ;;  %1054 = vmatmul.f32.vlgmr.msrb.gmra.mxu0 %v12430_v4  ;;  %1141 = vmatpush.msrb.mxu1 %v12476_v23 }
  0xe5   :  { %19776 = vst [vmem:[#allocation211_spill] sm:$0xff] %v12367_v10  ;;  %v1151_v10 = vsub.f32 %v12410_v6, %v12451_v20  ;;  %1369 = vmatpush.msra.mxu2 %v12412_v56  ;;  %1283 = vmatpush.msra.mxu0 %v12270_v39 }
  0xe6   :  { %19777 = vst [vmem:[#allocation212_spill] sm:$0xff] %v12370_v61  ;;  %v1414_v43 = vsub.f32 %v12381_v30, %v12419_v17 }
  0xe7   :  { %19778 = vst [vmem:[#allocation213_spill] sm:$0xff] %v12375_v55  ;;  %v12519_v41 = vand.u32 4294901760, %v1151_v10  ;;  %1371 = vmatpush.msra.mxu2 %v12424_v12  ;;  %1287 = vmatpush.msra.mxu0 %v12290_v18 }
  0xe8   :  { %19779 = vst [vmem:[#allocation214_spill] sm:$0xff] %v12378_v34  ;;  %v12437_v34 = vand.u32 4294901760, %v1402_v32  ;;  %v12454_v32 = vsub.f32 %v311_v9, %v12412_v56  ;;  %v12470_v9 = vand.u32 4294901760, %v12433_v19  ;;  %v12494_v45 = vand.u32 4294901760, %v1414_v43 }
  0xe9   :  { %19780 = vst [vmem:[#allocation215_spill] sm:$0xff] %v12381_v30  ;;  %1373 = vmatpush.msra.mxu2 %v12444_v63  ;;  %1291 = vmatpush.msra.mxu0 %v12306_v31 }
  0xea   :  { %19781 = vst [vmem:[#allocation216_spill] sm:$0xff] %v12385_v54  ;;  %v12442_v54 = vand.u32 4294901760, %v12401_v40  ;;  %1404 = vmatpush.msra.mxu3 %v12437_v34 }
  0xeb   :  { %19782 = vst [vmem:[#allocation217_spill] sm:$0xff] %v12391_v57  ;;  %1375 = vmatpush.msra.mxu2 %v12472_v0  ;;  %1295 = vmatpush.msra.mxu0 %v12328_v52 }
  0xec   :  { %19783 = vst [vmem:[#allocation218_spill] sm:$0xff] %v12398_v37  ;;  %v1420_v3 = vsub.f32 %v12401_v40, %v12442_v54  ;;  %1410 = vmatpush.msra.mxu3 %v12458_v59 }
  0xed   :  { %19784 = vst [vmem:[#allocation219_spill] sm:$0xff] %v12401_v40  ;;  %1299 = vmatpush.msra.mxu0 %v12346_v28 }
  0xee   :  { %19785 = vst [vmem:[#allocation220_spill] sm:$0xff] %v12405_v49  ;;  %v1145_v49 = vsub.f32 %v12375_v55, %v12422_v11  ;;  %v12481_v55 = vsub.f32 %v303_v2, %v12444_v63  ;;  %v12512_v43 = vand.u32 4294901760, %v1420_v3  ;;  %1416 = vmatpush.msra.mxu3 %v12494_v45  ;;  %v1438_v3 = vsub.f32 %v12465_v35, %v12499_v42 }
  0xef   :  { %19786 = vst [vmem:[#allocation221_spill] sm:$0xff] %v12410_v6  ;;  %1303 = vmatpush.msra.mxu0 %v12370_v61 }
  0xf0   :  { %19788 = vst [vmem:[#allocation223_spill] sm:$0xff] %v12419_v17  ;;  %v12496_v2 = vand.u32 4294901760, %v1145_v49  ;;  %v12506_v17 = vsub.f32 %v299_v15, %v12472_v0  ;;  %v12515_v49 = vand.u32 4294901760, %v12481_v55  ;;  %1422 = vmatpush.msra.mxu3 %v12512_v43 }
  0xf1   :  { %19789 = vst [vmem:[#allocation224_spill] sm:$0xff] %v12422_v11  ;;  %1307 = vmatpush.msra.mxu0 %v12398_v37  ;;  %v100_v37 = vld [vmem:[#allocation8 + $0xa8] sm:$0xff] }
  0xf2   :  { %19790 = vst [vmem:[#allocation225_spill] sm:$0xff] %v12424_v12  ;;  %1147 = vmatpush.msrb.mxu1 %v12496_v2  ;;  %v12537_v47 = vand.u32 4294901760, %v12506_v17 }
  0xf3   :  { %19791 = vst [vmem:[#allocation226_spill] sm:$0xff] %v12428_v48  ;;  %v291_v48 = vld [vmem:[#allocation8 + $0x6a0] sm:$0xff]  ;;  %1311 = vmatpush.msra.mxu0 %v12422_v11  ;;  %v19853_v11 = vld [vmem:[#allocation189_spill] sm:$0xff] }
  0xf4   :  { %19792 = vst [vmem:[#allocation227_spill] sm:$0xff] %v12430_v4  ;;  %v12488_v4 = vand.u32 4294901760, %v12454_v32  ;;  %v12508_v6 = vand.u32 4294901760, %v291_v48  ;;  %1153 = vmatpush.msrb.mxu1 %v12519_v41 }
  0xf5   :  { %19793 = vst [vmem:[#allocation228_spill] sm:$0xff] %v12433_v19  ;;  %1155 = vmatmul.f32.vlgmr.msrb.gmra.mxu1 %v12272_v8  ;;  %1315 = vmatpush.msra.mxu0 %v12451_v20 }
  0xf6   :  { %19794 = vst [vmem:[#allocation229_spill] sm:$0xff] %v12437_v34  ;;  %v12490_v34 = vand.u32 4294901760, %v295_v29  ;;  %v1432_v15 = vsub.f32 %v12454_v32, %v12488_v4  ;;  %1322 = vmatpush.msra.mxu1 %v12130_v44  ;;  %1317 = vmatmul.f32.vlgmr.msra.gmra.mxu0 %v12272_v8 }
  0xf7   :  { %19795 = vst [vmem:[#allocation230_spill] sm:$0xff] %v12442_v54  ;;  %v1426_v54 = vsub.f32 %v12433_v19, %v12470_v9 }
  0xf8   :  { %19796 = vst [vmem:[#allocation231_spill] sm:$0xff] %v12444_v63  ;;  %1324 = vmatpush.msra.mxu1 %v12136_v58  ;;  %v78_v58 = vld [vmem:[#allocation2 + $0x18] sm:$0xff]  ;;  %1377 = vmatpush.msra.mxu2 %v12490_v34 }
  0xf9   :  { %19797 = vst [vmem:[#allocation232_spill] sm:$0xff] %v12448_v22  ;;  %v287_v22 = vld [vmem:[#allocation8 + $0x680] sm:$0xff]  ;;  %v12534_v10 = vand.u32 4294901760, %v1426_v54  ;;  %v12550_v54 = vand.u32 4294901760, %v1432_v15  ;;  %v1450_v15 = vsub.f32 %v12506_v17, %v12537_v47  ;;  %v12622_v39 = vand.u32 4294901760, %v78_v58 }
  0xfa   :  { %19798 = vst [vmem:[#allocation233_spill] sm:$0xff] %v12451_v20  ;;  %1326 = vmatpush.msra.mxu1 %v12145_v26  ;;  %1379 = vmatpush.msra.mxu2 %v12508_v6  ;;  %v19854_v20 = vld [vmem:[#allocation202_spill] sm:$0xff] }
  0xfb   :  { %19799 = vst [vmem:[#allocation234_spill] sm:$0xff] %v12454_v32  ;;  %1428 = vmatpush.msra.mxu3 %v12534_v10  ;;  %v12647_v31 = vsub.f32 %v78_v58, %v12622_v39 }
  0xfc   :  { %19800 = vst [vmem:[#allocation235_spill] sm:$0xff] %v12458_v59  ;;  %v283_v59 = vld [vmem:[#allocation8 + $0x660] sm:$0xff]  ;;  %1328 = vmatpush.msra.mxu1 %v12149_v36 }
  0xfd   :  { %19801 = vst [vmem:[#allocation236_spill] sm:$0xff] %v12465_v35  ;;  %1434 = vmatpush.msra.mxu3 %v12550_v54 }
  0xfe   :  { %19802 = vst [vmem:[#allocation237_spill] sm:$0xff] %v12470_v9  ;;  %v12524_v9 = vsub.f32 %v295_v29, %v12490_v34  ;;  %v12540_v29 = vsub.f32 %v291_v48, %v12508_v6  ;;  %1330 = vmatpush.msra.mxu1 %v12158_v1 }
  0xff   :  { %19803 = vst [vmem:[#allocation238_spill] sm:$0xff] %v12472_v0 }
 0x100   :  { %19804 = vst [vmem:[#allocation239_spill] sm:$0xff] %v12476_v23  ;;  %v12526_v23 = vand.u32 4294901760, %v287_v22  ;;  %v12553_v14 = vand.u32 4294901760, %v12524_v9  ;;  %v12569_v60 = vand.u32 4294901760, %v12540_v29  ;;  %1332 = vmatpush.msra.mxu1 %v12173_v5 }
 0x101   :  { %19805 = vst [vmem:[#allocation240_spill] sm:$0xff] %v12481_v55 }
 0x102   :  { %19806 = vst [vmem:[#allocation241_spill] sm:$0xff] %v12488_v4  ;;  %v12542_v4 = vand.u32 4294901760, %v283_v59  ;;  %v12556_v48 = vsub.f32 %v287_v22, %v12526_v23  ;;  %1334 = vmatpush.msra.mxu1 %v12189_v27  ;;  %1381 = vmatpush.msra.mxu2 %v12526_v23 }
 0x103   :  { %19807 = vst [vmem:[#allocation242_spill] sm:$0xff] %v12490_v34 }
 0x104   :  { %19808 = vst [vmem:[#allocation243_spill] sm:$0xff] %v12494_v45  ;;  %v275_v45 = vld [vmem:[#allocation8 + $0x620] sm:$0xff]  ;;  %v12572_v22 = vsub.f32 %v283_v59, %v12542_v4  ;;  %v12585_v44 = vand.u32 4294901760, %v12556_v48  ;;  %v12588_v59 = vsub.f32 %v279_v53, %v12558_v16  ;;  %1336 = vmatpush.msra.mxu1 %v12206_v13  ;;  %1383 = vmatpush.msra.mxu2 %v12542_v4 }
 0x105   :  { %19809 = vst [vmem:[#allocation244_spill] sm:$0xff] %v12496_v2  ;;  %v1444_v2 = vsub.f32 %v12481_v55, %v12515_v49 }
 0x106   :  { %19810 = vst [vmem:[#allocation245_spill] sm:$0xff] %v12499_v42  ;;  %v12601_v51 = vand.u32 4294901760, %v12572_v22  ;;  %v12615_v38 = vand.u32 4294901760, %v12588_v59  ;;  %1338 = vmatpush.msra.mxu1 %v12222_v50  ;;  %1385 = vmatpush.msra.mxu2 %v12558_v16 }
 0x107   :  { %19811 = vst [vmem:[#allocation246_spill] sm:$0xff] %v12506_v17 }
 0x108   :  { %19812 = vst [vmem:[#allocation247_spill] sm:$0xff] %v12508_v6  ;;  %1340 = vmatpush.msra.mxu1 %v12238_v33  ;;  %v184_v33 = vld [vmem:[#allocation8 + $0x348] sm:$0xff] }
 0x109   :  { %19813 = vst [vmem:[#allocation248_spill] sm:$0xff] %v12512_v43  ;;  %v12562_v43 = vand.u32 4294901760, %v1438_v3  ;;  %v12578_v3 = vand.u32 4294901760, %v1444_v2  ;;  %v12596_v2 = vand.u32 4294901760, %v1450_v15 }
 0x10a   :  { %19814 = vst [vmem:[#allocation249_spill] sm:$0xff] %v12515_v49  ;;  %v271_v49 = vld [vmem:[#allocation8 + $0x600] sm:$0xff]  ;;  %1342 = vmatpush.msra.mxu1 %v12251_v21 }
 0x10b   :  { %19815 = vst [vmem:[#allocation250_spill] sm:$0xff] %v12519_v41  ;;  %v12574_v41 = vand.u32 4294901760, %v275_v45  ;;  %1440 = vmatpush.msra.mxu3 %v12562_v43 }
 0x10c   :  { %19816 = vst [vmem:[#allocation251_spill] sm:$0xff] %v12524_v9  ;;  %1344 = vmatpush.msra.mxu1 %v12267_v62 }
 0x10d   :  { %19817 = vst [vmem:[#allocation252_spill] sm:$0xff] %v12526_v23  ;;  %v12604_v53 = vsub.f32 %v275_v45, %v12574_v41  ;;  %1446 = vmatpush.msra.mxu3 %v12578_v3  ;;  %1387 = vmatpush.msra.mxu2 %v12574_v41 }
 0x10e   :  { %19818 = vst [vmem:[#allocation253_spill] sm:$0xff] %v12534_v10  ;;  %v1456_v10 = vsub.f32 %v12524_v9, %v12553_v14  ;;  %1346 = vmatpush.msra.mxu1 %v19853_v11  ;;  %v188_v11 = vld [vmem:[#allocation8 + $0x368] sm:$0xff] }
 0x10f   :  { %19819 = vst [vmem:[#allocation254_spill] sm:$0xff] %v12537_v47  ;;  %v12590_v47 = vand.u32 4294901760, %v271_v49  ;;  %1452 = vmatpush.msra.mxu3 %v12596_v2  ;;  %v12631_v36 = vand.u32 4294901760, %v12604_v53 }
 0x110   :  { %19820 = vst [vmem:[#allocation255_spill] sm:$0xff] %v12540_v29  ;;  %v12610_v15 = vand.u32 4294901760, %v1456_v10 }
 0x111   :  { %19821 = vst [vmem:[#allocation256_spill] sm:$0xff] %v12542_v4  ;;  %v12618_v45 = vsub.f32 %v271_v49, %v12590_v47  ;;  %1389 = vmatpush.msra.mxu2 %v12590_v47 }
 0x112   :  { %19822 = vst [vmem:[#allocation257_spill] sm:$0xff] %v12550_v54  ;;  %v1462_v54 = vsub.f32 %v12540_v29, %v12569_v60  ;;  %1458 = vmatpush.msra.mxu3 %v12610_v15 }
 0x113   :  { %19823 = vst [vmem:[#allocation258_spill] sm:$0xff] %v12553_v14 }
 0x114   :  { %19824 = vst [vmem:[#allocation259_spill] sm:$0xff] %v12556_v48  ;;  %v12626_v10 = vand.u32 4294901760, %v1462_v54  ;;  %v1480_v54 = vsub.f32 %v12588_v59, %v12615_v38 }
 0x115   :  { %19825 = vst [vmem:[#allocation260_spill] sm:$0xff] %v12558_v16 }
 0x116   :  { %19826 = vst [vmem:[#allocation261_spill] sm:$0xff] %v12562_v43  ;;  %v1468_v43 = vsub.f32 %v12556_v48, %v12585_v44  ;;  %1464 = vmatpush.msra.mxu3 %v12626_v10  ;;  %v12659_v52 = vand.u32 4294901760, %v1480_v54 }
 0x117   :  { %19827 = vst [vmem:[#allocation262_spill] sm:$0xff] %v12569_v60 }
 0x118   :  { %19828 = vst [vmem:[#allocation263_spill] sm:$0xff] %v12572_v22  ;;  %v12637_v49 = vand.u32 4294901760, %v1468_v43  ;;  %v1486_v43 = vsub.f32 %v12604_v53, %v12631_v36 }
 0x119   :  { %19829 = vst [vmem:[#allocation264_spill] sm:$0xff] %v12574_v41 }
 0x11a   :  { %19830 = vst [vmem:[#allocation265_spill] sm:$0xff] %v12578_v3  ;;  %v1474_v3 = vsub.f32 %v12572_v22, %v12601_v51  ;;  %1470 = vmatpush.msra.mxu3 %v12637_v49  ;;  %v12670_v28 = vand.u32 4294901760, %v1486_v43 }
 0x11b   :  { %19831 = vst [vmem:[#allocation266_spill] sm:$0xff] %v12585_v44 }
 0x11c   :  { %19832 = vst [vmem:[#allocation267_spill] sm:$0xff] %v12588_v59 }
 0x11d   :  { %19833 = vst [vmem:[#allocation268_spill] sm:$0xff] %v12590_v47 }
 0x11e   :  { %19834 = vst [vmem:[#allocation269_spill] sm:$0xff] %v12596_v2  ;;  %v12642_v2 = vand.u32 4294901760, %v12618_v45 }
 0x11f   :  { %19835 = vst [vmem:[#allocation270_spill] sm:$0xff] %v12601_v51 }
 0x120   :  { %19836 = vst [vmem:[#allocation271_spill] sm:$0xff] %v12604_v53  ;;  %v1492_v58 = vsub.f32 %v12618_v45, %v12642_v2 }
 0x121   :  { %19837 = vst [vmem:[#allocation272_spill] sm:$0xff] %v12610_v15  ;;  %v12651_v15 = vand.u32 4294901760, %v1474_v3  ;;  %v12666_v3 = vand.u32 4294901760, %v12647_v31 }
 0x122   :  { %19838 = vst [vmem:[#allocation273_spill] sm:$0xff] %v12615_v38  ;;  %v12676_v54 = vand.u32 4294901760, %v1492_v58  ;;  %v19852_v58 = vld [vmem:[#allocation197_spill] sm:$0xff] }
 0x123   :  { %19839 = vst [vmem:[#allocation274_spill] sm:$0xff] %v12618_v45  ;;  %1476 = vmatpush.msra.mxu3 %v12651_v15  ;;  %v1393_v61 = vsub.f32 %v12647_v31, %v12666_v3  ;;  %1502 = vmatpush.msrb.mxu0 %v19852_v58  ;;  %v19858_v58 = vld [vmem:[#allocation201_spill] sm:$0xff] }
 0x124   :  { %19840 = vst [vmem:[#allocation275_spill] sm:$0xff] %v12622_v39 }
 0x125   :  { %19841 = vst [vmem:[#allocation276_spill] sm:$0xff] %v12626_v10  ;;  %1482 = vmatpush.msra.mxu3 %v12659_v52  ;;  %v12690_v43 = vand.u32 4294901760, %v1393_v61  ;;  %1505 = vmatpush.msrb.mxu0 %v19854_v20  ;;  %v19857_v61 = vld [vmem:[#allocation214_spill] sm:$0xff]  ;;  %v204_v10 = vld [vmem:[#allocation8 + $0x3e8] sm:$0xff] }
 0x126   :  { %19842 = vst [vmem:[#allocation277_spill] sm:$0xff] %v12631_v36 }
 0x127   :  { %19843 = vst [vmem:[#allocation278_spill] sm:$0xff] %v12637_v49  ;;  %1488 = vmatpush.msra.mxu3 %v12670_v28  ;;  %1395 = vmatmul.f32.vlgmr.msra.gmra.mxu2 %v12690_v43  ;;  %v12863_v49 = vand.u32 4294901760, %v100_v37 }
 0x128   :  { %19844 = vst [vmem:[#allocation279_spill] sm:$0xff] %v12642_v2  ;;  %1508 = vmatpush.msrb.mxu0 %v12381_v30  ;;  %v19861_v30 = vld [vmem:[#allocation230_spill] sm:$0xff] }
 0x129   :  { %19845 = vst [vmem:[#allocation280_spill] sm:$0xff] %v12647_v31  ;;  %1494 = vmatpush.msra.mxu3 %v12676_v54 }
 0x12a   :  { %19846 = vst [vmem:[#allocation281_spill] sm:$0xff] %v12651_v15  ;;  %1496 = vmatmul.f32.vlgmr.msra.gmra.mxu3 %v12622_v39  ;;  %1511 = vmatpush.msrb.mxu0 %v12401_v40  ;;  %v104_v40 = vld [vmem:[#allocation8 + $0xc8] sm:$0xff] }
 0x12b   :  { %19847 = vst [vmem:[#allocation282_spill] sm:$0xff] %v12659_v52  ;;  %1663 = vmatpush.msrb.mxu3 %v12278_v24  ;;  %v19856_v52 = vld [vmem:[#allocation196_spill] sm:$0xff] }
 0x12c   :  { %19848 = vst [vmem:[#allocation283_spill] sm:$0xff] %v12666_v3  ;;  %1348 = vmatpush.msra.mxu1 %v19856_v52  ;;  %1514 = vmatpush.msrb.mxu0 %v12433_v19 }
 0x12d   :  { %19849 = vst [vmem:[#allocation284_spill] sm:$0xff] %v12670_v28  ;;  %1665 = vmatpush.msrb.mxu3 %v12296_v7  ;;  %v19855_v28 = vld [vmem:[#allocation208_spill] sm:$0xff] }
 0x12e   :  { %19850 = vst [vmem:[#allocation285_spill] sm:$0xff] %v12676_v54  ;;  %1596 = vmatpush.msrb.mxu2 %v19855_v28  ;;  %1350 = vmatpush.msra.mxu1 %v19858_v58  ;;  %v19859_v54 = vld [vmem:[#allocation223_spill] sm:$0xff] }
 0x12f   :  { %19851 = vst [vmem:[#allocation286_spill] sm:$0xff] %v12690_v43  ;;  %1667 = vmatpush.msrb.mxu3 %v12337_v46  ;;  %v19860_v28 = vld [vmem:[#allocation211_spill] sm:$0xff]  ;;  %1517 = vmatpush.msrb.mxu0 %v12454_v32  ;;  %v172_v43 = vld [vmem:[#allocation8 + $0x2e8] sm:$0xff] }
 0x130   :  { %1600 = vmatpush.msrb.mxu2 %v19857_v61  ;;  %1352 = vmatpush.msra.mxu1 %v19860_v28  ;;  %v19862_v61 = vld [vmem:[#allocation237_spill] sm:$0xff]  ;;  %19894 = vst [vmem:[#allocation315_spill] sm:$0xff] %v12863_v49  ;;  %v192_v28 = vld [vmem:[#allocation8 + $0x388] sm:$0xff] }
 0x131   :  { %1669 = vmatpush.msrb.mxu3 %v12359_v25  ;;  %1354 = vmatmul.f32.vlgmr.msra.gmra.mxu1 %v12272_v8  ;;  %v12960_v21 = vand.u32 4294901760, %v192_v28 }
 0x132   :  { %1604 = vmatpush.msrb.mxu2 %v19859_v54  ;;  %1555 = vmatpush.msrb.mxu1 %v12278_v24  ;;  %v19863_v54 = vld [vmem:[#allocation241_spill] sm:$0xff] }
 0x133   :  { %1671 = vmatpush.msrb.mxu3 %v12391_v57  ;;  %1520 = vmatpush.msrb.mxu0 %v12465_v35  ;;  %19921 = vst [vmem:[#allocation342_spill] sm:$0xff] %v12960_v21 }
 0x134   :  { %1608 = vmatpush.msrb.mxu2 %v19861_v30  ;;  %1557 = vmatpush.msrb.mxu1 %v12296_v7  ;;  %v108_v30 = vld [vmem:[#allocation8 + $0xe8] sm:$0xff] }
 0x135   :  { %1673 = vmatpush.msrb.mxu3 %v12412_v56  ;;  %1523 = vmatpush.msrb.mxu0 %v12481_v55  ;;  %v12822_v20 = vand.u32 4294901760, %v108_v30 }
 0x136   :  { %1612 = vmatpush.msrb.mxu2 %v19862_v61  ;;  %1559 = vmatpush.msrb.mxu1 %v12337_v46  ;;  %v19864_v61 = vld [vmem:[#allocation249_spill] sm:$0xff] }
 0x137   :  { %1675 = vmatpush.msrb.mxu3 %v12424_v12  ;;  %1526 = vmatpush.msrb.mxu0 %v12506_v17  ;;  %v112_v17 = vld [vmem:[#allocation8 + $0x108] sm:$0xff]  ;;  %19884 = vst [vmem:[#allocation305_spill] sm:$0xff] %v12822_v20 }
 0x138   :  { %1616 = vmatpush.msrb.mxu2 %v19863_v54  ;;  %1561 = vmatpush.msrb.mxu1 %v12359_v25  ;;  %v19865_v54 = vld [vmem:[#allocation254_spill] sm:$0xff] }
 0x139   :  { %1677 = vmatpush.msrb.mxu3 %v12444_v63  ;;  %1529 = vmatpush.msrb.mxu0 %v12524_v9  ;;  %v136_v9 = vld [vmem:[#allocation8 + $0x1c8] sm:$0xff] }
 0x13a   :  { %1620 = vmatpush.msrb.mxu2 %v12499_v42  ;;  %1563 = vmatpush.msrb.mxu1 %v12391_v57  ;;  %v140_v42 = vld [vmem:[#allocation8 + $0x1e8] sm:$0xff] }
 0x13b   :  { %1679 = vmatpush.msrb.mxu3 %v12472_v0  ;;  %1532 = vmatpush.msrb.mxu0 %v12540_v29  ;;  %v12748_v29 = vand.u32 4294901760, %v136_v9 }
 0x13c   :  { %1624 = vmatpush.msrb.mxu2 %v19864_v61  ;;  %1565 = vmatpush.msrb.mxu1 %v12412_v56 }
 0x13d   :  { %1681 = vmatpush.msrb.mxu3 %v12490_v34  ;;  %1535 = vmatpush.msrb.mxu0 %v12556_v48  ;;  %19867 = vst [vmem:[#allocation288_spill] sm:$0xff] %v12748_v29  ;;  %v124_v48 = vld [vmem:[#allocation8 + $0x168] sm:$0xff] }
 0x13e   :  { %1628 = vmatpush.msrb.mxu2 %v19865_v54  ;;  %1567 = vmatpush.msrb.mxu1 %v12424_v12  ;;  %v12742_v54 = vand.u32 4294901760, %v140_v42  ;;  %v12898_v12 = vsub.f32 %v100_v37, %v12863_v49 }
 0x13f   :  { %1683 = vmatpush.msrb.mxu3 %v12508_v6  ;;  %1538 = vmatpush.msrb.mxu0 %v12572_v22 }
 0x140   :  { %1632 = vmatpush.msrb.mxu2 %v12553_v14  ;;  %1569 = vmatpush.msrb.mxu1 %v12444_v63  ;;  %19866 = vst [vmem:[#allocation287_spill] sm:$0xff] %v12742_v54  ;;  %v132_v14 = vld [vmem:[#allocation8 + $0x1a8] sm:$0xff]  ;;  %v12755_v22 = vsub.f32 %v140_v42, %v12742_v54 }
 0x141   :  { %1685 = vmatpush.msrb.mxu3 %v12526_v23  ;;  %1541 = vmatpush.msrb.mxu0 %v12588_v59  ;;  %v120_v42 = vld [vmem:[#allocation8 + $0x148] sm:$0xff]  ;;  %19903 = vst [vmem:[#allocation324_spill] sm:$0xff] %v12898_v12 }
 0x142   :  { %1636 = vmatpush.msrb.mxu2 %v12569_v60  ;;  %1571 = vmatpush.msrb.mxu1 %v12472_v0  ;;  %v128_v60 = vld [vmem:[#allocation8 + $0x188] sm:$0xff]  ;;  %19868 = vst [vmem:[#allocation289_spill] sm:$0xff] %v12755_v22  ;;  %v12778_v61 = vand.u32 4294901760, %v12755_v22 }
 0x143   :  { %1687 = vmatpush.msrb.mxu3 %v12542_v4  ;;  %1544 = vmatpush.msrb.mxu0 %v12604_v53  ;;  %v12766_v59 = vand.u32 4294901760, %v128_v60  ;;  %v12775_v53 = vand.u32 4294901760, %v124_v48  ;;  %v200_v63 = vld [vmem:[#allocation8 + $0x3c8] sm:$0xff] }
 0x144   :  { %1640 = vmatpush.msrb.mxu2 %v12585_v44  ;;  %1573 = vmatpush.msrb.mxu1 %v12490_v34  ;;  %v12757_v44 = vand.u32 4294901760, %v132_v14  ;;  %19874 = vst [vmem:[#allocation295_spill] sm:$0xff] %v12778_v61  ;;  %v1743_v55 = vsub.f32 %v12755_v22, %v12778_v61 }
 0x145   :  { %1689 = vmatpush.msrb.mxu3 %v12558_v16  ;;  %19871 = vst [vmem:[#allocation292_spill] sm:$0xff] %v12766_v59  ;;  %1547 = vmatpush.msrb.mxu0 %v12618_v45  ;;  %v12787_v45 = vand.u32 4294901760, %v120_v42 }
 0x146   :  { %1644 = vmatpush.msrb.mxu2 %v12601_v51  ;;  %19869 = vst [vmem:[#allocation290_spill] sm:$0xff] %v12757_v44  ;;  %1575 = vmatpush.msrb.mxu1 %v12508_v6  ;;  %v12764_v51 = vsub.f32 %v136_v9, %v12748_v29  ;;  %v116_v9 = vld [vmem:[#allocation8 + $0x128] sm:$0xff] }
 0x147   :  { %1691 = vmatpush.msrb.mxu3 %v12574_v41  ;;  %19873 = vst [vmem:[#allocation294_spill] sm:$0xff] %v12775_v53  ;;  %1550 = vmatmul.f32.vlgmr.msrb.gmra.mxu0 %v12647_v31  ;;  %v12801_v35 = vand.u32 4294901760, %v116_v9 }
 0x148   :  { %1648 = vmatpush.msrb.mxu2 %v12615_v38  ;;  %19870 = vst [vmem:[#allocation291_spill] sm:$0xff] %v12764_v51  ;;  %1577 = vmatpush.msrb.mxu1 %v12526_v23  ;;  %v12773_v38 = vsub.f32 %v132_v14, %v12757_v44  ;;  %v12790_v14 = vand.u32 4294901760, %v12764_v51 }
 0x149   :  { %1693 = vmatpush.msrb.mxu3 %v12590_v47  ;;  %1700 = vmatpush.msra.mxu0 %v12742_v54  ;;  %19876 = vst [vmem:[#allocation297_spill] sm:$0xff] %v12787_v45 }
 0x14a   :  { %1652 = vmatpush.msrb.mxu2 %v12631_v36  ;;  %19872 = vst [vmem:[#allocation293_spill] sm:$0xff] %v12773_v38  ;;  %1579 = vmatpush.msrb.mxu1 %v12542_v4  ;;  %v12785_v36 = vsub.f32 %v128_v60, %v12766_v59  ;;  %v12799_v60 = vsub.f32 %v124_v48, %v12775_v53  ;;  %v12804_v32 = vand.u32 4294901760, %v12773_v38 }
 0x14b   :  { %1896 = vmatpush.msra.mxu3 %v12742_v54  ;;  %19877 = vst [vmem:[#allocation298_spill] sm:$0xff] %v12790_v14  ;;  %1702 = vmatpush.msra.mxu0 %v12748_v29  ;;  %v12813_v48 = vsub.f32 %v120_v42, %v12787_v45 }
 0x14c   :  { %19875 = vst [vmem:[#allocation296_spill] sm:$0xff] %v12785_v36  ;;  %1656 = vmatpush.msrb.mxu2 %v12642_v2  ;;  %1581 = vmatpush.msrb.mxu1 %v12558_v16  ;;  %v12815_v2 = vand.u32 4294901760, %v112_v17  ;;  %v12818_v19 = vand.u32 4294901760, %v12785_v36  ;;  %v1755_v42 = vsub.f32 %v12773_v38, %v12804_v32  ;;  %v12831_v16 = vsub.f32 %v116_v9, %v12801_v35 }
 0x14d   :  { %1898 = vmatpush.msra.mxu3 %v12748_v29  ;;  %19878 = vst [vmem:[#allocation299_spill] sm:$0xff] %v12799_v60  ;;  %1658 = vmatmul.f32.vlgmr.msrb.gmra.mxu2 %v12622_v39  ;;  %v12834_v4 = vand.u32 4294901760, %v12799_v60  ;;  %v12850_v23 = vand.u32 4294901760, %v12813_v48 }
 0x14e   :  { %1843 = vmatpush.msra.mxu2 %v12755_v22  ;;  %19879 = vst [vmem:[#allocation300_spill] sm:$0xff] %v12801_v35  ;;  %1704 = vmatpush.msra.mxu0 %v12757_v44  ;;  %v1749_v22 = vsub.f32 %v12764_v51, %v12790_v14  ;;  %v1761_v9 = vsub.f32 %v12785_v36, %v12818_v19  ;;  %v12866_v6 = vand.u32 4294901760, %v12831_v16 }
 0x14f   :  { %19880 = vst [vmem:[#allocation301_spill] sm:$0xff] %v12804_v32  ;;  %1900 = vmatpush.msra.mxu3 %v12757_v44  ;;  %1583 = vmatpush.msrb.mxu1 %v12574_v41  ;;  %v12838_v41 = vand.u32 4294901760, %v104_v40  ;;  %v12847_v15 = vsub.f32 %v112_v17, %v12815_v2  ;;  %v1767_v17 = vsub.f32 %v12799_v60, %v12834_v4 }
 0x150   :  { %1846 = vmatpush.msra.mxu2 %v12764_v51  ;;  %19881 = vst [vmem:[#allocation302_spill] sm:$0xff] %v12813_v48  ;;  %1695 = vmatmul.f32.vlgmr.msrb.gmra.mxu3 %v12622_v39  ;;  %v12826_v51 = vand.u32 4294901760, %v1743_v55  ;;  %v12842_v55 = vand.u32 4294901760, %v1749_v22  ;;  %v12859_v22 = vand.u32 4294901760, %v1755_v42  ;;  %v12875_v42 = vand.u32 4294901760, %v1761_v9 }
 0x151   :  { %19882 = vst [vmem:[#allocation303_spill] sm:$0xff] %v12815_v2  ;;  %1706 = vmatpush.msra.mxu0 %v12766_v59  ;;  %1902 = vmatpush.msra.mxu3 %v12766_v59  ;;  %v12882_v0 = vand.u32 4294901760, %v12847_v15  ;;  %v12893_v9 = vand.u32 4294901760, %v1767_v17  ;;  %v1779_v18 = vsub.f32 %v12831_v16, %v12866_v6  ;;  %v196_v17 = vld [vmem:[#allocation8 + $0x3a8] sm:$0xff] }
 0x152   :  { %19883 = vst [vmem:[#allocation304_spill] sm:$0xff] %v12818_v19  ;;  %1849 = vmatpush.msra.mxu2 %v12773_v38  ;;  %1585 = vmatpush.msrb.mxu1 %v12590_v47  ;;  %v12855_v38 = vsub.f32 %v108_v30, %v12822_v20  ;;  %v96_v47 = vld [vmem:[#allocation8 + $0x88] sm:$0xff]  ;;  %v12871_v30 = vsub.f32 %v104_v40, %v12838_v41  ;;  %v12939_v52 = vand.u32 4294901760, %v196_v17 }
 0x153   :  { %19885 = vst [vmem:[#allocation306_spill] sm:$0xff] %v12826_v51  ;;  %1708 = vmatpush.msra.mxu0 %v12775_v53  ;;  %1589 = vmatmul.f32.vlgmr.msrb.gmra.mxu1 %v12666_v3  ;;  %v12879_v34 = vand.u32 4294901760, %v96_v47  ;;  %v1785_v37 = vsub.f32 %v12847_v15, %v12882_v0 }
 0x154   :  { %19886 = vst [vmem:[#allocation307_spill] sm:$0xff] %v12831_v16  ;;  %1852 = vmatpush.msra.mxu2 %v12785_v36  ;;  %1745 = vmatpush.msra.mxu1 %v12826_v51  ;;  %v92_v51 = vld [vmem:[#allocation8 + $0x68] sm:$0xff]  ;;  %v1773_v36 = vsub.f32 %v12813_v48, %v12850_v23  ;;  %v12887_v40 = vand.u32 4294901760, %v12855_v38  ;;  %v12905_v57 = vand.u32 4294901760, %v12871_v30 }
 0x155   :  { %19887 = vst [vmem:[#allocation308_spill] sm:$0xff] %v12834_v4  ;;  %1904 = vmatpush.msra.mxu3 %v12775_v53  ;;  %1710 = vmatpush.msra.mxu0 %v12787_v45  ;;  %v12900_v56 = vand.u32 4294901760, %v92_v51  ;;  %v12916_v46 = vsub.f32 %v96_v47, %v12879_v34  ;;  %v12931_v47 = vand.u32 4294901760, %v1779_v18 }
 0x156   :  { %19888 = vst [vmem:[#allocation309_spill] sm:$0xff] %v12838_v41  ;;  %1855 = vmatpush.msra.mxu2 %v12799_v60  ;;  %1751 = vmatpush.msra.mxu1 %v12842_v55  ;;  %v12889_v60 = vand.u32 4294901760, %v204_v10  ;;  %v12911_v25 = vand.u32 4294901760, %v1773_v36 }
 0x157   :  { %19889 = vst [vmem:[#allocation310_spill] sm:$0xff] %v12842_v55  ;;  %1906 = vmatpush.msra.mxu3 %v12787_v45  ;;  %1712 = vmatpush.msra.mxu0 %v12801_v35  ;;  %v88_v55 = vld [vmem:[#allocation8 + $0x48] sm:$0xff]  ;;  %v12934_v58 = vsub.f32 %v92_v51, %v12900_v56  ;;  %v12952_v51 = vand.u32 4294901760, %v1785_v37 }
 0x158   :  { %19890 = vst [vmem:[#allocation311_spill] sm:$0xff] %v12847_v15  ;;  %1858 = vmatpush.msra.mxu2 %v12813_v48  ;;  %1757 = vmatpush.msra.mxu1 %v12859_v22  ;;  %v84_v48 = vld [vmem:[#allocation8 + $0x28] sm:$0xff]  ;;  %v12918_v7 = vand.u32 4294901760, %v88_v55  ;;  %v12927_v36 = vsub.f32 %v204_v10, %v12889_v60  ;;  %v1797_v10 = vsub.f32 %v12871_v30, %v12905_v57 }
 0x159   :  { %19891 = vst [vmem:[#allocation312_spill] sm:$0xff] %v12850_v23  ;;  %1908 = vmatpush.msra.mxu3 %v12801_v35  ;;  %1714 = vmatpush.msra.mxu0 %v12815_v2  ;;  %v12924_v24 = vand.u32 4294901760, %v84_v48  ;;  %v12977_v50 = vand.u32 4294901760, %v12934_v58 }
 0x15a   :  { %19892 = vst [vmem:[#allocation313_spill] sm:$0xff] %v12855_v38  ;;  %1861 = vmatpush.msra.mxu2 %v12831_v16  ;;  %1763 = vmatpush.msra.mxu1 %v12875_v42  ;;  %v80_v16 = vld [vmem:[#allocation8 + $0x8] sm:$0xff]  ;;  %v12955_v62 = vsub.f32 %v88_v55, %v12918_v7  ;;  %v12970_v37 = vand.u32 4294901760, %v12927_v36  ;;  %v12986_v13 = vand.u32 4294901760, %v1797_v10  ;;  %v13004_v10 = vand.u32 4294901760, %v184_v33 }
 0x15b   :  { %19893 = vst [vmem:[#allocation314_spill] sm:$0xff] %v12859_v22  ;;  %v12907_v22 = vand.u32 4294901760, %v200_v63  ;;  %1910 = vmatpush.msra.mxu3 %v12815_v2  ;;  %1716 = vmatpush.msra.mxu0 %v12822_v20  ;;  %v1815_v3 = vsub.f32 %v12934_v58, %v12977_v50 }
 0x15c   :  { %19895 = vst [vmem:[#allocation316_spill] sm:$0xff] %v12866_v6  ;;  %1864 = vmatpush.msra.mxu2 %v12847_v15  ;;  %1769 = vmatpush.msra.mxu1 %v12893_v9  ;;  %v12937_v15 = vand.u32 4294901760, %v12898_v12  ;;  %v12999_v5 = vand.u32 4294901760, %v12955_v62 }
 0x15d   :  { %19896 = vst [vmem:[#allocation317_spill] sm:$0xff] %v12871_v30  ;;  %1912 = vmatpush.msra.mxu3 %v12822_v20  ;;  %1718 = vmatpush.msra.mxu0 %v12838_v41  ;;  %v12948_v18 = vsub.f32 %v200_v63, %v12907_v22 }
 0x15e   :  { %19897 = vst [vmem:[#allocation318_spill] sm:$0xff] %v12875_v42  ;;  %v1791_v42 = vsub.f32 %v12855_v38, %v12887_v40  ;;  %1867 = vmatpush.msra.mxu2 %v12855_v38  ;;  %1775 = vmatpush.msra.mxu1 %v12911_v25  ;;  %v12958_v38 = vand.u32 4294901760, %v12916_v46  ;;  %v1803_v55 = vsub.f32 %v12898_v12, %v12937_v15 }
 0x15f   :  { %19898 = vst [vmem:[#allocation319_spill] sm:$0xff] %v12879_v34  ;;  %1914 = vmatpush.msra.mxu3 %v12838_v41  ;;  %1720 = vmatpush.msra.mxu0 %v12863_v49  ;;  %v12992_v27 = vand.u32 4294901760, %v12948_v18 }
 0x160   :  { %19899 = vst [vmem:[#allocation320_spill] sm:$0xff] %v12882_v0  ;;  %1870 = vmatpush.msra.mxu2 %v12871_v30  ;;  %v12964_v63 = vand.u32 4294901760, %v1791_v42  ;;  %1781 = vmatpush.msra.mxu1 %v12931_v47  ;;  %v12980_v42 = vsub.f32 %v196_v17, %v12939_v52  ;;  %v12982_v30 = vand.u32 4294901760, %v188_v11  ;;  %v1809_v17 = vsub.f32 %v12916_v46, %v12958_v38 }
 0x161   :  { %19900 = vst [vmem:[#allocation321_spill] sm:$0xff] %v12887_v40  ;;  %1916 = vmatpush.msra.mxu3 %v12863_v49  ;;  %1722 = vmatpush.msra.mxu0 %v12879_v34 }
 0x162   :  { %19901 = vst [vmem:[#allocation322_spill] sm:$0xff] %v12889_v60  ;;  %1873 = vmatpush.msra.mxu2 %v12898_v12  ;;  %1787 = vmatpush.msra.mxu1 %v12952_v51  ;;  %v13002_v12 = vsub.f32 %v192_v28, %v12960_v21  ;;  %v13017_v28 = vand.u32 4294901760, %v1803_v55  ;;  %v13022_v31 = vand.u32 4294901760, %v12980_v42  ;;  %v13038_v8 = vand.u32 4294901760, %v1809_v17 }
 0x163   :  { %19902 = vst [vmem:[#allocation323_spill] sm:$0xff] %v12893_v9  ;;  %v12945_v9 = vand.u32 4294901760, %v80_v16  ;;  %1918 = vmatpush.msra.mxu3 %v12879_v34  ;;  %1724 = vmatpush.msra.mxu0 %v12900_v56 }
 0x164   :  { %19904 = vst [vmem:[#allocation325_spill] sm:$0xff] %v12900_v56  ;;  %1876 = vmatpush.msra.mxu2 %v12916_v46  ;;  %1793 = vmatpush.msra.mxu1 %v12964_v63 }
 0x165   :  { %19905 = vst [vmem:[#allocation326_spill] sm:$0xff] %v12905_v57  ;;  %1920 = vmatpush.msra.mxu3 %v12900_v56  ;;  %1726 = vmatpush.msra.mxu0 %v12918_v7 }
 0x166   :  { %19906 = vst [vmem:[#allocation327_spill] sm:$0xff] %v12907_v22  ;;  %1879 = vmatpush.msra.mxu2 %v12934_v58  ;;  %1799 = vmatpush.msra.mxu1 %v12986_v13 }
 0x167   :  { %19907 = vst [vmem:[#allocation328_spill] sm:$0xff] %v12911_v25  ;;  %v12967_v25 = vsub.f32 %v84_v48, %v12924_v24  ;;  %v180_v48 = vld [vmem:[#allocation8 + $0x328] sm:$0xff]  ;;  %1922 = vmatpush.msra.mxu3 %v12918_v7  ;;  %1728 = vmatpush.msra.mxu0 %v12924_v24 }
 0x168   :  { %19908 = vst [vmem:[#allocation329_spill] sm:$0xff] %v12916_v46  ;;  %v13013_v26 = vand.u32 4294901760, %v180_v48  ;;  %v13025_v46 = vsub.f32 %v188_v11, %v12982_v30  ;;  %v1821_v11 = vsub.f32 %v12955_v62, %v12999_v5  ;;  %1882 = vmatpush.msra.mxu2 %v12955_v62  ;;  %1805 = vmatpush.msra.mxu1 %v13017_v28 }
 0x169   :  { %19909 = vst [vmem:[#allocation330_spill] sm:$0xff] %v12918_v7  ;;  %v13011_v1 = vand.u32 4294901760, %v12967_v25  ;;  %v168_v7 = vld [vmem:[#allocation8 + $0x2c8] sm:$0xff]  ;;  %1924 = vmatpush.msra.mxu3 %v12924_v24  ;;  %1730 = vmatpush.msra.mxu0 %v12945_v9 }
 0x16a   :  { %19910 = vst [vmem:[#allocation331_spill] sm:$0xff] %v12924_v24  ;;  %v13055_v17 = vsub.f32 %v180_v48, %v13013_v26  ;;  %1885 = vmatpush.msra.mxu2 %v12967_v25  ;;  %v164_v24 = vld [vmem:[#allocation8 + $0x2a8] sm:$0xff]  ;;  %1811 = vmatpush.msra.mxu1 %v13038_v8 }
 0x16b   :  { %19911 = vst [vmem:[#allocation332_spill] sm:$0xff] %v12927_v36  ;;  %1926 = vmatpush.msra.mxu3 %v12945_v9  ;;  %1937 = vmatpush.msrb.mxu0 %v12778_v61  ;;  %v13104_v61 = vand.u32 4294901760, %v164_v24 }
 0x16c   :  { %19912 = vst [vmem:[#allocation333_spill] sm:$0xff] %v12931_v47  ;;  %v12989_v47 = vsub.f32 %v80_v16, %v12945_v9  ;;  %v176_v16 = vld [vmem:[#allocation8 + $0x308] sm:$0xff] }
 0x16d   :  { %19913 = vst [vmem:[#allocation334_spill] sm:$0xff] %v12934_v58  ;;  %v13034_v55 = vand.u32 4294901760, %v176_v16  ;;  %v13043_v58 = vand.u32 4294901760, %v13002_v12  ;;  %1941 = vmatpush.msrb.mxu0 %v12790_v14 }
 0x16e   :  { %19914 = vst [vmem:[#allocation335_spill] sm:$0xff] %v12937_v15  ;;  %v13032_v39 = vand.u32 4294901760, %v12989_v47  ;;  %1888 = vmatpush.msra.mxu2 %v12989_v47 }
 0x16f   :  { %19915 = vst [vmem:[#allocation336_spill] sm:$0xff] %v12939_v52  ;;  %1945 = vmatpush.msrb.mxu0 %v12804_v32 }
 0x170   :  { %19916 = vst [vmem:[#allocation337_spill] sm:$0xff] %v12945_v9  ;;  %v160_v9 = vld [vmem:[#allocation8 + $0x288] sm:$0xff]  ;;  %2041 = vmatpush.msrb.mxu2 %v12889_v60 }
 0x171   :  { %19917 = vst [vmem:[#allocation338_spill] sm:$0xff] %v12948_v18  ;;  %v13122_v14 = vand.u32 4294901760, %v160_v9  ;;  %1949 = vmatpush.msrb.mxu0 %v12818_v19 }
 0x172   :  { %19918 = vst [vmem:[#allocation339_spill] sm:$0xff] %v12952_v51  ;;  %v2084_v51 = vsub.f32 %v12927_v36, %v12970_v37  ;;  %2043 = vmatpush.msrb.mxu2 %v12907_v22 }
 0x173   :  { %19919 = vst [vmem:[#allocation340_spill] sm:$0xff] %v12955_v62  ;;  %v13064_v62 = vand.u32 4294901760, %v13025_v46  ;;  %1953 = vmatpush.msrb.mxu0 %v12834_v4 }
 0x174   :  { %19920 = vst [vmem:[#allocation341_spill] sm:$0xff] %v12958_v38  ;;  %2045 = vmatpush.msrb.mxu2 %v12939_v52 }
 0x175   :  { %19922 = vst [vmem:[#allocation343_spill] sm:$0xff] %v12964_v63  ;;  %v2090_v63 = vsub.f32 %v12948_v18, %v12992_v27  ;;  %v13059_v18 = vand.u32 4294901760, %v1815_v3  ;;  %v13075_v3 = vsub.f32 %v176_v16, %v13034_v55  ;;  %1957 = vmatpush.msrb.mxu0 %v12850_v23 }
 0x176   :  { %19923 = vst [vmem:[#allocation344_spill] sm:$0xff] %v12967_v25  ;;  %2047 = vmatpush.msrb.mxu2 %v12960_v21 }
 0x177   :  { %19924 = vst [vmem:[#allocation345_spill] sm:$0xff] %v12970_v37  ;;  %v13050_v37 = vand.u32 4294901760, %v2084_v51  ;;  %v13066_v51 = vand.u32 4294901760, %v172_v43  ;;  %v13070_v48 = vand.u32 4294901760, %v2090_v63  ;;  %v13086_v63 = vand.u32 4294901760, %v168_v7  ;;  %1817 = vmatpush.msra.mxu1 %v13059_v18  ;;  %1961 = vmatpush.msrb.mxu0 %v12866_v6 }
 0x178   :  { %19925 = vst [vmem:[#allocation346_spill] sm:$0xff] %v12977_v50  ;;  %2049 = vmatpush.msrb.mxu2 %v12982_v30 }
 0x179   :  { %19926 = vst [vmem:[#allocation347_spill] sm:$0xff] %v12980_v42  ;;  %2086 = vmatpush.msrb.mxu3 %v13050_v37  ;;  %1965 = vmatpush.msrb.mxu0 %v12882_v0 }
 0x17a   :  { %19927 = vst [vmem:[#allocation348_spill] sm:$0xff] %v12982_v30  ;;  %2051 = vmatpush.msrb.mxu2 %v13004_v10 }
 0x17b   :  { %19928 = vst [vmem:[#allocation349_spill] sm:$0xff] %v12986_v13  ;;  %v1827_v13 = vsub.f32 %v12967_v25, %v13011_v1  ;;  %2092 = vmatpush.msrb.mxu3 %v13070_v48  ;;  %1969 = vmatpush.msrb.mxu0 %v12887_v40 }
 0x17c   :  { %19929 = vst [vmem:[#allocation350_spill] sm:$0xff] %v12989_v47  ;;  %2053 = vmatpush.msrb.mxu2 %v13013_v26 }
 0x17d   :  { %19930 = vst [vmem:[#allocation351_spill] sm:$0xff] %v12992_v27  ;;  %v13046_v27 = vsub.f32 %v184_v33, %v13004_v10  ;;  %v2096_v33 = vsub.f32 %v12980_v42, %v13022_v31  ;;  %v2102_v42 = vsub.f32 %v13002_v12, %v13043_v58  ;;  %v13090_v16 = vand.u32 4294901760, %v1827_v13  ;;  %1973 = vmatpush.msrb.mxu0 %v12905_v57 }
 0x17e   :  { %19931 = vst [vmem:[#allocation352_spill] sm:$0xff] %v12999_v5  ;;  %2055 = vmatpush.msrb.mxu2 %v13034_v55 }
 0x17f   :  { %19932 = vst [vmem:[#allocation353_spill] sm:$0xff] %v13002_v12  ;;  %v13084_v25 = vand.u32 4294901760, %v13046_v27  ;;  %v13102_v12 = vsub.f32 %v172_v43, %v13066_v51  ;;  %1977 = vmatpush.msrb.mxu0 %v12937_v15 }
 0x180   :  { %19933 = vst [vmem:[#allocation354_spill] sm:$0xff] %v13004_v10  ;;  %2057 = vmatpush.msrb.mxu2 %v13066_v51 }
 0x181   :  { %19934 = vst [vmem:[#allocation355_spill] sm:$0xff] %v13011_v1  ;;  %v2114_v43 = vsub.f32 %v13046_v27, %v13084_v25  ;;  %1981 = vmatpush.msrb.mxu0 %v12958_v38  ;;  %v228_v38 = vld [vmem:[#allocation8 + $0x4a8] sm:$0xff] }
 0x182   :  { %19935 = vst [vmem:[#allocation356_spill] sm:$0xff] %v13013_v26  ;;  %2059 = vmatpush.msrb.mxu2 %v13086_v63 }
 0x183   :  { %19936 = vst [vmem:[#allocation357_spill] sm:$0xff] %v13017_v28  ;;  %v1833_v28 = vsub.f32 %v12989_v47, %v13032_v39  ;;  %v156_v47 = vld [vmem:[#allocation8 + $0x268] sm:$0xff]  ;;  %1985 = vmatpush.msrb.mxu0 %v12977_v50  ;;  %v20004_v50 = vld [vmem:[#allocation129_spill] sm:$0xff] }
 0x184   :  { %19937 = vst [vmem:[#allocation358_spill] sm:$0xff] %v13022_v31  ;;  %v13079_v31 = vand.u32 4294901760, %v1821_v11  ;;  %v13097_v11 = vand.u32 4294901760, %v2096_v33  ;;  %v13115_v33 = vand.u32 4294901760, %v2102_v42  ;;  %2061 = vmatpush.msrb.mxu2 %v13104_v61 }
 0x185   :  { %19938 = vst [vmem:[#allocation359_spill] sm:$0xff] %v13025_v46  ;;  %v13108_v13 = vand.u32 4294901760, %v1833_v28  ;;  %1989 = vmatpush.msrb.mxu0 %v12999_v5  ;;  %v20001_v5 = vld [vmem:[#allocation351_spill] sm:$0xff] }
 0x186   :  { %19939 = vst [vmem:[#allocation360_spill] sm:$0xff] %v13032_v39  ;;  %1823 = vmatpush.msra.mxu1 %v13079_v31  ;;  %2098 = vmatpush.msrb.mxu3 %v13097_v11 }
 0x187   :  { %19940 = vst [vmem:[#allocation361_spill] sm:$0xff] %v13034_v55  ;;  %2063 = vmatpush.msrb.mxu2 %v13122_v14  ;;  %1993 = vmatpush.msrb.mxu0 %v13011_v1  ;;  %v19998_v1 = vld [vmem:[#allocation345_spill] sm:$0xff] }
 0x188   :  { %19941 = vst [vmem:[#allocation362_spill] sm:$0xff] %v13038_v8  ;;  %v13093_v8 = vand.u32 4294901760, %v13055_v17  ;;  %1829 = vmatpush.msra.mxu1 %v13090_v16  ;;  %2104 = vmatpush.msrb.mxu3 %v13115_v33 }
 0x189   :  { %19942 = vst [vmem:[#allocation363_spill] sm:$0xff] %v13043_v58  ;;  %v2108_v58 = vsub.f32 %v13025_v46, %v13064_v62  ;;  %1997 = vmatpush.msrb.mxu0 %v13032_v39  ;;  %v19997_v39 = vld [vmem:[#allocation338_spill] sm:$0xff] }
 0x18a   :  { %19943 = vst [vmem:[#allocation364_spill] sm:$0xff] %v13046_v27  ;;  %v2120_v28 = vsub.f32 %v13055_v17, %v13093_v8  ;;  %1835 = vmatpush.msra.mxu1 %v13108_v13 }
 0x18b   :  { %19944 = vst [vmem:[#allocation365_spill] sm:$0xff] %v13050_v37  ;;  %v13120_v37 = vsub.f32 %v168_v7, %v13086_v63  ;;  %v13130_v42 = vand.u32 4294901760, %v2108_v58  ;;  %v13136_v7 = vsub.f32 %v164_v24, %v13104_v61  ;;  %v13146_v58 = vand.u32 4294901760, %v2114_v43  ;;  %1837 = vmatmul.f32.vlgmr.msra.gmra.mxu1 %v20004_v50 }
 0x18c   :  { %19945 = vst [vmem:[#allocation366_spill] sm:$0xff] %v13055_v17  ;;  %v13152_v24 = vsub.f32 %v160_v9, %v13122_v14  ;;  %2004 = vmatpush.msrb.mxu1 %v12742_v54  ;;  %v13158_v19 = vand.u32 4294901760, %v2120_v28 }
 0x18d   :  { %19946 = vst [vmem:[#allocation367_spill] sm:$0xff] %v13059_v18  ;;  %v13111_v18 = vand.u32 4294901760, %v13075_v3  ;;  %2110 = vmatpush.msrb.mxu3 %v13130_v42 }
 0x18e   :  { %19947 = vst [vmem:[#allocation368_spill] sm:$0xff] %v13064_v62  ;;  %2006 = vmatpush.msrb.mxu1 %v12748_v29  ;;  %v13181_v4 = vand.u32 4294901760, %v13152_v24 }
 0x18f   :  { %19948 = vst [vmem:[#allocation369_spill] sm:$0xff] %v13066_v51  ;;  %v2126_v32 = vsub.f32 %v13075_v3, %v13111_v18  ;;  %2116 = vmatpush.msrb.mxu3 %v13146_v58 }
 0x190   :  { %19949 = vst [vmem:[#allocation370_spill] sm:$0xff] %v13070_v48  ;;  %v152_v48 = vld [vmem:[#allocation8 + $0x248] sm:$0xff]  ;;  %2008 = vmatpush.msrb.mxu1 %v12757_v44 }
 0x191   :  { %19950 = vst [vmem:[#allocation371_spill] sm:$0xff] %v13075_v3  ;;  %v13174_v28 = vand.u32 4294901760, %v2126_v32  ;;  %2122 = vmatpush.msrb.mxu3 %v13158_v19 }
 0x192   :  { %19951 = vst [vmem:[#allocation372_spill] sm:$0xff] %v13079_v31  ;;  %v13133_v31 = vand.u32 4294901760, %v13102_v12  ;;  %2010 = vmatpush.msrb.mxu1 %v12766_v59 }
 0x193   :  { %19952 = vst [vmem:[#allocation373_spill] sm:$0xff] %v13084_v25  ;;  %v13138_v25 = vand.u32 4294901760, %v156_v47  ;;  %2128 = vmatpush.msrb.mxu3 %v13174_v28 }
 0x194   :  { %19953 = vst [vmem:[#allocation374_spill] sm:$0xff] %v13086_v63  ;;  %v2132_v43 = vsub.f32 %v13102_v12, %v13133_v31  ;;  %2012 = vmatpush.msrb.mxu1 %v12775_v53 }
 0x195   :  { %19954 = vst [vmem:[#allocation375_spill] sm:$0xff] %v13090_v16  ;;  %v13149_v16 = vand.u32 4294901760, %v13120_v37  ;;  %v13168_v9 = vsub.f32 %v156_v47, %v13138_v25  ;;  %2065 = vmatpush.msrb.mxu2 %v13138_v25 }
 0x196   :  { %19955 = vst [vmem:[#allocation376_spill] sm:$0xff] %v13093_v8  ;;  %v13154_v8 = vand.u32 4294901760, %v152_v48  ;;  %v13192_v32 = vand.u32 4294901760, %v2132_v43  ;;  %v2150_v43 = vsub.f32 %v13152_v24, %v13181_v4  ;;  %2014 = vmatpush.msrb.mxu1 %v12787_v45  ;;  %v312_v45 = vld [vmem:[#allocation8 + $0x748] sm:$0xff] }
 0x197   :  { %19956 = vst [vmem:[#allocation377_spill] sm:$0xff] %v13097_v11  ;;  %v148_v11 = vld [vmem:[#allocation8 + $0x228] sm:$0xff]  ;;  %v13197_v23 = vand.u32 4294901760, %v13168_v9 }
 0x198   :  { %19957 = vst [vmem:[#allocation378_spill] sm:$0xff] %v13102_v12  ;;  %v13184_v47 = vsub.f32 %v152_v48, %v13154_v8  ;;  %2134 = vmatpush.msrb.mxu3 %v13192_v32  ;;  %2016 = vmatpush.msrb.mxu1 %v12801_v35 }
 0x199   :  { %19958 = vst [vmem:[#allocation379_spill] sm:$0xff] %v13104_v61  ;;  %2067 = vmatpush.msrb.mxu2 %v13154_v8 }
 0x19a   :  { %19959 = vst [vmem:[#allocation380_spill] sm:$0xff] %v13108_v13  ;;  %v13165_v13 = vand.u32 4294901760, %v13136_v7  ;;  %v13211_v6 = vand.u32 4294901760, %v13184_v47  ;;  %2018 = vmatpush.msrb.mxu1 %v12815_v2 }
 0x19b   :  { %19960 = vst [vmem:[#allocation381_spill] sm:$0xff] %v13111_v18  ;;  %v144_v18 = vld [vmem:[#allocation8 + $0x208] sm:$0xff] }
 0x19c   :  { %19961 = vst [vmem:[#allocation382_spill] sm:$0xff] %v13115_v33  ;;  %v13170_v33 = vand.u32 4294901760, %v148_v11  ;;  %v13186_v54 = vand.u32 4294901760, %v144_v18  ;;  %2020 = vmatpush.msrb.mxu1 %v12822_v20 }
 0x19d   :  { %19962 = vst [vmem:[#allocation383_spill] sm:$0xff] %v13120_v37 }
 0x19e   :  { %19963 = vst [vmem:[#allocation384_spill] sm:$0xff] %v13122_v14  ;;  %v13200_v48 = vsub.f32 %v148_v11, %v13170_v33  ;;  %v13214_v44 = vsub.f32 %v144_v18, %v13186_v54  ;;  %v13231_v18 = vand.u32 4294901760, %v2150_v43  ;;  %2022 = vmatpush.msrb.mxu1 %v12838_v41  ;;  %2069 = vmatpush.msrb.mxu2 %v13170_v33 }
 0x19f   :  { %19964 = vst [vmem:[#allocation385_spill] sm:$0xff] %v13130_v42  ;;  %v2138_v42 = vsub.f32 %v13120_v37, %v13149_v16 }
 0x1a0   :  { %19965 = vst [vmem:[#allocation386_spill] sm:$0xff] %v13133_v31  ;;  %2024 = vmatpush.msrb.mxu1 %v12863_v49  ;;  %2071 = vmatpush.msrb.mxu2 %v13186_v54 }
 0x1a1   :  { %19966 = vst [vmem:[#allocation387_spill] sm:$0xff] %v13136_v7 }
 0x1a2   :  { %19967 = vst [vmem:[#allocation388_spill] sm:$0xff] %v13138_v25  ;;  %2026 = vmatpush.msrb.mxu1 %v12879_v34 }
 0x1a3   :  { %19968 = vst [vmem:[#allocation389_spill] sm:$0xff] %v13146_v58  ;;  %v2144_v58 = vsub.f32 %v13136_v7, %v13165_v13 }
 0x1a4   :  { %19969 = vst [vmem:[#allocation390_spill] sm:$0xff] %v13149_v16  ;;  %2028 = vmatpush.msrb.mxu1 %v12900_v56 }
 0x1a5   :  { %19970 = vst [vmem:[#allocation391_spill] sm:$0xff] %v13152_v24  ;;  %v13220_v11 = vand.u32 4294901760, %v2144_v58  ;;  %v2162_v58 = vsub.f32 %v13184_v47, %v13211_v6 }
 0x1a6   :  { %19971 = vst [vmem:[#allocation392_spill] sm:$0xff] %v13154_v8 }
 0x1a7   :  { %19972 = vst [vmem:[#allocation393_spill] sm:$0xff] %v13158_v19  ;;  %v13206_v19 = vand.u32 4294901760, %v2138_v42  ;;  %v2156_v42 = vsub.f32 %v13168_v9, %v13197_v23  ;;  %v13250_v15 = vand.u32 4294901760, %v2162_v58 }
 0x1a8   :  { %19973 = vst [vmem:[#allocation394_spill] sm:$0xff] %v13165_v13 }
 0x1a9   :  { %19974 = vst [vmem:[#allocation395_spill] sm:$0xff] %v13168_v9  ;;  %2140 = vmatpush.msrb.mxu3 %v13206_v19  ;;  %v13242_v57 = vand.u32 4294901760, %v2156_v42 }
 0x1aa   :  { %19975 = vst [vmem:[#allocation396_spill] sm:$0xff] %v13170_v33 }
 0x1ab   :  { %19976 = vst [vmem:[#allocation397_spill] sm:$0xff] %v13174_v28  ;;  %v13225_v28 = vand.u32 4294901760, %v13200_v48  ;;  %2146 = vmatpush.msrb.mxu3 %v13220_v11 }
 0x1ac   :  { %19977 = vst [vmem:[#allocation398_spill] sm:$0xff] %v13181_v4 }
 0x1ad   :  { %19978 = vst [vmem:[#allocation399_spill] sm:$0xff] %v13184_v47  ;;  %v2168_v43 = vsub.f32 %v13200_v48, %v13225_v28  ;;  %2152 = vmatpush.msrb.mxu3 %v13231_v18 }
 0x1ae   :  { %19979 = vst [vmem:[#allocation400_spill] sm:$0xff] %v13186_v54 }
 0x1af   :  { %19980 = vst [vmem:[#allocation401_spill] sm:$0xff] %v13192_v32  ;;  %v13236_v32 = vand.u32 4294901760, %v13214_v44  ;;  %2158 = vmatpush.msrb.mxu3 %v13242_v57  ;;  %v13258_v42 = vand.u32 4294901760, %v2168_v43  ;;  %v19994_v43 = vld [vmem:[#allocation147_spill] sm:$0xff] }
 0x1b0   :  { %19981 = vst [vmem:[#allocation402_spill] sm:$0xff] %v13197_v23  ;;  %1736 = vmatmul.f32.vlgmr.msra.gmra.mxu0 %v19994_v43  ;;  %v300_v43 = vld [vmem:[#allocation8 + $0x6e8] sm:$0xff] }
 0x1b1   :  { %19982 = vst [vmem:[#allocation403_spill] sm:$0xff] %v13200_v48  ;;  %2164 = vmatpush.msrb.mxu3 %v13250_v15  ;;  %2184 = vmatpush.msra.mxu0 %v12927_v36  ;;  %v20002_v36 = vld [vmem:[#allocation331_spill] sm:$0xff] }
 0x1b2   :  { %19983 = vst [vmem:[#allocation404_spill] sm:$0xff] %v13206_v19  ;;  %v2174_v19 = vsub.f32 %v13214_v44, %v13236_v32 }
 0x1b3   :  { %19984 = vst [vmem:[#allocation405_spill] sm:$0xff] %v13211_v6  ;;  %2170 = vmatpush.msrb.mxu3 %v13258_v42  ;;  %2187 = vmatpush.msra.mxu0 %v19997_v39 }
 0x1b4   :  { %19985 = vst [vmem:[#allocation406_spill] sm:$0xff] %v13214_v44  ;;  %v13264_v58 = vand.u32 4294901760, %v2174_v19  ;;  %v19995_v19 = vld [vmem:[#allocation141_spill] sm:$0xff] }
 0x1b5   :  { %19986 = vst [vmem:[#allocation407_spill] sm:$0xff] %v13220_v11  ;;  %1930 = vmatmul.f32.vlgmr.msra.gmra.mxu3 %v19995_v19 }
 0x1b6   :  { %19987 = vst [vmem:[#allocation408_spill] sm:$0xff] %v13225_v28  ;;  %2176 = vmatpush.msrb.mxu3 %v13264_v58 }
 0x1b7   :  { %19988 = vst [vmem:[#allocation409_spill] sm:$0xff] %v13231_v18  ;;  %v20005_v18 = vld [vmem:[#allocation358_spill] sm:$0xff] }
 0x1b8   :  { %19989 = vst [vmem:[#allocation410_spill] sm:$0xff] %v13236_v32  ;;  %2345 = vmatpush.msra.mxu3 %v12889_v60  ;;  %1999 = vmatmul.f32.vlgmr.msrb.gmra.mxu0 %v20004_v50 }
 0x1b9   :  { %19990 = vst [vmem:[#allocation411_spill] sm:$0xff] %v13242_v57  ;;  %v20003_v57 = vld [vmem:[#allocation353_spill] sm:$0xff] }
 0x1ba   :  { %19991 = vst [vmem:[#allocation412_spill] sm:$0xff] %v13250_v15  ;;  %2347 = vmatpush.msra.mxu3 %v12907_v22  ;;  %v20000_v15 = vld [vmem:[#allocation347_spill] sm:$0xff] }
 0x1bb   :  { %19992 = vst [vmem:[#allocation413_spill] sm:$0xff] %v13258_v42  ;;  %v19996_v42 = vld [vmem:[#allocation136_spill] sm:$0xff]  ;;  %2190 = vmatpush.msra.mxu0 %v20000_v15  ;;  %v20007_v15 = vld [vmem:[#allocation363_spill] sm:$0xff] }
 0x1bc   :  { %19993 = vst [vmem:[#allocation414_spill] sm:$0xff] %v13264_v58  ;;  %1891 = vmatmul.f32.vlgmr.msra.gmra.mxu2 %v19996_v42  ;;  %v19999_v58 = vld [vmem:[#allocation330_spill] sm:$0xff]  ;;  %2349 = vmatpush.msra.mxu3 %v12939_v52 }
 0x1bd   :  { %2278 = vmatpush.msra.mxu2 %v19998_v1  ;;  %2030 = vmatpush.msrb.mxu1 %v19999_v58  ;;  %v20006_v1 = vld [vmem:[#allocation337_spill] sm:$0xff] }
 0x1be   :  { %2193 = vmatpush.msra.mxu0 %v20003_v57  ;;  %2351 = vmatpush.msra.mxu3 %v12960_v21 }
 0x1bf   :  { %2282 = vmatpush.msra.mxu2 %v20001_v5  ;;  %2032 = vmatpush.msrb.mxu1 %v20002_v36  ;;  %v20008_v5 = vld [vmem:[#allocation150_spill] sm:$0xff]  ;;  %v324_v36 = vld [vmem:[#allocation8 + $0x7a8] sm:$0xff] }
 0x1c0   :  { %2196 = vmatpush.msra.mxu0 %v13025_v46  ;;  %2353 = vmatpush.msra.mxu3 %v12982_v30  ;;  %v13532_v34 = vand.u32 4294901760, %v324_v36 }
 0x1c1   :  { %2286 = vmatpush.msra.mxu2 %v20005_v18  ;;  %2034 = vmatpush.msrb.mxu1 %v20006_v1  ;;  %v20009_v18 = vld [vmem:[#allocation144_spill] sm:$0xff] }
 0x1c2   :  { %2199 = vmatpush.msra.mxu0 %v13046_v27  ;;  %2355 = vmatpush.msra.mxu3 %v13004_v10  ;;  %v212_v1 = vld [vmem:[#allocation8 + $0x428] sm:$0xff]  ;;  %20065 = vst [vmem:[#allocation465_spill] sm:$0xff] %v13532_v34 }
 0x1c3   :  { %2237 = vmatpush.msra.mxu1 %v12889_v60  ;;  %2290 = vmatpush.msra.mxu2 %v20007_v15  ;;  %v20010_v15 = vld [vmem:[#allocation373_spill] sm:$0xff] }
 0x1c4   :  { %2077 = vmatmul.f32.vlgmr.msrb.gmra.mxu2 %v20008_v5  ;;  %2178 = vmatmul.f32.vlgmr.msrb.gmra.mxu3 %v20009_v18 }
 0x1c5   :  { %2239 = vmatpush.msra.mxu1 %v12907_v22  ;;  %2294 = vmatpush.msra.mxu2 %v13064_v62  ;;  %v20011_v62 = vld [vmem:[#allocation376_spill] sm:$0xff] }
 0x1c6   :  { %2202 = vmatpush.msra.mxu0 %v13055_v17  ;;  %2357 = vmatpush.msra.mxu3 %v13013_v26  ;;  %v20012_v17 = vld [vmem:[#allocation381_spill] sm:$0xff] }
 0x1c7   :  { %2241 = vmatpush.msra.mxu1 %v12939_v52  ;;  %2298 = vmatpush.msra.mxu2 %v20010_v15  ;;  %v240_v15 = vld [vmem:[#allocation8 + $0x508] sm:$0xff] }
 0x1c8   :  { %2036 = vmatmul.f32.vlgmr.msrb.gmra.mxu1 %v20004_v50  ;;  %2205 = vmatpush.msra.mxu0 %v13075_v3  ;;  %v13406_v39 = vand.u32 4294901760, %v240_v15 }
 0x1c9   :  { %2243 = vmatpush.msra.mxu1 %v12960_v21  ;;  %2302 = vmatpush.msra.mxu2 %v20011_v62  ;;  %v268_v62 = vld [vmem:[#allocation8 + $0x5e8] sm:$0xff] }
 0x1ca   :  { %2359 = vmatpush.msra.mxu3 %v13034_v55  ;;  %2208 = vmatpush.msra.mxu0 %v13102_v12  ;;  %v20022_v12 = vld [vmem:[#allocation148_spill] sm:$0xff]  ;;  %20031 = vst [vmem:[#allocation432_spill] sm:$0xff] %v13406_v39  ;;  %v13433_v11 = vsub.f32 %v240_v15, %v13406_v39 }
 0x1cb   :  { %2245 = vmatpush.msra.mxu1 %v12982_v30  ;;  %2306 = vmatpush.msra.mxu2 %v20012_v17  ;;  %v252_v17 = vld [vmem:[#allocation8 + $0x568] sm:$0xff] }
 0x1cc   :  { %2361 = vmatpush.msra.mxu3 %v13066_v51  ;;  %2211 = vmatpush.msra.mxu0 %v13120_v37  ;;  %v264_v37 = vld [vmem:[#allocation8 + $0x5c8] sm:$0xff]  ;;  %20037 = vst [vmem:[#allocation438_spill] sm:$0xff] %v13433_v11 }
 0x1cd   :  { %2247 = vmatpush.msra.mxu1 %v13004_v10  ;;  %2310 = vmatpush.msra.mxu2 %v13133_v31  ;;  %v13330_v31 = vand.u32 4294901760, %v268_v62  ;;  %v13470_v10 = vand.u32 4294901760, %v13433_v11  ;;  %v328_v30 = vld [vmem:[#allocation8 + $0x7c8] sm:$0xff] }
 0x1ce   :  { %2363 = vmatpush.msra.mxu3 %v13086_v63  ;;  %2214 = vmatpush.msra.mxu0 %v13136_v7  ;;  %v260_v7 = vld [vmem:[#allocation8 + $0x5a8] sm:$0xff] }
 0x1cf   :  { %2249 = vmatpush.msra.mxu1 %v13013_v26  ;;  %2314 = vmatpush.msra.mxu2 %v13149_v16  ;;  %20013 = vst [vmem:[#allocation415_spill] sm:$0xff] %v13330_v31  ;;  %v13336_v16 = vand.u32 4294901760, %v264_v37  ;;  %v332_v26 = vld [vmem:[#allocation8 + $0x7e8] sm:$0xff] }
 0x1d0   :  { %2365 = vmatpush.msra.mxu3 %v13104_v61  ;;  %2217 = vmatpush.msra.mxu0 %v13152_v24  ;;  %v256_v24 = vld [vmem:[#allocation8 + $0x588] sm:$0xff]  ;;  %20048 = vst [vmem:[#allocation448_spill] sm:$0xff] %v13470_v10 }
 0x1d1   :  { %2251 = vmatpush.msra.mxu1 %v13034_v55  ;;  %2318 = vmatpush.msra.mxu2 %v13165_v13  ;;  %20014 = vst [vmem:[#allocation416_spill] sm:$0xff] %v13336_v16  ;;  %v13345_v13 = vand.u32 4294901760, %v260_v7  ;;  %v13451_v55 = vand.u32 4294901760, %v228_v38 }
 0x1d2   :  { %2367 = vmatpush.msra.mxu3 %v13122_v14  ;;  %2220 = vmatpush.msra.mxu0 %v13168_v9  ;;  %v13343_v9 = vsub.f32 %v268_v62, %v13330_v31  ;;  %v13358_v62 = vand.u32 4294901760, %v252_v17 }
 0x1d3   :  { %2253 = vmatpush.msra.mxu1 %v13066_v51  ;;  %2322 = vmatpush.msra.mxu2 %v13181_v4  ;;  %20016 = vst [vmem:[#allocation418_spill] sm:$0xff] %v13345_v13  ;;  %v13349_v4 = vand.u32 4294901760, %v256_v24 }
 0x1d4   :  { %2369 = vmatpush.msra.mxu3 %v13138_v25  ;;  %2223 = vmatpush.msra.mxu0 %v13184_v47  ;;  %20015 = vst [vmem:[#allocation417_spill] sm:$0xff] %v13343_v9  ;;  %v248_v47 = vld [vmem:[#allocation8 + $0x548] sm:$0xff]  ;;  %v13383_v3 = vsub.f32 %v252_v17, %v13358_v62 }
 0x1d5   :  { %2255 = vmatpush.msra.mxu1 %v13086_v63  ;;  %2326 = vmatpush.msra.mxu2 %v13197_v23  ;;  %20017 = vst [vmem:[#allocation419_spill] sm:$0xff] %v13349_v4  ;;  %v13354_v23 = vsub.f32 %v264_v37, %v13336_v16  ;;  %v13371_v37 = vsub.f32 %v256_v24, %v13349_v4 }
 0x1d6   :  { %2371 = vmatpush.msra.mxu3 %v13154_v8  ;;  %2226 = vmatpush.msra.mxu0 %v13200_v48  ;;  %20019 = vst [vmem:[#allocation421_spill] sm:$0xff] %v13358_v62  ;;  %v13363_v48 = vsub.f32 %v260_v7, %v13345_v13 }
 0x1d7   :  { %2257 = vmatpush.msra.mxu1 %v13104_v61  ;;  %2330 = vmatpush.msra.mxu2 %v13211_v6  ;;  %20018 = vst [vmem:[#allocation420_spill] sm:$0xff] %v13354_v23  ;;  %v13366_v6 = vand.u32 4294901760, %v13343_v9  ;;  %v13378_v7 = vand.u32 4294901760, %v13354_v23  ;;  %v13397_v17 = vand.u32 4294901760, %v13371_v37 }
 0x1d8   :  { %2373 = vmatpush.msra.mxu3 %v13170_v33  ;;  %2229 = vmatpush.msra.mxu0 %v13214_v44  ;;  %20020 = vst [vmem:[#allocation422_spill] sm:$0xff] %v13363_v48  ;;  %v244_v44 = vld [vmem:[#allocation8 + $0x528] sm:$0xff]  ;;  %v13392_v46 = vand.u32 4294901760, %v13363_v48 }
 0x1d9   :  { %2259 = vmatpush.msra.mxu1 %v13122_v14  ;;  %2334 = vmatpush.msra.mxu2 %v13225_v28  ;;  %20021 = vst [vmem:[#allocation423_spill] sm:$0xff] %v13366_v6  ;;  %v13375_v28 = vand.u32 4294901760, %v248_v47  ;;  %v2425_v24 = vsub.f32 %v13343_v9, %v13366_v6  ;;  %v13389_v27 = vand.u32 4294901760, %v244_v44 }
 0x1da   :  { %2375 = vmatpush.msra.mxu3 %v13186_v54  ;;  %2232 = vmatmul.f32.vlgmr.msra.gmra.mxu0 %v20022_v12  ;;  %20023 = vst [vmem:[#allocation424_spill] sm:$0xff] %v13371_v37  ;;  %v13602_v12 = vand.u32 4294901760, %v312_v45 }
 0x1db   :  { %2382 = vmatpush.msrb.mxu0 %v13330_v31  ;;  %2261 = vmatpush.msra.mxu1 %v13138_v25  ;;  %20024 = vst [vmem:[#allocation425_spill] sm:$0xff] %v13375_v28  ;;  %v13404_v57 = vsub.f32 %v248_v47, %v13375_v28  ;;  %v232_v25 = vld [vmem:[#allocation8 + $0x4c8] sm:$0xff]  ;;  %v13415_v14 = vand.u32 4294901760, %v2425_v24  ;;  %v2437_v47 = vsub.f32 %v13363_v48, %v13392_v46 }
 0x1dc   :  { %2578 = vmatpush.msrb.mxu3 %v13330_v31  ;;  %20025 = vst [vmem:[#allocation426_spill] sm:$0xff] %v13378_v7  ;;  %2338 = vmatpush.msra.mxu2 %v13236_v32  ;;  %v236_v32 = vld [vmem:[#allocation8 + $0x4e8] sm:$0xff] }
 0x1dd   :  { %20026 = vst [vmem:[#allocation427_spill] sm:$0xff] %v13383_v3  ;;  %2384 = vmatpush.msrb.mxu0 %v13336_v16  ;;  %2263 = vmatpush.msra.mxu1 %v13154_v8  ;;  %v13411_v8 = vand.u32 4294901760, %v13383_v3  ;;  %v13422_v61 = vand.u32 4294901760, %v236_v32  ;;  %v13438_v63 = vand.u32 4294901760, %v13404_v57 }
 0x1de   :  { %2580 = vmatpush.msrb.mxu3 %v13336_v16  ;;  %2525 = vmatpush.msrb.mxu2 %v13343_v9  ;;  %20027 = vst [vmem:[#allocation428_spill] sm:$0xff] %v13389_v27  ;;  %v2431_v9 = vsub.f32 %v13354_v23, %v13378_v7 }
 0x1df   :  { %20028 = vst [vmem:[#allocation429_spill] sm:$0xff] %v13392_v46  ;;  %2340 = vmatmul.f32.vlgmr.msra.gmra.mxu2 %v20009_v18  ;;  %2386 = vmatpush.msrb.mxu0 %v13345_v13  ;;  %v2449_v51 = vsub.f32 %v13383_v3, %v13411_v8  ;;  %v13449_v15 = vsub.f32 %v236_v32, %v13422_v61 }
 0x1e0   :  { %20029 = vst [vmem:[#allocation430_spill] sm:$0xff] %v13397_v17  ;;  %2528 = vmatpush.msrb.mxu2 %v13354_v23  ;;  %2582 = vmatpush.msrb.mxu3 %v13345_v13  ;;  %v13420_v23 = vsub.f32 %v244_v44, %v13389_v27  ;;  %v13430_v24 = vand.u32 4294901760, %v2431_v9  ;;  %v13435_v44 = vand.u32 4294901760, %v232_v25  ;;  %v13446_v9 = vand.u32 4294901760, %v2437_v47 }
 0x1e1   :  { %20030 = vst [vmem:[#allocation431_spill] sm:$0xff] %v13404_v57  ;;  %2265 = vmatpush.msra.mxu1 %v13170_v33  ;;  %2377 = vmatmul.f32.vlgmr.msra.gmra.mxu3 %v20009_v18  ;;  %v2443_v33 = vsub.f32 %v13371_v37, %v13397_v17  ;;  %v2455_v32 = vsub.f32 %v13404_v57, %v13438_v63  ;;  %v13488_v52 = vand.u32 4294901760, %v13449_v15  ;;  %v304_v18 = vld [vmem:[#allocation8 + $0x708] sm:$0xff] }
 0x1e2   :  { %20032 = vst [vmem:[#allocation433_spill] sm:$0xff] %v13411_v8  ;;  %2388 = vmatpush.msrb.mxu0 %v13349_v4  ;;  %2531 = vmatpush.msrb.mxu2 %v13363_v48  ;;  %v20040_v48 = vld [vmem:[#allocation149_spill] sm:$0xff]  ;;  %v13454_v40 = vand.u32 4294901760, %v13420_v23  ;;  %v13465_v47 = vsub.f32 %v232_v25, %v13435_v44 }
 0x1e3   :  { %20033 = vst [vmem:[#allocation434_spill] sm:$0xff] %v13415_v14  ;;  %2584 = vmatpush.msrb.mxu3 %v13349_v4  ;;  %2267 = vmatpush.msra.mxu1 %v13186_v54  ;;  %v224_v54 = vld [vmem:[#allocation8 + $0x488] sm:$0xff] }
 0x1e4   :  { %20034 = vst [vmem:[#allocation435_spill] sm:$0xff] %v13420_v23  ;;  %2390 = vmatpush.msrb.mxu0 %v13358_v62  ;;  %2271 = vmatmul.f32.vlgmr.msra.gmra.mxu1 %v20040_v48  ;;  %v13467_v0 = vand.u32 4294901760, %v224_v54  ;;  %v2461_v25 = vsub.f32 %v13420_v23, %v13454_v40  ;;  %v13504_v60 = vand.u32 4294901760, %v13465_v47 }
 0x1e5   :  { %20035 = vst [vmem:[#allocation436_spill] sm:$0xff] %v13422_v61  ;;  %2534 = vmatpush.msrb.mxu2 %v13371_v37  ;;  %2427 = vmatpush.msrb.mxu1 %v13415_v14  ;;  %v13458_v37 = vand.u32 4294901760, %v2443_v33  ;;  %v220_v14 = vld [vmem:[#allocation8 + $0x468] sm:$0xff]  ;;  %v13474_v33 = vand.u32 4294901760, %v2449_v51  ;;  %v13492_v51 = vand.u32 4294901760, %v328_v30 }
 0x1e6   :  { %20036 = vst [vmem:[#allocation437_spill] sm:$0xff] %v13430_v24  ;;  %2586 = vmatpush.msrb.mxu3 %v13358_v62  ;;  %2392 = vmatpush.msrb.mxu0 %v13375_v28  ;;  %v13485_v21 = vand.u32 4294901760, %v220_v14  ;;  %v13501_v22 = vsub.f32 %v224_v54, %v13467_v0  ;;  %v13515_v54 = vand.u32 4294901760, %v2461_v25  ;;  %v2479_v49 = vsub.f32 %v13465_v47, %v13504_v60 }
 0x1e7   :  { %20038 = vst [vmem:[#allocation439_spill] sm:$0xff] %v13435_v44  ;;  %2537 = vmatpush.msrb.mxu2 %v13383_v3  ;;  %2433 = vmatpush.msrb.mxu1 %v13430_v24  ;;  %v13476_v24 = vand.u32 4294901760, %v332_v26  ;;  %v13483_v3 = vsub.f32 %v228_v38, %v13451_v55  ;;  %v2467_v38 = vsub.f32 %v13433_v11, %v13470_v10 }
 0x1e8   :  { %20039 = vst [vmem:[#allocation440_spill] sm:$0xff] %v13438_v63  ;;  %2588 = vmatpush.msrb.mxu3 %v13375_v28  ;;  %2394 = vmatpush.msrb.mxu0 %v13389_v27  ;;  %v13520_v58 = vsub.f32 %v220_v14, %v13485_v21  ;;  %v13530_v25 = vsub.f32 %v328_v30, %v13492_v51  ;;  %v13541_v41 = vand.u32 4294901760, %v13501_v22  ;;  %v13577_v53 = vand.u32 4294901760, %v2479_v49 }
 0x1e9   :  { %20041 = vst [vmem:[#allocation441_spill] sm:$0xff] %v13446_v9  ;;  %2540 = vmatpush.msrb.mxu2 %v13404_v57  ;;  %2439 = vmatpush.msrb.mxu1 %v13446_v9  ;;  %v216_v57 = vld [vmem:[#allocation8 + $0x448] sm:$0xff]  ;;  %v13496_v9 = vand.u32 4294901760, %v2455_v32  ;;  %v13511_v32 = vsub.f32 %v332_v26, %v13476_v24  ;;  %v13523_v56 = vand.u32 4294901760, %v13483_v3  ;;  %v13527_v26 = vand.u32 4294901760, %v212_v1 }
 0x1ea   :  { %20042 = vst [vmem:[#allocation442_spill] sm:$0xff] %v13449_v15  ;;  %2590 = vmatpush.msrb.mxu3 %v13389_v27  ;;  %2396 = vmatpush.msrb.mxu0 %v13406_v39  ;;  %v13536_v14 = vand.u32 4294901760, %v2467_v38  ;;  %v316_v38 = vld [vmem:[#allocation8 + $0x768] sm:$0xff]  ;;  %v2491_v59 = vsub.f32 %v13501_v22, %v13541_v41 }
 0x1eb   :  { %20043 = vst [vmem:[#allocation443_spill] sm:$0xff] %v13451_v55  ;;  %2543 = vmatpush.msrb.mxu2 %v13420_v23  ;;  %2445 = vmatpush.msrb.mxu1 %v13458_v37  ;;  %v2473_v23 = vsub.f32 %v13449_v15, %v13488_v52  ;;  %v2485_v2 = vsub.f32 %v13483_v3, %v13523_v56 }
 0x1ec   :  { %20044 = vst [vmem:[#allocation444_spill] sm:$0xff] %v13454_v40  ;;  %2592 = vmatpush.msrb.mxu3 %v13406_v39  ;;  %2398 = vmatpush.msrb.mxu0 %v13422_v61 }
 0x1ed   :  { %20045 = vst [vmem:[#allocation445_spill] sm:$0xff] %v13458_v37  ;;  %2546 = vmatpush.msrb.mxu2 %v13433_v11  ;;  %v13508_v37 = vand.u32 4294901760, %v216_v57  ;;  %2451 = vmatpush.msrb.mxu1 %v13474_v33  ;;  %v320_v11 = vld [vmem:[#allocation8 + $0x788] sm:$0xff]  ;;  %v13555_v20 = vand.u32 4294901760, %v2473_v23  ;;  %v13573_v23 = vsub.f32 %v324_v36, %v13532_v34  ;;  %v13595_v49 = vand.u32 4294901760, %v2485_v2 }
 0x1ee   :  { %20046 = vst [vmem:[#allocation446_spill] sm:$0xff] %v13465_v47  ;;  %2594 = vmatpush.msrb.mxu3 %v13422_v61  ;;  %2400 = vmatpush.msrb.mxu0 %v13435_v44 }
 0x1ef   :  { %20047 = vst [vmem:[#allocation447_spill] sm:$0xff] %v13467_v0  ;;  %2549 = vmatpush.msrb.mxu2 %v13449_v15  ;;  %2457 = vmatpush.msrb.mxu1 %v13496_v9  ;;  %v13546_v30 = vsub.f32 %v216_v57, %v13508_v37  ;;  %v13549_v15 = vand.u32 4294901760, %v13511_v32  ;;  %v13562_v57 = vand.u32 4294901760, %v13520_v58 }
 0x1f0   :  { %20049 = vst [vmem:[#allocation449_spill] sm:$0xff] %v13474_v33  ;;  %v208_v33 = vld [vmem:[#allocation8 + $0x408] sm:$0xff]  ;;  %2596 = vmatpush.msrb.mxu3 %v13435_v44  ;;  %2402 = vmatpush.msrb.mxu0 %v13451_v55 }
 0x1f1   :  { %20050 = vst [vmem:[#allocation450_spill] sm:$0xff] %v13476_v24  ;;  %2552 = vmatpush.msrb.mxu2 %v13465_v47  ;;  %2463 = vmatpush.msrb.mxu1 %v13515_v54  ;;  %v13559_v35 = vand.u32 4294901760, %v208_v33  ;;  %v13567_v47 = vsub.f32 %v212_v1, %v13527_v26  ;;  %v308_v1 = vld [vmem:[#allocation8 + $0x728] sm:$0xff]  ;;  %v2766_v36 = vsub.f32 %v13511_v32, %v13549_v15  ;;  %v13588_v29 = vand.u32 4294901760, %v13546_v30 }
 0x1f2   :  { %20051 = vst [vmem:[#allocation451_spill] sm:$0xff] %v13483_v3  ;;  %2598 = vmatpush.msrb.mxu3 %v13451_v55  ;;  %2404 = vmatpush.msrb.mxu0 %v13467_v0  ;;  %v2497_v48 = vsub.f32 %v13520_v58, %v13562_v57  ;;  %v13614_v5 = vand.u32 4294901760, %v308_v1 }
 0x1f3   :  { %20052 = vst [vmem:[#allocation452_spill] sm:$0xff] %v13485_v21  ;;  %2555 = vmatpush.msrb.mxu2 %v13483_v3  ;;  %2469 = vmatpush.msrb.mxu1 %v13536_v14  ;;  %v13581_v3 = vand.u32 4294901760, %v316_v38  ;;  %v13612_v2 = vand.u32 4294901760, %v13567_v47  ;;  %v2503_v42 = vsub.f32 %v13546_v30, %v13588_v29 }
 0x1f4   :  { %20053 = vst [vmem:[#allocation453_spill] sm:$0xff] %v13488_v52  ;;  %2600 = vmatpush.msrb.mxu3 %v13467_v0  ;;  %2406 = vmatpush.msrb.mxu0 %v13485_v21 }
 0x1f5   :  { %20054 = vst [vmem:[#allocation454_spill] sm:$0xff] %v13492_v51  ;;  %2558 = vmatpush.msrb.mxu2 %v13501_v22  ;;  %2475 = vmatpush.msrb.mxu1 %v13555_v20  ;;  %v13621_v50 = vsub.f32 %v316_v38, %v13581_v3 }
 0x1f6   :  { %20055 = vst [vmem:[#allocation455_spill] sm:$0xff] %v13496_v9  ;;  %v13551_v9 = vand.u32 4294901760, %v320_v11  ;;  %2602 = vmatpush.msrb.mxu3 %v13485_v21  ;;  %2408 = vmatpush.msrb.mxu0 %v13508_v37 }
 0x1f7   :  { %20056 = vst [vmem:[#allocation456_spill] sm:$0xff] %v13501_v22  ;;  %v13600_v22 = vsub.f32 %v208_v33, %v13559_v35  ;;  %2561 = vmatpush.msrb.mxu2 %v13520_v58  ;;  %2481 = vmatpush.msrb.mxu1 %v13577_v53  ;;  %v13618_v33 = vand.u32 4294901760, %v2491_v59  ;;  %v13636_v59 = vand.u32 4294901760, %v2497_v48  ;;  %v13653_v48 = vsub.f32 %v308_v1, %v13614_v5 }
 0x1f8   :  { %20057 = vst [vmem:[#allocation457_spill] sm:$0xff] %v13504_v60  ;;  %2604 = vmatpush.msrb.mxu3 %v13508_v37  ;;  %2410 = vmatpush.msrb.mxu0 %v13527_v26 }
 0x1f9   :  { %20058 = vst [vmem:[#allocation458_spill] sm:$0xff] %v13508_v37  ;;  %2564 = vmatpush.msrb.mxu2 %v13546_v30  ;;  %2487 = vmatpush.msrb.mxu1 %v13595_v49  ;;  %v13639_v38 = vand.u32 4294901760, %v13600_v22  ;;  %v13660_v37 = vand.u32 4294901760, %v300_v43 }
 0x1fa   :  { %20059 = vst [vmem:[#allocation459_spill] sm:$0xff] %v13511_v32  ;;  %2606 = vmatpush.msrb.mxu3 %v13527_v26  ;;  %2412 = vmatpush.msrb.mxu0 %v13559_v35 }
 0x1fb   :  { %20060 = vst [vmem:[#allocation460_spill] sm:$0xff] %v13515_v54  ;;  %v13570_v54 = vand.u32 4294901760, %v13530_v25  ;;  %2567 = vmatpush.msrb.mxu2 %v13567_v47  ;;  %2493 = vmatpush.msrb.mxu1 %v13618_v33 }
 0x1fc   :  { %20061 = vst [vmem:[#allocation461_spill] sm:$0xff] %v13520_v58  ;;  %v13625_v58 = vand.u32 4294901760, %v2766_v36  ;;  %v13642_v36 = vsub.f32 %v312_v45, %v13602_v12  ;;  %2608 = vmatpush.msrb.mxu3 %v13559_v35  ;;  %v13658_v45 = vand.u32 4294901760, %v13621_v50  ;;  %2619 = vmatpush.msra.mxu0 %v13366_v6  ;;  %v13687_v6 = vand.u32 4294901760, %v13653_v48 }
 0x1fd   :  { %20062 = vst [vmem:[#allocation462_spill] sm:$0xff] %v13523_v56  ;;  %2499 = vmatpush.msrb.mxu1 %v13636_v59  ;;  %2570 = vmatpush.msrb.mxu2 %v13600_v22 }
 0x1fe   :  { %20063 = vst [vmem:[#allocation463_spill] sm:$0xff] %v13527_v26  ;;  %v296_v26 = vld [vmem:[#allocation8 + $0x6c8] sm:$0xff]  ;;  %2768 = vmatpush.msra.mxu3 %v13625_v58  ;;  %2623 = vmatpush.msra.mxu0 %v13378_v7 }
 0x1ff   :  { %20064 = vst [vmem:[#allocation464_spill] sm:$0xff] %v13530_v25  ;;  %2723 = vmatpush.msra.mxu2 %v13476_v24  ;;  %v284_v7 = vld [vmem:[#allocation8 + $0x668] sm:$0xff] }
 0x200   :  { %20066 = vst [vmem:[#allocation466_spill] sm:$0xff] %v13536_v14  ;;  %v13591_v14 = vsub.f32 %v320_v11, %v13551_v9  ;;  %v2772_v11 = vsub.f32 %v13530_v25, %v13570_v54  ;;  %2627 = vmatpush.msra.mxu0 %v13392_v46  ;;  %v280_v46 = vld [vmem:[#allocation8 + $0x648] sm:$0xff] }
 0x201   :  { %20067 = vst [vmem:[#allocation467_spill] sm:$0xff] %v13541_v41  ;;  %2725 = vmatpush.msra.mxu2 %v13492_v51 }
 0x202   :  { %20068 = vst [vmem:[#allocation468_spill] sm:$0xff] %v13546_v30  ;;  %v13630_v19 = vand.u32 4294901760, %v13591_v14  ;;  %v13646_v30 = vand.u32 4294901760, %v2772_v11  ;;  %v20099_v11 = vld [vmem:[#allocation227_spill] sm:$0xff]  ;;  %2631 = vmatpush.msra.mxu0 %v13397_v17 }
 0x203   :  { %20069 = vst [vmem:[#allocation469_spill] sm:$0xff] %v13549_v15  ;;  %2418 = vmatmul.f32.vlgmr.msrb.gmra.mxu0 %v20099_v11  ;;  %v13676_v11 = vand.u32 4294901760, %v13642_v36  ;;  %2727 = vmatpush.msra.mxu2 %v13532_v34 }
 0x204   :  { %20070 = vst [vmem:[#allocation470_spill] sm:$0xff] %v13551_v9  ;;  %v2784_v1 = vsub.f32 %v13591_v14, %v13630_v19  ;;  %2774 = vmatpush.msra.mxu3 %v13646_v30  ;;  %2635 = vmatpush.msra.mxu0 %v13411_v8 }
 0x205   :  { %20071 = vst [vmem:[#allocation471_spill] sm:$0xff] %v13555_v20  ;;  %v13609_v20 = vand.u32 4294901760, %v13573_v23  ;;  %2729 = vmatpush.msra.mxu2 %v13551_v9 }
 0x206   :  { %20072 = vst [vmem:[#allocation472_spill] sm:$0xff] %v13559_v35  ;;  %v2515_v35 = vsub.f32 %v13600_v22, %v13639_v38  ;;  %2639 = vmatpush.msra.mxu0 %v13438_v63 }
 0x207   :  { %20073 = vst [vmem:[#allocation473_spill] sm:$0xff] %v13562_v57  ;;  %2731 = vmatpush.msra.mxu2 %v13581_v3 }
 0x208   :  { %20074 = vst [vmem:[#allocation474_spill] sm:$0xff] %v13567_v47  ;;  %2643 = vmatpush.msra.mxu0 %v13454_v40 }
 0x209   :  { %20075 = vst [vmem:[#allocation475_spill] sm:$0xff] %v13570_v54  ;;  %v2778_v54 = vsub.f32 %v13573_v23, %v13609_v20  ;;  %2733 = vmatpush.msra.mxu2 %v13602_v12 }
 0x20a   :  { %20076 = vst [vmem:[#allocation476_spill] sm:$0xff] %v13573_v23  ;;  %2647 = vmatpush.msra.mxu0 %v13470_v10 }
 0x20b   :  { %20077 = vst [vmem:[#allocation477_spill] sm:$0xff] %v13577_v53  ;;  %v13632_v53 = vand.u32 4294901760, %v304_v18  ;;  %2735 = vmatpush.msra.mxu2 %v13614_v5 }
 0x20c   :  { %20078 = vst [vmem:[#allocation478_spill] sm:$0xff] %v13581_v3  ;;  %2651 = vmatpush.msra.mxu0 %v13488_v52 }
 0x20d   :  { %20079 = vst [vmem:[#allocation479_spill] sm:$0xff] %v13588_v29  ;;  %2737 = vmatpush.msra.mxu2 %v13632_v53 }
 0x20e   :  { %20080 = vst [vmem:[#allocation480_spill] sm:$0xff] %v13591_v14  ;;  %v13694_v14 = vsub.f32 %v300_v43, %v13660_v37  ;;  %v2796_v43 = vsub.f32 %v13642_v36, %v13676_v11  ;;  %2655 = vmatpush.msra.mxu0 %v13504_v60 }
 0x20f   :  { %20081 = vst [vmem:[#allocation481_spill] sm:$0xff] %v13595_v49  ;;  %v2509_v49 = vsub.f32 %v13567_v47, %v13612_v2  ;;  %v13669_v47 = vsub.f32 %v304_v18, %v13632_v53  ;;  %2739 = vmatpush.msra.mxu2 %v13660_v37 }
 0x210   :  { %20082 = vst [vmem:[#allocation482_spill] sm:$0xff] %v13600_v22  ;;  %2659 = vmatpush.msra.mxu0 %v13523_v56 }
 0x211   :  { %20083 = vst [vmem:[#allocation483_spill] sm:$0xff] %v13602_v12  ;;  %v13684_v18 = vand.u32 4294901760, %v2509_v49  ;;  %v13700_v49 = vand.u32 4294901760, %v2784_v1  ;;  %v2802_v1 = vsub.f32 %v13653_v48, %v13687_v6 }
 0x212   :  { %20084 = vst [vmem:[#allocation484_spill] sm:$0xff] %v13609_v20  ;;  %v13664_v20 = vand.u32 4294901760, %v2503_v42  ;;  %v13682_v42 = vand.u32 4294901760, %v2778_v54  ;;  %v20109_v54 = vld [vmem:[#allocation195_spill] sm:$0xff]  ;;  %2663 = vmatpush.msra.mxu0 %v13541_v41 }
 0x213   :  { %20085 = vst [vmem:[#allocation485_spill] sm:$0xff] %v13612_v2  ;;  %2573 = vmatmul.f32.vlgmr.msrb.gmra.mxu2 %v20109_v54  ;;  %v20115_v54 = vld [vmem:[#allocation206_spill] sm:$0xff] }
 0x214   :  { %20086 = vst [vmem:[#allocation486_spill] sm:$0xff] %v13614_v5  ;;  %2505 = vmatpush.msrb.mxu1 %v13664_v20  ;;  %2780 = vmatpush.msra.mxu3 %v13682_v42 }
 0x215   :  { %20087 = vst [vmem:[#allocation487_spill] sm:$0xff] %v13618_v33  ;;  %v292_v33 = vld [vmem:[#allocation8 + $0x6a8] sm:$0xff]  ;;  %2612 = vmatmul.f32.vlgmr.msrb.gmra.mxu3 %v20115_v54  ;;  %v13746_v54 = vand.u32 4294901760, %v280_v46  ;;  %2667 = vmatpush.msra.mxu0 %v13562_v57  ;;  %v101_v57 = vld [vmem:[#allocation8 + $0xb0] sm:$0xff] }
 0x216   :  { %20088 = vst [vmem:[#allocation488_spill] sm:$0xff] %v13621_v50  ;;  %v13696_v22 = vand.u32 4294901760, %v292_v33  ;;  %2511 = vmatpush.msrb.mxu1 %v13684_v18  ;;  %2786 = vmatpush.msra.mxu3 %v13700_v49 }
 0x217   :  { %20089 = vst [vmem:[#allocation489_spill] sm:$0xff] %v13625_v58  ;;  %v13678_v58 = vand.u32 4294901760, %v296_v26  ;;  %2671 = vmatpush.msra.mxu0 %v13588_v29  ;;  %v105_v29 = vld [vmem:[#allocation8 + $0xd0] sm:$0xff] }
 0x218   :  { %20090 = vst [vmem:[#allocation490_spill] sm:$0xff] %v13630_v19  ;;  %v2790_v19 = vsub.f32 %v13621_v50, %v13658_v45 }
 0x219   :  { %20091 = vst [vmem:[#allocation491_spill] sm:$0xff] %v13632_v53  ;;  %v13712_v50 = vsub.f32 %v296_v26, %v13678_v58  ;;  %v13728_v26 = vsub.f32 %v292_v33, %v13696_v22  ;;  %2741 = vmatpush.msra.mxu2 %v13678_v58  ;;  %2675 = vmatpush.msra.mxu0 %v13612_v2  ;;  %v20153_v2 = vld [vmem:[#allocation484_spill] sm:$0xff] }
 0x21a   :  { %20092 = vst [vmem:[#allocation492_spill] sm:$0xff] %v13636_v59  ;;  %v288_v59 = vld [vmem:[#allocation8 + $0x688] sm:$0xff] }
 0x21b   :  { %20093 = vst [vmem:[#allocation493_spill] sm:$0xff] %v13639_v38  ;;  %v13741_v17 = vand.u32 4294901760, %v13712_v50  ;;  %v13757_v8 = vand.u32 4294901760, %v13728_v26  ;;  %2743 = vmatpush.msra.mxu2 %v13696_v22  ;;  %2679 = vmatpush.msra.mxu0 %v13639_v38  ;;  %v20151_v38 = vld [vmem:[#allocation275_spill] sm:$0xff] }
 0x21c   :  { %20094 = vst [vmem:[#allocation494_spill] sm:$0xff] %v13642_v36  ;;  %v13730_v36 = vand.u32 4294901760, %v284_v7 }
 0x21d   :  { %20095 = vst [vmem:[#allocation495_spill] sm:$0xff] %v13646_v30  ;;  %v13703_v30 = vand.u32 4294901760, %v13669_v47  ;;  %2866 = vmatpush.msrb.mxu0 %v13511_v32  ;;  %v20150_v32 = vld [vmem:[#allocation463_spill] sm:$0xff] }
 0x21e   :  { %20096 = vst [vmem:[#allocation496_spill] sm:$0xff] %v13653_v48 }
 0x21f   :  { %20097 = vst [vmem:[#allocation497_spill] sm:$0xff] %v13658_v45  ;;  %v13707_v45 = vand.u32 4294901760, %v2515_v35  ;;  %v13722_v35 = vand.u32 4294901760, %v2790_v19  ;;  %v13738_v19 = vand.u32 4294901760, %v2796_v43  ;;  %2869 = vmatpush.msrb.mxu0 %v13530_v25  ;;  %v20155_v25 = vld [vmem:[#allocation488_spill] sm:$0xff] }
 0x220   :  { %20098 = vst [vmem:[#allocation498_spill] sm:$0xff] %v13660_v37 }
 0x221   :  { %20100 = vst [vmem:[#allocation499_spill] sm:$0xff] %v13664_v20  ;;  %v13714_v20 = vand.u32 4294901760, %v288_v59  ;;  %2517 = vmatpush.msrb.mxu1 %v13707_v45  ;;  %2792 = vmatpush.msra.mxu3 %v13722_v35 }
 0x222   :  { %20101 = vst [vmem:[#allocation500_spill] sm:$0xff] %v13669_v47  ;;  %2872 = vmatpush.msrb.mxu0 %v13573_v23  ;;  %v20156_v23 = vld [vmem:[#allocation490_spill] sm:$0xff] }
 0x223   :  { %20102 = vst [vmem:[#allocation501_spill] sm:$0xff] %v13676_v11  ;;  %v13725_v11 = vand.u32 4294901760, %v13694_v14  ;;  %v13744_v33 = vsub.f32 %v288_v59, %v13714_v20  ;;  %2686 = vmatpush.msra.mxu1 %v13330_v31  ;;  %v13760_v59 = vsub.f32 %v284_v7, %v13730_v36  ;;  %2798 = vmatpush.msra.mxu3 %v13738_v19 }
 0x224   :  { %20103 = vst [vmem:[#allocation502_spill] sm:$0xff] %v13678_v58  ;;  %v13776_v7 = vsub.f32 %v280_v46, %v13746_v54  ;;  %2745 = vmatpush.msra.mxu2 %v13714_v20 }
 0x225   :  { %20104 = vst [vmem:[#allocation503_spill] sm:$0xff] %v13682_v42  ;;  %v276_v42 = vld [vmem:[#allocation8 + $0x628] sm:$0xff]  ;;  %v2814_v43 = vsub.f32 %v13694_v14, %v13725_v11  ;;  %2688 = vmatpush.msra.mxu1 %v13336_v16  ;;  %v13773_v31 = vand.u32 4294901760, %v13744_v33  ;;  %v13789_v63 = vand.u32 4294901760, %v13760_v59 }
 0x226   :  { %20105 = vst [vmem:[#allocation504_spill] sm:$0xff] %v13684_v18  ;;  %v2808_v18 = vsub.f32 %v13669_v47, %v13703_v30  ;;  %v13803_v40 = vand.u32 4294901760, %v13776_v7  ;;  %2747 = vmatpush.msra.mxu2 %v13730_v36 }
 0x227   :  { %20106 = vst [vmem:[#allocation505_spill] sm:$0xff] %v13687_v6  ;;  %v20124_v6 = vld [vmem:[#allocation185_spill] sm:$0xff]  ;;  %2690 = vmatpush.msra.mxu1 %v13345_v13 }
 0x228   :  { %20107 = vst [vmem:[#allocation506_spill] sm:$0xff] %v13694_v14  ;;  %2519 = vmatmul.f32.vlgmr.msrb.gmra.mxu1 %v20124_v6  ;;  %2749 = vmatpush.msra.mxu2 %v13746_v54 }
 0x229   :  { %20108 = vst [vmem:[#allocation507_spill] sm:$0xff] %v13696_v22  ;;  %2692 = vmatpush.msra.mxu1 %v13349_v4  ;;  %2681 = vmatmul.f32.vlgmr.msra.gmra.mxu0 %v20124_v6 }
 0x22a   :  { %20110 = vst [vmem:[#allocation508_spill] sm:$0xff] %v13700_v49  ;;  %v13750_v49 = vand.u32 4294901760, %v2802_v1  ;;  %v13766_v1 = vand.u32 4294901760, %v2808_v18  ;;  %v13784_v18 = vand.u32 4294901760, %v2814_v43  ;;  %v2832_v43 = vsub.f32 %v13744_v33, %v13773_v31 }
 0x22b   :  { %20111 = vst [vmem:[#allocation509_spill] sm:$0xff] %v13703_v30  ;;  %v272_v30 = vld [vmem:[#allocation8 + $0x608] sm:$0xff]  ;;  %2694 = vmatpush.msra.mxu1 %v13358_v62 }
 0x22c   :  { %20112 = vst [vmem:[#allocation510_spill] sm:$0xff] %v13707_v45  ;;  %v13762_v45 = vand.u32 4294901760, %v276_v42  ;;  %2804 = vmatpush.msra.mxu3 %v13750_v49 }
 0x22d   :  { %20113 = vst [vmem:[#allocation511_spill] sm:$0xff] %v13712_v50  ;;  %2696 = vmatpush.msra.mxu1 %v13375_v28 }
 0x22e   :  { %20114 = vst [vmem:[#allocation512_spill] sm:$0xff] %v13714_v20  ;;  %v13792_v46 = vsub.f32 %v276_v42, %v13762_v45  ;;  %2810 = vmatpush.msra.mxu3 %v13766_v1  ;;  %2751 = vmatpush.msra.mxu2 %v13762_v45 }
 0x22f   :  { %20116 = vst [vmem:[#allocation513_spill] sm:$0xff] %v13722_v35  ;;  %v2820_v35 = vsub.f32 %v13712_v50, %v13741_v17  ;;  %2698 = vmatpush.msra.mxu1 %v13389_v27 }
 0x230   :  { %20117 = vst [vmem:[#allocation514_spill] sm:$0xff] %v13725_v11  ;;  %v13778_v11 = vand.u32 4294901760, %v272_v30  ;;  %2816 = vmatpush.msra.mxu3 %v13784_v18 }
 0x231   :  { %20118 = vst [vmem:[#allocation515_spill] sm:$0xff] %v13728_v26  ;;  %2700 = vmatpush.msra.mxu1 %v13406_v39 }
 0x232   :  { %20119 = vst [vmem:[#allocation516_spill] sm:$0xff] %v13730_v36  ;;  %v13806_v13 = vsub.f32 %v272_v30, %v13778_v11  ;;  %v13823_v30 = vand.u32 4294901760, %v2832_v43  ;;  %2753 = vmatpush.msra.mxu2 %v13778_v11 }
 0x233   :  { %20120 = vst [vmem:[#allocation517_spill] sm:$0xff] %v13738_v19  ;;  %v2826_v19 = vsub.f32 %v13728_v26, %v13757_v8  ;;  %2702 = vmatpush.msra.mxu1 %v13422_v61  ;;  %v185_v61 = vld [vmem:[#allocation8 + $0x350] sm:$0xff] }
 0x234   :  { %20121 = vst [vmem:[#allocation518_spill] sm:$0xff] %v13741_v17  ;;  %2960 = vmatpush.msrb.mxu2 %v13549_v15  ;;  %v20154_v15 = vld [vmem:[#allocation472_spill] sm:$0xff] }
 0x235   :  { %20122 = vst [vmem:[#allocation519_spill] sm:$0xff] %v13744_v33  ;;  %v13812_v42 = vand.u32 4294901760, %v2826_v19  ;;  %v2844_v19 = vsub.f32 %v13776_v7, %v13803_v40  ;;  %2704 = vmatpush.msra.mxu1 %v13435_v44 }
 0x236   :  { %20123 = vst [vmem:[#allocation520_spill] sm:$0xff] %v13746_v54 }
 0x237   :  { %20125 = vst [vmem:[#allocation521_spill] sm:$0xff] %v13750_v49  ;;  %v13798_v49 = vand.u32 4294901760, %v2820_v35  ;;  %v2838_v35 = vsub.f32 %v13760_v59, %v13789_v63  ;;  %v13842_v56 = vand.u32 4294901760, %v2844_v19  ;;  %2706 = vmatpush.msra.mxu1 %v13451_v55 }
 0x238   :  { %20126 = vst [vmem:[#allocation522_spill] sm:$0xff] %v13757_v8 }
 0x239   :  { %20127 = vst [vmem:[#allocation523_spill] sm:$0xff] %v13760_v59  ;;  %2822 = vmatpush.msra.mxu3 %v13798_v49  ;;  %v13834_v60 = vand.u32 4294901760, %v2838_v35  ;;  %2708 = vmatpush.msra.mxu1 %v13467_v0  ;;  %v189_v0 = vld [vmem:[#allocation8 + $0x370] sm:$0xff] }
 0x23a   :  { %20128 = vst [vmem:[#allocation524_spill] sm:$0xff] %v13762_v45 }
 0x23b   :  { %20129 = vst [vmem:[#allocation525_spill] sm:$0xff] %v13766_v1  ;;  %v13817_v1 = vand.u32 4294901760, %v13792_v46  ;;  %2828 = vmatpush.msra.mxu3 %v13812_v42  ;;  %2710 = vmatpush.msra.mxu1 %v13485_v21 }
 0x23c   :  { %20130 = vst [vmem:[#allocation526_spill] sm:$0xff] %v13773_v31 }
 0x23d   :  { %20131 = vst [vmem:[#allocation527_spill] sm:$0xff] %v13776_v7  ;;  %v2850_v43 = vsub.f32 %v13792_v46, %v13817_v1  ;;  %2834 = vmatpush.msra.mxu3 %v13823_v30 }
 0x23e   :  { %20132 = vst [vmem:[#allocation528_spill] sm:$0xff] %v13778_v11 }
 0x23f   :  { %20133 = vst [vmem:[#allocation529_spill] sm:$0xff] %v13784_v18  ;;  %v13828_v18 = vand.u32 4294901760, %v13806_v13  ;;  %2840 = vmatpush.msra.mxu3 %v13834_v60  ;;  %v13850_v35 = vand.u32 4294901760, %v2850_v43  ;;  %v20148_v43 = vld [vmem:[#allocation286_spill] sm:$0xff] }
 0x240   :  { %20134 = vst [vmem:[#allocation530_spill] sm:$0xff] %v13789_v63  ;;  %2759 = vmatmul.f32.vlgmr.msra.gmra.mxu2 %v20148_v43  ;;  %v173_v43 = vld [vmem:[#allocation8 + $0x2f0] sm:$0xff] }
 0x241   :  { %20135 = vst [vmem:[#allocation531_spill] sm:$0xff] %v13792_v46  ;;  %2846 = vmatpush.msra.mxu3 %v13842_v56 }
 0x242   :  { %20136 = vst [vmem:[#allocation532_spill] sm:$0xff] %v13798_v49  ;;  %v2856_v49 = vsub.f32 %v13806_v13, %v13828_v18 }
 0x243   :  { %20137 = vst [vmem:[#allocation533_spill] sm:$0xff] %v13803_v40  ;;  %2852 = vmatpush.msra.mxu3 %v13850_v35 }
 0x244   :  { %20138 = vst [vmem:[#allocation534_spill] sm:$0xff] %v13806_v13  ;;  %v13856_v19 = vand.u32 4294901760, %v2856_v49  ;;  %v20147_v49 = vld [vmem:[#allocation458_spill] sm:$0xff] }
 0x245   :  { %20139 = vst [vmem:[#allocation535_spill] sm:$0xff] %v13812_v42  ;;  %2712 = vmatpush.msra.mxu1 %v20147_v49  ;;  %v14039_v42 = vand.u32 4294901760, %v101_v57 }
 0x246   :  { %20140 = vst [vmem:[#allocation536_spill] sm:$0xff] %v13817_v1  ;;  %2858 = vmatpush.msra.mxu3 %v13856_v19 }
 0x247   :  { %20141 = vst [vmem:[#allocation537_spill] sm:$0xff] %v13823_v30  ;;  %2714 = vmatpush.msra.mxu1 %v20150_v32  ;;  %2860 = vmatmul.f32.vlgmr.msra.gmra.mxu3 %v20151_v38  ;;  %v193_v32 = vld [vmem:[#allocation8 + $0x390] sm:$0xff] }
 0x248   :  { %20142 = vst [vmem:[#allocation538_spill] sm:$0xff] %v13828_v18  ;;  %3027 = vmatpush.msrb.mxu3 %v13476_v24  ;;  %v14136_v44 = vand.u32 4294901760, %v193_v32 }
 0x249   :  { %20143 = vst [vmem:[#allocation539_spill] sm:$0xff] %v13834_v60  ;;  %2716 = vmatpush.msra.mxu1 %v20154_v15 }
 0x24a   :  { %20144 = vst [vmem:[#allocation540_spill] sm:$0xff] %v13842_v56  ;;  %3029 = vmatpush.msrb.mxu3 %v13492_v51  ;;  %2718 = vmatmul.f32.vlgmr.msra.gmra.mxu1 %v20124_v6  ;;  %v20158_v56 = vld [vmem:[#allocation497_spill] sm:$0xff] }
 0x24b   :  { %20145 = vst [vmem:[#allocation541_spill] sm:$0xff] %v13850_v35  ;;  %v20152_v35 = vld [vmem:[#allocation480_spill] sm:$0xff]  ;;  %2919 = vmatpush.msrb.mxu1 %v13476_v24 }
 0x24c   :  { %20146 = vst [vmem:[#allocation542_spill] sm:$0xff] %v13856_v19  ;;  %v20149_v19 = vld [vmem:[#allocation475_spill] sm:$0xff]  ;;  %3031 = vmatpush.msrb.mxu3 %v13532_v34  ;;  %2875 = vmatpush.msrb.mxu0 %v20152_v35  ;;  %v109_v35 = vld [vmem:[#allocation8 + $0xf0] sm:$0xff] }
 0x24d   :  { %2964 = vmatpush.msrb.mxu2 %v20149_v19  ;;  %v20157_v19 = vld [vmem:[#allocation494_spill] sm:$0xff]  ;;  %2921 = vmatpush.msrb.mxu1 %v13492_v51  ;;  %20193 = vst [vmem:[#allocation571_spill] sm:$0xff] %v14039_v42 }
 0x24e   :  { %3033 = vmatpush.msrb.mxu3 %v13551_v9  ;;  %2878 = vmatpush.msrb.mxu0 %v20155_v25  ;;  %20220 = vst [vmem:[#allocation598_spill] sm:$0xff] %v14136_v44 }
 0x24f   :  { %2968 = vmatpush.msrb.mxu2 %v20153_v2  ;;  %v20159_v2 = vld [vmem:[#allocation501_spill] sm:$0xff]  ;;  %2923 = vmatpush.msrb.mxu1 %v13532_v34 }
 0x250   :  { %3035 = vmatpush.msrb.mxu3 %v13581_v3  ;;  %2881 = vmatpush.msrb.mxu0 %v20157_v19 }
 0x251   :  { %2972 = vmatpush.msrb.mxu2 %v20156_v23  ;;  %v20160_v23 = vld [vmem:[#allocation505_spill] sm:$0xff]  ;;  %2925 = vmatpush.msrb.mxu1 %v13551_v9 }
 0x252   :  { %3037 = vmatpush.msrb.mxu3 %v13602_v12  ;;  %2884 = vmatpush.msrb.mxu0 %v13653_v48 }
 0x253   :  { %2976 = vmatpush.msrb.mxu2 %v20158_v56  ;;  %v20161_v56 = vld [vmem:[#allocation509_spill] sm:$0xff]  ;;  %2927 = vmatpush.msrb.mxu1 %v13581_v3 }
 0x254   :  { %3039 = vmatpush.msrb.mxu3 %v13614_v5  ;;  %2887 = vmatpush.msrb.mxu0 %v13669_v47  ;;  %v113_v47 = vld [vmem:[#allocation8 + $0x110] sm:$0xff] }
 0x255   :  { %2980 = vmatpush.msrb.mxu2 %v20159_v2  ;;  %v20162_v2 = vld [vmem:[#allocation514_spill] sm:$0xff]  ;;  %2929 = vmatpush.msrb.mxu1 %v13602_v12  ;;  %v14074_v12 = vsub.f32 %v101_v57, %v14039_v42 }
 0x256   :  { %3041 = vmatpush.msrb.mxu3 %v13632_v53  ;;  %2890 = vmatpush.msrb.mxu0 %v13694_v14 }
 0x257   :  { %2984 = vmatpush.msrb.mxu2 %v20160_v23  ;;  %v141_v23 = vld [vmem:[#allocation8 + $0x1f0] sm:$0xff]  ;;  %2931 = vmatpush.msrb.mxu1 %v13614_v5  ;;  %20202 = vst [vmem:[#allocation580_spill] sm:$0xff] %v14074_v12 }
 0x258   :  { %3043 = vmatpush.msrb.mxu3 %v13660_v37  ;;  %2893 = vmatpush.msrb.mxu0 %v13712_v50  ;;  %v137_v50 = vld [vmem:[#allocation8 + $0x1d0] sm:$0xff] }
 0x259   :  { %2988 = vmatpush.msrb.mxu2 %v20161_v56  ;;  %2933 = vmatpush.msrb.mxu1 %v13632_v53  ;;  %v201_v5 = vld [vmem:[#allocation8 + $0x3d0] sm:$0xff] }
 0x25a   :  { %3045 = vmatpush.msrb.mxu3 %v13678_v58  ;;  %2896 = vmatpush.msrb.mxu0 %v13728_v26  ;;  %v13924_v26 = vand.u32 4294901760, %v137_v50 }
 0x25b   :  { %2992 = vmatpush.msrb.mxu2 %v20162_v2  ;;  %v13918_v2 = vand.u32 4294901760, %v141_v23  ;;  %2935 = vmatpush.msrb.mxu1 %v13660_v37  ;;  %v205_v37 = vld [vmem:[#allocation8 + $0x3f0] sm:$0xff] }
 0x25c   :  { %3047 = vmatpush.msrb.mxu3 %v13696_v22  ;;  %2899 = vmatpush.msrb.mxu0 %v13744_v33  ;;  %20164 = vst [vmem:[#allocation544_spill] sm:$0xff] %v13924_v26  ;;  %v125_v33 = vld [vmem:[#allocation8 + $0x170] sm:$0xff] }
 0x25d   :  { %2996 = vmatpush.msrb.mxu2 %v13741_v17  ;;  %20163 = vst [vmem:[#allocation543_spill] sm:$0xff] %v13918_v2  ;;  %v133_v17 = vld [vmem:[#allocation8 + $0x1b0] sm:$0xff]  ;;  %2937 = vmatpush.msrb.mxu1 %v13678_v58 }
 0x25e   :  { %3049 = vmatpush.msrb.mxu3 %v13714_v20  ;;  %2902 = vmatpush.msrb.mxu0 %v13760_v59  ;;  %v13931_v59 = vsub.f32 %v141_v23, %v13918_v2  ;;  %v121_v23 = vld [vmem:[#allocation8 + $0x150] sm:$0xff] }
 0x25f   :  { %3000 = vmatpush.msrb.mxu2 %v13757_v8  ;;  %v129_v8 = vld [vmem:[#allocation8 + $0x190] sm:$0xff]  ;;  %2939 = vmatpush.msrb.mxu1 %v13696_v22  ;;  %v13963_v14 = vand.u32 4294901760, %v121_v23 }
 0x260   :  { %3051 = vmatpush.msrb.mxu3 %v13730_v36  ;;  %2905 = vmatpush.msrb.mxu0 %v13776_v7  ;;  %20165 = vst [vmem:[#allocation545_spill] sm:$0xff] %v13931_v59  ;;  %v13942_v7 = vand.u32 4294901760, %v129_v8  ;;  %v13954_v56 = vand.u32 4294901760, %v13931_v59 }
 0x261   :  { %3004 = vmatpush.msrb.mxu2 %v13773_v31  ;;  %v13933_v31 = vand.u32 4294901760, %v133_v17  ;;  %2941 = vmatpush.msrb.mxu1 %v13714_v20  ;;  %20174 = vst [vmem:[#allocation553_spill] sm:$0xff] %v13963_v14 }
 0x262   :  { %3053 = vmatpush.msrb.mxu3 %v13746_v54  ;;  %2908 = vmatpush.msrb.mxu0 %v13792_v46  ;;  %20168 = vst [vmem:[#allocation548_spill] sm:$0xff] %v13942_v7  ;;  %v13951_v46 = vand.u32 4294901760, %v125_v33  ;;  %v3107_v48 = vsub.f32 %v13931_v59, %v13954_v56 }
 0x263   :  { %3008 = vmatpush.msrb.mxu2 %v13789_v63  ;;  %20166 = vst [vmem:[#allocation546_spill] sm:$0xff] %v13933_v31  ;;  %v13940_v63 = vsub.f32 %v137_v50, %v13924_v26  ;;  %v20172_v50 = vld [vmem:[#allocation280_spill] sm:$0xff]  ;;  %2943 = vmatpush.msrb.mxu1 %v13730_v36 }
 0x264   :  { %3055 = vmatpush.msrb.mxu3 %v13762_v45  ;;  %2911 = vmatpush.msrb.mxu0 %v13806_v13  ;;  %20170 = vst [vmem:[#allocation550_spill] sm:$0xff] %v13951_v46  ;;  %v117_v13 = vld [vmem:[#allocation8 + $0x130] sm:$0xff] }
 0x265   :  { %3012 = vmatpush.msrb.mxu2 %v13803_v40  ;;  %20167 = vst [vmem:[#allocation547_spill] sm:$0xff] %v13940_v63  ;;  %v13949_v40 = vsub.f32 %v133_v17, %v13933_v31  ;;  %2914 = vmatmul.f32.vlgmr.msrb.gmra.mxu0 %v20172_v50  ;;  %v13966_v17 = vand.u32 4294901760, %v13940_v63  ;;  %v13977_v19 = vand.u32 4294901760, %v117_v13 }
 0x266   :  { %3057 = vmatpush.msrb.mxu3 %v13778_v11  ;;  %20171 = vst [vmem:[#allocation551_spill] sm:$0xff] %v13954_v56  ;;  %3064 = vmatpush.msra.mxu0 %v13918_v2 }
 0x267   :  { %3016 = vmatpush.msrb.mxu2 %v13817_v1  ;;  %20169 = vst [vmem:[#allocation549_spill] sm:$0xff] %v13949_v40  ;;  %v13961_v1 = vsub.f32 %v129_v8, %v13942_v7  ;;  %v13975_v8 = vsub.f32 %v125_v33, %v13951_v46  ;;  %v13980_v25 = vand.u32 4294901760, %v13949_v40  ;;  %2945 = vmatpush.msrb.mxu1 %v13746_v54  ;;  %v13998_v54 = vand.u32 4294901760, %v109_v35 }
 0x268   :  { %3260 = vmatpush.msra.mxu3 %v13918_v2  ;;  %20175 = vst [vmem:[#allocation554_spill] sm:$0xff] %v13966_v17  ;;  %3066 = vmatpush.msra.mxu0 %v13924_v26  ;;  %v13989_v33 = vsub.f32 %v121_v23, %v13963_v14  ;;  %v14007_v60 = vsub.f32 %v117_v13, %v13977_v19 }
 0x269   :  { %20173 = vst [vmem:[#allocation552_spill] sm:$0xff] %v13961_v1  ;;  %3020 = vmatpush.msrb.mxu2 %v13828_v18  ;;  %v13991_v18 = vand.u32 4294901760, %v113_v47  ;;  %v13994_v36 = vand.u32 4294901760, %v13961_v1  ;;  %2947 = vmatpush.msrb.mxu1 %v13762_v45  ;;  %v3119_v23 = vsub.f32 %v13949_v40, %v13980_v25  ;;  %v14010_v20 = vand.u32 4294901760, %v13975_v8 }
 0x26a   :  { %3262 = vmatpush.msra.mxu3 %v13924_v26  ;;  %20176 = vst [vmem:[#allocation555_spill] sm:$0xff] %v13975_v8  ;;  %3022 = vmatmul.f32.vlgmr.msrb.gmra.mxu2 %v20151_v38  ;;  %v14014_v45 = vand.u32 4294901760, %v105_v29  ;;  %v14026_v22 = vand.u32 4294901760, %v13989_v33  ;;  %v14031_v41 = vsub.f32 %v109_v35, %v13998_v54  ;;  %v14042_v58 = vand.u32 4294901760, %v14007_v60 }
 0x26b   :  { %3207 = vmatpush.msra.mxu2 %v13931_v59  ;;  %20177 = vst [vmem:[#allocation556_spill] sm:$0xff] %v13977_v19  ;;  %3068 = vmatpush.msra.mxu0 %v13933_v31  ;;  %v3113_v59 = vsub.f32 %v13940_v63, %v13966_v17  ;;  %v3125_v13 = vsub.f32 %v13961_v1, %v13994_v36 }
 0x26c   :  { %20178 = vst [vmem:[#allocation557_spill] sm:$0xff] %v13980_v25  ;;  %3264 = vmatpush.msra.mxu3 %v13933_v31  ;;  %2949 = vmatpush.msrb.mxu1 %v13778_v11  ;;  %v14023_v30 = vsub.f32 %v113_v47, %v13991_v18  ;;  %v97_v11 = vld [vmem:[#allocation8 + $0x90] sm:$0xff]  ;;  %v3131_v47 = vsub.f32 %v13975_v8, %v14010_v20 }
 0x26d   :  { %3210 = vmatpush.msra.mxu2 %v13940_v63  ;;  %20179 = vst [vmem:[#allocation558_spill] sm:$0xff] %v13989_v33  ;;  %3059 = vmatmul.f32.vlgmr.msrb.gmra.mxu3 %v20151_v38  ;;  %v14002_v63 = vand.u32 4294901760, %v3107_v48  ;;  %v14018_v48 = vand.u32 4294901760, %v3113_v59  ;;  %v14035_v59 = vand.u32 4294901760, %v3119_v23  ;;  %v14047_v35 = vsub.f32 %v105_v29, %v14014_v45 }
 0x26e   :  { %20180 = vst [vmem:[#allocation559_spill] sm:$0xff] %v13991_v18  ;;  %3070 = vmatpush.msra.mxu0 %v13942_v7  ;;  %3266 = vmatpush.msra.mxu3 %v13942_v7  ;;  %v14051_v23 = vand.u32 4294901760, %v3125_v13  ;;  %v14055_v53 = vand.u32 4294901760, %v97_v11  ;;  %v14058_v52 = vand.u32 4294901760, %v14023_v30  ;;  %v14063_v29 = vand.u32 4294901760, %v14031_v41 }
 0x26f   :  { %20181 = vst [vmem:[#allocation560_spill] sm:$0xff] %v13994_v36  ;;  %3213 = vmatpush.msra.mxu2 %v13949_v40  ;;  %v20190_v40 = vld [vmem:[#allocation283_spill] sm:$0xff]  ;;  %3109 = vmatpush.msra.mxu1 %v14002_v63  ;;  %v14069_v13 = vand.u32 4294901760, %v3131_v47  ;;  %v3143_v10 = vsub.f32 %v14007_v60, %v14042_v58  ;;  %v14081_v9 = vand.u32 4294901760, %v14047_v35  ;;  %v197_v47 = vld [vmem:[#allocation8 + $0x3b0] sm:$0xff] }
 0x270   :  { %20182 = vst [vmem:[#allocation561_spill] sm:$0xff] %v13998_v54  ;;  %3072 = vmatpush.msra.mxu0 %v13951_v46  ;;  %2953 = vmatmul.f32.vlgmr.msrb.gmra.mxu1 %v20190_v40  ;;  %v3149_v57 = vsub.f32 %v14023_v30, %v14058_v52  ;;  %v14092_v51 = vsub.f32 %v97_v11, %v14055_v53  ;;  %v14115_v21 = vand.u32 4294901760, %v197_v47 }
 0x271   :  { %20183 = vst [vmem:[#allocation562_spill] sm:$0xff] %v14002_v63  ;;  %3216 = vmatpush.msra.mxu2 %v13961_v1  ;;  %3268 = vmatpush.msra.mxu3 %v13951_v46  ;;  %v93_v63 = vld [vmem:[#allocation8 + $0x70] sm:$0xff]  ;;  %v3137_v1 = vsub.f32 %v13989_v33, %v14026_v22  ;;  %v14107_v11 = vand.u32 4294901760, %v3143_v10 }
 0x272   :  { %20184 = vst [vmem:[#allocation563_spill] sm:$0xff] %v14007_v60  ;;  %3074 = vmatpush.msra.mxu0 %v13963_v14  ;;  %3115 = vmatpush.msra.mxu1 %v14018_v48  ;;  %v14076_v3 = vand.u32 4294901760, %v93_v63 }
 0x273   :  { %20185 = vst [vmem:[#allocation564_spill] sm:$0xff] %v14010_v20  ;;  %3219 = vmatpush.msra.mxu2 %v13975_v8  ;;  %3270 = vmatpush.msra.mxu3 %v13963_v14  ;;  %v14065_v8 = vand.u32 4294901760, %v205_v37  ;;  %v14087_v34 = vand.u32 4294901760, %v3137_v1 }
 0x274   :  { %20186 = vst [vmem:[#allocation565_spill] sm:$0xff] %v14014_v45  ;;  %3076 = vmatpush.msra.mxu0 %v13977_v19  ;;  %3121 = vmatpush.msra.mxu1 %v14035_v59  ;;  %v14110_v49 = vsub.f32 %v93_v63, %v14076_v3  ;;  %v14128_v63 = vand.u32 4294901760, %v3149_v57 }
 0x275   :  { %20187 = vst [vmem:[#allocation566_spill] sm:$0xff] %v14018_v48  ;;  %3222 = vmatpush.msra.mxu2 %v13989_v33  ;;  %v89_v48 = vld [vmem:[#allocation8 + $0x50] sm:$0xff]  ;;  %3272 = vmatpush.msra.mxu3 %v13977_v19  ;;  %v14103_v1 = vsub.f32 %v205_v37, %v14065_v8  ;;  %v3161_v37 = vsub.f32 %v14047_v35, %v14081_v9 }
 0x276   :  { %20188 = vst [vmem:[#allocation567_spill] sm:$0xff] %v14023_v30  ;;  %v85_v33 = vld [vmem:[#allocation8 + $0x30] sm:$0xff]  ;;  %3078 = vmatpush.msra.mxu0 %v13991_v18  ;;  %3127 = vmatpush.msra.mxu1 %v14051_v23  ;;  %v14094_v24 = vand.u32 4294901760, %v89_v48  ;;  %v14153_v39 = vand.u32 4294901760, %v14110_v49 }
 0x277   :  { %20189 = vst [vmem:[#allocation568_spill] sm:$0xff] %v14026_v22  ;;  %3225 = vmatpush.msra.mxu2 %v14007_v60  ;;  %3274 = vmatpush.msra.mxu3 %v13991_v18  ;;  %v81_v60 = vld [vmem:[#allocation8 + $0x10] sm:$0xff]  ;;  %v14100_v15 = vand.u32 4294901760, %v85_v33  ;;  %v14146_v57 = vand.u32 4294901760, %v14103_v1  ;;  %v14162_v27 = vand.u32 4294901760, %v3161_v37  ;;  %v14180_v37 = vand.u32 4294901760, %v185_v61 }
 0x278   :  { %20191 = vst [vmem:[#allocation569_spill] sm:$0xff] %v14031_v41  ;;  %3080 = vmatpush.msra.mxu0 %v13998_v54  ;;  %3133 = vmatpush.msra.mxu1 %v14069_v13  ;;  %v14131_v55 = vsub.f32 %v89_v48, %v14094_v24  ;;  %v3179_v40 = vsub.f32 %v14110_v49, %v14153_v39 }
 0x279   :  { %20192 = vst [vmem:[#allocation570_spill] sm:$0xff] %v14035_v59  ;;  %v14083_v59 = vand.u32 4294901760, %v201_v5  ;;  %3228 = vmatpush.msra.mxu2 %v14023_v30  ;;  %3276 = vmatpush.msra.mxu3 %v13998_v54  ;;  %v14113_v30 = vand.u32 4294901760, %v14074_v12 }
 0x27a   :  { %20194 = vst [vmem:[#allocation572_spill] sm:$0xff] %v14042_v58  ;;  %3082 = vmatpush.msra.mxu0 %v14014_v45  ;;  %3139 = vmatpush.msra.mxu1 %v14087_v34  ;;  %v14175_v62 = vand.u32 4294901760, %v14131_v55 }
 0x27b   :  { %20195 = vst [vmem:[#allocation573_spill] sm:$0xff] %v14047_v35  ;;  %3231 = vmatpush.msra.mxu2 %v14031_v41  ;;  %v14124_v10 = vsub.f32 %v201_v5, %v14083_v59  ;;  %3278 = vmatpush.msra.mxu3 %v14014_v45  ;;  %v3167_v48 = vsub.f32 %v14074_v12, %v14113_v30 }
 0x27c   :  { %20196 = vst [vmem:[#allocation574_spill] sm:$0xff] %v14051_v23  ;;  %v3155_v23 = vsub.f32 %v14031_v41, %v14063_v29  ;;  %v14134_v41 = vand.u32 4294901760, %v14092_v51  ;;  %3084 = vmatpush.msra.mxu0 %v14039_v42  ;;  %3145 = vmatpush.msra.mxu1 %v14107_v11 }
 0x27d   :  { %20197 = vst [vmem:[#allocation575_spill] sm:$0xff] %v14055_v53  ;;  %3234 = vmatpush.msra.mxu2 %v14047_v35  ;;  %3280 = vmatpush.msra.mxu3 %v14039_v42  ;;  %v14158_v35 = vand.u32 4294901760, %v189_v0  ;;  %v14168_v28 = vand.u32 4294901760, %v14124_v10 }
 0x27e   :  { %20198 = vst [vmem:[#allocation576_spill] sm:$0xff] %v14058_v52  ;;  %v14140_v5 = vand.u32 4294901760, %v3155_v23  ;;  %v14156_v23 = vsub.f32 %v197_v47, %v14115_v21  ;;  %3086 = vmatpush.msra.mxu0 %v14055_v53  ;;  %3151 = vmatpush.msra.mxu1 %v14128_v63  ;;  %v3173_v47 = vsub.f32 %v14092_v51, %v14134_v41 }
 0x27f   :  { %20199 = vst [vmem:[#allocation577_spill] sm:$0xff] %v14063_v29  ;;  %3237 = vmatpush.msra.mxu2 %v14074_v12  ;;  %3282 = vmatpush.msra.mxu3 %v14055_v53  ;;  %v14178_v12 = vsub.f32 %v193_v32, %v14136_v44  ;;  %v14193_v32 = vand.u32 4294901760, %v3167_v48 }
 0x280   :  { %20200 = vst [vmem:[#allocation578_spill] sm:$0xff] %v14065_v8  ;;  %3088 = vmatpush.msra.mxu0 %v14076_v3  ;;  %3157 = vmatpush.msra.mxu1 %v14140_v5  ;;  %v14198_v50 = vand.u32 4294901760, %v14156_v23  ;;  %v14214_v6 = vand.u32 4294901760, %v3173_v47 }
 0x281   :  { %20201 = vst [vmem:[#allocation579_spill] sm:$0xff] %v14069_v13  ;;  %v14121_v13 = vand.u32 4294901760, %v81_v60  ;;  %3240 = vmatpush.msra.mxu2 %v14092_v51  ;;  %3284 = vmatpush.msra.mxu3 %v14076_v3 }
 0x282   :  { %20203 = vst [vmem:[#allocation581_spill] sm:$0xff] %v14076_v3  ;;  %3090 = vmatpush.msra.mxu0 %v14094_v24  ;;  %3163 = vmatpush.msra.mxu1 %v14162_v27 }
 0x283   :  { %20204 = vst [vmem:[#allocation582_spill] sm:$0xff] %v14081_v9  ;;  %3243 = vmatpush.msra.mxu2 %v14110_v49  ;;  %3286 = vmatpush.msra.mxu3 %v14094_v24 }
 0x284   :  { %20205 = vst [vmem:[#allocation583_spill] sm:$0xff] %v14083_v59  ;;  %3092 = vmatpush.msra.mxu0 %v14100_v15  ;;  %3169 = vmatpush.msra.mxu1 %v14193_v32 }
 0x285   :  { %20206 = vst [vmem:[#allocation584_spill] sm:$0xff] %v14087_v34  ;;  %v14143_v34 = vsub.f32 %v85_v33, %v14100_v15  ;;  %v181_v33 = vld [vmem:[#allocation8 + $0x330] sm:$0xff]  ;;  %3246 = vmatpush.msra.mxu2 %v14131_v55  ;;  %3288 = vmatpush.msra.mxu3 %v14100_v15 }
 0x286   :  { %20207 = vst [vmem:[#allocation585_spill] sm:$0xff] %v14092_v51  ;;  %v14189_v16 = vand.u32 4294901760, %v181_v33  ;;  %v14201_v51 = vsub.f32 %v189_v0, %v14158_v35  ;;  %v3185_v0 = vsub.f32 %v14131_v55, %v14175_v62  ;;  %3094 = vmatpush.msra.mxu0 %v14121_v13  ;;  %3175 = vmatpush.msra.mxu1 %v14214_v6 }
 0x287   :  { %20208 = vst [vmem:[#allocation586_spill] sm:$0xff] %v14094_v24  ;;  %v14187_v4 = vand.u32 4294901760, %v14143_v34  ;;  %v169_v24 = vld [vmem:[#allocation8 + $0x2d0] sm:$0xff]  ;;  %3249 = vmatpush.msra.mxu2 %v14143_v34  ;;  %3290 = vmatpush.msra.mxu3 %v14121_v13 }
 0x288   :  { %20209 = vst [vmem:[#allocation587_spill] sm:$0xff] %v14100_v15  ;;  %v14231_v47 = vsub.f32 %v181_v33, %v14189_v16  ;;  %v165_v15 = vld [vmem:[#allocation8 + $0x2b0] sm:$0xff]  ;;  %3301 = vmatpush.msrb.mxu0 %v13954_v56 }
 0x289   :  { %20210 = vst [vmem:[#allocation588_spill] sm:$0xff] %v14103_v1  ;;  %v14280_v56 = vand.u32 4294901760, %v165_v15 }
 0x28a   :  { %20211 = vst [vmem:[#allocation589_spill] sm:$0xff] %v14107_v11  ;;  %v14165_v11 = vsub.f32 %v81_v60, %v14121_v13  ;;  %v177_v60 = vld [vmem:[#allocation8 + $0x310] sm:$0xff]  ;;  %3305 = vmatpush.msrb.mxu0 %v13966_v17 }
 0x28b   :  { %20212 = vst [vmem:[#allocation590_spill] sm:$0xff] %v14110_v49  ;;  %v14210_v48 = vand.u32 4294901760, %v177_v60  ;;  %v14219_v49 = vand.u32 4294901760, %v14178_v12 }
 0x28c   :  { %20213 = vst [vmem:[#allocation591_spill] sm:$0xff] %v14113_v30  ;;  %v14208_v38 = vand.u32 4294901760, %v14165_v11  ;;  %3252 = vmatpush.msra.mxu2 %v14165_v11  ;;  %3309 = vmatpush.msrb.mxu0 %v13980_v25 }
 0x28d   :  { %20214 = vst [vmem:[#allocation592_spill] sm:$0xff] %v14115_v21 }
 0x28e   :  { %20215 = vst [vmem:[#allocation593_spill] sm:$0xff] %v14121_v13  ;;  %v161_v13 = vld [vmem:[#allocation8 + $0x290] sm:$0xff]  ;;  %3405 = vmatpush.msrb.mxu2 %v14065_v8  ;;  %3313 = vmatpush.msrb.mxu0 %v13994_v36 }
 0x28f   :  { %20216 = vst [vmem:[#allocation594_spill] sm:$0xff] %v14124_v10  ;;  %v14298_v17 = vand.u32 4294901760, %v161_v13 }
 0x290   :  { %20217 = vst [vmem:[#allocation595_spill] sm:$0xff] %v14128_v63  ;;  %v3448_v63 = vsub.f32 %v14103_v1, %v14146_v57  ;;  %3407 = vmatpush.msrb.mxu2 %v14083_v59  ;;  %3317 = vmatpush.msrb.mxu0 %v14010_v20 }
 0x291   :  { %20218 = vst [vmem:[#allocation596_spill] sm:$0xff] %v14131_v55  ;;  %v14240_v55 = vand.u32 4294901760, %v14201_v51 }
 0x292   :  { %20219 = vst [vmem:[#allocation597_spill] sm:$0xff] %v14134_v41  ;;  %3409 = vmatpush.msrb.mxu2 %v14115_v21  ;;  %3321 = vmatpush.msrb.mxu0 %v14026_v22 }
 0x293   :  { %20221 = vst [vmem:[#allocation599_spill] sm:$0xff] %v14140_v5  ;;  %v3454_v5 = vsub.f32 %v14124_v10, %v14168_v28  ;;  %v14235_v10 = vand.u32 4294901760, %v3179_v40  ;;  %v14251_v40 = vsub.f32 %v177_v60, %v14210_v48 }
 0x294   :  { %20222 = vst [vmem:[#allocation600_spill] sm:$0xff] %v14143_v34  ;;  %3411 = vmatpush.msrb.mxu2 %v14136_v44  ;;  %3325 = vmatpush.msrb.mxu0 %v14042_v58 }
 0x295   :  { %20223 = vst [vmem:[#allocation601_spill] sm:$0xff] %v14146_v57  ;;  %v14226_v57 = vand.u32 4294901760, %v3448_v63  ;;  %v14242_v63 = vand.u32 4294901760, %v173_v43  ;;  %v14246_v33 = vand.u32 4294901760, %v3454_v5  ;;  %v14262_v5 = vand.u32 4294901760, %v169_v24  ;;  %3181 = vmatpush.msra.mxu1 %v14235_v10 }
 0x296   :  { %20224 = vst [vmem:[#allocation602_spill] sm:$0xff] %v14153_v39  ;;  %3413 = vmatpush.msrb.mxu2 %v14158_v35  ;;  %3329 = vmatpush.msrb.mxu0 %v14058_v52 }
 0x297   :  { %20225 = vst [vmem:[#allocation603_spill] sm:$0xff] %v14156_v23  ;;  %3450 = vmatpush.msrb.mxu3 %v14226_v57 }
 0x298   :  { %20226 = vst [vmem:[#allocation604_spill] sm:$0xff] %v14158_v35  ;;  %3415 = vmatpush.msrb.mxu2 %v14180_v37  ;;  %3333 = vmatpush.msrb.mxu0 %v14063_v29 }
 0x299   :  { %20227 = vst [vmem:[#allocation605_spill] sm:$0xff] %v14162_v27  ;;  %v3191_v27 = vsub.f32 %v14143_v34, %v14187_v4  ;;  %3456 = vmatpush.msrb.mxu3 %v14246_v33 }
 0x29a   :  { %20228 = vst [vmem:[#allocation606_spill] sm:$0xff] %v14165_v11  ;;  %3417 = vmatpush.msrb.mxu2 %v14189_v16  ;;  %3337 = vmatpush.msrb.mxu0 %v14081_v9 }
 0x29b   :  { %20229 = vst [vmem:[#allocation607_spill] sm:$0xff] %v14168_v28  ;;  %v14222_v28 = vsub.f32 %v185_v61, %v14180_v37  ;;  %v3460_v61 = vsub.f32 %v14156_v23, %v14198_v50  ;;  %v3466_v23 = vsub.f32 %v14178_v12, %v14219_v49  ;;  %v14266_v60 = vand.u32 4294901760, %v3191_v27 }
 0x29c   :  { %20230 = vst [vmem:[#allocation608_spill] sm:$0xff] %v14175_v62  ;;  %3419 = vmatpush.msrb.mxu2 %v14210_v48  ;;  %3341 = vmatpush.msrb.mxu0 %v14113_v30 }
 0x29d   :  { %20231 = vst [vmem:[#allocation609_spill] sm:$0xff] %v14178_v12  ;;  %v14260_v34 = vand.u32 4294901760, %v14222_v28  ;;  %v14278_v12 = vsub.f32 %v173_v43, %v14242_v63 }
 0x29e   :  { %20232 = vst [vmem:[#allocation610_spill] sm:$0xff] %v14180_v37  ;;  %3421 = vmatpush.msrb.mxu2 %v14242_v63  ;;  %3345 = vmatpush.msrb.mxu0 %v14134_v41  ;;  %v229_v41 = vld [vmem:[#allocation8 + $0x4b0] sm:$0xff] }
 0x29f   :  { %20233 = vst [vmem:[#allocation611_spill] sm:$0xff] %v14187_v4  ;;  %v3478_v43 = vsub.f32 %v14222_v28, %v14260_v34 }
 0x2a0   :  { %20234 = vst [vmem:[#allocation612_spill] sm:$0xff] %v14189_v16  ;;  %3423 = vmatpush.msrb.mxu2 %v14262_v5  ;;  %3349 = vmatpush.msrb.mxu0 %v14153_v39  ;;  %v20303_v39 = vld [vmem:[#allocation129_spill] sm:$0xff] }
 0x2a1   :  { %20235 = vst [vmem:[#allocation613_spill] sm:$0xff] %v14193_v32  ;;  %v3197_v32 = vsub.f32 %v14165_v11, %v14208_v38  ;;  %v157_v11 = vld [vmem:[#allocation8 + $0x270] sm:$0xff] }
 0x2a2   :  { %20236 = vst [vmem:[#allocation614_spill] sm:$0xff] %v14198_v50  ;;  %v14255_v50 = vand.u32 4294901760, %v3185_v0  ;;  %v14273_v0 = vand.u32 4294901760, %v3460_v61  ;;  %v14291_v61 = vand.u32 4294901760, %v3466_v23  ;;  %3425 = vmatpush.msrb.mxu2 %v14280_v56  ;;  %3353 = vmatpush.msrb.mxu0 %v14175_v62  ;;  %v20300_v62 = vld [vmem:[#allocation607_spill] sm:$0xff] }
 0x2a3   :  { %20237 = vst [vmem:[#allocation615_spill] sm:$0xff] %v14201_v51  ;;  %v14284_v27 = vand.u32 4294901760, %v3197_v32 }
 0x2a4   :  { %20238 = vst [vmem:[#allocation616_spill] sm:$0xff] %v14208_v38  ;;  %3187 = vmatpush.msra.mxu1 %v14255_v50  ;;  %3462 = vmatpush.msrb.mxu3 %v14273_v0 }
 0x2a5   :  { %20239 = vst [vmem:[#allocation617_spill] sm:$0xff] %v14210_v48  ;;  %3427 = vmatpush.msrb.mxu2 %v14298_v17  ;;  %3357 = vmatpush.msrb.mxu0 %v14187_v4  ;;  %v20297_v4 = vld [vmem:[#allocation601_spill] sm:$0xff] }
 0x2a6   :  { %20240 = vst [vmem:[#allocation618_spill] sm:$0xff] %v14214_v6  ;;  %v14269_v6 = vand.u32 4294901760, %v14231_v47  ;;  %3193 = vmatpush.msra.mxu1 %v14266_v60  ;;  %3468 = vmatpush.msrb.mxu3 %v14291_v61 }
 0x2a7   :  { %20241 = vst [vmem:[#allocation619_spill] sm:$0xff] %v14219_v49  ;;  %v3472_v49 = vsub.f32 %v14201_v51, %v14240_v55  ;;  %3361 = vmatpush.msrb.mxu0 %v14208_v38  ;;  %v20296_v38 = vld [vmem:[#allocation594_spill] sm:$0xff] }
 0x2a8   :  { %20242 = vst [vmem:[#allocation620_spill] sm:$0xff] %v14222_v28  ;;  %v3484_v32 = vsub.f32 %v14231_v47, %v14269_v6  ;;  %3199 = vmatpush.msra.mxu1 %v14284_v27 }
 0x2a9   :  { %20243 = vst [vmem:[#allocation621_spill] sm:$0xff] %v14226_v57  ;;  %v14296_v57 = vsub.f32 %v169_v24, %v14262_v5  ;;  %v14306_v23 = vand.u32 4294901760, %v3472_v49  ;;  %v14312_v24 = vsub.f32 %v165_v15, %v14280_v56  ;;  %v14322_v49 = vand.u32 4294901760, %v3478_v43  ;;  %3201 = vmatmul.f32.vlgmr.msra.gmra.mxu1 %v20303_v39 }
 0x2aa   :  { %20244 = vst [vmem:[#allocation622_spill] sm:$0xff] %v14231_v47  ;;  %v14328_v15 = vsub.f32 %v161_v13, %v14298_v17  ;;  %3368 = vmatpush.msrb.mxu1 %v13918_v2  ;;  %v14334_v36 = vand.u32 4294901760, %v3484_v32 }
 0x2ab   :  { %20245 = vst [vmem:[#allocation623_spill] sm:$0xff] %v14235_v10  ;;  %v14287_v10 = vand.u32 4294901760, %v14251_v40  ;;  %3474 = vmatpush.msrb.mxu3 %v14306_v23 }
 0x2ac   :  { %20246 = vst [vmem:[#allocation624_spill] sm:$0xff] %v14240_v55  ;;  %3370 = vmatpush.msrb.mxu1 %v13924_v26  ;;  %v14357_v20 = vand.u32 4294901760, %v14328_v15 }
 0x2ad   :  { %20247 = vst [vmem:[#allocation625_spill] sm:$0xff] %v14242_v63  ;;  %v3490_v25 = vsub.f32 %v14251_v40, %v14287_v10  ;;  %3480 = vmatpush.msrb.mxu3 %v14322_v49 }
 0x2ae   :  { %20248 = vst [vmem:[#allocation626_spill] sm:$0xff] %v14246_v33  ;;  %v153_v33 = vld [vmem:[#allocation8 + $0x250] sm:$0xff]  ;;  %3372 = vmatpush.msrb.mxu1 %v13933_v31 }
 0x2af   :  { %20249 = vst [vmem:[#allocation627_spill] sm:$0xff] %v14251_v40  ;;  %v14350_v32 = vand.u32 4294901760, %v3490_v25  ;;  %3486 = vmatpush.msrb.mxu3 %v14334_v36 }
 0x2b0   :  { %20250 = vst [vmem:[#allocation628_spill] sm:$0xff] %v14255_v50  ;;  %v14309_v50 = vand.u32 4294901760, %v14278_v12  ;;  %3374 = vmatpush.msrb.mxu1 %v13942_v7 }
 0x2b1   :  { %20251 = vst [vmem:[#allocation629_spill] sm:$0xff] %v14260_v34  ;;  %v14314_v34 = vand.u32 4294901760, %v157_v11  ;;  %3492 = vmatpush.msrb.mxu3 %v14350_v32 }
 0x2b2   :  { %20252 = vst [vmem:[#allocation630_spill] sm:$0xff] %v14262_v5  ;;  %v3496_v43 = vsub.f32 %v14278_v12, %v14309_v50  ;;  %3376 = vmatpush.msrb.mxu1 %v13951_v46 }
 0x2b3   :  { %20253 = vst [vmem:[#allocation631_spill] sm:$0xff] %v14266_v60  ;;  %v14325_v60 = vand.u32 4294901760, %v14296_v57  ;;  %v14344_v13 = vsub.f32 %v157_v11, %v14314_v34  ;;  %3429 = vmatpush.msrb.mxu2 %v14314_v34 }
 0x2b4   :  { %20254 = vst [vmem:[#allocation632_spill] sm:$0xff] %v14269_v6  ;;  %v14330_v6 = vand.u32 4294901760, %v153_v33  ;;  %v14368_v25 = vand.u32 4294901760, %v3496_v43  ;;  %v3514_v43 = vsub.f32 %v14328_v15, %v14357_v20  ;;  %3378 = vmatpush.msrb.mxu1 %v13963_v14  ;;  %v313_v14 = vld [vmem:[#allocation8 + $0x750] sm:$0xff] }
 0x2b5   :  { %20255 = vst [vmem:[#allocation633_spill] sm:$0xff] %v14273_v0  ;;  %v149_v0 = vld [vmem:[#allocation8 + $0x230] sm:$0xff]  ;;  %v14373_v22 = vand.u32 4294901760, %v14344_v13 }
 0x2b6   :  { %20256 = vst [vmem:[#allocation634_spill] sm:$0xff] %v14278_v12  ;;  %v14360_v11 = vsub.f32 %v153_v33, %v14330_v6  ;;  %3498 = vmatpush.msrb.mxu3 %v14368_v25  ;;  %3380 = vmatpush.msrb.mxu1 %v13977_v19 }
 0x2b7   :  { %20257 = vst [vmem:[#allocation635_spill] sm:$0xff] %v14280_v56  ;;  %3431 = vmatpush.msrb.mxu2 %v14330_v6 }
 0x2b8   :  { %20258 = vst [vmem:[#allocation636_spill] sm:$0xff] %v14284_v27  ;;  %v14341_v27 = vand.u32 4294901760, %v14312_v24  ;;  %v14387_v58 = vand.u32 4294901760, %v14360_v11  ;;  %3382 = vmatpush.msrb.mxu1 %v13991_v18 }
 0x2b9   :  { %20259 = vst [vmem:[#allocation637_spill] sm:$0xff] %v14287_v10  ;;  %v145_v10 = vld [vmem:[#allocation8 + $0x210] sm:$0xff] }
 0x2ba   :  { %20260 = vst [vmem:[#allocation638_spill] sm:$0xff] %v14291_v61  ;;  %v14346_v61 = vand.u32 4294901760, %v149_v0  ;;  %v14362_v2 = vand.u32 4294901760, %v145_v10  ;;  %3384 = vmatpush.msrb.mxu1 %v13998_v54 }
 0x2bb   :  { %20261 = vst [vmem:[#allocation639_spill] sm:$0xff] %v14296_v57 }
 0x2bc   :  { %20262 = vst [vmem:[#allocation640_spill] sm:$0xff] %v14298_v17  ;;  %v14376_v33 = vsub.f32 %v149_v0, %v14346_v61  ;;  %v14390_v31 = vsub.f32 %v145_v10, %v14362_v2  ;;  %v14407_v10 = vand.u32 4294901760, %v3514_v43  ;;  %3386 = vmatpush.msrb.mxu1 %v14014_v45  ;;  %3433 = vmatpush.msrb.mxu2 %v14346_v61 }
 0x2bd   :  { %20263 = vst [vmem:[#allocation641_spill] sm:$0xff] %v14306_v23  ;;  %v3502_v23 = vsub.f32 %v14296_v57, %v14325_v60 }
 0x2be   :  { %20264 = vst [vmem:[#allocation642_spill] sm:$0xff] %v14309_v50  ;;  %3388 = vmatpush.msrb.mxu1 %v14039_v42  ;;  %3435 = vmatpush.msrb.mxu2 %v14362_v2 }
 0x2bf   :  { %20265 = vst [vmem:[#allocation643_spill] sm:$0xff] %v14312_v24 }
 0x2c0   :  { %20266 = vst [vmem:[#allocation644_spill] sm:$0xff] %v14314_v34  ;;  %3390 = vmatpush.msrb.mxu1 %v14055_v53 }
 0x2c1   :  { %20267 = vst [vmem:[#allocation645_spill] sm:$0xff] %v14322_v49  ;;  %v3508_v49 = vsub.f32 %v14312_v24, %v14341_v27 }
 0x2c2   :  { %20268 = vst [vmem:[#allocation646_spill] sm:$0xff] %v14325_v60  ;;  %3392 = vmatpush.msrb.mxu1 %v14076_v3 }
 0x2c3   :  { %20269 = vst [vmem:[#allocation647_spill] sm:$0xff] %v14328_v15  ;;  %v14396_v0 = vand.u32 4294901760, %v3508_v49  ;;  %v3526_v49 = vsub.f32 %v14360_v11, %v14387_v58 }
 0x2c4   :  { %20270 = vst [vmem:[#allocation648_spill] sm:$0xff] %v14330_v6 }
 0x2c5   :  { %20271 = vst [vmem:[#allocation649_spill] sm:$0xff] %v14334_v36  ;;  %v14382_v36 = vand.u32 4294901760, %v3502_v23  ;;  %v3520_v23 = vsub.f32 %v14344_v13, %v14373_v22  ;;  %v14426_v30 = vand.u32 4294901760, %v3526_v49 }
 0x2c6   :  { %20272 = vst [vmem:[#allocation650_spill] sm:$0xff] %v14341_v27 }
 0x2c7   :  { %20273 = vst [vmem:[#allocation651_spill] sm:$0xff] %v14344_v13  ;;  %3504 = vmatpush.msrb.mxu3 %v14382_v36  ;;  %v14418_v9 = vand.u32 4294901760, %v3520_v23 }
 0x2c8   :  { %20274 = vst [vmem:[#allocation652_spill] sm:$0xff] %v14346_v61 }
 0x2c9   :  { %20275 = vst [vmem:[#allocation653_spill] sm:$0xff] %v14350_v32  ;;  %v14401_v32 = vand.u32 4294901760, %v14376_v33  ;;  %3510 = vmatpush.msrb.mxu3 %v14396_v0 }
 0x2ca   :  { %20276 = vst [vmem:[#allocation654_spill] sm:$0xff] %v14357_v20 }
 0x2cb   :  { %20277 = vst [vmem:[#allocation655_spill] sm:$0xff] %v14360_v11  ;;  %v3532_v43 = vsub.f32 %v14376_v33, %v14401_v32  ;;  %3516 = vmatpush.msrb.mxu3 %v14407_v10 }
 0x2cc   :  { %20278 = vst [vmem:[#allocation656_spill] sm:$0xff] %v14362_v2 }
 0x2cd   :  { %20279 = vst [vmem:[#allocation657_spill] sm:$0xff] %v14368_v25  ;;  %v14412_v25 = vand.u32 4294901760, %v14390_v31  ;;  %3522 = vmatpush.msrb.mxu3 %v14418_v9  ;;  %v14434_v23 = vand.u32 4294901760, %v3532_v43  ;;  %v20293_v43 = vld [vmem:[#allocation147_spill] sm:$0xff] }
 0x2ce   :  { %20280 = vst [vmem:[#allocation658_spill] sm:$0xff] %v14373_v22  ;;  %3100 = vmatmul.f32.vlgmr.msra.gmra.mxu0 %v20293_v43  ;;  %v301_v43 = vld [vmem:[#allocation8 + $0x6f0] sm:$0xff] }
 0x2cf   :  { %20281 = vst [vmem:[#allocation659_spill] sm:$0xff] %v14376_v33  ;;  %3528 = vmatpush.msrb.mxu3 %v14426_v30  ;;  %3548 = vmatpush.msra.mxu0 %v14103_v1  ;;  %v20301_v1 = vld [vmem:[#allocation587_spill] sm:$0xff] }
 0x2d0   :  { %20282 = vst [vmem:[#allocation660_spill] sm:$0xff] %v14382_v36  ;;  %v3538_v36 = vsub.f32 %v14390_v31, %v14412_v25 }
 0x2d1   :  { %20283 = vst [vmem:[#allocation661_spill] sm:$0xff] %v14387_v58  ;;  %3534 = vmatpush.msrb.mxu3 %v14434_v23  ;;  %3551 = vmatpush.msra.mxu0 %v20296_v38 }
 0x2d2   :  { %20284 = vst [vmem:[#allocation662_spill] sm:$0xff] %v14390_v31  ;;  %v14440_v49 = vand.u32 4294901760, %v3538_v36  ;;  %v20294_v36 = vld [vmem:[#allocation141_spill] sm:$0xff] }
 0x2d3   :  { %20285 = vst [vmem:[#allocation663_spill] sm:$0xff] %v14396_v0  ;;  %3294 = vmatmul.f32.vlgmr.msra.gmra.mxu3 %v20294_v36 }
 0x2d4   :  { %20286 = vst [vmem:[#allocation664_spill] sm:$0xff] %v14401_v32  ;;  %3540 = vmatpush.msrb.mxu3 %v14440_v49 }
 0x2d5   :  { %20287 = vst [vmem:[#allocation665_spill] sm:$0xff] %v14407_v10  ;;  %v20304_v10 = vld [vmem:[#allocation614_spill] sm:$0xff] }
 0x2d6   :  { %20288 = vst [vmem:[#allocation666_spill] sm:$0xff] %v14412_v25  ;;  %3709 = vmatpush.msra.mxu3 %v14065_v8  ;;  %3363 = vmatmul.f32.vlgmr.msrb.gmra.mxu0 %v20303_v39 }
 0x2d7   :  { %20289 = vst [vmem:[#allocation667_spill] sm:$0xff] %v14418_v9  ;;  %v20302_v9 = vld [vmem:[#allocation609_spill] sm:$0xff] }
 0x2d8   :  { %20290 = vst [vmem:[#allocation668_spill] sm:$0xff] %v14426_v30  ;;  %3711 = vmatpush.msra.mxu3 %v14083_v59  ;;  %v20299_v30 = vld [vmem:[#allocation603_spill] sm:$0xff] }
 0x2d9   :  { %20291 = vst [vmem:[#allocation669_spill] sm:$0xff] %v14434_v23  ;;  %v20295_v23 = vld [vmem:[#allocation136_spill] sm:$0xff]  ;;  %3554 = vmatpush.msra.mxu0 %v20299_v30  ;;  %v20306_v30 = vld [vmem:[#allocation619_spill] sm:$0xff] }
 0x2da   :  { %20292 = vst [vmem:[#allocation670_spill] sm:$0xff] %v14440_v49  ;;  %3255 = vmatmul.f32.vlgmr.msra.gmra.mxu2 %v20295_v23  ;;  %v20298_v49 = vld [vmem:[#allocation586_spill] sm:$0xff]  ;;  %3713 = vmatpush.msra.mxu3 %v14115_v21 }
 0x2db   :  { %3642 = vmatpush.msra.mxu2 %v20297_v4  ;;  %3394 = vmatpush.msrb.mxu1 %v20298_v49  ;;  %v20305_v4 = vld [vmem:[#allocation593_spill] sm:$0xff] }
 0x2dc   :  { %3557 = vmatpush.msra.mxu0 %v20302_v9  ;;  %3715 = vmatpush.msra.mxu3 %v14136_v44 }
 0x2dd   :  { %3646 = vmatpush.msra.mxu2 %v20300_v62  ;;  %3396 = vmatpush.msrb.mxu1 %v20301_v1  ;;  %v20307_v62 = vld [vmem:[#allocation150_spill] sm:$0xff]  ;;  %v325_v1 = vld [vmem:[#allocation8 + $0x7b0] sm:$0xff] }
 0x2de   :  { %3560 = vmatpush.msra.mxu0 %v14201_v51  ;;  %3717 = vmatpush.msra.mxu3 %v14158_v35  ;;  %v14708_v53 = vand.u32 4294901760, %v325_v1 }
 0x2df   :  { %3650 = vmatpush.msra.mxu2 %v20304_v10  ;;  %3398 = vmatpush.msrb.mxu1 %v20305_v4  ;;  %v20308_v10 = vld [vmem:[#allocation144_spill] sm:$0xff]  ;;  %v213_v4 = vld [vmem:[#allocation8 + $0x430] sm:$0xff] }
 0x2e0   :  { %3563 = vmatpush.msra.mxu0 %v14222_v28  ;;  %3719 = vmatpush.msra.mxu3 %v14180_v37  ;;  %20364 = vst [vmem:[#allocation721_spill] sm:$0xff] %v14708_v53 }
 0x2e1   :  { %3601 = vmatpush.msra.mxu1 %v14065_v8  ;;  %3654 = vmatpush.msra.mxu2 %v20306_v30  ;;  %v20309_v30 = vld [vmem:[#allocation629_spill] sm:$0xff] }
 0x2e2   :  { %3441 = vmatmul.f32.vlgmr.msrb.gmra.mxu2 %v20307_v62  ;;  %3542 = vmatmul.f32.vlgmr.msrb.gmra.mxu3 %v20308_v10 }
 0x2e3   :  { %3603 = vmatpush.msra.mxu1 %v14083_v59  ;;  %3658 = vmatpush.msra.mxu2 %v14240_v55  ;;  %v20310_v55 = vld [vmem:[#allocation632_spill] sm:$0xff] }
 0x2e4   :  { %3566 = vmatpush.msra.mxu0 %v14231_v47  ;;  %3721 = vmatpush.msra.mxu3 %v14189_v16  ;;  %v20311_v47 = vld [vmem:[#allocation637_spill] sm:$0xff] }
 0x2e5   :  { %3605 = vmatpush.msra.mxu1 %v14115_v21  ;;  %3662 = vmatpush.msra.mxu2 %v20309_v30  ;;  %v241_v30 = vld [vmem:[#allocation8 + $0x510] sm:$0xff] }
 0x2e6   :  { %3400 = vmatmul.f32.vlgmr.msrb.gmra.mxu1 %v20303_v39  ;;  %3569 = vmatpush.msra.mxu0 %v14251_v40  ;;  %v14582_v38 = vand.u32 4294901760, %v241_v30 }
 0x2e7   :  { %3607 = vmatpush.msra.mxu1 %v14136_v44  ;;  %3666 = vmatpush.msra.mxu2 %v20310_v55  ;;  %v269_v55 = vld [vmem:[#allocation8 + $0x5f0] sm:$0xff] }
 0x2e8   :  { %3723 = vmatpush.msra.mxu3 %v14210_v48  ;;  %3572 = vmatpush.msra.mxu0 %v14278_v12  ;;  %v20321_v12 = vld [vmem:[#allocation148_spill] sm:$0xff]  ;;  %20330 = vst [vmem:[#allocation688_spill] sm:$0xff] %v14582_v38  ;;  %v14609_v0 = vsub.f32 %v241_v30, %v14582_v38 }
 0x2e9   :  { %3609 = vmatpush.msra.mxu1 %v14158_v35  ;;  %3670 = vmatpush.msra.mxu2 %v20311_v47  ;;  %v253_v47 = vld [vmem:[#allocation8 + $0x570] sm:$0xff] }
 0x2ea   :  { %3725 = vmatpush.msra.mxu3 %v14242_v63  ;;  %3575 = vmatpush.msra.mxu0 %v14296_v57  ;;  %v265_v57 = vld [vmem:[#allocation8 + $0x5d0] sm:$0xff]  ;;  %20336 = vst [vmem:[#allocation694_spill] sm:$0xff] %v14609_v0 }
 0x2eb   :  { %3611 = vmatpush.msra.mxu1 %v14180_v37  ;;  %3674 = vmatpush.msra.mxu2 %v14309_v50  ;;  %v14506_v50 = vand.u32 4294901760, %v269_v55  ;;  %v14646_v37 = vand.u32 4294901760, %v14609_v0  ;;  %v329_v35 = vld [vmem:[#allocation8 + $0x7d0] sm:$0xff] }
 0x2ec   :  { %3727 = vmatpush.msra.mxu3 %v14262_v5  ;;  %3578 = vmatpush.msra.mxu0 %v14312_v24  ;;  %v261_v24 = vld [vmem:[#allocation8 + $0x5b0] sm:$0xff] }
 0x2ed   :  { %3613 = vmatpush.msra.mxu1 %v14189_v16  ;;  %3678 = vmatpush.msra.mxu2 %v14325_v60  ;;  %20312 = vst [vmem:[#allocation671_spill] sm:$0xff] %v14506_v50  ;;  %v14512_v60 = vand.u32 4294901760, %v265_v57  ;;  %v333_v16 = vld [vmem:[#allocation8 + $0x7f0] sm:$0xff] }
 0x2ee   :  { %3729 = vmatpush.msra.mxu3 %v14280_v56  ;;  %3581 = vmatpush.msra.mxu0 %v14328_v15  ;;  %v257_v15 = vld [vmem:[#allocation8 + $0x590] sm:$0xff]  ;;  %20347 = vst [vmem:[#allocation704_spill] sm:$0xff] %v14646_v37 }
 0x2ef   :  { %3615 = vmatpush.msra.mxu1 %v14210_v48  ;;  %3682 = vmatpush.msra.mxu2 %v14341_v27  ;;  %20313 = vst [vmem:[#allocation672_spill] sm:$0xff] %v14512_v60  ;;  %v14521_v27 = vand.u32 4294901760, %v261_v24  ;;  %v14627_v48 = vand.u32 4294901760, %v229_v41 }
 0x2f0   :  { %3731 = vmatpush.msra.mxu3 %v14298_v17  ;;  %3584 = vmatpush.msra.mxu0 %v14344_v13  ;;  %v14519_v13 = vsub.f32 %v269_v55, %v14506_v50  ;;  %v14534_v55 = vand.u32 4294901760, %v253_v47 }
 0x2f1   :  { %3617 = vmatpush.msra.mxu1 %v14242_v63  ;;  %3686 = vmatpush.msra.mxu2 %v14357_v20  ;;  %20315 = vst [vmem:[#allocation674_spill] sm:$0xff] %v14521_v27  ;;  %v14525_v20 = vand.u32 4294901760, %v257_v15 }
 0x2f2   :  { %3733 = vmatpush.msra.mxu3 %v14314_v34  ;;  %3587 = vmatpush.msra.mxu0 %v14360_v11  ;;  %20314 = vst [vmem:[#allocation673_spill] sm:$0xff] %v14519_v13  ;;  %v249_v11 = vld [vmem:[#allocation8 + $0x550] sm:$0xff]  ;;  %v14559_v40 = vsub.f32 %v253_v47, %v14534_v55 }
 0x2f3   :  { %3619 = vmatpush.msra.mxu1 %v14262_v5  ;;  %3690 = vmatpush.msra.mxu2 %v14373_v22  ;;  %20316 = vst [vmem:[#allocation675_spill] sm:$0xff] %v14525_v20  ;;  %v14530_v22 = vsub.f32 %v265_v57, %v14512_v60  ;;  %v14547_v57 = vsub.f32 %v257_v15, %v14525_v20 }
 0x2f4   :  { %3735 = vmatpush.msra.mxu3 %v14330_v6  ;;  %3590 = vmatpush.msra.mxu0 %v14376_v33  ;;  %20318 = vst [vmem:[#allocation677_spill] sm:$0xff] %v14534_v55  ;;  %v14539_v33 = vsub.f32 %v261_v24, %v14521_v27 }
 0x2f5   :  { %3621 = vmatpush.msra.mxu1 %v14280_v56  ;;  %3694 = vmatpush.msra.mxu2 %v14387_v58  ;;  %20317 = vst [vmem:[#allocation676_spill] sm:$0xff] %v14530_v22  ;;  %v14542_v58 = vand.u32 4294901760, %v14519_v13  ;;  %v14554_v24 = vand.u32 4294901760, %v14530_v22  ;;  %v14573_v47 = vand.u32 4294901760, %v14547_v57 }
 0x2f6   :  { %3737 = vmatpush.msra.mxu3 %v14346_v61  ;;  %3593 = vmatpush.msra.mxu0 %v14390_v31  ;;  %20319 = vst [vmem:[#allocation678_spill] sm:$0xff] %v14539_v33  ;;  %v245_v31 = vld [vmem:[#allocation8 + $0x530] sm:$0xff]  ;;  %v14568_v51 = vand.u32 4294901760, %v14539_v33 }
 0x2f7   :  { %3623 = vmatpush.msra.mxu1 %v14298_v17  ;;  %3698 = vmatpush.msra.mxu2 %v14401_v32  ;;  %20320 = vst [vmem:[#allocation679_spill] sm:$0xff] %v14542_v58  ;;  %v14551_v32 = vand.u32 4294901760, %v249_v11  ;;  %v3789_v15 = vsub.f32 %v14519_v13, %v14542_v58  ;;  %v14565_v28 = vand.u32 4294901760, %v245_v31 }
 0x2f8   :  { %3739 = vmatpush.msra.mxu3 %v14362_v2  ;;  %3596 = vmatmul.f32.vlgmr.msra.gmra.mxu0 %v20321_v12  ;;  %20322 = vst [vmem:[#allocation680_spill] sm:$0xff] %v14547_v57  ;;  %v14778_v12 = vand.u32 4294901760, %v313_v14 }
 0x2f9   :  { %3746 = vmatpush.msrb.mxu0 %v14506_v50  ;;  %3625 = vmatpush.msra.mxu1 %v14314_v34  ;;  %20323 = vst [vmem:[#allocation681_spill] sm:$0xff] %v14551_v32  ;;  %v14580_v9 = vsub.f32 %v249_v11, %v14551_v32  ;;  %v233_v34 = vld [vmem:[#allocation8 + $0x4d0] sm:$0xff]  ;;  %v14591_v17 = vand.u32 4294901760, %v3789_v15  ;;  %v3801_v11 = vsub.f32 %v14539_v33, %v14568_v51 }
 0x2fa   :  { %3942 = vmatpush.msrb.mxu3 %v14506_v50  ;;  %20324 = vst [vmem:[#allocation682_spill] sm:$0xff] %v14554_v24  ;;  %3702 = vmatpush.msra.mxu2 %v14412_v25  ;;  %v237_v25 = vld [vmem:[#allocation8 + $0x4f0] sm:$0xff] }
 0x2fb   :  { %20325 = vst [vmem:[#allocation683_spill] sm:$0xff] %v14559_v40  ;;  %3748 = vmatpush.msrb.mxu0 %v14512_v60  ;;  %3627 = vmatpush.msra.mxu1 %v14330_v6  ;;  %v14587_v6 = vand.u32 4294901760, %v14559_v40  ;;  %v14598_v56 = vand.u32 4294901760, %v237_v25  ;;  %v14614_v5 = vand.u32 4294901760, %v14580_v9 }
 0x2fc   :  { %3944 = vmatpush.msrb.mxu3 %v14512_v60  ;;  %3889 = vmatpush.msrb.mxu2 %v14519_v13  ;;  %20326 = vst [vmem:[#allocation684_spill] sm:$0xff] %v14565_v28  ;;  %v3795_v13 = vsub.f32 %v14530_v22, %v14554_v24 }
 0x2fd   :  { %20327 = vst [vmem:[#allocation685_spill] sm:$0xff] %v14568_v51  ;;  %3704 = vmatmul.f32.vlgmr.msra.gmra.mxu2 %v20308_v10  ;;  %3750 = vmatpush.msrb.mxu0 %v14521_v27  ;;  %v3813_v63 = vsub.f32 %v14559_v40, %v14587_v6  ;;  %v14625_v30 = vsub.f32 %v237_v25, %v14598_v56 }
 0x2fe   :  { %20328 = vst [vmem:[#allocation686_spill] sm:$0xff] %v14573_v47  ;;  %3892 = vmatpush.msrb.mxu2 %v14530_v22  ;;  %3946 = vmatpush.msrb.mxu3 %v14521_v27  ;;  %v14596_v22 = vsub.f32 %v245_v31, %v14565_v28  ;;  %v14606_v15 = vand.u32 4294901760, %v3795_v13  ;;  %v14611_v31 = vand.u32 4294901760, %v233_v34  ;;  %v14622_v13 = vand.u32 4294901760, %v3801_v11 }
 0x2ff   :  { %20329 = vst [vmem:[#allocation687_spill] sm:$0xff] %v14580_v9  ;;  %3629 = vmatpush.msra.mxu1 %v14346_v61  ;;  %3741 = vmatmul.f32.vlgmr.msra.gmra.mxu3 %v20308_v10  ;;  %v3807_v61 = vsub.f32 %v14547_v57, %v14573_v47  ;;  %v3819_v25 = vsub.f32 %v14580_v9, %v14614_v5  ;;  %v14664_v21 = vand.u32 4294901760, %v14625_v30  ;;  %v305_v10 = vld [vmem:[#allocation8 + $0x710] sm:$0xff] }
 0x300   :  { %20331 = vst [vmem:[#allocation689_spill] sm:$0xff] %v14587_v6  ;;  %3752 = vmatpush.msrb.mxu0 %v14525_v20  ;;  %3895 = vmatpush.msrb.mxu2 %v14539_v33  ;;  %v20339_v33 = vld [vmem:[#allocation149_spill] sm:$0xff]  ;;  %v14630_v29 = vand.u32 4294901760, %v14596_v22  ;;  %v14641_v11 = vsub.f32 %v233_v34, %v14611_v31 }
 0x301   :  { %20332 = vst [vmem:[#allocation690_spill] sm:$0xff] %v14591_v17  ;;  %3948 = vmatpush.msrb.mxu3 %v14525_v20  ;;  %3631 = vmatpush.msra.mxu1 %v14362_v2  ;;  %v225_v2 = vld [vmem:[#allocation8 + $0x490] sm:$0xff] }
 0x302   :  { %20333 = vst [vmem:[#allocation691_spill] sm:$0xff] %v14596_v22  ;;  %3754 = vmatpush.msrb.mxu0 %v14534_v55  ;;  %3635 = vmatmul.f32.vlgmr.msra.gmra.mxu1 %v20339_v33  ;;  %v14643_v52 = vand.u32 4294901760, %v225_v2  ;;  %v3825_v34 = vsub.f32 %v14596_v22, %v14630_v29  ;;  %v14680_v8 = vand.u32 4294901760, %v14641_v11 }
 0x303   :  { %20334 = vst [vmem:[#allocation692_spill] sm:$0xff] %v14598_v56  ;;  %3898 = vmatpush.msrb.mxu2 %v14547_v57  ;;  %3791 = vmatpush.msrb.mxu1 %v14591_v17  ;;  %v14634_v57 = vand.u32 4294901760, %v3807_v61  ;;  %v221_v17 = vld [vmem:[#allocation8 + $0x470] sm:$0xff]  ;;  %v14650_v61 = vand.u32 4294901760, %v3813_v63  ;;  %v14668_v63 = vand.u32 4294901760, %v329_v35 }
 0x304   :  { %20335 = vst [vmem:[#allocation693_spill] sm:$0xff] %v14606_v15  ;;  %3950 = vmatpush.msrb.mxu3 %v14534_v55  ;;  %3756 = vmatpush.msrb.mxu0 %v14551_v32  ;;  %v14661_v44 = vand.u32 4294901760, %v221_v17  ;;  %v14677_v59 = vsub.f32 %v225_v2, %v14643_v52  ;;  %v14691_v2 = vand.u32 4294901760, %v3825_v34  ;;  %v3843_v42 = vsub.f32 %v14641_v11, %v14680_v8 }
 0x305   :  { %20337 = vst [vmem:[#allocation695_spill] sm:$0xff] %v14611_v31  ;;  %3901 = vmatpush.msrb.mxu2 %v14559_v40  ;;  %3797 = vmatpush.msrb.mxu1 %v14606_v15  ;;  %v14652_v15 = vand.u32 4294901760, %v333_v16  ;;  %v14659_v40 = vsub.f32 %v229_v41, %v14627_v48  ;;  %v3831_v41 = vsub.f32 %v14609_v0, %v14646_v37 }
 0x306   :  { %20338 = vst [vmem:[#allocation696_spill] sm:$0xff] %v14614_v5  ;;  %3952 = vmatpush.msrb.mxu3 %v14551_v32  ;;  %3758 = vmatpush.msrb.mxu0 %v14565_v28  ;;  %v14696_v49 = vsub.f32 %v221_v17, %v14661_v44  ;;  %v14706_v34 = vsub.f32 %v329_v35, %v14668_v63  ;;  %v14717_v45 = vand.u32 4294901760, %v14677_v59  ;;  %v14753_v46 = vand.u32 4294901760, %v3843_v42 }
 0x307   :  { %20340 = vst [vmem:[#allocation697_spill] sm:$0xff] %v14622_v13  ;;  %3904 = vmatpush.msrb.mxu2 %v14580_v9  ;;  %3803 = vmatpush.msrb.mxu1 %v14622_v13  ;;  %v217_v9 = vld [vmem:[#allocation8 + $0x450] sm:$0xff]  ;;  %v14672_v13 = vand.u32 4294901760, %v3819_v25  ;;  %v14687_v25 = vsub.f32 %v333_v16, %v14652_v15  ;;  %v14699_v3 = vand.u32 4294901760, %v14659_v40  ;;  %v14703_v16 = vand.u32 4294901760, %v213_v4 }
 0x308   :  { %20341 = vst [vmem:[#allocation698_spill] sm:$0xff] %v14625_v30  ;;  %3954 = vmatpush.msrb.mxu3 %v14565_v28  ;;  %3760 = vmatpush.msrb.mxu0 %v14582_v38  ;;  %v14712_v17 = vand.u32 4294901760, %v3831_v41  ;;  %v317_v41 = vld [vmem:[#allocation8 + $0x770] sm:$0xff]  ;;  %v3855_v7 = vsub.f32 %v14677_v59, %v14717_v45 }
 0x309   :  { %20342 = vst [vmem:[#allocation699_spill] sm:$0xff] %v14627_v48  ;;  %3907 = vmatpush.msrb.mxu2 %v14596_v22  ;;  %3809 = vmatpush.msrb.mxu1 %v14634_v57  ;;  %v3837_v22 = vsub.f32 %v14625_v30, %v14664_v21  ;;  %v3849_v18 = vsub.f32 %v14659_v40, %v14699_v3 }
 0x30a   :  { %20343 = vst [vmem:[#allocation700_spill] sm:$0xff] %v14630_v29  ;;  %3956 = vmatpush.msrb.mxu3 %v14582_v38  ;;  %3762 = vmatpush.msrb.mxu0 %v14598_v56 }
 0x30b   :  { %20344 = vst [vmem:[#allocation701_spill] sm:$0xff] %v14634_v57  ;;  %3910 = vmatpush.msrb.mxu2 %v14609_v0  ;;  %v14684_v57 = vand.u32 4294901760, %v217_v9  ;;  %3815 = vmatpush.msrb.mxu1 %v14650_v61  ;;  %v321_v0 = vld [vmem:[#allocation8 + $0x790] sm:$0xff]  ;;  %v14731_v54 = vand.u32 4294901760, %v3837_v22  ;;  %v14749_v22 = vsub.f32 %v325_v1, %v14708_v53  ;;  %v14771_v42 = vand.u32 4294901760, %v3849_v18 }
 0x30c   :  { %20345 = vst [vmem:[#allocation702_spill] sm:$0xff] %v14641_v11  ;;  %3958 = vmatpush.msrb.mxu3 %v14598_v56  ;;  %3764 = vmatpush.msrb.mxu0 %v14611_v31 }
 0x30d   :  { %20346 = vst [vmem:[#allocation703_spill] sm:$0xff] %v14643_v52  ;;  %3913 = vmatpush.msrb.mxu2 %v14625_v30  ;;  %3821 = vmatpush.msrb.mxu1 %v14672_v13  ;;  %v14722_v35 = vsub.f32 %v217_v9, %v14684_v57  ;;  %v14725_v30 = vand.u32 4294901760, %v14687_v25  ;;  %v14738_v9 = vand.u32 4294901760, %v14696_v49 }
 0x30e   :  { %20348 = vst [vmem:[#allocation705_spill] sm:$0xff] %v14650_v61  ;;  %v209_v61 = vld [vmem:[#allocation8 + $0x410] sm:$0xff]  ;;  %3960 = vmatpush.msrb.mxu3 %v14611_v31  ;;  %3766 = vmatpush.msrb.mxu0 %v14627_v48 }
 0x30f   :  { %20349 = vst [vmem:[#allocation706_spill] sm:$0xff] %v14652_v15  ;;  %3916 = vmatpush.msrb.mxu2 %v14641_v11  ;;  %3827 = vmatpush.msrb.mxu1 %v14691_v2  ;;  %v14735_v19 = vand.u32 4294901760, %v209_v61  ;;  %v14743_v11 = vsub.f32 %v213_v4, %v14703_v16  ;;  %v309_v4 = vld [vmem:[#allocation8 + $0x730] sm:$0xff]  ;;  %v4130_v1 = vsub.f32 %v14687_v25, %v14725_v30  ;;  %v14764_v26 = vand.u32 4294901760, %v14722_v35 }
 0x310   :  { %20350 = vst [vmem:[#allocation707_spill] sm:$0xff] %v14659_v40  ;;  %3962 = vmatpush.msrb.mxu3 %v14627_v48  ;;  %3768 = vmatpush.msrb.mxu0 %v14643_v52  ;;  %v3861_v33 = vsub.f32 %v14696_v49, %v14738_v9  ;;  %v14790_v62 = vand.u32 4294901760, %v309_v4 }
 0x311   :  { %20351 = vst [vmem:[#allocation708_spill] sm:$0xff] %v14661_v44  ;;  %3919 = vmatpush.msrb.mxu2 %v14659_v40  ;;  %3833 = vmatpush.msrb.mxu1 %v14712_v17  ;;  %v14757_v40 = vand.u32 4294901760, %v317_v41  ;;  %v14788_v18 = vand.u32 4294901760, %v14743_v11  ;;  %v3867_v23 = vsub.f32 %v14722_v35, %v14764_v26 }
 0x312   :  { %20352 = vst [vmem:[#allocation709_spill] sm:$0xff] %v14664_v21  ;;  %3964 = vmatpush.msrb.mxu3 %v14643_v52  ;;  %3770 = vmatpush.msrb.mxu0 %v14661_v44 }
 0x313   :  { %20353 = vst [vmem:[#allocation710_spill] sm:$0xff] %v14668_v63  ;;  %3922 = vmatpush.msrb.mxu2 %v14677_v59  ;;  %3839 = vmatpush.msrb.mxu1 %v14731_v54  ;;  %v14797_v39 = vsub.f32 %v317_v41, %v14757_v40 }
 0x314   :  { %20354 = vst [vmem:[#allocation711_spill] sm:$0xff] %v14672_v13  ;;  %v14727_v13 = vand.u32 4294901760, %v321_v0  ;;  %3966 = vmatpush.msrb.mxu3 %v14661_v44  ;;  %3772 = vmatpush.msrb.mxu0 %v14684_v57 }
 0x315   :  { %20355 = vst [vmem:[#allocation712_spill] sm:$0xff] %v14677_v59  ;;  %v14776_v59 = vsub.f32 %v209_v61, %v14735_v19  ;;  %3925 = vmatpush.msrb.mxu2 %v14696_v49  ;;  %3845 = vmatpush.msrb.mxu1 %v14753_v46  ;;  %v14794_v61 = vand.u32 4294901760, %v3855_v7  ;;  %v14812_v7 = vand.u32 4294901760, %v3861_v33  ;;  %v14829_v33 = vsub.f32 %v309_v4, %v14790_v62 }
 0x316   :  { %20356 = vst [vmem:[#allocation713_spill] sm:$0xff] %v14680_v8  ;;  %3968 = vmatpush.msrb.mxu3 %v14684_v57  ;;  %3774 = vmatpush.msrb.mxu0 %v14703_v16 }
 0x317   :  { %20357 = vst [vmem:[#allocation714_spill] sm:$0xff] %v14684_v57  ;;  %3928 = vmatpush.msrb.mxu2 %v14722_v35  ;;  %3851 = vmatpush.msrb.mxu1 %v14771_v42  ;;  %v14815_v41 = vand.u32 4294901760, %v14776_v59  ;;  %v14836_v57 = vand.u32 4294901760, %v301_v43 }
 0x318   :  { %20358 = vst [vmem:[#allocation715_spill] sm:$0xff] %v14687_v25  ;;  %3970 = vmatpush.msrb.mxu3 %v14703_v16  ;;  %3776 = vmatpush.msrb.mxu0 %v14735_v19 }
 0x319   :  { %20359 = vst [vmem:[#allocation716_spill] sm:$0xff] %v14691_v2  ;;  %v14746_v2 = vand.u32 4294901760, %v14706_v34  ;;  %3931 = vmatpush.msrb.mxu2 %v14743_v11  ;;  %3857 = vmatpush.msrb.mxu1 %v14794_v61 }
 0x31a   :  { %20360 = vst [vmem:[#allocation717_spill] sm:$0xff] %v14696_v49  ;;  %v14801_v49 = vand.u32 4294901760, %v4130_v1  ;;  %v14818_v1 = vsub.f32 %v313_v14, %v14778_v12  ;;  %3972 = vmatpush.msrb.mxu3 %v14735_v19  ;;  %v14834_v14 = vand.u32 4294901760, %v14797_v39  ;;  %3983 = vmatpush.msra.mxu0 %v14542_v58  ;;  %v14863_v58 = vand.u32 4294901760, %v14829_v33 }
 0x31b   :  { %20361 = vst [vmem:[#allocation718_spill] sm:$0xff] %v14699_v3  ;;  %3863 = vmatpush.msrb.mxu1 %v14812_v7  ;;  %3934 = vmatpush.msrb.mxu2 %v14776_v59 }
 0x31c   :  { %20362 = vst [vmem:[#allocation719_spill] sm:$0xff] %v14703_v16  ;;  %v297_v16 = vld [vmem:[#allocation8 + $0x6d0] sm:$0xff]  ;;  %4132 = vmatpush.msra.mxu3 %v14801_v49  ;;  %3987 = vmatpush.msra.mxu0 %v14554_v24 }
 0x31d   :  { %20363 = vst [vmem:[#allocation720_spill] sm:$0xff] %v14706_v34  ;;  %4087 = vmatpush.msra.mxu2 %v14652_v15  ;;  %v285_v24 = vld [vmem:[#allocation8 + $0x670] sm:$0xff] }
 0x31e   :  { %20365 = vst [vmem:[#allocation722_spill] sm:$0xff] %v14712_v17  ;;  %v14767_v17 = vsub.f32 %v321_v0, %v14727_v13  ;;  %v4136_v0 = vsub.f32 %v14706_v34, %v14746_v2  ;;  %3991 = vmatpush.msra.mxu0 %v14568_v51  ;;  %v281_v51 = vld [vmem:[#allocation8 + $0x650] sm:$0xff] }
 0x31f   :  { %20366 = vst [vmem:[#allocation723_spill] sm:$0xff] %v14717_v45  ;;  %4089 = vmatpush.msra.mxu2 %v14668_v63 }
 0x320   :  { %20367 = vst [vmem:[#allocation724_spill] sm:$0xff] %v14722_v35  ;;  %v14806_v36 = vand.u32 4294901760, %v14767_v17  ;;  %v14822_v35 = vand.u32 4294901760, %v4136_v0  ;;  %v20398_v0 = vld [vmem:[#allocation227_spill] sm:$0xff]  ;;  %3995 = vmatpush.msra.mxu0 %v14573_v47 }
 0x321   :  { %20368 = vst [vmem:[#allocation725_spill] sm:$0xff] %v14725_v30  ;;  %3782 = vmatmul.f32.vlgmr.msrb.gmra.mxu0 %v20398_v0  ;;  %v14852_v0 = vand.u32 4294901760, %v14818_v1  ;;  %4091 = vmatpush.msra.mxu2 %v14708_v53 }
 0x322   :  { %20369 = vst [vmem:[#allocation726_spill] sm:$0xff] %v14727_v13  ;;  %v4148_v4 = vsub.f32 %v14767_v17, %v14806_v36  ;;  %4138 = vmatpush.msra.mxu3 %v14822_v35  ;;  %3999 = vmatpush.msra.mxu0 %v14587_v6 }
 0x323   :  { %20370 = vst [vmem:[#allocation727_spill] sm:$0xff] %v14731_v54  ;;  %v14785_v54 = vand.u32 4294901760, %v14749_v22  ;;  %4093 = vmatpush.msra.mxu2 %v14727_v13 }
 0x324   :  { %20371 = vst [vmem:[#allocation728_spill] sm:$0xff] %v14735_v19  ;;  %v3879_v19 = vsub.f32 %v14776_v59, %v14815_v41  ;;  %4003 = vmatpush.msra.mxu0 %v14614_v5 }
 0x325   :  { %20372 = vst [vmem:[#allocation729_spill] sm:$0xff] %v14738_v9  ;;  %4095 = vmatpush.msra.mxu2 %v14757_v40 }
 0x326   :  { %20373 = vst [vmem:[#allocation730_spill] sm:$0xff] %v14743_v11  ;;  %4007 = vmatpush.msra.mxu0 %v14630_v29 }
 0x327   :  { %20374 = vst [vmem:[#allocation731_spill] sm:$0xff] %v14746_v2  ;;  %v4142_v2 = vsub.f32 %v14749_v22, %v14785_v54  ;;  %4097 = vmatpush.msra.mxu2 %v14778_v12 }
 0x328   :  { %20375 = vst [vmem:[#allocation732_spill] sm:$0xff] %v14749_v22  ;;  %4011 = vmatpush.msra.mxu0 %v14646_v37 }
 0x329   :  { %20376 = vst [vmem:[#allocation733_spill] sm:$0xff] %v14753_v46  ;;  %v14808_v46 = vand.u32 4294901760, %v305_v10  ;;  %4099 = vmatpush.msra.mxu2 %v14790_v62 }
 0x32a   :  { %20377 = vst [vmem:[#allocation734_spill] sm:$0xff] %v14757_v40  ;;  %4015 = vmatpush.msra.mxu0 %v14664_v21 }
 0x32b   :  { %20378 = vst [vmem:[#allocation735_spill] sm:$0xff] %v14764_v26  ;;  %4101 = vmatpush.msra.mxu2 %v14808_v46 }
 0x32c   :  { %20379 = vst [vmem:[#allocation736_spill] sm:$0xff] %v14767_v17  ;;  %v14870_v17 = vsub.f32 %v301_v43, %v14836_v57  ;;  %v4160_v43 = vsub.f32 %v14818_v1, %v14852_v0  ;;  %4019 = vmatpush.msra.mxu0 %v14680_v8 }
 0x32d   :  { %20380 = vst [vmem:[#allocation737_spill] sm:$0xff] %v14771_v42  ;;  %v3873_v42 = vsub.f32 %v14743_v11, %v14788_v18  ;;  %v14845_v11 = vsub.f32 %v305_v10, %v14808_v46  ;;  %4103 = vmatpush.msra.mxu2 %v14836_v57 }
 0x32e   :  { %20381 = vst [vmem:[#allocation738_spill] sm:$0xff] %v14776_v59  ;;  %4023 = vmatpush.msra.mxu0 %v14699_v3 }
 0x32f   :  { %20382 = vst [vmem:[#allocation739_spill] sm:$0xff] %v14778_v12  ;;  %v14860_v10 = vand.u32 4294901760, %v3873_v42  ;;  %v14876_v42 = vand.u32 4294901760, %v4148_v4  ;;  %v4166_v4 = vsub.f32 %v14829_v33, %v14863_v58 }
 0x330   :  { %20383 = vst [vmem:[#allocation740_spill] sm:$0xff] %v14785_v54  ;;  %v14840_v54 = vand.u32 4294901760, %v3867_v23  ;;  %v14858_v23 = vand.u32 4294901760, %v4142_v2  ;;  %v20408_v2 = vld [vmem:[#allocation195_spill] sm:$0xff]  ;;  %4027 = vmatpush.msra.mxu0 %v14717_v45 }
 0x331   :  { %20384 = vst [vmem:[#allocation741_spill] sm:$0xff] %v14788_v18  ;;  %3937 = vmatmul.f32.vlgmr.msrb.gmra.mxu2 %v20408_v2  ;;  %v20414_v2 = vld [vmem:[#allocation206_spill] sm:$0xff] }
 0x332   :  { %20385 = vst [vmem:[#allocation742_spill] sm:$0xff] %v14790_v62  ;;  %3869 = vmatpush.msrb.mxu1 %v14840_v54  ;;  %4144 = vmatpush.msra.mxu3 %v14858_v23 }
 0x333   :  { %20386 = vst [vmem:[#allocation743_spill] sm:$0xff] %v14794_v61  ;;  %v293_v61 = vld [vmem:[#allocation8 + $0x6b0] sm:$0xff]  ;;  %3976 = vmatmul.f32.vlgmr.msrb.gmra.mxu3 %v20414_v2  ;;  %v14922_v2 = vand.u32 4294901760, %v281_v51  ;;  %4031 = vmatpush.msra.mxu0 %v14738_v9  ;;  %v102_v9 = vld [vmem:[#allocation8 + $0xb8] sm:$0xff] }
 0x334   :  { %20387 = vst [vmem:[#allocation744_spill] sm:$0xff] %v14797_v39  ;;  %v14872_v59 = vand.u32 4294901760, %v293_v61  ;;  %3875 = vmatpush.msrb.mxu1 %v14860_v10  ;;  %4150 = vmatpush.msra.mxu3 %v14876_v42 }
 0x335   :  { %20388 = vst [vmem:[#allocation745_spill] sm:$0xff] %v14801_v49  ;;  %v14854_v49 = vand.u32 4294901760, %v297_v16  ;;  %4035 = vmatpush.msra.mxu0 %v14764_v26  ;;  %v106_v26 = vld [vmem:[#allocation8 + $0xd8] sm:$0xff] }
 0x336   :  { %20389 = vst [vmem:[#allocation746_spill] sm:$0xff] %v14806_v36  ;;  %v4154_v36 = vsub.f32 %v14797_v39, %v14834_v14 }
 0x337   :  { %20390 = vst [vmem:[#allocation747_spill] sm:$0xff] %v14808_v46  ;;  %v14888_v39 = vsub.f32 %v297_v16, %v14854_v49  ;;  %v14904_v16 = vsub.f32 %v293_v61, %v14872_v59  ;;  %4105 = vmatpush.msra.mxu2 %v14854_v49  ;;  %4039 = vmatpush.msra.mxu0 %v14788_v18  ;;  %v20452_v18 = vld [vmem:[#allocation740_spill] sm:$0xff] }
 0x338   :  { %20391 = vst [vmem:[#allocation748_spill] sm:$0xff] %v14812_v7  ;;  %v289_v7 = vld [vmem:[#allocation8 + $0x690] sm:$0xff] }
 0x339   :  { %20392 = vst [vmem:[#allocation749_spill] sm:$0xff] %v14815_v41  ;;  %v14917_v47 = vand.u32 4294901760, %v14888_v39  ;;  %v14933_v6 = vand.u32 4294901760, %v14904_v16  ;;  %4107 = vmatpush.msra.mxu2 %v14872_v59  ;;  %4043 = vmatpush.msra.mxu0 %v14815_v41  ;;  %v20450_v41 = vld [vmem:[#allocation275_spill] sm:$0xff] }
 0x33a   :  { %20393 = vst [vmem:[#allocation750_spill] sm:$0xff] %v14818_v1  ;;  %v14906_v1 = vand.u32 4294901760, %v285_v24 }
 0x33b   :  { %20394 = vst [vmem:[#allocation751_spill] sm:$0xff] %v14822_v35  ;;  %v14879_v35 = vand.u32 4294901760, %v14845_v11  ;;  %4230 = vmatpush.msrb.mxu0 %v14687_v25  ;;  %v20449_v25 = vld [vmem:[#allocation719_spill] sm:$0xff] }
 0x33c   :  { %20395 = vst [vmem:[#allocation752_spill] sm:$0xff] %v14829_v33 }
 0x33d   :  { %20396 = vst [vmem:[#allocation753_spill] sm:$0xff] %v14834_v14  ;;  %v14883_v14 = vand.u32 4294901760, %v3879_v19  ;;  %v14898_v19 = vand.u32 4294901760, %v4154_v36  ;;  %v14914_v36 = vand.u32 4294901760, %v4160_v43  ;;  %4233 = vmatpush.msrb.mxu0 %v14706_v34  ;;  %v20454_v34 = vld [vmem:[#allocation744_spill] sm:$0xff] }
 0x33e   :  { %20397 = vst [vmem:[#allocation754_spill] sm:$0xff] %v14836_v57 }
 0x33f   :  { %20399 = vst [vmem:[#allocation755_spill] sm:$0xff] %v14840_v54  ;;  %v14890_v54 = vand.u32 4294901760, %v289_v7  ;;  %3881 = vmatpush.msrb.mxu1 %v14883_v14  ;;  %4156 = vmatpush.msra.mxu3 %v14898_v19 }
 0x340   :  { %20400 = vst [vmem:[#allocation756_spill] sm:$0xff] %v14845_v11  ;;  %4236 = vmatpush.msrb.mxu0 %v14749_v22  ;;  %v20455_v22 = vld [vmem:[#allocation746_spill] sm:$0xff] }
 0x341   :  { %20401 = vst [vmem:[#allocation757_spill] sm:$0xff] %v14852_v0  ;;  %v14901_v0 = vand.u32 4294901760, %v14870_v17  ;;  %v14920_v61 = vsub.f32 %v289_v7, %v14890_v54  ;;  %4050 = vmatpush.msra.mxu1 %v14506_v50  ;;  %v14936_v7 = vsub.f32 %v285_v24, %v14906_v1  ;;  %4162 = vmatpush.msra.mxu3 %v14914_v36 }
 0x342   :  { %20402 = vst [vmem:[#allocation758_spill] sm:$0xff] %v14854_v49  ;;  %v14952_v24 = vsub.f32 %v281_v51, %v14922_v2  ;;  %4109 = vmatpush.msra.mxu2 %v14890_v54 }
 0x343   :  { %20403 = vst [vmem:[#allocation759_spill] sm:$0xff] %v14858_v23  ;;  %v277_v23 = vld [vmem:[#allocation8 + $0x630] sm:$0xff]  ;;  %v4178_v43 = vsub.f32 %v14870_v17, %v14901_v0  ;;  %4052 = vmatpush.msra.mxu1 %v14512_v60  ;;  %v14949_v50 = vand.u32 4294901760, %v14920_v61  ;;  %v14965_v5 = vand.u32 4294901760, %v14936_v7 }
 0x344   :  { %20404 = vst [vmem:[#allocation760_spill] sm:$0xff] %v14860_v10  ;;  %v4172_v10 = vsub.f32 %v14845_v11, %v14879_v35  ;;  %v14979_v29 = vand.u32 4294901760, %v14952_v24  ;;  %4111 = vmatpush.msra.mxu2 %v14906_v1 }
 0x345   :  { %20405 = vst [vmem:[#allocation761_spill] sm:$0xff] %v14863_v58  ;;  %v20423_v58 = vld [vmem:[#allocation185_spill] sm:$0xff]  ;;  %4054 = vmatpush.msra.mxu1 %v14521_v27 }
 0x346   :  { %20406 = vst [vmem:[#allocation762_spill] sm:$0xff] %v14870_v17  ;;  %3883 = vmatmul.f32.vlgmr.msrb.gmra.mxu1 %v20423_v58  ;;  %4113 = vmatpush.msra.mxu2 %v14922_v2 }
 0x347   :  { %20407 = vst [vmem:[#allocation763_spill] sm:$0xff] %v14872_v59  ;;  %4056 = vmatpush.msra.mxu1 %v14525_v20  ;;  %4045 = vmatmul.f32.vlgmr.msra.gmra.mxu0 %v20423_v58 }
 0x348   :  { %20409 = vst [vmem:[#allocation764_spill] sm:$0xff] %v14876_v42  ;;  %v14926_v42 = vand.u32 4294901760, %v4166_v4  ;;  %v14942_v4 = vand.u32 4294901760, %v4172_v10  ;;  %v14960_v10 = vand.u32 4294901760, %v4178_v43  ;;  %v4196_v43 = vsub.f32 %v14920_v61, %v14949_v50 }
 0x349   :  { %20410 = vst [vmem:[#allocation765_spill] sm:$0xff] %v14879_v35  ;;  %v273_v35 = vld [vmem:[#allocation8 + $0x610] sm:$0xff]  ;;  %4058 = vmatpush.msra.mxu1 %v14534_v55 }
 0x34a   :  { %20411 = vst [vmem:[#allocation766_spill] sm:$0xff] %v14883_v14  ;;  %v14938_v14 = vand.u32 4294901760, %v277_v23  ;;  %4168 = vmatpush.msra.mxu3 %v14926_v42 }
 0x34b   :  { %20412 = vst [vmem:[#allocation767_spill] sm:$0xff] %v14888_v39  ;;  %4060 = vmatpush.msra.mxu1 %v14551_v32 }
 0x34c   :  { %20413 = vst [vmem:[#allocation768_spill] sm:$0xff] %v14890_v54  ;;  %v14968_v51 = vsub.f32 %v277_v23, %v14938_v14  ;;  %4174 = vmatpush.msra.mxu3 %v14942_v4  ;;  %4115 = vmatpush.msra.mxu2 %v14938_v14 }
 0x34d   :  { %20415 = vst [vmem:[#allocation769_spill] sm:$0xff] %v14898_v19  ;;  %v4184_v19 = vsub.f32 %v14888_v39, %v14917_v47  ;;  %4062 = vmatpush.msra.mxu1 %v14565_v28 }
 0x34e   :  { %20416 = vst [vmem:[#allocation770_spill] sm:$0xff] %v14901_v0  ;;  %v14954_v0 = vand.u32 4294901760, %v273_v35  ;;  %4180 = vmatpush.msra.mxu3 %v14960_v10 }
 0x34f   :  { %20417 = vst [vmem:[#allocation771_spill] sm:$0xff] %v14904_v16  ;;  %4064 = vmatpush.msra.mxu1 %v14582_v38 }
 0x350   :  { %20418 = vst [vmem:[#allocation772_spill] sm:$0xff] %v14906_v1  ;;  %v14982_v27 = vsub.f32 %v273_v35, %v14954_v0  ;;  %v14999_v35 = vand.u32 4294901760, %v4196_v43  ;;  %4117 = vmatpush.msra.mxu2 %v14954_v0 }
 0x351   :  { %20419 = vst [vmem:[#allocation773_spill] sm:$0xff] %v14914_v36  ;;  %v4190_v36 = vsub.f32 %v14904_v16, %v14933_v6  ;;  %4066 = vmatpush.msra.mxu1 %v14598_v56  ;;  %v186_v56 = vld [vmem:[#allocation8 + $0x358] sm:$0xff] }
 0x352   :  { %20420 = vst [vmem:[#allocation774_spill] sm:$0xff] %v14917_v47  ;;  %4324 = vmatpush.msrb.mxu2 %v14725_v30  ;;  %v20453_v30 = vld [vmem:[#allocation728_spill] sm:$0xff] }
 0x353   :  { %20421 = vst [vmem:[#allocation775_spill] sm:$0xff] %v14920_v61  ;;  %v14988_v23 = vand.u32 4294901760, %v4190_v36  ;;  %v4208_v36 = vsub.f32 %v14952_v24, %v14979_v29  ;;  %4068 = vmatpush.msra.mxu1 %v14611_v31 }
 0x354   :  { %20422 = vst [vmem:[#allocation776_spill] sm:$0xff] %v14922_v2 }
 0x355   :  { %20424 = vst [vmem:[#allocation777_spill] sm:$0xff] %v14926_v42  ;;  %v14974_v42 = vand.u32 4294901760, %v4184_v19  ;;  %v4202_v19 = vsub.f32 %v14936_v7, %v14965_v5  ;;  %v15018_v3 = vand.u32 4294901760, %v4208_v36  ;;  %4070 = vmatpush.msra.mxu1 %v14627_v48 }
 0x356   :  { %20425 = vst [vmem:[#allocation778_spill] sm:$0xff] %v14933_v6 }
 0x357   :  { %20426 = vst [vmem:[#allocation779_spill] sm:$0xff] %v14936_v7  ;;  %4186 = vmatpush.msra.mxu3 %v14974_v42  ;;  %v15010_v8 = vand.u32 4294901760, %v4202_v19  ;;  %4072 = vmatpush.msra.mxu1 %v14643_v52  ;;  %v190_v52 = vld [vmem:[#allocation8 + $0x378] sm:$0xff] }
 0x358   :  { %20427 = vst [vmem:[#allocation780_spill] sm:$0xff] %v14938_v14 }
 0x359   :  { %20428 = vst [vmem:[#allocation781_spill] sm:$0xff] %v14942_v4  ;;  %v14993_v4 = vand.u32 4294901760, %v14968_v51  ;;  %4192 = vmatpush.msra.mxu3 %v14988_v23  ;;  %4074 = vmatpush.msra.mxu1 %v14661_v44 }
 0x35a   :  { %20429 = vst [vmem:[#allocation782_spill] sm:$0xff] %v14949_v50 }
 0x35b   :  { %20430 = vst [vmem:[#allocation783_spill] sm:$0xff] %v14952_v24  ;;  %v4214_v43 = vsub.f32 %v14968_v51, %v14993_v4  ;;  %4198 = vmatpush.msra.mxu3 %v14999_v35 }
 0x35c   :  { %20431 = vst [vmem:[#allocation784_spill] sm:$0xff] %v14954_v0 }
 0x35d   :  { %20432 = vst [vmem:[#allocation785_spill] sm:$0xff] %v14960_v10  ;;  %v15004_v10 = vand.u32 4294901760, %v14982_v27  ;;  %4204 = vmatpush.msra.mxu3 %v15010_v8  ;;  %v15026_v19 = vand.u32 4294901760, %v4214_v43  ;;  %v20447_v43 = vld [vmem:[#allocation286_spill] sm:$0xff] }
 0x35e   :  { %20433 = vst [vmem:[#allocation786_spill] sm:$0xff] %v14965_v5  ;;  %4123 = vmatmul.f32.vlgmr.msra.gmra.mxu2 %v20447_v43  ;;  %v174_v43 = vld [vmem:[#allocation8 + $0x2f8] sm:$0xff] }
 0x35f   :  { %20434 = vst [vmem:[#allocation787_spill] sm:$0xff] %v14968_v51  ;;  %4210 = vmatpush.msra.mxu3 %v15018_v3 }
 0x360   :  { %20435 = vst [vmem:[#allocation788_spill] sm:$0xff] %v14974_v42  ;;  %v4220_v42 = vsub.f32 %v14982_v27, %v15004_v10 }
 0x361   :  { %20436 = vst [vmem:[#allocation789_spill] sm:$0xff] %v14979_v29  ;;  %4216 = vmatpush.msra.mxu3 %v15026_v19 }
 0x362   :  { %20437 = vst [vmem:[#allocation790_spill] sm:$0xff] %v14982_v27  ;;  %v15032_v36 = vand.u32 4294901760, %v4220_v42  ;;  %v20446_v42 = vld [vmem:[#allocation714_spill] sm:$0xff] }
 0x363   :  { %20438 = vst [vmem:[#allocation791_spill] sm:$0xff] %v14988_v23  ;;  %4076 = vmatpush.msra.mxu1 %v20446_v42  ;;  %v15215_v23 = vand.u32 4294901760, %v102_v9 }
 0x364   :  { %20439 = vst [vmem:[#allocation792_spill] sm:$0xff] %v14993_v4  ;;  %4222 = vmatpush.msra.mxu3 %v15032_v36 }
 0x365   :  { %20440 = vst [vmem:[#allocation793_spill] sm:$0xff] %v14999_v35  ;;  %4078 = vmatpush.msra.mxu1 %v20449_v25  ;;  %4224 = vmatmul.f32.vlgmr.msra.gmra.mxu3 %v20450_v41  ;;  %v194_v25 = vld [vmem:[#allocation8 + $0x398] sm:$0xff] }
 0x366   :  { %20441 = vst [vmem:[#allocation794_spill] sm:$0xff] %v15004_v10  ;;  %4391 = vmatpush.msrb.mxu3 %v14652_v15  ;;  %v15312_v31 = vand.u32 4294901760, %v194_v25 }
 0x367   :  { %20442 = vst [vmem:[#allocation795_spill] sm:$0xff] %v15010_v8  ;;  %4080 = vmatpush.msra.mxu1 %v20453_v30 }
 0x368   :  { %20443 = vst [vmem:[#allocation796_spill] sm:$0xff] %v15018_v3  ;;  %4393 = vmatpush.msrb.mxu3 %v14668_v63  ;;  %4082 = vmatmul.f32.vlgmr.msra.gmra.mxu1 %v20423_v58  ;;  %v20457_v3 = vld [vmem:[#allocation753_spill] sm:$0xff] }
 0x369   :  { %20444 = vst [vmem:[#allocation797_spill] sm:$0xff] %v15026_v19  ;;  %v20451_v19 = vld [vmem:[#allocation736_spill] sm:$0xff]  ;;  %4283 = vmatpush.msrb.mxu1 %v14652_v15 }
 0x36a   :  { %20445 = vst [vmem:[#allocation798_spill] sm:$0xff] %v15032_v36  ;;  %v20448_v36 = vld [vmem:[#allocation731_spill] sm:$0xff]  ;;  %4395 = vmatpush.msrb.mxu3 %v14708_v53  ;;  %4239 = vmatpush.msrb.mxu0 %v20451_v19  ;;  %v110_v19 = vld [vmem:[#allocation8 + $0xf8] sm:$0xff] }
 0x36b   :  { %4328 = vmatpush.msrb.mxu2 %v20448_v36  ;;  %v20456_v36 = vld [vmem:[#allocation750_spill] sm:$0xff]  ;;  %4285 = vmatpush.msrb.mxu1 %v14668_v63  ;;  %20492 = vst [vmem:[#allocation827_spill] sm:$0xff] %v15215_v23 }
 0x36c   :  { %4397 = vmatpush.msrb.mxu3 %v14727_v13  ;;  %4242 = vmatpush.msrb.mxu0 %v20454_v34  ;;  %20519 = vst [vmem:[#allocation854_spill] sm:$0xff] %v15312_v31 }
 0x36d   :  { %4332 = vmatpush.msrb.mxu2 %v20452_v18  ;;  %v20458_v18 = vld [vmem:[#allocation757_spill] sm:$0xff]  ;;  %4287 = vmatpush.msrb.mxu1 %v14708_v53 }
 0x36e   :  { %4399 = vmatpush.msrb.mxu3 %v14757_v40  ;;  %4245 = vmatpush.msrb.mxu0 %v20456_v36 }
 0x36f   :  { %4336 = vmatpush.msrb.mxu2 %v20455_v22  ;;  %v20459_v22 = vld [vmem:[#allocation761_spill] sm:$0xff]  ;;  %4289 = vmatpush.msrb.mxu1 %v14727_v13 }
 0x370   :  { %4401 = vmatpush.msrb.mxu3 %v14778_v12  ;;  %4248 = vmatpush.msrb.mxu0 %v14829_v33 }
 0x371   :  { %4340 = vmatpush.msrb.mxu2 %v20457_v3  ;;  %v20460_v3 = vld [vmem:[#allocation765_spill] sm:$0xff]  ;;  %4291 = vmatpush.msrb.mxu1 %v14757_v40 }
 0x372   :  { %4403 = vmatpush.msrb.mxu3 %v14790_v62  ;;  %4251 = vmatpush.msrb.mxu0 %v14845_v11  ;;  %v114_v11 = vld [vmem:[#allocation8 + $0x118] sm:$0xff] }
 0x373   :  { %4344 = vmatpush.msrb.mxu2 %v20458_v18  ;;  %v20461_v18 = vld [vmem:[#allocation770_spill] sm:$0xff]  ;;  %4293 = vmatpush.msrb.mxu1 %v14778_v12  ;;  %v15250_v12 = vsub.f32 %v102_v9, %v15215_v23 }
 0x374   :  { %4405 = vmatpush.msrb.mxu3 %v14808_v46  ;;  %4254 = vmatpush.msrb.mxu0 %v14870_v17 }
 0x375   :  { %4348 = vmatpush.msrb.mxu2 %v20459_v22  ;;  %v142_v22 = vld [vmem:[#allocation8 + $0x1f8] sm:$0xff]  ;;  %4295 = vmatpush.msrb.mxu1 %v14790_v62  ;;  %20501 = vst [vmem:[#allocation836_spill] sm:$0xff] %v15250_v12 }
 0x376   :  { %4407 = vmatpush.msrb.mxu3 %v14836_v57  ;;  %4257 = vmatpush.msrb.mxu0 %v14888_v39  ;;  %v138_v39 = vld [vmem:[#allocation8 + $0x1d8] sm:$0xff] }
 0x377   :  { %4352 = vmatpush.msrb.mxu2 %v20460_v3  ;;  %4297 = vmatpush.msrb.mxu1 %v14808_v46  ;;  %v202_v62 = vld [vmem:[#allocation8 + $0x3d8] sm:$0xff] }
 0x378   :  { %4409 = vmatpush.msrb.mxu3 %v14854_v49  ;;  %4260 = vmatpush.msrb.mxu0 %v14904_v16  ;;  %v15100_v16 = vand.u32 4294901760, %v138_v39 }
 0x379   :  { %4356 = vmatpush.msrb.mxu2 %v20461_v18  ;;  %v15094_v18 = vand.u32 4294901760, %v142_v22  ;;  %4299 = vmatpush.msrb.mxu1 %v14836_v57  ;;  %v206_v57 = vld [vmem:[#allocation8 + $0x3f8] sm:$0xff] }
 0x37a   :  { %4411 = vmatpush.msrb.mxu3 %v14872_v59  ;;  %4263 = vmatpush.msrb.mxu0 %v14920_v61  ;;  %20463 = vst [vmem:[#allocation800_spill] sm:$0xff] %v15100_v16  ;;  %v126_v61 = vld [vmem:[#allocation8 + $0x178] sm:$0xff] }
 0x37b   :  { %4360 = vmatpush.msrb.mxu2 %v14917_v47  ;;  %20462 = vst [vmem:[#allocation799_spill] sm:$0xff] %v15094_v18  ;;  %v134_v47 = vld [vmem:[#allocation8 + $0x1b8] sm:$0xff]  ;;  %4301 = vmatpush.msrb.mxu1 %v14854_v49 }
 0x37c   :  { %4413 = vmatpush.msrb.mxu3 %v14890_v54  ;;  %4266 = vmatpush.msrb.mxu0 %v14936_v7  ;;  %v15107_v7 = vsub.f32 %v142_v22, %v15094_v18  ;;  %v122_v22 = vld [vmem:[#allocation8 + $0x158] sm:$0xff] }
 0x37d   :  { %4364 = vmatpush.msrb.mxu2 %v14933_v6  ;;  %v130_v6 = vld [vmem:[#allocation8 + $0x198] sm:$0xff]  ;;  %4303 = vmatpush.msrb.mxu1 %v14872_v59  ;;  %v15139_v17 = vand.u32 4294901760, %v122_v22 }
 0x37e   :  { %4415 = vmatpush.msrb.mxu3 %v14906_v1  ;;  %4269 = vmatpush.msrb.mxu0 %v14952_v24  ;;  %20464 = vst [vmem:[#allocation801_spill] sm:$0xff] %v15107_v7  ;;  %v15118_v24 = vand.u32 4294901760, %v130_v6  ;;  %v15130_v3 = vand.u32 4294901760, %v15107_v7 }
 0x37f   :  { %4368 = vmatpush.msrb.mxu2 %v14949_v50  ;;  %v15109_v50 = vand.u32 4294901760, %v134_v47  ;;  %4305 = vmatpush.msrb.mxu1 %v14890_v54  ;;  %20473 = vst [vmem:[#allocation809_spill] sm:$0xff] %v15139_v17 }
 0x380   :  { %4417 = vmatpush.msrb.mxu3 %v14922_v2  ;;  %4272 = vmatpush.msrb.mxu0 %v14968_v51  ;;  %20467 = vst [vmem:[#allocation804_spill] sm:$0xff] %v15118_v24  ;;  %v15127_v51 = vand.u32 4294901760, %v126_v61  ;;  %v4471_v33 = vsub.f32 %v15107_v7, %v15130_v3 }
 0x381   :  { %4372 = vmatpush.msrb.mxu2 %v14965_v5  ;;  %20465 = vst [vmem:[#allocation802_spill] sm:$0xff] %v15109_v50  ;;  %v15116_v5 = vsub.f32 %v138_v39, %v15100_v16  ;;  %v20471_v39 = vld [vmem:[#allocation280_spill] sm:$0xff]  ;;  %4307 = vmatpush.msrb.mxu1 %v14906_v1 }
 0x382   :  { %4419 = vmatpush.msrb.mxu3 %v14938_v14  ;;  %4275 = vmatpush.msrb.mxu0 %v14982_v27  ;;  %20469 = vst [vmem:[#allocation806_spill] sm:$0xff] %v15127_v51  ;;  %v118_v27 = vld [vmem:[#allocation8 + $0x138] sm:$0xff] }
 0x383   :  { %4376 = vmatpush.msrb.mxu2 %v14979_v29  ;;  %20466 = vst [vmem:[#allocation803_spill] sm:$0xff] %v15116_v5  ;;  %v15125_v29 = vsub.f32 %v134_v47, %v15109_v50  ;;  %4278 = vmatmul.f32.vlgmr.msrb.gmra.mxu0 %v20471_v39  ;;  %v15142_v47 = vand.u32 4294901760, %v15116_v5  ;;  %v15153_v36 = vand.u32 4294901760, %v118_v27 }
 0x384   :  { %4421 = vmatpush.msrb.mxu3 %v14954_v0  ;;  %20470 = vst [vmem:[#allocation807_spill] sm:$0xff] %v15130_v3  ;;  %4428 = vmatpush.msra.mxu0 %v15094_v18 }
 0x385   :  { %4380 = vmatpush.msrb.mxu2 %v14993_v4  ;;  %20468 = vst [vmem:[#allocation805_spill] sm:$0xff] %v15125_v29  ;;  %v15137_v4 = vsub.f32 %v130_v6, %v15118_v24  ;;  %v15151_v6 = vsub.f32 %v126_v61, %v15127_v51  ;;  %v15156_v34 = vand.u32 4294901760, %v15125_v29  ;;  %4309 = vmatpush.msrb.mxu1 %v14922_v2  ;;  %v15174_v2 = vand.u32 4294901760, %v110_v19 }
 0x386   :  { %4624 = vmatpush.msra.mxu3 %v15094_v18  ;;  %20474 = vst [vmem:[#allocation810_spill] sm:$0xff] %v15142_v47  ;;  %4430 = vmatpush.msra.mxu0 %v15100_v16  ;;  %v15165_v61 = vsub.f32 %v122_v22, %v15139_v17  ;;  %v15183_v8 = vsub.f32 %v118_v27, %v15153_v36 }
 0x387   :  { %20472 = vst [vmem:[#allocation808_spill] sm:$0xff] %v15137_v4  ;;  %4384 = vmatpush.msrb.mxu2 %v15004_v10  ;;  %v15167_v10 = vand.u32 4294901760, %v114_v11  ;;  %v15170_v1 = vand.u32 4294901760, %v15137_v4  ;;  %4311 = vmatpush.msrb.mxu1 %v14938_v14  ;;  %v4483_v22 = vsub.f32 %v15125_v29, %v15156_v34  ;;  %v15186_v54 = vand.u32 4294901760, %v15151_v6 }
 0x388   :  { %4626 = vmatpush.msra.mxu3 %v15100_v16  ;;  %20475 = vst [vmem:[#allocation811_spill] sm:$0xff] %v15151_v6  ;;  %4386 = vmatmul.f32.vlgmr.msrb.gmra.mxu2 %v20450_v41  ;;  %v15190_v14 = vand.u32 4294901760, %v106_v26  ;;  %v15202_v59 = vand.u32 4294901760, %v15165_v61  ;;  %v15207_v45 = vsub.f32 %v110_v19, %v15174_v2  ;;  %v15218_v49 = vand.u32 4294901760, %v15183_v8 }
 0x389   :  { %4571 = vmatpush.msra.mxu2 %v15107_v7  ;;  %20476 = vst [vmem:[#allocation812_spill] sm:$0xff] %v15153_v36  ;;  %4432 = vmatpush.msra.mxu0 %v15109_v50  ;;  %v4477_v7 = vsub.f32 %v15116_v5, %v15142_v47  ;;  %v4489_v27 = vsub.f32 %v15137_v4, %v15170_v1 }
 0x38a   :  { %20477 = vst [vmem:[#allocation813_spill] sm:$0xff] %v15156_v34  ;;  %4628 = vmatpush.msra.mxu3 %v15109_v50  ;;  %4313 = vmatpush.msrb.mxu1 %v14954_v0  ;;  %v15199_v35 = vsub.f32 %v114_v11, %v15167_v10  ;;  %v98_v0 = vld [vmem:[#allocation8 + $0x98] sm:$0xff]  ;;  %v4495_v11 = vsub.f32 %v15151_v6, %v15186_v54 }
 0x38b   :  { %4574 = vmatpush.msra.mxu2 %v15116_v5  ;;  %20478 = vst [vmem:[#allocation814_spill] sm:$0xff] %v15165_v61  ;;  %4423 = vmatmul.f32.vlgmr.msrb.gmra.mxu3 %v20450_v41  ;;  %v15178_v5 = vand.u32 4294901760, %v4471_v33  ;;  %v15194_v33 = vand.u32 4294901760, %v4477_v7  ;;  %v15211_v7 = vand.u32 4294901760, %v4483_v22  ;;  %v15223_v19 = vsub.f32 %v106_v26, %v15190_v14 }
 0x38c   :  { %20479 = vst [vmem:[#allocation815_spill] sm:$0xff] %v15167_v10  ;;  %4434 = vmatpush.msra.mxu0 %v15118_v24  ;;  %4630 = vmatpush.msra.mxu3 %v15118_v24  ;;  %v15227_v22 = vand.u32 4294901760, %v4489_v27  ;;  %v15231_v46 = vand.u32 4294901760, %v98_v0  ;;  %v15234_v21 = vand.u32 4294901760, %v15199_v35  ;;  %v15239_v26 = vand.u32 4294901760, %v15207_v45 }
 0x38d   :  { %20480 = vst [vmem:[#allocation816_spill] sm:$0xff] %v15170_v1  ;;  %4577 = vmatpush.msra.mxu2 %v15125_v29  ;;  %v20489_v29 = vld [vmem:[#allocation283_spill] sm:$0xff]  ;;  %4473 = vmatpush.msra.mxu1 %v15178_v5  ;;  %v15245_v27 = vand.u32 4294901760, %v4495_v11  ;;  %v4507_v37 = vsub.f32 %v15183_v8, %v15218_v49  ;;  %v15257_v13 = vand.u32 4294901760, %v15223_v19  ;;  %v198_v11 = vld [vmem:[#allocation8 + $0x3b8] sm:$0xff] }
 0x38e   :  { %20481 = vst [vmem:[#allocation817_spill] sm:$0xff] %v15174_v2  ;;  %4436 = vmatpush.msra.mxu0 %v15127_v51  ;;  %4317 = vmatmul.f32.vlgmr.msrb.gmra.mxu1 %v20489_v29  ;;  %v4513_v9 = vsub.f32 %v15199_v35, %v15234_v21  ;;  %v15268_v63 = vsub.f32 %v98_v0, %v15231_v46  ;;  %v15291_v44 = vand.u32 4294901760, %v198_v11 }
 0x38f   :  { %20482 = vst [vmem:[#allocation818_spill] sm:$0xff] %v15178_v5  ;;  %4580 = vmatpush.msra.mxu2 %v15137_v4  ;;  %4632 = vmatpush.msra.mxu3 %v15127_v51  ;;  %v94_v5 = vld [vmem:[#allocation8 + $0x78] sm:$0xff]  ;;  %v4501_v4 = vsub.f32 %v15165_v61, %v15202_v59  ;;  %v15283_v0 = vand.u32 4294901760, %v4507_v37 }
 0x390   :  { %20483 = vst [vmem:[#allocation819_spill] sm:$0xff] %v15183_v8  ;;  %4438 = vmatpush.msra.mxu0 %v15139_v17  ;;  %4479 = vmatpush.msra.mxu1 %v15194_v33  ;;  %v15252_v40 = vand.u32 4294901760, %v94_v5 }
 0x391   :  { %20484 = vst [vmem:[#allocation820_spill] sm:$0xff] %v15186_v54  ;;  %4583 = vmatpush.msra.mxu2 %v15151_v6  ;;  %4634 = vmatpush.msra.mxu3 %v15139_v17  ;;  %v15241_v6 = vand.u32 4294901760, %v206_v57  ;;  %v15263_v53 = vand.u32 4294901760, %v4501_v4 }
 0x392   :  { %20485 = vst [vmem:[#allocation821_spill] sm:$0xff] %v15190_v14  ;;  %4440 = vmatpush.msra.mxu0 %v15153_v36  ;;  %4485 = vmatpush.msra.mxu1 %v15211_v7  ;;  %v15286_v42 = vsub.f32 %v94_v5, %v15252_v40  ;;  %v15304_v5 = vand.u32 4294901760, %v4513_v9 }
 0x393   :  { %20486 = vst [vmem:[#allocation822_spill] sm:$0xff] %v15194_v33  ;;  %4586 = vmatpush.msra.mxu2 %v15165_v61  ;;  %v90_v33 = vld [vmem:[#allocation8 + $0x58] sm:$0xff]  ;;  %4636 = vmatpush.msra.mxu3 %v15153_v36  ;;  %v15279_v4 = vsub.f32 %v206_v57, %v15241_v6  ;;  %v4525_v57 = vsub.f32 %v15223_v19, %v15257_v13 }
 0x394   :  { %20487 = vst [vmem:[#allocation823_spill] sm:$0xff] %v15199_v35  ;;  %v86_v61 = vld [vmem:[#allocation8 + $0x38] sm:$0xff]  ;;  %4442 = vmatpush.msra.mxu0 %v15167_v10  ;;  %4491 = vmatpush.msra.mxu1 %v15227_v22  ;;  %v15270_v15 = vand.u32 4294901760, %v90_v33  ;;  %v15329_v38 = vand.u32 4294901760, %v15286_v42 }
 0x395   :  { %20488 = vst [vmem:[#allocation824_spill] sm:$0xff] %v15202_v59  ;;  %4589 = vmatpush.msra.mxu2 %v15183_v8  ;;  %4638 = vmatpush.msra.mxu3 %v15167_v10  ;;  %v82_v8 = vld [vmem:[#allocation8 + $0x18] sm:$0xff]  ;;  %v15276_v30 = vand.u32 4294901760, %v86_v61  ;;  %v15322_v9 = vand.u32 4294901760, %v15279_v4  ;;  %v15338_v28 = vand.u32 4294901760, %v4525_v57  ;;  %v15356_v57 = vand.u32 4294901760, %v186_v56 }
 0x396   :  { %20490 = vst [vmem:[#allocation825_spill] sm:$0xff] %v15207_v45  ;;  %4444 = vmatpush.msra.mxu0 %v15174_v2  ;;  %4497 = vmatpush.msra.mxu1 %v15245_v27  ;;  %v15307_v48 = vsub.f32 %v90_v33, %v15270_v15  ;;  %v4543_v29 = vsub.f32 %v15286_v42, %v15329_v38 }
 0x397   :  { %20491 = vst [vmem:[#allocation826_spill] sm:$0xff] %v15211_v7  ;;  %v15259_v7 = vand.u32 4294901760, %v202_v62  ;;  %4592 = vmatpush.msra.mxu2 %v15199_v35  ;;  %4640 = vmatpush.msra.mxu3 %v15174_v2  ;;  %v15289_v35 = vand.u32 4294901760, %v15250_v12 }
 0x398   :  { %20493 = vst [vmem:[#allocation828_spill] sm:$0xff] %v15218_v49  ;;  %4446 = vmatpush.msra.mxu0 %v15190_v14  ;;  %4503 = vmatpush.msra.mxu1 %v15263_v53  ;;  %v15351_v55 = vand.u32 4294901760, %v15307_v48 }
 0x399   :  { %20494 = vst [vmem:[#allocation829_spill] sm:$0xff] %v15223_v19  ;;  %4595 = vmatpush.msra.mxu2 %v15207_v45  ;;  %v15300_v37 = vsub.f32 %v202_v62, %v15259_v7  ;;  %4642 = vmatpush.msra.mxu3 %v15190_v14  ;;  %v4531_v33 = vsub.f32 %v15250_v12, %v15289_v35 }
 0x39a   :  { %20495 = vst [vmem:[#allocation830_spill] sm:$0xff] %v15227_v22  ;;  %v4519_v22 = vsub.f32 %v15207_v45, %v15239_v26  ;;  %v15310_v45 = vand.u32 4294901760, %v15268_v63  ;;  %4448 = vmatpush.msra.mxu0 %v15215_v23  ;;  %4509 = vmatpush.msra.mxu1 %v15283_v0 }
 0x39b   :  { %20496 = vst [vmem:[#allocation831_spill] sm:$0xff] %v15231_v46  ;;  %4598 = vmatpush.msra.mxu2 %v15223_v19  ;;  %4644 = vmatpush.msra.mxu3 %v15215_v23  ;;  %v15334_v19 = vand.u32 4294901760, %v190_v52  ;;  %v15344_v32 = vand.u32 4294901760, %v15300_v37 }
 0x39c   :  { %20497 = vst [vmem:[#allocation832_spill] sm:$0xff] %v15234_v21  ;;  %v15316_v62 = vand.u32 4294901760, %v4519_v22  ;;  %v15332_v22 = vsub.f32 %v198_v11, %v15291_v44  ;;  %4450 = vmatpush.msra.mxu0 %v15231_v46  ;;  %4515 = vmatpush.msra.mxu1 %v15304_v5  ;;  %v4537_v11 = vsub.f32 %v15268_v63, %v15310_v45 }
 0x39d   :  { %20498 = vst [vmem:[#allocation833_spill] sm:$0xff] %v15239_v26  ;;  %4601 = vmatpush.msra.mxu2 %v15250_v12  ;;  %4646 = vmatpush.msra.mxu3 %v15231_v46  ;;  %v15354_v12 = vsub.f32 %v194_v25, %v15312_v31  ;;  %v15369_v25 = vand.u32 4294901760, %v4531_v33 }
 0x39e   :  { %20499 = vst [vmem:[#allocation834_spill] sm:$0xff] %v15241_v6  ;;  %4452 = vmatpush.msra.mxu0 %v15252_v40  ;;  %4521 = vmatpush.msra.mxu1 %v15316_v62  ;;  %v15374_v39 = vand.u32 4294901760, %v15332_v22  ;;  %v15390_v58 = vand.u32 4294901760, %v4537_v11 }
 0x39f   :  { %20500 = vst [vmem:[#allocation835_spill] sm:$0xff] %v15245_v27  ;;  %v15297_v27 = vand.u32 4294901760, %v82_v8  ;;  %4604 = vmatpush.msra.mxu2 %v15268_v63  ;;  %4648 = vmatpush.msra.mxu3 %v15252_v40 }
 0x3a0   :  { %20502 = vst [vmem:[#allocation837_spill] sm:$0xff] %v15252_v40  ;;  %4454 = vmatpush.msra.mxu0 %v15270_v15  ;;  %4527 = vmatpush.msra.mxu1 %v15338_v28 }
 0x3a1   :  { %20503 = vst [vmem:[#allocation838_spill] sm:$0xff] %v15257_v13  ;;  %4607 = vmatpush.msra.mxu2 %v15286_v42  ;;  %4650 = vmatpush.msra.mxu3 %v15270_v15 }
 0x3a2   :  { %20504 = vst [vmem:[#allocation839_spill] sm:$0xff] %v15259_v7  ;;  %4456 = vmatpush.msra.mxu0 %v15276_v30  ;;  %4533 = vmatpush.msra.mxu1 %v15369_v25 }
 0x3a3   :  { %20505 = vst [vmem:[#allocation840_spill] sm:$0xff] %v15263_v53  ;;  %v15319_v53 = vsub.f32 %v86_v61, %v15276_v30  ;;  %v182_v61 = vld [vmem:[#allocation8 + $0x338] sm:$0xff]  ;;  %4610 = vmatpush.msra.mxu2 %v15307_v48  ;;  %4652 = vmatpush.msra.mxu3 %v15276_v30 }
 0x3a4   :  { %20506 = vst [vmem:[#allocation841_spill] sm:$0xff] %v15268_v63  ;;  %v15365_v60 = vand.u32 4294901760, %v182_v61  ;;  %v15377_v63 = vsub.f32 %v190_v52, %v15334_v19  ;;  %v4549_v52 = vsub.f32 %v15307_v48, %v15351_v55  ;;  %4458 = vmatpush.msra.mxu0 %v15297_v27  ;;  %4539 = vmatpush.msra.mxu1 %v15390_v58 }
 0x3a5   :  { %20507 = vst [vmem:[#allocation842_spill] sm:$0xff] %v15270_v15  ;;  %v15363_v20 = vand.u32 4294901760, %v15319_v53  ;;  %v170_v15 = vld [vmem:[#allocation8 + $0x2d8] sm:$0xff]  ;;  %4613 = vmatpush.msra.mxu2 %v15319_v53  ;;  %4654 = vmatpush.msra.mxu3 %v15297_v27 }
 0x3a6   :  { %20508 = vst [vmem:[#allocation843_spill] sm:$0xff] %v15276_v30  ;;  %v15407_v11 = vsub.f32 %v182_v61, %v15365_v60  ;;  %v166_v30 = vld [vmem:[#allocation8 + $0x2b8] sm:$0xff]  ;;  %4665 = vmatpush.msrb.mxu0 %v15130_v3 }
 0x3a7   :  { %20509 = vst [vmem:[#allocation844_spill] sm:$0xff] %v15279_v4  ;;  %v15456_v3 = vand.u32 4294901760, %v166_v30 }
 0x3a8   :  { %20510 = vst [vmem:[#allocation845_spill] sm:$0xff] %v15283_v0  ;;  %v15341_v0 = vsub.f32 %v82_v8, %v15297_v27  ;;  %v178_v8 = vld [vmem:[#allocation8 + $0x318] sm:$0xff]  ;;  %4669 = vmatpush.msrb.mxu0 %v15142_v47 }
 0x3a9   :  { %20511 = vst [vmem:[#allocation846_spill] sm:$0xff] %v15286_v42  ;;  %v15386_v33 = vand.u32 4294901760, %v178_v8  ;;  %v15395_v42 = vand.u32 4294901760, %v15354_v12 }
 0x3aa   :  { %20512 = vst [vmem:[#allocation847_spill] sm:$0xff] %v15289_v35  ;;  %v15384_v41 = vand.u32 4294901760, %v15341_v0  ;;  %4616 = vmatpush.msra.mxu2 %v15341_v0  ;;  %4673 = vmatpush.msrb.mxu0 %v15156_v34 }
 0x3ab   :  { %20513 = vst [vmem:[#allocation848_spill] sm:$0xff] %v15291_v44 }
 0x3ac   :  { %20514 = vst [vmem:[#allocation849_spill] sm:$0xff] %v15297_v27  ;;  %v162_v27 = vld [vmem:[#allocation8 + $0x298] sm:$0xff]  ;;  %4769 = vmatpush.msrb.mxu2 %v15241_v6  ;;  %4677 = vmatpush.msrb.mxu0 %v15170_v1 }
 0x3ad   :  { %20515 = vst [vmem:[#allocation850_spill] sm:$0xff] %v15300_v37  ;;  %v15474_v47 = vand.u32 4294901760, %v162_v27 }
 0x3ae   :  { %20516 = vst [vmem:[#allocation851_spill] sm:$0xff] %v15304_v5  ;;  %v4812_v5 = vsub.f32 %v15279_v4, %v15322_v9  ;;  %4771 = vmatpush.msrb.mxu2 %v15259_v7  ;;  %4681 = vmatpush.msrb.mxu0 %v15186_v54 }
 0x3af   :  { %20517 = vst [vmem:[#allocation852_spill] sm:$0xff] %v15307_v48  ;;  %v15416_v48 = vand.u32 4294901760, %v15377_v63 }
 0x3b0   :  { %20518 = vst [vmem:[#allocation853_spill] sm:$0xff] %v15310_v45  ;;  %4773 = vmatpush.msrb.mxu2 %v15291_v44  ;;  %4685 = vmatpush.msrb.mxu0 %v15202_v59 }
 0x3b1   :  { %20520 = vst [vmem:[#allocation855_spill] sm:$0xff] %v15316_v62  ;;  %v4818_v62 = vsub.f32 %v15300_v37, %v15344_v32  ;;  %v15411_v37 = vand.u32 4294901760, %v4543_v29  ;;  %v15427_v29 = vsub.f32 %v178_v8, %v15386_v33 }
 0x3b2   :  { %20521 = vst [vmem:[#allocation856_spill] sm:$0xff] %v15319_v53  ;;  %4775 = vmatpush.msrb.mxu2 %v15312_v31  ;;  %4689 = vmatpush.msrb.mxu0 %v15218_v49 }
 0x3b3   :  { %20522 = vst [vmem:[#allocation857_spill] sm:$0xff] %v15322_v9  ;;  %v15402_v9 = vand.u32 4294901760, %v4812_v5  ;;  %v15418_v5 = vand.u32 4294901760, %v174_v43  ;;  %v15422_v61 = vand.u32 4294901760, %v4818_v62  ;;  %v15438_v62 = vand.u32 4294901760, %v170_v15  ;;  %4545 = vmatpush.msra.mxu1 %v15411_v37 }
 0x3b4   :  { %20523 = vst [vmem:[#allocation858_spill] sm:$0xff] %v15329_v38  ;;  %4777 = vmatpush.msrb.mxu2 %v15334_v19  ;;  %4693 = vmatpush.msrb.mxu0 %v15234_v21  ;;  %v326_v21 = vld [vmem:[#allocation8 + $0x7b8] sm:$0xff] }
 0x3b5   :  { %20524 = vst [vmem:[#allocation859_spill] sm:$0xff] %v15332_v22  ;;  %4814 = vmatpush.msrb.mxu3 %v15402_v9 }
 0x3b6   :  { %20525 = vst [vmem:[#allocation860_spill] sm:$0xff] %v15334_v19  ;;  %4779 = vmatpush.msrb.mxu2 %v15356_v57  ;;  %4697 = vmatpush.msrb.mxu0 %v15239_v26 }
 0x3b7   :  { %20526 = vst [vmem:[#allocation861_spill] sm:$0xff] %v15338_v28  ;;  %v4555_v28 = vsub.f32 %v15319_v53, %v15363_v20  ;;  %4820 = vmatpush.msrb.mxu3 %v15422_v61 }
 0x3b8   :  { %20527 = vst [vmem:[#allocation862_spill] sm:$0xff] %v15341_v0  ;;  %4781 = vmatpush.msrb.mxu2 %v15365_v60  ;;  %4701 = vmatpush.msrb.mxu0 %v15257_v13 }
 0x3b9   :  { %20528 = vst [vmem:[#allocation863_spill] sm:$0xff] %v15344_v32  ;;  %v15398_v32 = vsub.f32 %v186_v56, %v15356_v57  ;;  %v4824_v56 = vsub.f32 %v15332_v22, %v15374_v39  ;;  %v4830_v22 = vsub.f32 %v15354_v12, %v15395_v42  ;;  %v15442_v8 = vand.u32 4294901760, %v4555_v28 }
 0x3ba   :  { %20529 = vst [vmem:[#allocation864_spill] sm:$0xff] %v15351_v55  ;;  %4783 = vmatpush.msrb.mxu2 %v15386_v33  ;;  %4705 = vmatpush.msrb.mxu0 %v15289_v35 }
 0x3bb   :  { %20530 = vst [vmem:[#allocation865_spill] sm:$0xff] %v15354_v12  ;;  %v15436_v53 = vand.u32 4294901760, %v15398_v32  ;;  %v15454_v12 = vsub.f32 %v174_v43, %v15418_v5 }
 0x3bc   :  { %20531 = vst [vmem:[#allocation866_spill] sm:$0xff] %v15356_v57  ;;  %4785 = vmatpush.msrb.mxu2 %v15418_v5  ;;  %4709 = vmatpush.msrb.mxu0 %v15310_v45 }
 0x3bd   :  { %20532 = vst [vmem:[#allocation867_spill] sm:$0xff] %v15363_v20  ;;  %v4842_v43 = vsub.f32 %v15398_v32, %v15436_v53 }
 0x3be   :  { %20533 = vst [vmem:[#allocation868_spill] sm:$0xff] %v15365_v60  ;;  %4787 = vmatpush.msrb.mxu2 %v15438_v62  ;;  %4713 = vmatpush.msrb.mxu0 %v15329_v38 }
 0x3bf   :  { %20534 = vst [vmem:[#allocation869_spill] sm:$0xff] %v15369_v25  ;;  %v4561_v25 = vsub.f32 %v15341_v0, %v15384_v41  ;;  %v158_v0 = vld [vmem:[#allocation8 + $0x278] sm:$0xff] }
 0x3c0   :  { %20535 = vst [vmem:[#allocation870_spill] sm:$0xff] %v15374_v39  ;;  %v15431_v39 = vand.u32 4294901760, %v4549_v52  ;;  %v15449_v52 = vand.u32 4294901760, %v4824_v56  ;;  %v15467_v56 = vand.u32 4294901760, %v4830_v22  ;;  %4789 = vmatpush.msrb.mxu2 %v15456_v3  ;;  %4717 = vmatpush.msrb.mxu0 %v15351_v55  ;;  %v20602_v55 = vld [vmem:[#allocation129_spill] sm:$0xff] }
 0x3c1   :  { %20536 = vst [vmem:[#allocation871_spill] sm:$0xff] %v15377_v63  ;;  %v15460_v28 = vand.u32 4294901760, %v4561_v25 }
 0x3c2   :  { %20537 = vst [vmem:[#allocation872_spill] sm:$0xff] %v15384_v41  ;;  %4551 = vmatpush.msra.mxu1 %v15431_v39  ;;  %4826 = vmatpush.msrb.mxu3 %v15449_v52 }
 0x3c3   :  { %20538 = vst [vmem:[#allocation873_spill] sm:$0xff] %v15386_v33  ;;  %4791 = vmatpush.msrb.mxu2 %v15474_v47  ;;  %4721 = vmatpush.msrb.mxu0 %v15363_v20  ;;  %v20596_v20 = vld [vmem:[#allocation857_spill] sm:$0xff] }
 0x3c4   :  { %20539 = vst [vmem:[#allocation874_spill] sm:$0xff] %v15390_v58  ;;  %v15445_v58 = vand.u32 4294901760, %v15407_v11  ;;  %4557 = vmatpush.msra.mxu1 %v15442_v8  ;;  %4832 = vmatpush.msrb.mxu3 %v15467_v56 }
 0x3c5   :  { %20540 = vst [vmem:[#allocation875_spill] sm:$0xff] %v15395_v42  ;;  %v4836_v42 = vsub.f32 %v15377_v63, %v15416_v48  ;;  %4725 = vmatpush.msrb.mxu0 %v15384_v41  ;;  %v20595_v41 = vld [vmem:[#allocation850_spill] sm:$0xff] }
 0x3c6   :  { %20541 = vst [vmem:[#allocation876_spill] sm:$0xff] %v15398_v32  ;;  %v4848_v25 = vsub.f32 %v15407_v11, %v15445_v58  ;;  %4563 = vmatpush.msra.mxu1 %v15460_v28 }
 0x3c7   :  { %20542 = vst [vmem:[#allocation877_spill] sm:$0xff] %v15402_v9  ;;  %v15472_v9 = vsub.f32 %v170_v15, %v15438_v62  ;;  %v15482_v22 = vand.u32 4294901760, %v4836_v42  ;;  %v15488_v15 = vsub.f32 %v166_v30, %v15456_v3  ;;  %v15498_v42 = vand.u32 4294901760, %v4842_v43  ;;  %4565 = vmatmul.f32.vlgmr.msra.gmra.mxu1 %v20602_v55 }
 0x3c8   :  { %20543 = vst [vmem:[#allocation878_spill] sm:$0xff] %v15407_v11  ;;  %v15504_v30 = vsub.f32 %v162_v27, %v15474_v47  ;;  %4732 = vmatpush.msrb.mxu1 %v15094_v18  ;;  %v15510_v1 = vand.u32 4294901760, %v4848_v25 }
 0x3c9   :  { %20544 = vst [vmem:[#allocation879_spill] sm:$0xff] %v15411_v37  ;;  %v15463_v37 = vand.u32 4294901760, %v15427_v29  ;;  %4838 = vmatpush.msrb.mxu3 %v15482_v22 }
 0x3ca   :  { %20545 = vst [vmem:[#allocation880_spill] sm:$0xff] %v15416_v48  ;;  %4734 = vmatpush.msrb.mxu1 %v15100_v16  ;;  %v15533_v54 = vand.u32 4294901760, %v15504_v30 }
 0x3cb   :  { %20546 = vst [vmem:[#allocation881_spill] sm:$0xff] %v15418_v5  ;;  %v4854_v34 = vsub.f32 %v15427_v29, %v15463_v37  ;;  %4844 = vmatpush.msrb.mxu3 %v15498_v42 }
 0x3cc   :  { %20547 = vst [vmem:[#allocation882_spill] sm:$0xff] %v15422_v61  ;;  %v154_v61 = vld [vmem:[#allocation8 + $0x258] sm:$0xff]  ;;  %4736 = vmatpush.msrb.mxu1 %v15109_v50 }
 0x3cd   :  { %20548 = vst [vmem:[#allocation883_spill] sm:$0xff] %v15427_v29  ;;  %v15526_v25 = vand.u32 4294901760, %v4854_v34  ;;  %4850 = vmatpush.msrb.mxu3 %v15510_v1 }
 0x3ce   :  { %20549 = vst [vmem:[#allocation884_spill] sm:$0xff] %v15431_v39  ;;  %v15485_v39 = vand.u32 4294901760, %v15454_v12  ;;  %4738 = vmatpush.msrb.mxu1 %v15118_v24  ;;  %v306_v24 = vld [vmem:[#allocation8 + $0x718] sm:$0xff] }
 0x3cf   :  { %20550 = vst [vmem:[#allocation885_spill] sm:$0xff] %v15436_v53  ;;  %v15490_v53 = vand.u32 4294901760, %v158_v0  ;;  %4856 = vmatpush.msrb.mxu3 %v15526_v25 }
 0x3d0   :  { %20551 = vst [vmem:[#allocation886_spill] sm:$0xff] %v15438_v62  ;;  %v4860_v43 = vsub.f32 %v15454_v12, %v15485_v39  ;;  %4740 = vmatpush.msrb.mxu1 %v15127_v51 }
 0x3d1   :  { %20552 = vst [vmem:[#allocation887_spill] sm:$0xff] %v15442_v8  ;;  %v15501_v8 = vand.u32 4294901760, %v15472_v9  ;;  %v15520_v27 = vsub.f32 %v158_v0, %v15490_v53  ;;  %4793 = vmatpush.msrb.mxu2 %v15490_v53 }
 0x3d2   :  { %20553 = vst [vmem:[#allocation888_spill] sm:$0xff] %v15445_v58  ;;  %v15506_v58 = vand.u32 4294901760, %v154_v61  ;;  %v15544_v34 = vand.u32 4294901760, %v4860_v43  ;;  %v4878_v43 = vsub.f32 %v15504_v30, %v15533_v54  ;;  %4742 = vmatpush.msrb.mxu1 %v15139_v17 }
 0x3d3   :  { %20554 = vst [vmem:[#allocation889_spill] sm:$0xff] %v15449_v52  ;;  %v150_v52 = vld [vmem:[#allocation8 + $0x238] sm:$0xff]  ;;  %v15549_v59 = vand.u32 4294901760, %v15520_v27 }
 0x3d4   :  { %20555 = vst [vmem:[#allocation890_spill] sm:$0xff] %v15454_v12  ;;  %v15536_v0 = vsub.f32 %v154_v61, %v15506_v58  ;;  %4862 = vmatpush.msrb.mxu3 %v15544_v34  ;;  %4744 = vmatpush.msrb.mxu1 %v15153_v36 }
 0x3d5   :  { %20556 = vst [vmem:[#allocation891_spill] sm:$0xff] %v15456_v3  ;;  %4795 = vmatpush.msrb.mxu2 %v15506_v58 }
 0x3d6   :  { %20557 = vst [vmem:[#allocation892_spill] sm:$0xff] %v15460_v28  ;;  %v15517_v28 = vand.u32 4294901760, %v15488_v15  ;;  %v15563_v49 = vand.u32 4294901760, %v15536_v0  ;;  %4746 = vmatpush.msrb.mxu1 %v15167_v10  ;;  %v15941_v10 = vpop.f32.mrf.mxu3 }
 0x3d7   :  { %20558 = vst [vmem:[#allocation893_spill] sm:$0xff] %v15463_v37  ;;  %v146_v37 = vld [vmem:[#allocation8 + $0x218] sm:$0xff] }
 0x3d8   :  { %20559 = vst [vmem:[#allocation894_spill] sm:$0xff] %v15467_v56  ;;  %v15522_v56 = vand.u32 4294901760, %v150_v52  ;;  %v15538_v18 = vand.u32 4294901760, %v146_v37  ;;  %4748 = vmatpush.msrb.mxu1 %v15174_v2 }
 0x3d9   :  { %20560 = vst [vmem:[#allocation895_spill] sm:$0xff] %v15472_v9 }
 0x3da   :  { %20561 = vst [vmem:[#allocation896_spill] sm:$0xff] %v15474_v47  ;;  %v15552_v61 = vsub.f32 %v150_v52, %v15522_v56  ;;  %v15566_v50 = vsub.f32 %v146_v37, %v15538_v18  ;;  %v15583_v37 = vand.u32 4294901760, %v4878_v43  ;;  %4750 = vmatpush.msrb.mxu1 %v15190_v14  ;;  %4797 = vmatpush.msrb.mxu2 %v15522_v56 }
 0x3db   :  { %20562 = vst [vmem:[#allocation897_spill] sm:$0xff] %v15482_v22  ;;  %v4866_v22 = vsub.f32 %v15472_v9, %v15501_v8 }
 0x3dc   :  { %20563 = vst [vmem:[#allocation898_spill] sm:$0xff] %v15485_v39  ;;  %4752 = vmatpush.msrb.mxu1 %v15215_v23  ;;  %4799 = vmatpush.msrb.mxu2 %v15538_v18  ;;  %v314_v23 = vld [vmem:[#allocation8 + $0x758] sm:$0xff] }
 0x3dd   :  { %20564 = vst [vmem:[#allocation899_spill] sm:$0xff] %v15488_v15  ;;  %v15962_v51 = vand.u32 4294901760, %v314_v23 }
 0x3de   :  { %20565 = vst [vmem:[#allocation900_spill] sm:$0xff] %v15490_v53  ;;  %4754 = vmatpush.msrb.mxu1 %v15231_v46 }
 0x3df   :  { %20566 = vst [vmem:[#allocation901_spill] sm:$0xff] %v15498_v42  ;;  %v4872_v42 = vsub.f32 %v15488_v15, %v15517_v28 }
 0x3e0   :  { %20567 = vst [vmem:[#allocation902_spill] sm:$0xff] %v15501_v8  ;;  %4756 = vmatpush.msrb.mxu1 %v15252_v40 }
 0x3e1   :  { %20568 = vst [vmem:[#allocation903_spill] sm:$0xff] %v15504_v30  ;;  %v15572_v52 = vand.u32 4294901760, %v4872_v42  ;;  %v4890_v42 = vsub.f32 %v15536_v0, %v15563_v49 }
 0x3e2   :  { %20569 = vst [vmem:[#allocation904_spill] sm:$0xff] %v15506_v58 }
 0x3e3   :  { %20570 = vst [vmem:[#allocation905_spill] sm:$0xff] %v15510_v1  ;;  %v15558_v1 = vand.u32 4294901760, %v4866_v22  ;;  %v4884_v22 = vsub.f32 %v15520_v27, %v15549_v59  ;;  %v15602_v35 = vand.u32 4294901760, %v4890_v42 }
 0x3e4   :  { %20571 = vst [vmem:[#allocation906_spill] sm:$0xff] %v15517_v28 }
 0x3e5   :  { %20572 = vst [vmem:[#allocation907_spill] sm:$0xff] %v15520_v27  ;;  %4868 = vmatpush.msrb.mxu3 %v15558_v1  ;;  %v15594_v13 = vand.u32 4294901760, %v4884_v22 }
 0x3e6   :  { %20573 = vst [vmem:[#allocation908_spill] sm:$0xff] %v15522_v56 }
 0x3e7   :  { %20574 = vst [vmem:[#allocation909_spill] sm:$0xff] %v15526_v25  ;;  %v15577_v25 = vand.u32 4294901760, %v15552_v61  ;;  %4874 = vmatpush.msrb.mxu3 %v15572_v52 }
 0x3e8   :  { %20575 = vst [vmem:[#allocation910_spill] sm:$0xff] %v15533_v54 }
 0x3e9   :  { %20576 = vst [vmem:[#allocation911_spill] sm:$0xff] %v15536_v0  ;;  %v4896_v43 = vsub.f32 %v15552_v61, %v15577_v25  ;;  %4880 = vmatpush.msrb.mxu3 %v15583_v37 }
 0x3ea   :  { %20577 = vst [vmem:[#allocation912_spill] sm:$0xff] %v15538_v18 }
 0x3eb   :  { %20578 = vst [vmem:[#allocation913_spill] sm:$0xff] %v15544_v34  ;;  %v15588_v34 = vand.u32 4294901760, %v15566_v50  ;;  %4886 = vmatpush.msrb.mxu3 %v15594_v13  ;;  %v15610_v22 = vand.u32 4294901760, %v4896_v43  ;;  %v20592_v43 = vld [vmem:[#allocation147_spill] sm:$0xff] }
 0x3ec   :  { %20579 = vst [vmem:[#allocation914_spill] sm:$0xff] %v15549_v59  ;;  %4464 = vmatmul.f32.vlgmr.msra.gmra.mxu0 %v20592_v43  ;;  %v20598_v43 = vld [vmem:[#allocation859_spill] sm:$0xff] }
 0x3ed   :  { %20580 = vst [vmem:[#allocation915_spill] sm:$0xff] %v15552_v61  ;;  %4892 = vmatpush.msrb.mxu3 %v15602_v35  ;;  %4912 = vmatpush.msra.mxu0 %v15279_v4  ;;  %v20600_v4 = vld [vmem:[#allocation843_spill] sm:$0xff] }
 0x3ee   :  { %20581 = vst [vmem:[#allocation916_spill] sm:$0xff] %v15558_v1  ;;  %v4902_v1 = vsub.f32 %v15566_v50, %v15588_v34 }
 0x3ef   :  { %20582 = vst [vmem:[#allocation917_spill] sm:$0xff] %v15563_v49  ;;  %4898 = vmatpush.msrb.mxu3 %v15610_v22  ;;  %4915 = vmatpush.msra.mxu0 %v20595_v41 }
 0x3f0   :  { %20583 = vst [vmem:[#allocation918_spill] sm:$0xff] %v15566_v50  ;;  %v15616_v42 = vand.u32 4294901760, %v4902_v1  ;;  %v20593_v1 = vld [vmem:[#allocation141_spill] sm:$0xff] }
 0x3f1   :  { %20584 = vst [vmem:[#allocation919_spill] sm:$0xff] %v15572_v52  ;;  %4658 = vmatmul.f32.vlgmr.msra.gmra.mxu3 %v20593_v1  ;;  %4918 = vmatpush.msra.mxu0 %v20598_v43  ;;  %v20599_v1 = vld [vmem:[#allocation863_spill] sm:$0xff]  ;;  %v330_v52 = vld [vmem:[#allocation8 + $0x7d8] sm:$0xff] }
 0x3f2   :  { %20585 = vst [vmem:[#allocation920_spill] sm:$0xff] %v15577_v25  ;;  %4904 = vmatpush.msrb.mxu3 %v15616_v42  ;;  %v20605_v43 = vld [vmem:[#allocation875_spill] sm:$0xff] }
 0x3f3   :  { %20586 = vst [vmem:[#allocation921_spill] sm:$0xff] %v15583_v37 }
 0x3f4   :  { %20587 = vst [vmem:[#allocation922_spill] sm:$0xff] %v15588_v34  ;;  %5073 = vmatpush.msra.mxu3 %v15241_v6  ;;  %4727 = vmatmul.f32.vlgmr.msrb.gmra.mxu0 %v20602_v55 }
 0x3f5   :  { %20588 = vst [vmem:[#allocation923_spill] sm:$0xff] %v15594_v13 }
 0x3f6   :  { %20589 = vst [vmem:[#allocation924_spill] sm:$0xff] %v15602_v35  ;;  %5075 = vmatpush.msra.mxu3 %v15259_v7  ;;  %v20601_v35 = vld [vmem:[#allocation865_spill] sm:$0xff] }
 0x3f7   :  { %20590 = vst [vmem:[#allocation925_spill] sm:$0xff] %v15610_v22  ;;  %v20594_v22 = vld [vmem:[#allocation136_spill] sm:$0xff]  ;;  %4921 = vmatpush.msra.mxu0 %v20601_v35  ;;  %v234_v35 = vld [vmem:[#allocation8 + $0x4d8] sm:$0xff] }
 0x3f8   :  { %20591 = vst [vmem:[#allocation926_spill] sm:$0xff] %v15616_v42  ;;  %4619 = vmatmul.f32.vlgmr.msra.gmra.mxu2 %v20594_v22  ;;  %v20597_v42 = vld [vmem:[#allocation842_spill] sm:$0xff]  ;;  %5077 = vmatpush.msra.mxu3 %v15291_v44 }
 0x3f9   :  { %5006 = vmatpush.msra.mxu2 %v20596_v20  ;;  %4758 = vmatpush.msrb.mxu1 %v20597_v42  ;;  %v20603_v22 = vld [vmem:[#allocation870_spill] sm:$0xff]  ;;  %v20604_v20 = vld [vmem:[#allocation849_spill] sm:$0xff]  ;;  %20675 = vst [vmem:[#allocation981_spill] sm:$0xff] %v15962_v51 }
 0x3fa   :  { %5079 = vmatpush.msra.mxu3 %v15312_v31  ;;  %4924 = vmatpush.msra.mxu0 %v15377_v63 }
 0x3fb   :  { %5010 = vmatpush.msra.mxu2 %v20599_v1  ;;  %4760 = vmatpush.msrb.mxu1 %v20600_v4  ;;  %v20606_v1 = vld [vmem:[#allocation150_spill] sm:$0xff] }
 0x3fc   :  { %5081 = vmatpush.msra.mxu3 %v15334_v19  ;;  %4927 = vmatpush.msra.mxu0 %v15398_v32  ;;  %v318_v4 = vld [vmem:[#allocation8 + $0x778] sm:$0xff] }
 0x3fd   :  { %5014 = vmatpush.msra.mxu2 %v20603_v22  ;;  %4762 = vmatpush.msrb.mxu1 %v20604_v20  ;;  %v20607_v22 = vld [vmem:[#allocation144_spill] sm:$0xff] }
 0x3fe   :  { %5083 = vmatpush.msra.mxu3 %v15356_v57  ;;  %4930 = vmatpush.msra.mxu0 %v15407_v11  ;;  %v20610_v11 = vld [vmem:[#allocation893_spill] sm:$0xff] }
 0x3ff   :  { %4965 = vmatpush.msra.mxu1 %v15241_v6  ;;  %5018 = vmatpush.msra.mxu2 %v20605_v43  ;;  %v20608_v43 = vld [vmem:[#allocation885_spill] sm:$0xff] }
 0x400   :  { %4805 = vmatmul.f32.vlgmr.msrb.gmra.mxu2 %v20606_v1  ;;  %4906 = vmatmul.f32.vlgmr.msrb.gmra.mxu3 %v20607_v22  ;;  %v20609_v1 = vld [vmem:[#allocation888_spill] sm:$0xff] }
 0x401   :  { %4967 = vmatpush.msra.mxu1 %v15259_v7  ;;  %5022 = vmatpush.msra.mxu2 %v15416_v48  ;;  %v15888_v7 = vand.u32 4294901760, %v326_v21 }
 0x402   :  { %5085 = vmatpush.msra.mxu3 %v15365_v60  ;;  %4764 = vmatmul.f32.vlgmr.msrb.gmra.mxu1 %v20602_v55  ;;  %v270_v55 = vld [vmem:[#allocation8 + $0x5f8] sm:$0xff] }
 0x403   :  { %4969 = vmatpush.msra.mxu1 %v15291_v44  ;;  %5026 = vmatpush.msra.mxu2 %v20608_v43  ;;  %v15879_v44 = vpop.f32.mrf.mxu0  ;;  %20657 = vst [vmem:[#allocation963_spill] sm:$0xff] %v15888_v7 }
 0x404   :  { %4933 = vmatpush.msra.mxu0 %v15427_v29  ;;  %5087 = vmatpush.msra.mxu3 %v15386_v33 }
 0x405   :  { %4971 = vmatpush.msra.mxu1 %v15312_v31  ;;  %5030 = vmatpush.msra.mxu2 %v20609_v1  ;;  %v242_v1 = vld [vmem:[#allocation8 + $0x518] sm:$0xff] }
 0x406   :  { %4936 = vmatpush.msra.mxu0 %v15454_v12  ;;  %5089 = vmatpush.msra.mxu3 %v15418_v5  ;;  %v20619_v12 = vld [vmem:[#allocation148_spill] sm:$0xff]  ;;  %v15758_v32 = vand.u32 4294901760, %v242_v1 }
 0x407   :  { %4973 = vmatpush.msra.mxu1 %v15334_v19  ;;  %5034 = vmatpush.msra.mxu2 %v20610_v11  ;;  %v254_v11 = vld [vmem:[#allocation8 + $0x578] sm:$0xff] }
 0x408   :  { %4939 = vmatpush.msra.mxu0 %v15472_v9  ;;  %5091 = vmatpush.msra.mxu3 %v15438_v62  ;;  %v266_v9 = vld [vmem:[#allocation8 + $0x5d8] sm:$0xff] }
 0x409   :  { %4975 = vmatpush.msra.mxu1 %v15356_v57  ;;  %5038 = vmatpush.msra.mxu2 %v15485_v39  ;;  %v15682_v39 = vand.u32 4294901760, %v270_v55 }
 0x40a   :  { %4942 = vmatpush.msra.mxu0 %v15488_v15  ;;  %5093 = vmatpush.msra.mxu3 %v15456_v3  ;;  %v262_v15 = vld [vmem:[#allocation8 + $0x5b8] sm:$0xff] }
 0x40b   :  { %4977 = vmatpush.msra.mxu1 %v15365_v60  ;;  %5042 = vmatpush.msra.mxu2 %v15501_v8  ;;  %20611 = vst [vmem:[#allocation147_spill] sm:$0xff] %v15682_v39  ;;  %v15688_v8 = vand.u32 4294901760, %v266_v9  ;;  %v214_v60 = vld [vmem:[#allocation8 + $0x438] sm:$0xff] }
 0x40c   :  { %4945 = vmatpush.msra.mxu0 %v15504_v30  ;;  %5095 = vmatpush.msra.mxu3 %v15474_v47  ;;  %v258_v30 = vld [vmem:[#allocation8 + $0x598] sm:$0xff] }
 0x40d   :  { %4979 = vmatpush.msra.mxu1 %v15386_v33  ;;  %5046 = vmatpush.msra.mxu2 %v15517_v28  ;;  %20612 = vst [vmem:[#allocation141_spill] sm:$0xff] %v15688_v8  ;;  %v15697_v28 = vand.u32 4294901760, %v262_v15 }
 0x40e   :  { %4948 = vmatpush.msra.mxu0 %v15520_v27  ;;  %5097 = vmatpush.msra.mxu3 %v15490_v53  ;;  %v15695_v27 = vsub.f32 %v270_v55, %v15682_v39  ;;  %v15710_v55 = vand.u32 4294901760, %v254_v11 }
 0x40f   :  { %4981 = vmatpush.msra.mxu1 %v15418_v5  ;;  %5050 = vmatpush.msra.mxu2 %v15533_v54  ;;  %v15701_v54 = vand.u32 4294901760, %v258_v30 }
 0x410   :  { %4951 = vmatpush.msra.mxu0 %v15536_v0  ;;  %5099 = vmatpush.msra.mxu3 %v15506_v58  ;;  %20613 = vst [vmem:[#allocation136_spill] sm:$0xff] %v15695_v27  ;;  %v250_v0 = vld [vmem:[#allocation8 + $0x558] sm:$0xff] }
 0x411   :  { %4983 = vmatpush.msra.mxu1 %v15438_v62  ;;  %5054 = vmatpush.msra.mxu2 %v15549_v59  ;;  %20614 = vst [vmem:[#allocation129_spill] sm:$0xff] %v15701_v54  ;;  %v15706_v59 = vsub.f32 %v266_v9, %v15688_v8  ;;  %v15723_v9 = vsub.f32 %v258_v30, %v15701_v54 }
 0x412   :  { %4954 = vmatpush.msra.mxu0 %v15552_v61  ;;  %5101 = vmatpush.msra.mxu3 %v15522_v56  ;;  %20616 = vst [vmem:[#allocation144_spill] sm:$0xff] %v15710_v55  ;;  %v15715_v61 = vsub.f32 %v262_v15, %v15697_v28 }
 0x413   :  { %4985 = vmatpush.msra.mxu1 %v15456_v3  ;;  %5058 = vmatpush.msra.mxu2 %v15563_v49  ;;  %20615 = vst [vmem:[#allocation150_spill] sm:$0xff] %v15706_v59  ;;  %v15718_v49 = vand.u32 4294901760, %v15695_v27  ;;  %v15730_v15 = vand.u32 4294901760, %v15706_v59 }
 0x414   :  { %4957 = vmatpush.msra.mxu0 %v15566_v50  ;;  %5103 = vmatpush.msra.mxu3 %v15538_v18  ;;  %20617 = vst [vmem:[#allocation927_spill] sm:$0xff] %v15715_v61  ;;  %v246_v50 = vld [vmem:[#allocation8 + $0x538] sm:$0xff]  ;;  %v15744_v43 = vand.u32 4294901760, %v15715_v61 }
 0x415   :  { %4987 = vmatpush.msra.mxu1 %v15474_v47  ;;  %5062 = vmatpush.msra.mxu2 %v15577_v25  ;;  %20618 = vst [vmem:[#allocation928_spill] sm:$0xff] %v15718_v49  ;;  %v15727_v25 = vand.u32 4294901760, %v250_v0  ;;  %v5153_v30 = vsub.f32 %v15695_v27, %v15718_v49  ;;  %v15741_v29 = vand.u32 4294901760, %v246_v50 }
 0x416   :  { %4960 = vmatmul.f32.vlgmr.msra.gmra.mxu0 %v20619_v12  ;;  %5306 = vmatpush.msrb.mxu3 %v15682_v39  ;;  %20620 = vst [vmem:[#allocation148_spill] sm:$0xff] %v15723_v9  ;;  %v15735_v12 = vsub.f32 %v254_v11, %v15710_v55  ;;  %v15749_v11 = vand.u32 4294901760, %v15723_v9 }
 0x417   :  { %5110 = vmatpush.msrb.mxu0 %v15682_v39  ;;  %4989 = vmatpush.msra.mxu1 %v15490_v53  ;;  %20621 = vst [vmem:[#allocation929_spill] sm:$0xff] %v15730_v15  ;;  %v15756_v48 = vsub.f32 %v250_v0, %v15727_v25  ;;  %v15767_v41 = vand.u32 4294901760, %v5153_v30  ;;  %v5165_v0 = vsub.f32 %v15715_v61, %v15744_v43 }
 0x418   :  { %5066 = vmatpush.msra.mxu2 %v15588_v34  ;;  %5308 = vmatpush.msrb.mxu3 %v15688_v8  ;;  %20622 = vst [vmem:[#allocation930_spill] sm:$0xff] %v15735_v12  ;;  %v238_v34 = vld [vmem:[#allocation8 + $0x4f8] sm:$0xff]  ;;  %v15763_v63 = vand.u32 4294901760, %v15735_v12  ;;  %v15785_v53 = vsub.f32 %v242_v1, %v15758_v32 }
 0x419   :  { %5112 = vmatpush.msrb.mxu0 %v15688_v8  ;;  %20623 = vst [vmem:[#allocation931_spill] sm:$0xff] %v15744_v43  ;;  %4991 = vmatpush.msra.mxu1 %v15506_v58  ;;  %v15774_v58 = vand.u32 4294901760, %v238_v34  ;;  %v15790_v13 = vand.u32 4294901760, %v15756_v48 }
 0x41a   :  { %5253 = vmatpush.msrb.mxu2 %v15695_v27  ;;  %20624 = vst [vmem:[#allocation932_spill] sm:$0xff] %v15749_v11  ;;  %v5159_v27 = vsub.f32 %v15706_v59, %v15730_v15  ;;  %5310 = vmatpush.msrb.mxu3 %v15697_v28  ;;  %v5177_v47 = vsub.f32 %v15735_v12, %v15763_v63  ;;  %v15822_v45 = vand.u32 4294901760, %v15785_v53 }
 0x41b   :  { %5068 = vmatmul.f32.vlgmr.msra.gmra.mxu2 %v20607_v22  ;;  %5114 = vmatpush.msrb.mxu0 %v15697_v28  ;;  %20625 = vst [vmem:[#allocation933_spill] sm:$0xff] %v15756_v48  ;;  %v15801_v1 = vsub.f32 %v238_v34, %v15774_v58  ;;  %v5183_v34 = vsub.f32 %v15756_v48, %v15790_v13 }
 0x41c   :  { %5256 = vmatpush.msrb.mxu2 %v15706_v59  ;;  %4993 = vmatpush.msra.mxu1 %v15522_v56  ;;  %20626 = vst [vmem:[#allocation934_spill] sm:$0xff] %v15763_v63  ;;  %v15772_v59 = vsub.f32 %v246_v50, %v15741_v29  ;;  %v5171_v56 = vsub.f32 %v15723_v9, %v15749_v11  ;;  %v15782_v30 = vand.u32 4294901760, %v5159_v27  ;;  %v15787_v50 = vand.u32 4294901760, %v234_v35 }
 0x41d   :  { %5105 = vmatmul.f32.vlgmr.msra.gmra.mxu3 %v20607_v22  ;;  %5116 = vmatpush.msrb.mxu0 %v15701_v54  ;;  %20627 = vst [vmem:[#allocation935_spill] sm:$0xff] %v15767_v41  ;;  %v230_v22 = vld [vmem:[#allocation8 + $0x4b8] sm:$0xff]  ;;  %v15798_v27 = vand.u32 4294901760, %v5165_v0  ;;  %v15840_v5 = vand.u32 4294901760, %v15801_v1 }
 0x41e   :  { %20628 = vst [vmem:[#allocation936_spill] sm:$0xff] %v15772_v59  ;;  %5259 = vmatpush.msrb.mxu2 %v15715_v61  ;;  %5312 = vmatpush.msrb.mxu3 %v15701_v54  ;;  %v20633_v61 = vld [vmem:[#allocation149_spill] sm:$0xff]  ;;  %v15803_v38 = vand.u32 4294901760, %v230_v22  ;;  %v15806_v37 = vand.u32 4294901760, %v15772_v59  ;;  %v15817_v0 = vsub.f32 %v234_v35, %v15787_v50 }
 0x41f   :  { %4995 = vmatpush.msra.mxu1 %v15538_v18  ;;  %5118 = vmatpush.msrb.mxu0 %v15710_v55  ;;  %20629 = vst [vmem:[#allocation937_spill] sm:$0xff] %v15782_v30  ;;  %v226_v18 = vld [vmem:[#allocation8 + $0x498] sm:$0xff]  ;;  %v5201_v57 = vsub.f32 %v15801_v1, %v15840_v5 }
 0x420   :  { %20630 = vst [vmem:[#allocation938_spill] sm:$0xff] %v15785_v53  ;;  %4999 = vmatmul.f32.vlgmr.msra.gmra.mxu1 %v20633_v61  ;;  %5262 = vmatpush.msrb.mxu2 %v15723_v9  ;;  %v334_v61 = vld [vmem:[#allocation8 + $0x7f8] sm:$0xff]  ;;  %v15810_v9 = vand.u32 4294901760, %v5171_v56  ;;  %v15819_v3 = vand.u32 4294901760, %v226_v18  ;;  %v15826_v56 = vand.u32 4294901760, %v5177_v47  ;;  %v5189_v35 = vsub.f32 %v15772_v59, %v15806_v37 }
 0x421   :  { %20631 = vst [vmem:[#allocation939_spill] sm:$0xff] %v15787_v50  ;;  %5155 = vmatpush.msrb.mxu1 %v15767_v41  ;;  %5314 = vmatpush.msrb.mxu3 %v15710_v55  ;;  %v222_v41 = vld [vmem:[#allocation8 + $0x478] sm:$0xff]  ;;  %v15844_v47 = vand.u32 4294901760, %v330_v52  ;;  %v15856_v26 = vand.u32 4294901760, %v15817_v0  ;;  %v15913_v42 = vand.u32 4294901760, %v5201_v57  ;;  %v15931_v57 = vsub.f32 %v326_v21, %v15888_v7 }
 0x422   :  { %20632 = vst [vmem:[#allocation940_spill] sm:$0xff] %v15790_v13  ;;  %5120 = vmatpush.msrb.mxu0 %v15727_v25  ;;  %5265 = vmatpush.msrb.mxu2 %v15735_v12  ;;  %v15835_v12 = vsub.f32 %v230_v22, %v15803_v38  ;;  %v15837_v62 = vand.u32 4294901760, %v222_v41  ;;  %v5195_v22 = vsub.f32 %v15785_v53, %v15822_v45 }
 0x423   :  { %20634 = vst [vmem:[#allocation149_spill] sm:$0xff] %v15798_v27  ;;  %5161 = vmatpush.msrb.mxu1 %v15782_v30  ;;  %5316 = vmatpush.msrb.mxu3 %v15727_v25  ;;  %v15828_v30 = vand.u32 4294901760, %v334_v61  ;;  %v15853_v33 = vsub.f32 %v226_v18, %v15819_v3  ;;  %v15869_v18 = vand.u32 4294901760, %v5189_v35  ;;  %v210_v35 = vld [vmem:[#allocation8 + $0x418] sm:$0xff]  ;;  %v5207_v6 = vsub.f32 %v15817_v0, %v15856_v26 }
 0x424   :  { %20635 = vst [vmem:[#allocation941_spill] sm:$0xff] %v15801_v1  ;;  %5122 = vmatpush.msrb.mxu0 %v15741_v29  ;;  %5268 = vmatpush.msrb.mxu2 %v15756_v48  ;;  %v218_v48 = vld [vmem:[#allocation8 + $0x458] sm:$0xff]  ;;  %v15874_v19 = vsub.f32 %v222_v41, %v15837_v62  ;;  %v15877_v31 = vand.u32 4294901760, %v15835_v12  ;;  %v15892_v41 = vand.u32 4294901760, %v5195_v22  ;;  %v15917_v46 = vand.u32 4294901760, %v210_v35 }
 0x425   :  { %20636 = vst [vmem:[#allocation942_spill] sm:$0xff] %v15803_v38  ;;  %5167 = vmatpush.msrb.mxu1 %v15798_v27  ;;  %5318 = vmatpush.msrb.mxu3 %v15741_v29  ;;  %v15848_v27 = vand.u32 4294901760, %v5183_v34  ;;  %v15865_v34 = vsub.f32 %v334_v61, %v15828_v30  ;;  %v15883_v61 = vand.u32 4294901760, %v214_v60  ;;  %v15897_v20 = vand.u32 4294901760, %v15853_v33 }
 0x426   :  { %20637 = vst [vmem:[#allocation943_spill] sm:$0xff] %v15806_v37  ;;  %5124 = vmatpush.msrb.mxu0 %v15758_v32  ;;  %5271 = vmatpush.msrb.mxu2 %v15772_v59  ;;  %v15858_v59 = vpop.f32.mrf.mxu1  ;;  %v5213_v40 = vsub.f32 %v15835_v12, %v15877_v31  ;;  %v15935_v14 = vand.u32 4294901760, %v5207_v6 }
 0x427   :  { %20638 = vst [vmem:[#allocation944_spill] sm:$0xff] %v15810_v9  ;;  %5173 = vmatpush.msrb.mxu1 %v15810_v9  ;;  %5320 = vmatpush.msrb.mxu3 %v15758_v32  ;;  %v15862_v9 = vand.u32 4294901760, %v218_v48  ;;  %v5219_v2 = vsub.f32 %v15853_v33, %v15897_v20 }
 0x428   :  { %20639 = vst [vmem:[#allocation945_spill] sm:$0xff] %v15817_v0  ;;  %5126 = vmatpush.msrb.mxu0 %v15774_v58  ;;  %5274 = vmatpush.msrb.mxu2 %v15785_v53  ;;  %v322_v53 = vld [vmem:[#allocation8 + $0x798] sm:$0xff]  ;;  %v15955_v36 = vand.u32 4294901760, %v5213_v40  ;;  %v15971_v40 = vand.u32 4294901760, %v15931_v57 }
 0x429   :  { %20640 = vst [vmem:[#allocation946_spill] sm:$0xff] %v15819_v3  ;;  %5179 = vmatpush.msrb.mxu1 %v15826_v56  ;;  %5322 = vmatpush.msrb.mxu3 %v15774_v58  ;;  %v15909_v22 = vand.u32 4294901760, %v322_v53 }
 0x42a   :  { %20641 = vst [vmem:[#allocation947_spill] sm:$0xff] %v15822_v45  ;;  %5128 = vmatpush.msrb.mxu0 %v15787_v50  ;;  %5277 = vmatpush.msrb.mxu2 %v15801_v1  ;;  %v15899_v1 = vpop.f32.mrf.mxu2 }
 0x42b   :  { %20642 = vst [vmem:[#allocation948_spill] sm:$0xff] %v15826_v56  ;;  %v15886_v56 = vsub.f32 %v330_v52, %v15844_v47  ;;  %5185 = vmatpush.msrb.mxu1 %v15848_v27  ;;  %5324 = vmatpush.msrb.mxu3 %v15787_v50  ;;  %v15904_v52 = vsub.f32 %v218_v48, %v15862_v9  ;;  %v15920_v48 = vand.u32 4294901760, %v15874_v19 }
 0x42c   :  { %20643 = vst [vmem:[#allocation949_spill] sm:$0xff] %v15828_v30  ;;  %5130 = vmatpush.msrb.mxu0 %v15803_v38  ;;  %5280 = vmatpush.msrb.mxu2 %v15817_v0  ;;  %v15925_v0 = vsub.f32 %v214_v60, %v15883_v61  ;;  %v310_v60 = vld [vmem:[#allocation8 + $0x738] sm:$0xff]  ;;  %v15951_v6 = vsub.f32 %v322_v53, %v15909_v22 }
 0x42d   :  { %20644 = vst [vmem:[#allocation950_spill] sm:$0xff] %v15835_v12  ;;  %5191 = vmatpush.msrb.mxu1 %v15869_v18  ;;  %5326 = vmatpush.msrb.mxu3 %v15803_v38  ;;  %v5225_v17 = vsub.f32 %v15874_v19, %v15920_v48  ;;  %v298_v38 = vld [vmem:[#allocation8 + $0x6d8] sm:$0xff] }
 0x42e   :  { %20645 = vst [vmem:[#allocation951_spill] sm:$0xff] %v15837_v62  ;;  %5132 = vmatpush.msrb.mxu0 %v15819_v3  ;;  %5283 = vmatpush.msrb.mxu2 %v15835_v12  ;;  %v15939_v12 = vand.u32 4294901760, %v318_v4  ;;  %v15964_v16 = vpop.f32.mrf.mxu1 }
 0x42f   :  { %20646 = vst [vmem:[#allocation952_spill] sm:$0xff] %v15840_v5  ;;  %5197 = vmatpush.msrb.mxu1 %v15892_v41  ;;  %5328 = vmatpush.msrb.mxu3 %v15819_v3 }
 0x430   :  { %20647 = vst [vmem:[#allocation953_spill] sm:$0xff] %v15848_v27  ;;  %v15907_v27 = vand.u32 4294901760, %v15865_v34  ;;  %5134 = vmatpush.msrb.mxu0 %v15837_v62  ;;  %5286 = vmatpush.msrb.mxu2 %v15853_v33 }
 0x431   :  { %20648 = vst [vmem:[#allocation954_spill] sm:$0xff] %v15853_v33  ;;  %5203 = vmatpush.msrb.mxu1 %v15913_v42  ;;  %5330 = vmatpush.msrb.mxu3 %v15837_v62  ;;  %v15960_v33 = vsub.f32 %v210_v35, %v15917_v46  ;;  %v15976_v35 = vand.u32 4294901760, %v310_v60  ;;  %v15983_v62 = vsub.f32 %v318_v4, %v15939_v12  ;;  %v16000_v4 = vand.u32 4294901760, %v5225_v17 }
 0x432   :  { %20649 = vst [vmem:[#allocation955_spill] sm:$0xff] %v15856_v26  ;;  %v5494_v21 = vsub.f32 %v15865_v34, %v15907_v27  ;;  %5136 = vmatpush.msrb.mxu0 %v15862_v9  ;;  %5289 = vmatpush.msrb.mxu2 %v15874_v19  ;;  %v16008_v3 = vpop.f32.mrf.mxu2 }
 0x433   :  { %20650 = vst [vmem:[#allocation956_spill] sm:$0xff] %v15862_v9  ;;  %5209 = vmatpush.msrb.mxu1 %v15935_v14  ;;  %5332 = vmatpush.msrb.mxu3 %v15862_v9  ;;  %v15996_v9 = vand.u32 4294901760, %v306_v24 }
 0x434   :  { %20651 = vst [vmem:[#allocation957_spill] sm:$0xff] %v15865_v34  ;;  %5138 = vmatpush.msrb.mxu0 %v15883_v61  ;;  %5292 = vmatpush.msrb.mxu2 %v15904_v52  ;;  %v16003_v34 = vand.u32 4294901760, %v15960_v33 }
 0x435   :  { %20652 = vst [vmem:[#allocation958_spill] sm:$0xff] %v15869_v18  ;;  %v15928_v18 = vand.u32 4294901760, %v15886_v56  ;;  %5215 = vmatpush.msrb.mxu1 %v15955_v36  ;;  %5334 = vmatpush.msrb.mxu3 %v15883_v61 }
 0x436   :  { %20653 = vst [vmem:[#allocation959_spill] sm:$0xff] %v15874_v19  ;;  %v15985_v19 = vpop.f32.mrf.mxu0  ;;  %5140 = vmatpush.msrb.mxu0 %v15917_v46  ;;  %5295 = vmatpush.msrb.mxu2 %v15925_v0 }
 0x437   :  { %20654 = vst [vmem:[#allocation960_spill] sm:$0xff] %v15877_v31  ;;  %v5500_v53 = vsub.f32 %v15886_v56, %v15928_v18  ;;  %5336 = vmatpush.msrb.mxu3 %v15917_v46 }
 0x438   :  { %20655 = vst [vmem:[#allocation961_spill] sm:$0xff] %v15883_v61  ;;  %v16019_v61 = vsub.f32 %v310_v60, %v15976_v35  ;;  %5347 = vmatpush.msra.mxu0 %v15718_v49  ;;  %5298 = vmatpush.msrb.mxu2 %v15960_v33 }
 0x439   :  { %20656 = vst [vmem:[#allocation962_spill] sm:$0xff] %v15886_v56 }
 0x43a   :  { %20658 = vst [vmem:[#allocation964_spill] sm:$0xff] %v15892_v41  ;;  %v15948_v41 = vand.u32 4294901760, %v15904_v52  ;;  %5351 = vmatpush.msra.mxu0 %v15730_v15  ;;  %5451 = vmatpush.msra.mxu2 %v15828_v30  ;;  %v286_v30 = vld [vmem:[#allocation8 + $0x678] sm:$0xff] }
 0x43b   :  { %20659 = vst [vmem:[#allocation965_spill] sm:$0xff] %v15897_v20 }
 0x43c   :  { %20660 = vst [vmem:[#allocation966_spill] sm:$0xff] %v15904_v52  ;;  %v5231_v56 = vsub.f32 %v15904_v52, %v15948_v41  ;;  %v16012_v52 = vand.u32 4294901760, %v5500_v53  ;;  %v475_v53 = vadd.f32 %v15858_v59, %v15879_v44  ;;  %v5243_v44 = vsub.f32 %v15960_v33, %v16003_v34  ;;  %5355 = vmatpush.msra.mxu0 %v15744_v43  ;;  %v282_v43 = vld [vmem:[#allocation8 + $0x658] sm:$0xff] }
 0x43d   :  { %20661 = vst [vmem:[#allocation967_spill] sm:$0xff] %v15907_v27  ;;  %v15980_v27 = vand.u32 4294901760, %v5219_v2  ;;  %v302_v2 = vld [vmem:[#allocation8 + $0x6f8] sm:$0xff]  ;;  %5453 = vmatpush.msra.mxu2 %v15844_v47 }
 0x43e   :  { %20662 = vst [vmem:[#allocation968_spill] sm:$0xff] %v15909_v22  ;;  %v16026_v50 = vand.u32 4294901760, %v302_v2  ;;  %5359 = vmatpush.msra.mxu0 %v15749_v11  ;;  %v278_v11 = vld [vmem:[#allocation8 + $0x638] sm:$0xff] }
 0x43f   :  { %20663 = vst [vmem:[#allocation969_spill] sm:$0xff] %v15913_v42  ;;  %v15974_v42 = vand.u32 4294901760, %v15925_v0  ;;  %5221 = vmatpush.msrb.mxu1 %v15980_v27  ;;  %5455 = vmatpush.msra.mxu2 %v15888_v7 }
 0x440   :  { %20664 = vst [vmem:[#allocation970_spill] sm:$0xff] %v15917_v46  ;;  %v294_v46 = vld [vmem:[#allocation8 + $0x6b8] sm:$0xff]  ;;  %5363 = vmatpush.msra.mxu0 %v15763_v63 }
 0x441   :  { %20665 = vst [vmem:[#allocation971_spill] sm:$0xff] %v15920_v48  ;;  %v5237_v17 = vsub.f32 %v15925_v0, %v15974_v42  ;;  %5227 = vmatpush.msrb.mxu1 %v16000_v4  ;;  %5457 = vmatpush.msra.mxu2 %v15909_v22 }
 0x442   :  { %20666 = vst [vmem:[#allocation972_spill] sm:$0xff] %v15925_v0  ;;  %v16032_v0 = vand.u32 4294901760, %v5231_v56  ;;  %v16048_v56 = vpop.f32.mrf.mxu3  ;;  %5367 = vmatpush.msra.mxu0 %v15790_v13 }
 0x443   :  { %20667 = vst [vmem:[#allocation973_spill] sm:$0xff] %v15928_v18  ;;  %v15989_v18 = vand.u32 4294901760, %v5494_v21  ;;  %v16006_v21 = vsub.f32 %v314_v23, %v15962_v51  ;;  %v16024_v23 = vand.u32 4294901760, %v15983_v62  ;;  %v16056_v49 = vand.u32 4294901760, %v5237_v17  ;;  %v16071_v17 = vpop.f32.mrf.mxu0  ;;  %5459 = vmatpush.msra.mxu2 %v15939_v12 }
 0x444   :  { %20668 = vst [vmem:[#allocation974_spill] sm:$0xff] %v15931_v57  ;;  %5233 = vmatpush.msrb.mxu1 %v16032_v0  ;;  %5371 = vmatpush.msra.mxu0 %v15806_v37 }
 0x445   :  { %20669 = vst [vmem:[#allocation975_spill] sm:$0xff] %v15935_v14  ;;  %v15994_v14 = vand.u32 4294901760, %v15951_v6  ;;  %5496 = vmatpush.msra.mxu3 %v15989_v18  ;;  %v16044_v59 = vand.u32 4294901760, %v16006_v21  ;;  %5461 = vmatpush.msra.mxu2 %v15962_v51 }
 0x446   :  { %20670 = vst [vmem:[#allocation976_spill] sm:$0xff] %v15939_v12  ;;  %5239 = vmatpush.msrb.mxu1 %v16056_v49  ;;  %5375 = vmatpush.msra.mxu0 %v15822_v45 }
 0x447   :  { %20671 = vst [vmem:[#allocation977_spill] sm:$0xff] %v15948_v41  ;;  %v5512_v60 = vsub.f32 %v15951_v6, %v15994_v14  ;;  %5502 = vmatpush.msra.mxu3 %v16012_v52  ;;  %5463 = vmatpush.msra.mxu2 %v15976_v35 }
 0x448   :  { %20672 = vst [vmem:[#allocation978_spill] sm:$0xff] %v15951_v6  ;;  %v5518_v6 = vsub.f32 %v15983_v62, %v16024_v23  ;;  %5379 = vmatpush.msra.mxu0 %v15840_v5 }
 0x449   :  { %20673 = vst [vmem:[#allocation979_spill] sm:$0xff] %v15955_v36  ;;  %v5506_v36 = vsub.f32 %v15931_v57, %v15971_v40  ;;  %v16066_v57 = vsub.f32 %v302_v2, %v16026_v50  ;;  %v16082_v2 = vand.u32 4294901760, %v5243_v44  ;;  %v20707_v44 = vld [vmem:[#allocation206_spill] sm:$0xff]  ;;  %5465 = vmatpush.msra.mxu2 %v15996_v9 }
 0x44a   :  { %20674 = vst [vmem:[#allocation980_spill] sm:$0xff] %v15960_v33  ;;  %v16068_v33 = vand.u32 4294901760, %v294_v46  ;;  %5340 = vmatmul.f32.vlgmr.msrb.gmra.mxu3 %v20707_v44  ;;  %5383 = vmatpush.msra.mxu0 %v15856_v26 }
 0x44b   :  { %20676 = vst [vmem:[#allocation982_spill] sm:$0xff] %v15971_v40  ;;  %v20691_v40 = vld [vmem:[#allocation227_spill] sm:$0xff]  ;;  %5245 = vmatpush.msrb.mxu1 %v16082_v2  ;;  %5467 = vmatpush.msra.mxu2 %v16026_v50 }
 0x44c   :  { %20677 = vst [vmem:[#allocation983_spill] sm:$0xff] %v15974_v42  ;;  %5146 = vmatmul.f32.vlgmr.msrb.gmra.mxu0 %v20691_v40  ;;  %v16046_v40 = vand.u32 4294901760, %v298_v38 }
 0x44d   :  { %20678 = vst [vmem:[#allocation984_spill] sm:$0xff] %v15976_v35  ;;  %5414 = vmatpush.msra.mxu1 %v15682_v39  ;;  %5387 = vmatpush.msra.mxu0 %v15877_v31 }
 0x44e   :  { %20679 = vst [vmem:[#allocation985_spill] sm:$0xff] %v15980_v27  ;;  %v16037_v27 = vsub.f32 %v306_v24, %v15996_v9  ;;  %v16054_v24 = vand.u32 4294901760, %v5506_v36  ;;  %v529_v36 = vadd.f32 %v15899_v1, %v475_v53  ;;  %v5524_v1 = vsub.f32 %v16006_v21, %v16044_v59  ;;  %5469 = vmatpush.msra.mxu2 %v16046_v40 }
 0x44f   :  { %20680 = vst [vmem:[#allocation986_spill] sm:$0xff] %v15983_v62  ;;  %v16087_v53 = vsub.f32 %v298_v38, %v16046_v40  ;;  %v16102_v38 = vand.u32 4294901760, %v16066_v57  ;;  %5416 = vmatpush.msra.mxu1 %v15688_v8  ;;  %5391 = vmatpush.msra.mxu0 %v15897_v20 }
 0x450   :  { %20681 = vst [vmem:[#allocation987_spill] sm:$0xff] %v15989_v18  ;;  %v16050_v18 = vpop.f32.mrf.mxu1  ;;  %v16078_v15 = vand.u32 4294901760, %v16037_v27  ;;  %5508 = vmatpush.msra.mxu3 %v16054_v24  ;;  %5471 = vmatpush.msra.mxu2 %v16068_v33 }
 0x451   :  { %20682 = vst [vmem:[#allocation988_spill] sm:$0xff] %v15994_v14  ;;  %v290_v14 = vld [vmem:[#allocation8 + $0x698] sm:$0xff]  ;;  %5418 = vmatpush.msra.mxu1 %v15697_v28  ;;  %5395 = vmatpush.msra.mxu0 %v15920_v48 }
 0x452   :  { %20683 = vst [vmem:[#allocation989_spill] sm:$0xff] %v15996_v9  ;;  %v5536_v44 = vsub.f32 %v16037_v27, %v16078_v15 }
 0x453   :  { %20684 = vst [vmem:[#allocation990_spill] sm:$0xff] %v16000_v4  ;;  %v16059_v4 = vand.u32 4294901760, %v16019_v61  ;;  %5420 = vmatpush.msra.mxu1 %v15701_v54  ;;  %5399 = vmatpush.msra.mxu0 %v15948_v41  ;;  %v20742_v41 = vld [vmem:[#allocation946_spill] sm:$0xff] }
 0x454   :  { %20685 = vst [vmem:[#allocation991_spill] sm:$0xff] %v16003_v34  ;;  %v16075_v34 = vand.u32 4294901760, %v5512_v60 }
 0x455   :  { %20686 = vst [vmem:[#allocation992_spill] sm:$0xff] %v16006_v21  ;;  %v5530_v60 = vsub.f32 %v16019_v61, %v16059_v4  ;;  %v16107_v21 = vand.u32 4294901760, %v286_v30  ;;  %5422 = vmatpush.msra.mxu1 %v15710_v55  ;;  %5403 = vmatpush.msra.mxu0 %v15974_v42  ;;  %v20743_v42 = vld [vmem:[#allocation949_spill] sm:$0xff] }
 0x456   :  { %20687 = vst [vmem:[#allocation993_spill] sm:$0xff] %v16012_v52  ;;  %v20701_v52 = vld [vmem:[#allocation195_spill] sm:$0xff]  ;;  %5514 = vmatpush.msra.mxu3 %v16075_v34 }
 0x457   :  { %20688 = vst [vmem:[#allocation994_spill] sm:$0xff] %v16019_v61  ;;  %5301 = vmatmul.f32.vlgmr.msrb.gmra.mxu2 %v20701_v52  ;;  %v16091_v52 = vpop.f32.mrf.mxu2  ;;  %5424 = vmatpush.msra.mxu1 %v15727_v25 }
 0x458   :  { %20689 = vst [vmem:[#allocation995_spill] sm:$0xff] %v16024_v23  ;;  %v16105_v23 = vsub.f32 %v294_v46, %v16068_v33  ;;  %v16119_v46 = vand.u32 4294901760, %v16087_v53 }
 0x459   :  { %20690 = vst [vmem:[#allocation996_spill] sm:$0xff] %v16026_v50  ;;  %5426 = vmatpush.msra.mxu1 %v15741_v29 }
 0x45a   :  { %20692 = vst [vmem:[#allocation227_spill] sm:$0xff] %v16032_v0  ;;  %v16089_v0 = vand.u32 4294901760, %v290_v14  ;;  %v16139_v63 = vand.u32 4294901760, %v16105_v23 }
 0x45b   :  { %20693 = vst [vmem:[#allocation997_spill] sm:$0xff] %v16037_v27  ;;  %v16144_v27 = vand.u32 4294901760, %v278_v11  ;;  %5428 = vmatpush.msra.mxu1 %v15758_v32 }
 0x45c   :  { %20694 = vst [vmem:[#allocation998_spill] sm:$0xff] %v16044_v59  ;;  %v16099_v59 = vand.u32 4294901760, %v5518_v6  ;;  %v16116_v6 = vand.u32 4294901760, %v5524_v1  ;;  %v274_v1 = vld [vmem:[#allocation8 + $0x618] sm:$0xff]  ;;  %5473 = vmatpush.msra.mxu2 %v16089_v0 }
 0x45d   :  { %20695 = vst [vmem:[#allocation999_spill] sm:$0xff] %v16046_v40  ;;  %v16179_v8 = vsub.f32 %v278_v11, %v16144_v27  ;;  %5430 = vmatpush.msra.mxu1 %v15774_v58 }
 0x45e   :  { %20696 = vst [vmem:[#allocation1000_spill] sm:$0xff] %v16054_v24  ;;  %v16122_v24 = vsub.f32 %v290_v14, %v16089_v0  ;;  %5520 = vmatpush.msra.mxu3 %v16099_v59  ;;  %v5542_v14 = vsub.f32 %v16066_v57, %v16102_v38  ;;  %5475 = vmatpush.msra.mxu2 %v16107_v21 }
 0x45f   :  { %20697 = vst [vmem:[#allocation1001_spill] sm:$0xff] %v16056_v49  ;;  %v568_v49 = vadd.f32 %v15941_v10, %v529_v36  ;;  %v16124_v10 = vand.u32 4294901760, %v282_v43  ;;  %v16126_v36 = vpop.f32.mrf.mxu3  ;;  %v16165_v13 = vpop.f32.mrf.mxu2 }
 0x460   :  { %20698 = vst [vmem:[#allocation1002_spill] sm:$0xff] %v16059_v4  ;;  %v16142_v4 = vsub.f32 %v286_v30, %v16107_v21  ;;  %5526 = vmatpush.msra.mxu3 %v16116_v6  ;;  %v5548_v30 = vsub.f32 %v16087_v53, %v16119_v46  ;;  %v16158_v39 = vand.u32 4294901760, %v16122_v24 }
 0x461   :  { %20699 = vst [vmem:[#allocation1003_spill] sm:$0xff] %v16066_v57  ;;  %v637_v61 = vadd.f32 %v15985_v19, %v568_v49  ;;  %v16161_v49 = vsub.f32 %v282_v43, %v16124_v10  ;;  %v16163_v19 = vand.u32 4294901760, %v274_v1  ;;  %5477 = vmatpush.msra.mxu2 %v16124_v10 }
 0x462   :  { %20700 = vst [vmem:[#allocation1004_spill] sm:$0xff] %v16068_v33  ;;  %v16176_v43 = vand.u32 4294901760, %v16142_v4 }
 0x463   :  { %20702 = vst [vmem:[#allocation195_spill] sm:$0xff] %v16075_v34  ;;  %v16128_v34 = vpop.f32.mrf.mxu1  ;;  %v16191_v37 = vand.u32 4294901760, %v16161_v49  ;;  %v16194_v11 = vsub.f32 %v274_v1, %v16163_v19  ;;  %v16209_v1 = vand.u32 4294901760, %v16179_v8  ;;  %5479 = vmatpush.msra.mxu2 %v16144_v27 }
 0x464   :  { %20703 = vst [vmem:[#allocation1005_spill] sm:$0xff] %v16078_v15  ;;  %v20716_v15 = vld [vmem:[#allocation185_spill] sm:$0xff] }
 0x465   :  { %20704 = vst [vmem:[#allocation1006_spill] sm:$0xff] %v16082_v2  ;;  %5247 = vmatmul.f32.vlgmr.msrb.gmra.mxu1 %v20716_v15  ;;  %v16132_v2 = vand.u32 4294901760, %v5530_v60  ;;  %v16147_v60 = vpop.f32.mrf.mxu0  ;;  %v16223_v5 = vand.u32 4294901760, %v16194_v11  ;;  %5481 = vmatpush.msra.mxu2 %v16163_v19 }
 0x466   :  { %20705 = vst [vmem:[#allocation1007_spill] sm:$0xff] %v16087_v53 }
 0x467   :  { %20706 = vst [vmem:[#allocation1008_spill] sm:$0xff] %v16089_v0  ;;  %5532 = vmatpush.msra.mxu3 %v16132_v2  ;;  %v16225_v55 = vpop.f32.mrf.mxu2 }
 0x468   :  { %20708 = vst [vmem:[#allocation206_spill] sm:$0xff] %v16099_v59  ;;  %v16151_v59 = vand.u32 4294901760, %v5536_v44  ;;  %v16171_v44 = vand.u32 4294901760, %v5542_v14  ;;  %v16186_v14 = vand.u32 4294901760, %v5548_v30 }
 0x469   :  { %20709 = vst [vmem:[#allocation1009_spill] sm:$0xff] %v16102_v38 }
 0x46a   :  { %20710 = vst [vmem:[#allocation1010_spill] sm:$0xff] %v16105_v23  ;;  %5538 = vmatpush.msra.mxu3 %v16151_v59 }
 0x46b   :  { %20711 = vst [vmem:[#allocation1011_spill] sm:$0xff] %v16107_v21 }
 0x46c   :  { %20712 = vst [vmem:[#allocation1012_spill] sm:$0xff] %v16116_v6  ;;  %v5554_v6 = vsub.f32 %v16105_v23, %v16139_v63  ;;  %5544 = vmatpush.msra.mxu3 %v16171_v44 }
 0x46d   :  { %20713 = vst [vmem:[#allocation1013_spill] sm:$0xff] %v16119_v46  ;;  %v674_v46 = vadd.f32 %v15964_v16, %v637_v61  ;;  %v16196_v16 = vpop.f32.mrf.mxu3  ;;  %v16198_v61 = vpop.f32.mrf.mxu1 }
 0x46e   :  { %20714 = vst [vmem:[#allocation1014_spill] sm:$0xff] %v16122_v24  ;;  %v16204_v30 = vand.u32 4294901760, %v5554_v6  ;;  %v16212_v54 = vpop.f32.mrf.mxu0  ;;  %5550 = vmatpush.msra.mxu3 %v16186_v14 }
 0x46f   :  { %20715 = vst [vmem:[#allocation1015_spill] sm:$0xff] %v16124_v10  ;;  %v715_v45 = vadd.f32 %v16008_v3, %v674_v46  ;;  %v16264_v48 = vpop.f32.mrf.mxu2 }
 0x470   :  { %20717 = vst [vmem:[#allocation185_spill] sm:$0xff] %v16132_v2  ;;  %v5560_v2 = vsub.f32 %v16122_v24, %v16158_v39  ;;  %5556 = vmatpush.msra.mxu3 %v16204_v30 }
 0x471   :  { %20718 = vst [vmem:[#allocation1016_spill] sm:$0xff] %v16139_v63  ;;  %v816_v46 = vadd.f32 %v16048_v56, %v715_v45 }
 0x472   :  { %20719 = vst [vmem:[#allocation1017_spill] sm:$0xff] %v16142_v4  ;;  %v16218_v6 = vand.u32 4294901760, %v5560_v2  ;;  %v5578_v2 = vsub.f32 %v16179_v8, %v16209_v1 }
 0x473   :  { %20720 = vst [vmem:[#allocation1018_spill] sm:$0xff] %v16144_v27 }
 0x474   :  { %20721 = vst [vmem:[#allocation1019_spill] sm:$0xff] %v16151_v59  ;;  %v5566_v59 = vsub.f32 %v16142_v4, %v16176_v43  ;;  %5562 = vmatpush.msra.mxu3 %v16218_v6  ;;  %v16253_v45 = vand.u32 4294901760, %v5578_v2  ;;  %v20740_v2 = vld [vmem:[#allocation942_spill] sm:$0xff] }
 0x475   :  { %20722 = vst [vmem:[#allocation1020_spill] sm:$0xff] %v16158_v39  ;;  %v16247_v26 = vpop.f32.mrf.mxu1 }
 0x476   :  { %20723 = vst [vmem:[#allocation1021_spill] sm:$0xff] %v16161_v49  ;;  %v16231_v3 = vand.u32 4294901760, %v5566_v59  ;;  %v870_v59 = vadd.f32 %v16071_v17, %v816_v46  ;;  %v20738_v17 = vld [vmem:[#allocation939_spill] sm:$0xff] }
 0x477   :  { %20724 = vst [vmem:[#allocation1022_spill] sm:$0xff] %v16163_v19  ;;  %5432 = vmatpush.msra.mxu1 %v20738_v17 }
 0x478   :  { %20725 = vst [vmem:[#allocation1023_spill] sm:$0xff] %v16171_v44  ;;  %v5572_v44 = vsub.f32 %v16161_v49, %v16191_v37  ;;  %5568 = vmatpush.msra.mxu3 %v16231_v3  ;;  %v909_v56 = vadd.f32 %v16050_v18, %v870_v59  ;;  %v20741_v59 = vld [vmem:[#allocation991_spill] sm:$0xff] }
 0x479   :  { %20726 = vst [vmem:[#allocation1024_spill] sm:$0xff] %v16176_v43  ;;  %5434 = vmatpush.msra.mxu1 %v20740_v2  ;;  %5407 = vmatpush.msra.mxu0 %v20741_v59  ;;  %v20748_v2 = vld [vmem:[#allocation956_spill] sm:$0xff] }
 0x47a   :  { %20727 = vst [vmem:[#allocation1025_spill] sm:$0xff] %v16179_v8  ;;  %v16240_v31 = vand.u32 4294901760, %v5572_v44  ;;  %v16256_v44 = vpop.f32.mrf.mxu0  ;;  %v978_v18 = vadd.f32 %v16091_v52, %v909_v56  ;;  %5409 = vmatmul.f32.vlgmr.msra.gmra.mxu0 %v20716_v15 }
 0x47b   :  { %20728 = vst [vmem:[#allocation1026_spill] sm:$0xff] %v16186_v14  ;;  %v16245_v14 = vpop.f32.mrf.mxu3  ;;  %5436 = vmatpush.msra.mxu1 %v20742_v41  ;;  %v1892_v41 = vpop.f32.mrf.mxu2 }
 0x47c   :  { %20729 = vst [vmem:[#allocation1027_spill] sm:$0xff] %v16191_v37  ;;  %5574 = vmatpush.msra.mxu3 %v16240_v31  ;;  %v1015_v52 = vadd.f32 %v16126_v36, %v978_v18  ;;  %v20751_v36 = vld [vmem:[#allocation973_spill] sm:$0xff] }
 0x47d   :  { %20730 = vst [vmem:[#allocation1028_spill] sm:$0xff] %v16194_v11 }
 0x47e   :  { %20731 = vst [vmem:[#allocation1029_spill] sm:$0xff] %v16204_v30  ;;  %v5584_v30 = vsub.f32 %v16194_v11, %v16223_v5  ;;  %5580 = vmatpush.msra.mxu3 %v16253_v45  ;;  %v1056_v20 = vadd.f32 %v16147_v60, %v1015_v52  ;;  %v20755_v52 = vld [vmem:[#allocation982_spill] sm:$0xff] }
 0x47f   :  { %20732 = vst [vmem:[#allocation1030_spill] sm:$0xff] %v16209_v1 }
 0x480   :  { %20733 = vst [vmem:[#allocation1031_spill] sm:$0xff] %v16218_v6  ;;  %v16262_v46 = vand.u32 4294901760, %v5584_v30  ;;  %v20747_v6 = vld [vmem:[#allocation967_spill] sm:$0xff]  ;;  %v1157_v18 = vadd.f32 %v16128_v34, %v1056_v20  ;;  %v20757_v34 = vld [vmem:[#allocation988_spill] sm:$0xff] }
 0x481   :  { %20734 = vst [vmem:[#allocation1032_spill] sm:$0xff] %v16223_v5  ;;  %5688 = vmatpush.msrb.mxu2 %v20747_v6  ;;  %v20754_v6 = vld [vmem:[#allocation978_spill] sm:$0xff] }
 0x482   :  { %20735 = vst [vmem:[#allocation1033_spill] sm:$0xff] %v16231_v3  ;;  %5586 = vmatpush.msra.mxu3 %v16262_v46  ;;  %v20744_v3 = vld [vmem:[#allocation957_spill] sm:$0xff]  ;;  %v1737_v56 = vpop.f32.mrf.mxu0  ;;  %v1211_v20 = vadd.f32 %v16165_v13, %v1157_v18  ;;  %v20761_v18 = vld [vmem:[#allocation998_spill] sm:$0xff] }
 0x483   :  { %20736 = vst [vmem:[#allocation1034_spill] sm:$0xff] %v16240_v31  ;;  %v16275_v30 = vpop.f32.mrf.mxu3  ;;  %v1838_v31 = vpop.f32.mrf.mxu1  ;;  %5594 = vmatpush.msrb.mxu0 %v20744_v3  ;;  %v20749_v3 = vld [vmem:[#allocation286_spill] sm:$0xff]  ;;  %5692 = vmatpush.msrb.mxu2 %v20751_v36 }
 0x484   :  { %20737 = vst [vmem:[#allocation1035_spill] sm:$0xff] %v16253_v45  ;;  %5755 = vmatpush.msrb.mxu3 %v20743_v42  ;;  %v20745_v45 = vld [vmem:[#allocation951_spill] sm:$0xff]  ;;  %v1839_v59 = vadd.f32 %v1838_v31, %v1737_v56  ;;  %5487 = vmatmul.f32.vlgmr.msra.gmra.mxu2 %v20749_v3  ;;  %v20752_v31 = vld [vmem:[#allocation961_spill] sm:$0xff]  ;;  %v20756_v3 = vld [vmem:[#allocation970_spill] sm:$0xff]  ;;  %v1250_v13 = vadd.f32 %v16196_v16, %v1211_v20 }
 0x485   :  { %20739 = vst [vmem:[#allocation939_spill] sm:$0xff] %v16262_v46  ;;  %5438 = vmatpush.msra.mxu1 %v20745_v45  ;;  %v20746_v46 = vld [vmem:[#allocation962_spill] sm:$0xff]  ;;  %5696 = vmatpush.msrb.mxu2 %v20755_v52  ;;  %v20759_v52 = vld [vmem:[#allocation995_spill] sm:$0xff]  ;;  %v20764_v20 = vld [vmem:[#allocation1005_spill] sm:$0xff] }
 0x486   :  { %5757 = vmatpush.msrb.mxu3 %v15844_v47  ;;  %5597 = vmatpush.msrb.mxu0 %v20746_v46  ;;  %v20750_v45 = vld [vmem:[#allocation974_spill] sm:$0xff]  ;;  %v1893_v56 = vadd.f32 %v1892_v41, %v1839_v59  ;;  %v20753_v46 = vld [vmem:[#allocation275_spill] sm:$0xff] }
 0x487   :  { %5440 = vmatpush.msra.mxu1 %v20748_v2  ;;  %5588 = vmatmul.f32.vlgmr.msra.gmra.mxu3 %v20753_v46 }
 0x488   :  { %5600 = vmatpush.msrb.mxu0 %v20750_v45  ;;  %5759 = vmatpush.msrb.mxu3 %v15888_v7  ;;  %v20809_v45 = vld [vmem:[#allocation72_spill] sm:$0xff] }
 0x489   :  { %5442 = vmatpush.msra.mxu1 %v20752_v31  ;;  %5700 = vmatpush.msrb.mxu2 %v20757_v34  ;;  %v2078_v34 = vpop.f32.mrf.mxu2 }
 0x48a   :  { %5603 = vmatpush.msrb.mxu0 %v20754_v6  ;;  %5761 = vmatpush.msrb.mxu3 %v15909_v22  ;;  %v2000_v59 = vpop.f32.mrf.mxu0  ;;  %v20758_v6 = vld [vmem:[#allocation992_spill] sm:$0xff] }
 0x48b   :  { %v1931_v60 = vpop.f32.mrf.mxu3  ;;  %5444 = vmatpush.msra.mxu1 %v20756_v3  ;;  %5704 = vmatpush.msrb.mxu2 %v20759_v52  ;;  %v2037_v36 = vpop.f32.mrf.mxu1  ;;  %v20763_v52 = vld [vmem:[#allocation1002_spill] sm:$0xff] }
 0x48c   :  { %5606 = vmatpush.msrb.mxu0 %v15983_v62  ;;  %5446 = vmatmul.f32.vlgmr.msra.gmra.mxu1 %v20716_v15  ;;  %v1932_v41 = vadd.f32 %v1931_v60, %v1893_v56  ;;  %v20760_v15 = vld [vmem:[#allocation994_spill] sm:$0xff]  ;;  %v1319_v60 = vadd.f32 %v16212_v54, %v1250_v13  ;;  %v20765_v13 = vld [vmem:[#allocation1013_spill] sm:$0xff]  ;;  %v20807_v62 = vld [vmem:[#allocation83_spill] sm:$0xff] }
 0x48d   :  { %5647 = vmatpush.msrb.mxu1 %v20743_v42  ;;  %5763 = vmatpush.msrb.mxu3 %v15939_v12 }
 0x48e   :  { %5609 = vmatpush.msrb.mxu0 %v20758_v6  ;;  %5708 = vmatpush.msrb.mxu2 %v20761_v18  ;;  %v2001_v56 = vadd.f32 %v2000_v59, %v1932_v41  ;;  %v20762_v6 = vld [vmem:[#allocation997_spill] sm:$0xff]  ;;  %v1356_v16 = vadd.f32 %v16198_v61, %v1319_v60  ;;  %v20806_v18 = vld [vmem:[#allocation66_spill] sm:$0xff] }
 0x48f   :  { %5649 = vmatpush.msrb.mxu1 %v15844_v47  ;;  %5765 = vmatpush.msrb.mxu3 %v15962_v51 }
 0x490   :  { %5612 = vmatpush.msrb.mxu0 %v20760_v15  ;;  %5712 = vmatpush.msrb.mxu2 %v20763_v52  ;;  %v2038_v41 = vadd.f32 %v2037_v36, %v2001_v56  ;;  %v1397_v61 = vadd.f32 %v16225_v55, %v1356_v16  ;;  %v20802_v52 = vld [vmem:[#allocation55_spill] sm:$0xff] }
 0x491   :  { %5651 = vmatpush.msrb.mxu1 %v15888_v7  ;;  %5767 = vmatpush.msrb.mxu3 %v15976_v35  ;;  %v2341_v60 = vpop.f32.mrf.mxu2  ;;  %v20866_v7 = vld [vmem:[#allocation73_spill] sm:$0xff] }
 0x492   :  { %5615 = vmatpush.msrb.mxu0 %v20762_v6  ;;  %5716 = vmatpush.msrb.mxu2 %v20764_v20  ;;  %v2079_v36 = vadd.f32 %v2078_v34, %v2038_v41  ;;  %v2233_v56 = vpop.f32.mrf.mxu0  ;;  %v1498_v55 = vadd.f32 %v16245_v14, %v1397_v61  ;;  %v20797_v20 = vld [vmem:[#allocation51_spill] sm:$0xff]  ;;  %v20804_v6 = vld [vmem:[#allocation77_spill] sm:$0xff] }
 0x493   :  { %5653 = vmatpush.msrb.mxu1 %v15909_v22  ;;  %5769 = vmatpush.msrb.mxu3 %v15996_v9  ;;  %v2179_v54 = vpop.f32.mrf.mxu3  ;;  %v2272_v59 = vpop.f32.mrf.mxu1 }
 0x494   :  { %5618 = vmatpush.msrb.mxu0 %v16066_v57  ;;  %5720 = vmatpush.msrb.mxu2 %v16102_v38  ;;  %v2180_v34 = vadd.f32 %v2179_v54, %v2079_v36  ;;  %v1552_v16 = vadd.f32 %v16256_v44, %v1498_v55  ;;  %v20766_v36 = vld [vmem:[#allocation280_spill] sm:$0xff] }
 0x495   :  { %5655 = vmatpush.msrb.mxu1 %v15939_v12  ;;  %5771 = vmatpush.msrb.mxu3 %v16026_v50  ;;  %v20768_v55 = vld [vmem:[#allocation16_spill] sm:$0xff] }
 0x496   :  { %5621 = vmatpush.msrb.mxu0 %v16087_v53  ;;  %5724 = vmatpush.msrb.mxu2 %v20765_v13  ;;  %v2234_v41 = vadd.f32 %v2233_v56, %v2180_v34  ;;  %v1591_v14 = vadd.f32 %v16247_v26, %v1552_v16  ;;  %v20767_v56 = vld [vmem:[#allocation15_spill] sm:$0xff]  ;;  %v20792_v53 = vld [vmem:[#allocation53_spill] sm:$0xff] }
 0x497   :  { %5657 = vmatpush.msrb.mxu1 %v15962_v51  ;;  %5773 = vmatpush.msrb.mxu3 %v16046_v40 }
 0x498   :  { %5624 = vmatpush.msrb.mxu0 %v16105_v23  ;;  %5728 = vmatpush.msrb.mxu2 %v16139_v63  ;;  %v2273_v54 = vadd.f32 %v2272_v59, %v2234_v41  ;;  %v1660_v26 = vadd.f32 %v16264_v48, %v1591_v14  ;;  %v20769_v41 = vld [vmem:[#allocation21_spill] sm:$0xff]  ;;  %v20789_v23 = vld [vmem:[#allocation50_spill] sm:$0xff] }
 0x499   :  { %5659 = vmatpush.msrb.mxu1 %v15976_v35  ;;  %5775 = vmatpush.msrb.mxu3 %v16068_v33  ;;  %v2574_v44 = vpop.f32.mrf.mxu2  ;;  %v20852_v35 = vld [vmem:[#allocation112_spill] sm:$0xff] }
 0x49a   :  { %5627 = vmatpush.msrb.mxu0 %v16122_v24  ;;  %5732 = vmatpush.msrb.mxu2 %v16158_v39  ;;  %v2419_v61 = vpop.f32.mrf.mxu0  ;;  %v2342_v59 = vadd.f32 %v2341_v60, %v2273_v54  ;;  %v1697_v48 = vadd.f32 %v16275_v30, %v1660_v26  ;;  %v20770_v54 = vld [vmem:[#allocation17_spill] sm:$0xff]  ;;  %v11365_v30 = vld [vmem:[#allocation2] sm:$0xff]  ;;  %v20784_v39 = vld [vmem:[#allocation28_spill] sm:$0xff] }
 0x49b   :  { %5661 = vmatpush.msrb.mxu1 %v15996_v9  ;;  %5777 = vmatpush.msrb.mxu3 %v16089_v0  ;;  %v2378_v63 = vpop.f32.mrf.mxu3  ;;  %v2520_v24 = vpop.f32.mrf.mxu1  ;;  %v20846_v9 = vld [vmem:[#allocation99_spill] sm:$0xff] }
 0x49c   :  { %5630 = vmatpush.msrb.mxu0 %v16142_v4  ;;  %5736 = vmatpush.msrb.mxu2 %v16176_v43  ;;  %v2379_v60 = vadd.f32 %v2378_v63, %v2342_v59  ;;  %v16374_v26 = vsub.f32 %v11365_v30, %v1697_v48  ;;  %v20774_v59 = vld [vmem:[#allocation19_spill] sm:$0xff]  ;;  %v20778_v48 = vld [vmem:[#allocation20_spill] sm:$0xff] }
 0x49d   :  { %5663 = vmatpush.msrb.mxu1 %v16026_v50  ;;  %5779 = vmatpush.msrb.mxu3 %v16107_v21  ;;  %v20783_v43 = vld [vmem:[#allocation43_spill] sm:$0xff] }
 0x49e   :  { %5633 = vmatpush.msrb.mxu0 %v16161_v49  ;;  %5740 = vmatpush.msrb.mxu2 %v16191_v37  ;;  %v20777_v37 = vld [vmem:[#allocation38_spill] sm:$0xff] }
 0x49f   :  { %5665 = vmatpush.msrb.mxu1 %v16046_v40  ;;  %5781 = vmatpush.msrb.mxu3 %v16124_v10 }
 0x4a0   :  { %5636 = vmatpush.msrb.mxu0 %v16179_v8  ;;  %5744 = vmatpush.msrb.mxu2 %v16209_v1  ;;  %v20780_v8 = vld [vmem:[#allocation39_spill] sm:$0xff] }
 0x4a1   :  { %5667 = vmatpush.msrb.mxu1 %v16068_v33  ;;  %5783 = vmatpush.msrb.mxu3 %v16144_v27  ;;  %v2760_v1 = vpop.f32.mrf.mxu2 }
 0x4a2   :  { %5639 = vmatpush.msrb.mxu0 %v16194_v11  ;;  %5748 = vmatpush.msrb.mxu2 %v16223_v5  ;;  %v2682_v14 = vpop.f32.mrf.mxu0  ;;  %v2420_v5 = vadd.f32 %v2419_v61, %v2379_v60  ;;  %v20773_v11 = vld [vmem:[#allocation23_spill] sm:$0xff]  ;;  %v20776_v61 = vld [vmem:[#allocation25_spill] sm:$0xff] }
 0x4a3   :  { %5669 = vmatpush.msrb.mxu1 %v16089_v0  ;;  %5785 = vmatpush.msrb.mxu3 %v16163_v19  ;;  %v2613_v34 = vpop.f32.mrf.mxu3  ;;  %v2719_v16 = vpop.f32.mrf.mxu1 }
 0x4a4   :  { %5642 = vmatmul.f32.vlgmr.msrb.gmra.mxu0 %v20766_v36  ;;  %5943 = vmatpush.msra.mxu2 %v20769_v41  ;;  %v20771_v36 = vld [vmem:[#allocation22_spill] sm:$0xff]  ;;  %v2521_v63 = vadd.f32 %v2520_v24, %v2420_v5 }
 0x4a5   :  { %5996 = vmatpush.msra.mxu3 %v20767_v56  ;;  %5800 = vmatpush.msra.mxu0 %v20767_v56  ;;  %v20772_v41 = vld [vmem:[#allocation18_spill] sm:$0xff] }
 0x4a6   :  { %5671 = vmatpush.msrb.mxu1 %v16107_v21  ;;  %5750 = vmatmul.f32.vlgmr.msrb.gmra.mxu2 %v20753_v46  ;;  %v20779_v5 = vld [vmem:[#allocation26_spill] sm:$0xff]  ;;  %v2575_v24 = vadd.f32 %v2574_v44, %v2521_v63  ;;  %v20785_v44 = vld [vmem:[#allocation33_spill] sm:$0xff] }
 0x4a7   :  { %5998 = vmatpush.msra.mxu3 %v20768_v55  ;;  %5802 = vmatpush.msra.mxu0 %v20768_v55  ;;  %v20825_v21 = vld [vmem:[#allocation110_spill] sm:$0xff] }
 0x4a8   :  { %5673 = vmatpush.msrb.mxu1 %v16124_v10  ;;  %5946 = vmatpush.msra.mxu2 %v20771_v36  ;;  %v20775_v36 = vld [vmem:[#allocation283_spill] sm:$0xff]  ;;  %v2614_v63 = vadd.f32 %v2613_v34, %v2575_v24  ;;  %v20790_v34 = vld [vmem:[#allocation40_spill] sm:$0xff]  ;;  %v20791_v24 = vld [vmem:[#allocation41_spill] sm:$0xff] }
 0x4a9   :  { %5804 = vmatpush.msra.mxu0 %v20770_v54  ;;  %6000 = vmatpush.msra.mxu3 %v20770_v54 }
 0x4aa   :  { %5675 = vmatpush.msrb.mxu1 %v16144_v27  ;;  %5787 = vmatmul.f32.vlgmr.msrb.gmra.mxu3 %v20753_v46  ;;  %v2915_v30 = vpop.f32.mrf.mxu0  ;;  %v2683_v4 = vadd.f32 %v2682_v14, %v2614_v63  ;;  %v20793_v14 = vld [vmem:[#allocation44_spill] sm:$0xff]  ;;  %v20794_v63 = vld [vmem:[#allocation47_spill] sm:$0xff] }
 0x4ab   :  { %5806 = vmatpush.msra.mxu0 %v20772_v41  ;;  %5949 = vmatpush.msra.mxu2 %v20773_v11  ;;  %v2861_v60 = vpop.f32.mrf.mxu3  ;;  %v16382_v46 = vpop.f32.mrf.mxu1  ;;  %v5795_v11 = vmul.f32 %v16374_v26, %v16374_v26 }
 0x4ac   :  { %6002 = vmatpush.msra.mxu3 %v20772_v41  ;;  %5677 = vmatpush.msrb.mxu1 %v16163_v19  ;;  %v20810_v19 = vld [vmem:[#allocation88_spill] sm:$0xff] }
 0x4ad   :  { %5808 = vmatpush.msra.mxu0 %v20774_v59  ;;  %5681 = vmatmul.f32.vlgmr.msrb.gmra.mxu1 %v20775_v36  ;;  %v20781_v36 = vld [vmem:[#allocation24_spill] sm:$0xff]  ;;  %v16398_v49 = vand.u32 4294901760, %v5795_v11 }
 0x4ae   :  { %5952 = vmatpush.msra.mxu2 %v20776_v61  ;;  %5845 = vmatpush.msra.mxu1 %v20777_v37  ;;  %v20782_v61 = vld [vmem:[#allocation27_spill] sm:$0xff]  ;;  %v16394_v37 = vpop.f32.mrf.mxu2 }
 0x4af   :  { %6004 = vmatpush.msra.mxu3 %v20774_v59  ;;  %5810 = vmatpush.msra.mxu0 %v20778_v48  ;;  %v16411_v38 = vsub.f32 %v5795_v11, %v16398_v49  ;;  %v20796_v11 = vld [vmem:[#allocation48_spill] sm:$0xff] }
 0x4b0   :  { %5955 = vmatpush.msra.mxu2 %v20779_v5  ;;  %5851 = vmatpush.msra.mxu1 %v20780_v8  ;;  %v20786_v8 = vld [vmem:[#allocation46_spill] sm:$0xff] }
 0x4b1   :  { %6006 = vmatpush.msra.mxu3 %v20778_v48  ;;  %5812 = vmatpush.msra.mxu0 %v20781_v36  ;;  %v20787_v5 = vld [vmem:[#allocation34_spill] sm:$0xff] }
 0x4b2   :  { %5958 = vmatpush.msra.mxu2 %v20782_v61  ;;  %5857 = vmatpush.msra.mxu1 %v20783_v43  ;;  %v20788_v61 = vld [vmem:[#allocation36_spill] sm:$0xff] }
 0x4b3   :  { %6008 = vmatpush.msra.mxu3 %v20781_v36  ;;  %5814 = vmatpush.msra.mxu0 %v20784_v39  ;;  %v16406_v13 = vpop.f32.mrf.mxu3  ;;  %v3202_v43 = vpop.f32.mrf.mxu1 }
 0x4b4   :  { %5961 = vmatpush.msra.mxu2 %v20785_v44  ;;  %5863 = vmatpush.msra.mxu1 %v20786_v8  ;;  %v2720_v44 = vadd.f32 %v2719_v16, %v2683_v4  ;;  %v3101_v8 = vpop.f32.mrf.mxu0  ;;  %v16424_v4 = vand.u32 4294901760, %v16411_v38 }
 0x4b5   :  { %6010 = vmatpush.msra.mxu3 %v20784_v39  ;;  %5816 = vmatpush.msra.mxu0 %v20787_v5 }
 0x4b6   :  { %5964 = vmatpush.msra.mxu2 %v20788_v61  ;;  %5869 = vmatpush.msra.mxu1 %v20789_v23  ;;  %v3256_v23 = vpop.f32.mrf.mxu2  ;;  %v20795_v61 = vld [vmem:[#allocation58_spill] sm:$0xff]  ;;  %v2761_v16 = vadd.f32 %v2760_v1, %v2720_v44  ;;  %v5834_v1 = vsub.f32 %v16411_v38, %v16424_v4 }
 0x4b7   :  { %6012 = vmatpush.msra.mxu3 %v20787_v5  ;;  %5818 = vmatpush.msra.mxu0 %v20790_v34 }
 0x4b8   :  { %5967 = vmatpush.msra.mxu2 %v20791_v24  ;;  %5875 = vmatpush.msra.mxu1 %v20792_v53  ;;  %v20798_v53 = vld [vmem:[#allocation64_spill] sm:$0xff]  ;;  %v2862_v44 = vadd.f32 %v2861_v60, %v2761_v16  ;;  %v16446_v60 = vand.u32 4294901760, %v5834_v1  ;;  %v20814_v1 = vld [vmem:[#allocation78_spill] sm:$0xff] }
 0x4b9   :  { %6014 = vmatpush.msra.mxu3 %v20790_v34  ;;  %5820 = vmatpush.msra.mxu0 %v20793_v14  ;;  %v20799_v24 = vld [vmem:[#allocation52_spill] sm:$0xff] }
 0x4ba   :  { %5970 = vmatpush.msra.mxu2 %v20794_v63  ;;  %5881 = vmatpush.msra.mxu1 %v20795_v61  ;;  %v20800_v63 = vld [vmem:[#allocation54_spill] sm:$0xff]  ;;  %v20801_v61 = vld [vmem:[#allocation69_spill] sm:$0xff] }
 0x4bb   :  { %6016 = vmatpush.msra.mxu3 %v20793_v14  ;;  %5822 = vmatpush.msra.mxu0 %v20796_v11  ;;  %v3295_v57 = vpop.f32.mrf.mxu3 }
 0x4bc   :  { %5973 = vmatpush.msra.mxu2 %v20797_v20  ;;  %5887 = vmatpush.msra.mxu1 %v20798_v53  ;;  %v20803_v20 = vld [vmem:[#allocation60_spill] sm:$0xff]  ;;  %v16436_v53 = vpop.f32.mrf.mxu1  ;;  %v3364_v15 = vpop.f32.mrf.mxu0 }
 0x4bd   :  { %6018 = vmatpush.msra.mxu3 %v20796_v11  ;;  %5824 = vmatpush.msra.mxu0 %v20799_v24 }
 0x4be   :  { %5976 = vmatpush.msra.mxu2 %v20800_v63  ;;  %5893 = vmatpush.msra.mxu1 %v20801_v61  ;;  %v20805_v63 = vld [vmem:[#allocation61_spill] sm:$0xff]  ;;  %v2916_v61 = vadd.f32 %v2915_v30, %v2862_v44  ;;  %v16449_v16 = vpop.f32.mrf.mxu2 }
 0x4bf   :  { %6020 = vmatpush.msra.mxu3 %v20799_v24  ;;  %5826 = vmatpush.msra.mxu0 %v20802_v52  ;;  %v20812_v30 = vld [vmem:[#allocation93_spill] sm:$0xff] }
 0x4c0   :  { %5979 = vmatpush.msra.mxu2 %v20803_v20  ;;  %5899 = vmatpush.msra.mxu1 %v20804_v6  ;;  %v20808_v20 = vld [vmem:[#allocation67_spill] sm:$0xff]  ;;  %v2955_v6 = vadd.f32 %v16382_v46, %v2916_v61  ;;  %v20816_v61 = vld [vmem:[#allocation57_spill] sm:$0xff] }
 0x4c1   :  { %6022 = vmatpush.msra.mxu3 %v20802_v52  ;;  %5828 = vmatpush.msra.mxu0 %v20805_v63 }
 0x4c2   :  { %5982 = vmatpush.msra.mxu2 %v20806_v18  ;;  %5905 = vmatpush.msra.mxu1 %v20807_v62  ;;  %v3203_v18 = vadd.f32 %v3202_v43, %v3101_v8  ;;  %v20811_v62 = vld [vmem:[#allocation29_spill] sm:$0xff]  ;;  %v3024_v46 = vadd.f32 %v16394_v37, %v2955_v6  ;;  %v20815_v43 = vld [vmem:[#allocation30_spill] sm:$0xff]  ;;  %v20820_v37 = vld [vmem:[#allocation59_spill] sm:$0xff] }
 0x4c3   :  { %6024 = vmatpush.msra.mxu3 %v20805_v63  ;;  %5830 = vmatpush.msra.mxu0 %v20808_v20  ;;  %v16460_v44 = vpop.f32.mrf.mxu3  ;;  %v20821_v6 = vld [vmem:[#allocation105_spill] sm:$0xff] }
 0x4c4   :  { %5985 = vmatpush.msra.mxu2 %v20809_v45  ;;  %5911 = vmatpush.msra.mxu1 %v20810_v19  ;;  %v20813_v45 = vld [vmem:[#allocation94_spill] sm:$0xff]  ;;  %v16462_v19 = vpop.f32.mrf.mxu1  ;;  %v3257_v8 = vadd.f32 %v3256_v23, %v3203_v18  ;;  %v3061_v27 = vadd.f32 %v16406_v13, %v3024_v46  ;;  %v20823_v23 = vld [vmem:[#allocation32_spill] sm:$0xff]  ;;  %v11366_v13 = vld [vmem:[#allocation2 + $0x8] sm:$0xff] }
 0x4c5   :  { %6026 = vmatpush.msra.mxu3 %v20808_v20  ;;  %5836 = vmatmul.f32.vlgmr.msra.gmra.mxu0 %v16446_v60 }
 0x4c6   :  { %6030 = vmatmul.f32.vlgmr.msra.gmra.mxu3 %v16424_v4  ;;  %6037 = vmatpush.msrb.mxu0 %v20811_v62  ;;  %v20817_v62 = vld [vmem:[#allocation100_spill] sm:$0xff]  ;;  %v16475_v10 = vpop.f32.mrf.mxu2  ;;  %v3296_v18 = vadd.f32 %v3295_v57, %v3257_v8  ;;  %v16485_v46 = vsub.f32 %v11366_v13, %v3061_v27  ;;  %v20829_v57 = vld [vmem:[#allocation114_spill] sm:$0xff]  ;;  %v20830_v8 = vld [vmem:[#allocation37_spill] sm:$0xff] }
 0x4c7   :  { %6186 = vmatpush.msrb.mxu3 %v20812_v30  ;;  %5917 = vmatpush.msra.mxu1 %v20813_v45  ;;  %v16468_v30 = vpop.f32.mrf.mxu0  ;;  %v20818_v45 = vld [vmem:[#allocation98_spill] sm:$0xff] }
 0x4c8   :  { %5988 = vmatpush.msra.mxu2 %v20814_v1  ;;  %6041 = vmatpush.msrb.mxu0 %v20815_v43  ;;  %v20819_v1 = vld [vmem:[#allocation31_spill] sm:$0xff]  ;;  %v20833_v27 = vld [vmem:[#allocation42_spill] sm:$0xff] }
 0x4c9   :  { %5991 = vmatmul.f32.vlgmr.msra.gmra.mxu2 %v16411_v38  ;;  %6192 = vmatpush.msrb.mxu3 %v20817_v62  ;;  %v20822_v43 = vld [vmem:[#allocation103_spill] sm:$0xff]  ;;  %v20824_v62 = vld [vmem:[#allocation65_spill] sm:$0xff]  ;;  %v20834_v13 = vld [vmem:[#allocation82_spill] sm:$0xff] }
 0x4ca   :  { %6141 = vmatpush.msrb.mxu2 %v20816_v61  ;;  %5923 = vmatpush.msra.mxu1 %v20818_v45  ;;  %v20826_v45 = vld [vmem:[#allocation108_spill] sm:$0xff] }
 0x4cb   :  { %6045 = vmatpush.msrb.mxu0 %v20819_v1  ;;  %6198 = vmatpush.msrb.mxu3 %v20821_v6  ;;  %v20827_v1 = vld [vmem:[#allocation35_spill] sm:$0xff]  ;;  %v16487_v0 = vpop.f32.mrf.mxu3 }
 0x4cc   :  { %6143 = vmatpush.msrb.mxu2 %v20820_v37  ;;  %5929 = vmatpush.msra.mxu1 %v20822_v43  ;;  %v20828_v6 = vld [vmem:[#allocation71_spill] sm:$0xff]  ;;  %v16489_v43 = vpop.f32.mrf.mxu1 }
 0x4cd   :  { %6049 = vmatpush.msrb.mxu0 %v20823_v23  ;;  %6204 = vmatpush.msrb.mxu3 %v20825_v21  ;;  %v3365_v21 = vadd.f32 %v3364_v15, %v3296_v18  ;;  %v20831_v23 = vld [vmem:[#allocation76_spill] sm:$0xff]  ;;  %v20835_v15 = vld [vmem:[#allocation122_spill] sm:$0xff] }
 0x4ce   :  { %6145 = vmatpush.msrb.mxu2 %v20824_v62  ;;  %5935 = vmatpush.msra.mxu1 %v20826_v45  ;;  %v16503_v33 = vpop.f32.mrf.mxu2 }
 0x4cf   :  { %6053 = vmatpush.msrb.mxu0 %v20827_v1  ;;  %5937 = vmatmul.f32.vlgmr.msra.gmra.mxu1 %v16398_v49  ;;  %v16495_v45 = vpop.f32.mrf.mxu0  ;;  %v20832_v1 = vld [vmem:[#allocation118_spill] sm:$0xff]  ;;  %v3402_v18 = vadd.f32 %v16436_v53, %v3365_v21 }
 0x4d0   :  { %6147 = vmatpush.msrb.mxu2 %v20828_v6  ;;  %6104 = vmatpush.msrb.mxu1 %v20767_v56  ;;  %v5796_v56 = vmul.f32 %v16485_v46, %v16485_v46  ;;  %v20841_v53 = vld [vmem:[#allocation130_spill] sm:$0xff] }
 0x4d1   :  { %6210 = vmatpush.msrb.mxu3 %v20829_v57  ;;  %6057 = vmatpush.msrb.mxu0 %v20830_v8  ;;  %v20836_v57 = vld [vmem:[#allocation45_spill] sm:$0xff]  ;;  %v3443_v21 = vadd.f32 %v16449_v16, %v3402_v18 }
 0x4d2   :  { %6149 = vmatpush.msrb.mxu2 %v20831_v23  ;;  %6106 = vmatpush.msrb.mxu1 %v20768_v55  ;;  %v20837_v55 = vld [vmem:[#allocation87_spill] sm:$0xff]  ;;  %v20838_v8 = vld [vmem:[#allocation125_spill] sm:$0xff]  ;;  %v16514_v40 = vand.u32 4294901760, %v5796_v56 }
 0x4d3   :  { %6216 = vmatpush.msrb.mxu3 %v20832_v1  ;;  %6061 = vmatpush.msrb.mxu0 %v20833_v27  ;;  %v20839_v1 = vld [vmem:[#allocation49_spill] sm:$0xff]  ;;  %v20840_v27 = vld [vmem:[#allocation92_spill] sm:$0xff]  ;;  %v16516_v50 = vpop.f32.mrf.mxu3  ;;  %v3544_v18 = vadd.f32 %v16460_v44, %v3443_v21  ;;  %v20853_v44 = vld [vmem:[#allocation142_spill] sm:$0xff] }
 0x4d4   :  { %6151 = vmatpush.msrb.mxu2 %v20834_v13  ;;  %6108 = vmatpush.msrb.mxu1 %v20770_v54  ;;  %v16518_v54 = vpop.f32.mrf.mxu1  ;;  %v20847_v16 = vld [vmem:[#allocation137_spill] sm:$0xff] }
 0x4d5   :  { %6222 = vmatpush.msrb.mxu3 %v20835_v15  ;;  %6065 = vmatpush.msrb.mxu0 %v20836_v57  ;;  %v20842_v15 = vld [vmem:[#allocation56_spill] sm:$0xff] }
 0x4d6   :  { %6153 = vmatpush.msrb.mxu2 %v20837_v55  ;;  %6110 = vmatpush.msrb.mxu1 %v20772_v41  ;;  %v20843_v41 = vld [vmem:[#allocation97_spill] sm:$0xff] }
 0x4d7   :  { %6228 = vmatpush.msrb.mxu3 %v20838_v8  ;;  %6069 = vmatpush.msrb.mxu0 %v20839_v1  ;;  %v16525_v57 = vpop.f32.mrf.mxu0  ;;  %v20844_v8 = vld [vmem:[#allocation133_spill] sm:$0xff]  ;;  %v20845_v1 = vld [vmem:[#allocation62_spill] sm:$0xff] }
 0x4d8   :  { %6155 = vmatpush.msrb.mxu2 %v20840_v27  ;;  %6112 = vmatpush.msrb.mxu1 %v20774_v59  ;;  %v16532_v59 = vsub.f32 %v5796_v56, %v16514_v40  ;;  %v20851_v56 = vld [vmem:[#allocation74_spill] sm:$0xff] }
 0x4d9   :  { %6234 = vmatpush.msrb.mxu3 %v20841_v53  ;;  %6073 = vmatpush.msrb.mxu0 %v20842_v15  ;;  %v16534_v53 = vpop.f32.mrf.mxu2  ;;  %v20848_v15 = vld [vmem:[#allocation68_spill] sm:$0xff] }
 0x4da   :  { %6157 = vmatpush.msrb.mxu2 %v20843_v41  ;;  %6114 = vmatpush.msrb.mxu1 %v20778_v48  ;;  %v20849_v48 = vld [vmem:[#allocation104_spill] sm:$0xff]  ;;  %v16553_v21 = vand.u32 4294901760, %v16532_v59 }
 0x4db   :  { %6240 = vmatpush.msrb.mxu3 %v20844_v8  ;;  %6077 = vmatpush.msrb.mxu0 %v20845_v1  ;;  %v20850_v8 = vld [vmem:[#allocation139_spill] sm:$0xff]  ;;  %v3598_v1 = vadd.f32 %v16468_v30, %v3544_v18  ;;  %v16546_v51 = vpop.f32.mrf.mxu3  ;;  %v20855_v30 = vld [vmem:[#allocation116_spill] sm:$0xff] }
 0x4dc   :  { %6159 = vmatpush.msrb.mxu2 %v20846_v9  ;;  %6116 = vmatpush.msrb.mxu1 %v20781_v36  ;;  %v16548_v36 = vpop.f32.mrf.mxu1 }
 0x4dd   :  { %6246 = vmatpush.msrb.mxu3 %v20847_v16  ;;  %6081 = vmatpush.msrb.mxu0 %v20848_v15  ;;  %v20854_v16 = vld [vmem:[#allocation79_spill] sm:$0xff] }
 0x4de   :  { %6161 = vmatpush.msrb.mxu2 %v20849_v48  ;;  %6118 = vmatpush.msrb.mxu1 %v20784_v39  ;;  %v3637_v39 = vadd.f32 %v16462_v19, %v3598_v1  ;;  %v20856_v15 = vld [vmem:[#allocation143_spill] sm:$0xff]  ;;  %v6175_v19 = vsub.f32 %v16532_v59, %v16553_v21 }
 0x4df   :  { %6252 = vmatpush.msrb.mxu3 %v20850_v8  ;;  %6085 = vmatpush.msrb.mxu0 %v20851_v56  ;;  %v16558_v18 = vpop.f32.mrf.mxu0  ;;  %v20857_v8 = vld [vmem:[#allocation84_spill] sm:$0xff] }
 0x4e0   :  { %6163 = vmatpush.msrb.mxu2 %v20852_v35  ;;  %6120 = vmatpush.msrb.mxu1 %v20787_v5  ;;  %v20858_v5 = vld [vmem:[#allocation120_spill] sm:$0xff]  ;;  %v3706_v1 = vadd.f32 %v16475_v10, %v3637_v39  ;;  %v16581_v10 = vand.u32 4294901760, %v6175_v19 }
 0x4e1   :  { %6258 = vmatpush.msrb.mxu3 %v20853_v44  ;;  %6089 = vmatpush.msrb.mxu0 %v20854_v16  ;;  %v16564_v56 = vpop.f32.mrf.mxu2  ;;  %v20859_v44 = vld [vmem:[#allocation145_spill] sm:$0xff] }
 0x4e2   :  { %6165 = vmatpush.msrb.mxu2 %v20855_v30  ;;  %6122 = vmatpush.msrb.mxu1 %v20790_v34  ;;  %v20860_v16 = vld [vmem:[#allocation89_spill] sm:$0xff]  ;;  %v20861_v34 = vld [vmem:[#allocation124_spill] sm:$0xff]  ;;  %v3743_v39 = vadd.f32 %v16487_v0, %v3706_v1  ;;  %v20867_v0 = vld [vmem:[#allocation75_spill] sm:$0xff] }
 0x4e3   :  { %6264 = vmatpush.msrb.mxu3 %v20856_v15  ;;  %6093 = vmatpush.msrb.mxu0 %v20857_v8  ;;  %v20862_v15 = vld [vmem:[#allocation146_spill] sm:$0xff]  ;;  %v20868_v1 = vld [vmem:[#allocation80_spill] sm:$0xff] }
 0x4e4   :  { %6167 = vmatpush.msrb.mxu2 %v20858_v5  ;;  %6124 = vmatpush.msrb.mxu1 %v20793_v14  ;;  %v16577_v14 = vpop.f32.mrf.mxu3  ;;  %v4566_v8 = vpop.f32.mrf.mxu1  ;;  %v3784_v12 = vadd.f32 %v16495_v45, %v3743_v39  ;;  %v20874_v39 = vld [vmem:[#allocation95_spill] sm:$0xff] }
 0x4e5   :  { %6270 = vmatpush.msrb.mxu3 %v20859_v44  ;;  %6097 = vmatpush.msrb.mxu0 %v20860_v16  ;;  %v20863_v44 = vld [vmem:[#allocation63_spill] sm:$0xff] }
 0x4e6   :  { %6169 = vmatpush.msrb.mxu2 %v20861_v34  ;;  %6126 = vmatpush.msrb.mxu1 %v20796_v11  ;;  %v20864_v11 = vld [vmem:[#allocation128_spill] sm:$0xff] }
 0x4e7   :  { %6276 = vmatpush.msrb.mxu3 %v20862_v15  ;;  %6099 = vmatmul.f32.vlgmr.msrb.gmra.mxu0 %v16398_v49  ;;  %v4465_v16 = vpop.f32.mrf.mxu0  ;;  %v20865_v15 = vld [vmem:[#allocation70_spill] sm:$0xff] }
 0x4e8   :  { %6278 = vmatmul.f32.vlgmr.msrb.gmra.mxu3 %v16514_v40  ;;  %6284 = vmatpush.msra.mxu0 %v20863_v44  ;;  %v4567_v22 = vadd.f32 %v4566_v8, %v4465_v16  ;;  %v20869_v44 = vld [vmem:[#allocation81_spill] sm:$0xff] }
 0x4e9   :  { %6445 = vmatpush.msra.mxu3 %v20816_v61  ;;  %6128 = vmatpush.msrb.mxu1 %v20799_v24  ;;  %v4620_v19 = vpop.f32.mrf.mxu2  ;;  %v3885_v24 = vadd.f32 %v16489_v43, %v3784_v12  ;;  %v20870_v8 = vld [vmem:[#allocation85_spill] sm:$0xff]  ;;  %v20872_v43 = vld [vmem:[#allocation90_spill] sm:$0xff] }
 0x4ea   :  { %6171 = vmatpush.msrb.mxu2 %v20864_v11  ;;  %6287 = vmatpush.msra.mxu0 %v20865_v15  ;;  %v4621_v45 = vadd.f32 %v4620_v19, %v4567_v22  ;;  %v20876_v15 = vld [vmem:[#allocation101_spill] sm:$0xff] }
 0x4eb   :  { %6177 = vmatmul.f32.vlgmr.msrb.gmra.mxu2 %v16581_v10  ;;  %6447 = vmatpush.msra.mxu3 %v20820_v37  ;;  %v3939_v12 = vadd.f32 %v16503_v33, %v3885_v24  ;;  %v20878_v24 = vld [vmem:[#allocation106_spill] sm:$0xff] }
 0x4ec   :  { %6378 = vmatpush.msra.mxu2 %v20866_v7  ;;  %6130 = vmatpush.msrb.mxu1 %v20802_v52  ;;  %v4659_v7 = vpop.f32.mrf.mxu3  ;;  %v20871_v52 = vld [vmem:[#allocation86_spill] sm:$0xff] }
 0x4ed   :  { %6290 = vmatpush.msra.mxu0 %v20867_v0  ;;  %6449 = vmatpush.msra.mxu3 %v20824_v62  ;;  %v4660_v22 = vadd.f32 %v4659_v7, %v4621_v45  ;;  %v3978_v33 = vadd.f32 %v16516_v50, %v3939_v12  ;;  %v20877_v0 = vld [vmem:[#allocation102_spill] sm:$0xff]  ;;  %v20882_v45 = vld [vmem:[#allocation115_spill] sm:$0xff]  ;;  %v20884_v7 = vld [vmem:[#allocation117_spill] sm:$0xff] }
 0x4ee   :  { %6382 = vmatpush.msra.mxu2 %v20868_v1  ;;  %6132 = vmatpush.msrb.mxu1 %v20805_v63  ;;  %v20873_v63 = vld [vmem:[#allocation91_spill] sm:$0xff]  ;;  %v20886_v12 = vld [vmem:[#allocation121_spill] sm:$0xff] }
 0x4ef   :  { %6293 = vmatpush.msra.mxu0 %v20869_v44  ;;  %6451 = vmatpush.msra.mxu3 %v20828_v6  ;;  %v4728_v16 = vpop.f32.mrf.mxu0  ;;  %v20879_v1 = vld [vmem:[#allocation107_spill] sm:$0xff] }
 0x4f0   :  { %6386 = vmatpush.msra.mxu2 %v20870_v8  ;;  %6134 = vmatpush.msrb.mxu1 %v20808_v20  ;;  %v20875_v20 = vld [vmem:[#allocation96_spill] sm:$0xff]  ;;  %v4729_v19 = vadd.f32 %v4728_v16, %v4660_v22  ;;  %v20880_v44 = vld [vmem:[#allocation111_spill] sm:$0xff]  ;;  %v20888_v22 = vld [vmem:[#allocation126_spill] sm:$0xff] }
 0x4f1   :  { %6296 = vmatpush.msra.mxu0 %v20871_v52  ;;  %6136 = vmatmul.f32.vlgmr.msrb.gmra.mxu1 %v16398_v49  ;;  %v4806_v8 = vpop.f32.mrf.mxu2  ;;  %v20885_v52 = vld [vmem:[#allocation119_spill] sm:$0xff] }
 0x4f2   :  { %6390 = vmatpush.msra.mxu2 %v20872_v43  ;;  %6337 = vmatpush.msra.mxu1 %v20816_v61  ;;  %v4047_v61 = vadd.f32 %v16525_v57, %v3978_v33  ;;  %v20881_v57 = vld [vmem:[#allocation109_spill] sm:$0xff]  ;;  %v20889_v16 = vld [vmem:[#allocation127_spill] sm:$0xff] }
 0x4f3   :  { %6453 = vmatpush.msra.mxu3 %v20831_v23  ;;  %6299 = vmatpush.msra.mxu0 %v20873_v63  ;;  %v20890_v33 = vld [vmem:[#allocation131_spill] sm:$0xff] }
 0x4f4   :  { %6394 = vmatpush.msra.mxu2 %v20874_v39  ;;  %6339 = vmatpush.msra.mxu1 %v20820_v37  ;;  %v4765_v37 = vpop.f32.mrf.mxu1  ;;  %v4084_v50 = vadd.f32 %v16518_v54, %v4047_v61  ;;  %v20883_v54 = vld [vmem:[#allocation113_spill] sm:$0xff]  ;;  %v4907_v43 = vpop.f32.mrf.mxu3  ;;  %v20893_v61 = vld [vmem:[#allocation135_spill] sm:$0xff] }
 0x4f5   :  { %6455 = vmatpush.msra.mxu3 %v20834_v13  ;;  %6302 = vmatpush.msra.mxu0 %v20875_v20 }
 0x4f6   :  { %6398 = vmatpush.msra.mxu2 %v20876_v15  ;;  %6341 = vmatpush.msra.mxu1 %v20824_v62  ;;  %v4766_v62 = vadd.f32 %v4765_v37, %v4729_v19  ;;  %v20891_v15 = vld [vmem:[#allocation132_spill] sm:$0xff]  ;;  %v20894_v19 = vld [vmem:[#allocation138_spill] sm:$0xff] }
 0x4f7   :  { %6457 = vmatpush.msra.mxu3 %v20837_v55  ;;  %6305 = vmatpush.msra.mxu0 %v20877_v0  ;;  %v4961_v63 = vpop.f32.mrf.mxu0 }
 0x4f8   :  { %6402 = vmatpush.msra.mxu2 %v20878_v24  ;;  %6343 = vmatpush.msra.mxu1 %v20828_v6  ;;  %v4125_v6 = vadd.f32 %v16534_v53, %v4084_v50  ;;  %v20887_v53 = vld [vmem:[#allocation123_spill] sm:$0xff]  ;;  %v20896_v24 = vld [vmem:[#allocation140_spill] sm:$0xff]  ;;  %v20898_v50 = vld [vmem:[#allocation153_spill] sm:$0xff] }
 0x4f9   :  { %6459 = vmatpush.msra.mxu3 %v20840_v27  ;;  %6308 = vmatpush.msra.mxu0 %v20879_v1  ;;  %v5069_v0 = vpop.f32.mrf.mxu2 }
 0x4fa   :  { %6406 = vmatpush.msra.mxu2 %v20880_v44  ;;  %6345 = vmatpush.msra.mxu1 %v20831_v23  ;;  %v4807_v23 = vadd.f32 %v4806_v8, %v4766_v62  ;;  %v20899_v44 = vld [vmem:[#allocation154_spill] sm:$0xff] }
 0x4fb   :  { %6461 = vmatpush.msra.mxu3 %v20843_v41  ;;  %6311 = vmatpush.msra.mxu0 %v20881_v57 }
 0x4fc   :  { %6410 = vmatpush.msra.mxu2 %v20882_v45  ;;  %6347 = vmatpush.msra.mxu1 %v20834_v13  ;;  %v4226_v13 = vadd.f32 %v16546_v51, %v4125_v6  ;;  %v4908_v39 = vadd.f32 %v4907_v43, %v4807_v23  ;;  %v5106_v37 = vpop.f32.mrf.mxu3  ;;  %v20901_v45 = vld [vmem:[#allocation155_spill] sm:$0xff]  ;;  %v20904_v23 = vld [vmem:[#allocation160_spill] sm:$0xff]  ;;  %v20906_v43 = vld [vmem:[#allocation161_spill] sm:$0xff] }
 0x4fd   :  { %6463 = vmatpush.msra.mxu3 %v20846_v9  ;;  %6314 = vmatpush.msra.mxu0 %v20883_v54  ;;  %v20902_v54 = vld [vmem:[#allocation158_spill] sm:$0xff] }
 0x4fe   :  { %6414 = vmatpush.msra.mxu2 %v20884_v7  ;;  %6349 = vmatpush.msra.mxu1 %v20837_v55  ;;  %v4280_v55 = vadd.f32 %v16558_v18, %v4226_v13  ;;  %v4962_v20 = vadd.f32 %v4961_v63, %v4908_v39  ;;  %v20907_v13 = vld [vmem:[#allocation163_spill] sm:$0xff]  ;;  %v20910_v63 = vld [vmem:[#allocation166_spill] sm:$0xff]  ;;  %v20911_v39 = vld [vmem:[#allocation177_spill] sm:$0xff] }
 0x4ff   :  { %6465 = vmatpush.msra.mxu3 %v20849_v48  ;;  %6317 = vmatpush.msra.mxu0 %v20885_v52  ;;  %v5147_v1 = vpop.f32.mrf.mxu0  ;;  %v20905_v52 = vld [vmem:[#allocation170_spill] sm:$0xff] }
 0x500   :  { %6418 = vmatpush.msra.mxu2 %v20886_v12  ;;  %6351 = vmatpush.msra.mxu1 %v20840_v27  ;;  %v5000_v27 = vpop.f32.mrf.mxu1  ;;  %v4319_v51 = vadd.f32 %v16548_v36, %v4280_v55  ;;  %v20895_v36 = vld [vmem:[#allocation151_spill] sm:$0xff] }
 0x501   :  { %6467 = vmatpush.msra.mxu3 %v20852_v35  ;;  %6320 = vmatpush.msra.mxu0 %v20887_v53  ;;  %v5001_v18 = vadd.f32 %v5000_v27, %v4962_v20  ;;  %v20913_v27 = vld [vmem:[#allocation171_spill] sm:$0xff]  ;;  %v20914_v20 = vld [vmem:[#allocation181_spill] sm:$0xff] }
 0x502   :  { %6422 = vmatpush.msra.mxu2 %v20888_v22  ;;  %6353 = vmatpush.msra.mxu1 %v20843_v41  ;;  %v20892_v41 = vld [vmem:[#allocation134_spill] sm:$0xff]  ;;  %v20909_v22 = vld [vmem:[#allocation164_spill] sm:$0xff] }
 0x503   :  { %6469 = vmatpush.msra.mxu3 %v20855_v30  ;;  %6323 = vmatpush.msra.mxu0 %v20889_v16 }
 0x504   :  { %6426 = vmatpush.msra.mxu2 %v20890_v33  ;;  %6355 = vmatpush.msra.mxu1 %v20846_v9  ;;  %v4388_v9 = vadd.f32 %v16564_v56, %v4319_v51  ;;  %v5341_v55 = vpop.f32.mrf.mxu3  ;;  %v20912_v33 = vld [vmem:[#allocation168_spill] sm:$0xff] }
 0x505   :  { %6471 = vmatpush.msra.mxu3 %v20858_v5  ;;  %6326 = vmatpush.msra.mxu0 %v20891_v15 }
 0x506   :  { %6430 = vmatpush.msra.mxu2 %v20892_v41  ;;  %6357 = vmatpush.msra.mxu1 %v20849_v48  ;;  %v5070_v48 = vadd.f32 %v5069_v0, %v5001_v18  ;;  %v4425_v56 = vadd.f32 %v16577_v14, %v4388_v9  ;;  %v11367_v14 = vld [vmem:[#allocation2 + $0x10] sm:$0xff]  ;;  %v20916_v18 = vld [vmem:[#allocation175_spill] sm:$0xff] }
 0x507   :  { %6473 = vmatpush.msra.mxu3 %v20861_v34  ;;  %6329 = vmatpush.msra.mxu0 %v20893_v61  ;;  %v5410_v51 = vpop.f32.mrf.mxu0  ;;  %v20915_v41 = vld [vmem:[#allocation172_spill] sm:$0xff] }
 0x508   :  { %6434 = vmatpush.msra.mxu2 %v20894_v19  ;;  %6359 = vmatpush.msra.mxu1 %v20852_v35  ;;  %v20897_v35 = vld [vmem:[#allocation152_spill] sm:$0xff]  ;;  %v5107_v62 = vadd.f32 %v5106_v37, %v5070_v48  ;;  %v5248_v57 = vpop.f32.mrf.mxu1  ;;  %v16676_v8 = vsub.f32 %v11367_v14, %v4425_v56  ;;  %v20917_v19 = vld [vmem:[#allocation186_spill] sm:$0xff]  ;;  %v20920_v37 = vld [vmem:[#allocation191_spill] sm:$0xff] }
 0x509   :  { %6475 = vmatpush.msra.mxu3 %v20864_v11  ;;  %6332 = vmatmul.f32.vlgmr.msra.gmra.mxu0 %v16532_v59  ;;  %v20918_v48 = vld [vmem:[#allocation176_spill] sm:$0xff] }
 0x50a   :  { %6477 = vmatmul.f32.vlgmr.msra.gmra.mxu3 %v16514_v40  ;;  %6482 = vmatpush.msrb.mxu0 %v20895_v36  ;;  %v5148_v6 = vadd.f32 %v5147_v1, %v5107_v62  ;;  %v5797_v12 = vmul.f32 %v16676_v8, %v16676_v8  ;;  %v20922_v1 = vld [vmem:[#allocation182_spill] sm:$0xff]  ;;  %v20925_v14 = vld [vmem:[#allocation188_spill] sm:$0xff] }
 0x50b   :  { %6678 = vmatpush.msrb.mxu3 %v20895_v36  ;;  %6361 = vmatpush.msra.mxu1 %v20855_v30  ;;  %v20900_v30 = vld [vmem:[#allocation156_spill] sm:$0xff] }
 0x50c   :  { %6438 = vmatpush.msra.mxu2 %v20896_v24  ;;  %6484 = vmatpush.msrb.mxu0 %v20897_v35  ;;  %v5249_v7 = vadd.f32 %v5248_v57, %v5148_v6  ;;  %v16696_v16 = vand.u32 4294901760, %v5797_v12  ;;  %v20919_v24 = vld [vmem:[#allocation178_spill] sm:$0xff]  ;;  %v20924_v57 = vld [vmem:[#allocation183_spill] sm:$0xff] }
 0x50d   :  { %6440 = vmatmul.f32.vlgmr.msra.gmra.mxu2 %v16514_v40  ;;  %6680 = vmatpush.msrb.mxu3 %v20897_v35 }
 0x50e   :  { %6625 = vmatpush.msrb.mxu2 %v20898_v50  ;;  %6363 = vmatpush.msra.mxu1 %v20858_v5  ;;  %v20903_v5 = vld [vmem:[#allocation157_spill] sm:$0xff]  ;;  %v16707_v0 = vsub.f32 %v5797_v12, %v16696_v16  ;;  %v20921_v50 = vld [vmem:[#allocation179_spill] sm:$0xff]  ;;  %v20929_v12 = vld [vmem:[#allocation210_spill] sm:$0xff] }
 0x50f   :  { %6486 = vmatpush.msrb.mxu0 %v20899_v44  ;;  %6682 = vmatpush.msrb.mxu3 %v20899_v44 }
 0x510   :  { %6628 = vmatpush.msrb.mxu2 %v20900_v30  ;;  %6365 = vmatpush.msra.mxu1 %v20861_v34  ;;  %v5302_v34 = vpop.f32.mrf.mxu2  ;;  %v5447_v61 = vpop.f32.mrf.mxu1  ;;  %v20923_v30 = vld [vmem:[#allocation198_spill] sm:$0xff]  ;;  %v16720_v6 = vand.u32 4294901760, %v16707_v0 }
 0x511   :  { %6488 = vmatpush.msrb.mxu0 %v20901_v45  ;;  %6684 = vmatpush.msrb.mxu3 %v20901_v45  ;;  %v5303_v53 = vadd.f32 %v5302_v34, %v5249_v7  ;;  %v20928_v34 = vld [vmem:[#allocation193_spill] sm:$0xff] }
 0x512   :  { %6631 = vmatpush.msrb.mxu2 %v20902_v54  ;;  %6367 = vmatpush.msra.mxu1 %v20864_v11  ;;  %v20908_v11 = vld [vmem:[#allocation174_spill] sm:$0xff]  ;;  %v20926_v54 = vld [vmem:[#allocation204_spill] sm:$0xff] }
 0x513   :  { %6490 = vmatpush.msrb.mxu0 %v20903_v5  ;;  %6371 = vmatmul.f32.vlgmr.msra.gmra.mxu1 %v16553_v21  ;;  %v5342_v15 = vadd.f32 %v5341_v55, %v5303_v53  ;;  %v6516_v53 = vsub.f32 %v16707_v0, %v16720_v6 }
 0x514   :  { %6634 = vmatpush.msrb.mxu2 %v20904_v23  ;;  %6527 = vmatpush.msrb.mxu1 %v20905_v52  ;;  %v20927_v23 = vld [vmem:[#allocation189_spill] sm:$0xff]  ;;  %v5589_v52 = vpop.f32.mrf.mxu3 }
 0x515   :  { %6686 = vmatpush.msrb.mxu3 %v20903_v5  ;;  %6492 = vmatpush.msrb.mxu0 %v20906_v43  ;;  %v5411_v9 = vadd.f32 %v5410_v51, %v5342_v15  ;;  %v20934_v51 = vld [vmem:[#allocation207_spill] sm:$0xff] }
 0x516   :  { %6637 = vmatpush.msrb.mxu2 %v20907_v13  ;;  %6533 = vmatpush.msrb.mxu1 %v20908_v11  ;;  %v20930_v13 = vld [vmem:[#allocation196_spill] sm:$0xff]  ;;  %v20931_v11 = vld [vmem:[#allocation199_spill] sm:$0xff] }
 0x517   :  { %6688 = vmatpush.msrb.mxu3 %v20906_v43  ;;  %6494 = vmatpush.msrb.mxu0 %v20909_v22  ;;  %v5448_v56 = vadd.f32 %v5447_v61, %v5411_v9  ;;  %v20936_v15 = vld [vmem:[#allocation211_spill] sm:$0xff]  ;;  %v16740_v61 = vand.u32 4294901760, %v6516_v53  ;;  %v20938_v9 = vld [vmem:[#allocation226_spill] sm:$0xff]  ;;  %v20947_v53 = vld [vmem:[#allocation165_spill] sm:$0xff] }
 0x518   :  { %6640 = vmatpush.msrb.mxu2 %v20910_v63  ;;  %6539 = vmatpush.msrb.mxu1 %v20911_v39  ;;  %v5488_v62 = vpop.f32.mrf.mxu2  ;;  %v20932_v63 = vld [vmem:[#allocation216_spill] sm:$0xff] }
 0x519   :  { %6690 = vmatpush.msrb.mxu3 %v20909_v22  ;;  %6496 = vmatpush.msrb.mxu0 %v20912_v33  ;;  %v5489_v7 = vadd.f32 %v5488_v62, %v5448_v56  ;;  %v20940_v62 = vld [vmem:[#allocation229_spill] sm:$0xff] }
 0x51a   :  { %6643 = vmatpush.msrb.mxu2 %v20913_v27  ;;  %6545 = vmatpush.msrb.mxu1 %v20914_v20  ;;  %v20933_v27 = vld [vmem:[#allocation201_spill] sm:$0xff]  ;;  %v20935_v20 = vld [vmem:[#allocation220_spill] sm:$0xff] }
 0x51b   :  { %6692 = vmatpush.msrb.mxu3 %v20912_v33  ;;  %6498 = vmatpush.msrb.mxu0 %v20915_v41  ;;  %v5590_v39 = vadd.f32 %v5589_v52, %v5489_v7  ;;  %v20945_v52 = vld [vmem:[#allocation235_spill] sm:$0xff] }
 0x51c   :  { %6646 = vmatpush.msrb.mxu2 %v20916_v18  ;;  %6551 = vmatpush.msrb.mxu1 %v20917_v19  ;;  %v20937_v18 = vld [vmem:[#allocation213_spill] sm:$0xff] }
 0x51d   :  { %6694 = vmatpush.msrb.mxu3 %v20915_v41  ;;  %6500 = vmatpush.msrb.mxu0 %v20918_v48 }
 0x51e   :  { %6649 = vmatpush.msrb.mxu2 %v20919_v24  ;;  %6557 = vmatpush.msrb.mxu1 %v20920_v37 }
 0x51f   :  { %6696 = vmatpush.msrb.mxu3 %v20918_v48  ;;  %6502 = vmatpush.msrb.mxu0 %v20921_v50 }
 0x520   :  { %6652 = vmatpush.msrb.mxu2 %v20922_v1  ;;  %6563 = vmatpush.msrb.mxu1 %v20923_v30  ;;  %v20939_v1 = vld [vmem:[#allocation159_spill] sm:$0xff]  ;;  %v20941_v30 = vld [vmem:[#allocation232_spill] sm:$0xff] }
 0x521   :  { %6698 = vmatpush.msrb.mxu3 %v20921_v50  ;;  %6504 = vmatpush.msrb.mxu0 %v20924_v57  ;;  %v5643_v55 = vpop.f32.mrf.mxu0 }
 0x522   :  { %6655 = vmatpush.msrb.mxu2 %v20925_v14  ;;  %6569 = vmatpush.msrb.mxu1 %v20926_v54  ;;  %v5644_v19 = vadd.f32 %v5643_v55, %v5590_v39  ;;  %v20942_v14 = vld [vmem:[#allocation221_spill] sm:$0xff]  ;;  %v20943_v54 = vld [vmem:[#allocation162_spill] sm:$0xff]  ;;  %v20949_v55 = vld [vmem:[#allocation243_spill] sm:$0xff] }
 0x523   :  { %6700 = vmatpush.msrb.mxu3 %v20924_v57  ;;  %6506 = vmatpush.msrb.mxu0 %v20927_v23  ;;  %v20950_v39 = vld [vmem:[#allocation244_spill] sm:$0xff] }
 0x524   :  { %6658 = vmatpush.msrb.mxu2 %v20928_v34  ;;  %6575 = vmatpush.msrb.mxu1 %v20929_v12  ;;  %v20944_v34 = vld [vmem:[#allocation187_spill] sm:$0xff] }
 0x525   :  { %6702 = vmatpush.msrb.mxu3 %v20927_v23  ;;  %6508 = vmatpush.msrb.mxu0 %v20930_v13 }
 0x526   :  { %6661 = vmatpush.msrb.mxu2 %v20931_v11  ;;  %6581 = vmatpush.msrb.mxu1 %v20932_v63  ;;  %v20946_v11 = vld [vmem:[#allocation239_spill] sm:$0xff]  ;;  %v20948_v63 = vld [vmem:[#allocation192_spill] sm:$0xff] }
 0x527   :  { %6704 = vmatpush.msrb.mxu3 %v20930_v13  ;;  %6510 = vmatpush.msrb.mxu0 %v20933_v27 }
 0x528   :  { %6664 = vmatpush.msrb.mxu2 %v20934_v51  ;;  %6587 = vmatpush.msrb.mxu1 %v20935_v20  ;;  %v20951_v51 = vld [vmem:[#allocation167_spill] sm:$0xff] }
 0x529   :  { %6706 = vmatpush.msrb.mxu3 %v20933_v27  ;;  %6512 = vmatpush.msrb.mxu0 %v20936_v15  ;;  %v5751_v56 = vpop.f32.mrf.mxu2 }
 0x52a   :  { %6667 = vmatpush.msrb.mxu2 %v20937_v18  ;;  %6593 = vmatpush.msrb.mxu1 %v20938_v9  ;;  %v5682_v24 = vpop.f32.mrf.mxu1  ;;  %v20952_v18 = vld [vmem:[#allocation203_spill] sm:$0xff]  ;;  %v20954_v9 = vld [vmem:[#allocation250_spill] sm:$0xff] }
 0x52b   :  { %6708 = vmatpush.msrb.mxu3 %v20936_v15  ;;  %6518 = vmatmul.f32.vlgmr.msrb.gmra.mxu0 %v16740_v61  ;;  %v5683_v37 = vadd.f32 %v5682_v24, %v5644_v19  ;;  %v20953_v19 = vld [vmem:[#allocation248_spill] sm:$0xff]  ;;  %v20955_v24 = vld [vmem:[#allocation169_spill] sm:$0xff] }
 0x52c   :  { %6712 = vmatmul.f32.vlgmr.msrb.gmra.mxu3 %v16720_v6  ;;  %6719 = vmatpush.msra.mxu0 %v20939_v1  ;;  %v11368_v1 = vld [vmem:[#allocation2 + $0x18] sm:$0xff] }
 0x52d   :  { %6868 = vmatpush.msra.mxu3 %v20940_v62  ;;  %6599 = vmatpush.msrb.mxu1 %v20941_v30  ;;  %v5752_v7 = vadd.f32 %v5751_v56, %v5683_v37  ;;  %v5788_v12 = vpop.f32.mrf.mxu3  ;;  %v20956_v37 = vld [vmem:[#allocation209_spill] sm:$0xff] }
 0x52e   :  { %6670 = vmatpush.msrb.mxu2 %v20942_v14  ;;  %6723 = vmatpush.msra.mxu0 %v20943_v54  ;;  %v20957_v56 = vld [vmem:[#allocation253_spill] sm:$0xff] }
 0x52f   :  { %6673 = vmatmul.f32.vlgmr.msrb.gmra.mxu2 %v16707_v0  ;;  %6874 = vmatpush.msra.mxu3 %v20945_v52  ;;  %v5789_v20 = vadd.f32 %v5788_v12, %v5752_v7  ;;  %v20958_v30 = vld [vmem:[#allocation173_spill] sm:$0xff]  ;;  %v20961_v7 = vld [vmem:[#allocation180_spill] sm:$0xff]  ;;  %v20962_v52 = vld [vmem:[#allocation222_spill] sm:$0xff] }
 0x530   :  { %6823 = vmatpush.msra.mxu2 %v20944_v34  ;;  %6605 = vmatpush.msrb.mxu1 %v20946_v11  ;;  %v20959_v14 = vld [vmem:[#allocation217_spill] sm:$0xff]  ;;  %v20964_v11 = vld [vmem:[#allocation184_spill] sm:$0xff] }
 0x531   :  { %6727 = vmatpush.msra.mxu0 %v20947_v53  ;;  %6880 = vmatpush.msra.mxu3 %v20949_v55  ;;  %v16768_v62 = vsub.f32 %v11368_v1, %v5789_v20  ;;  %v20960_v54 = vld [vmem:[#allocation257_spill] sm:$0xff]  ;;  %v20967_v55 = vld [vmem:[#allocation190_spill] sm:$0xff] }
 0x532   :  { %6825 = vmatpush.msra.mxu2 %v20948_v63  ;;  %6611 = vmatpush.msrb.mxu1 %v20950_v39  ;;  %v20965_v53 = vld [vmem:[#allocation225_spill] sm:$0xff]  ;;  %v20968_v39 = vld [vmem:[#allocation231_spill] sm:$0xff]  ;;  %v20970_v20 = vld [vmem:[#allocation194_spill] sm:$0xff] }
 0x533   :  { %6731 = vmatpush.msra.mxu0 %v20951_v51  ;;  %6886 = vmatpush.msra.mxu3 %v20953_v19  ;;  %v5798_v12 = vmul.f32 %v16768_v62, %v16768_v62  ;;  %v20971_v19 = vld [vmem:[#allocation238_spill] sm:$0xff]  ;;  %v20976_v1 = vld [vmem:[#allocation205_spill] sm:$0xff] }
 0x534   :  { %6827 = vmatpush.msra.mxu2 %v20952_v18  ;;  %6617 = vmatpush.msrb.mxu1 %v20954_v9  ;;  %v20972_v9 = vld [vmem:[#allocation272_spill] sm:$0xff] }
 0x535   :  { %6735 = vmatpush.msra.mxu0 %v20955_v24  ;;  %6619 = vmatmul.f32.vlgmr.msrb.gmra.mxu1 %v16696_v16  ;;  %v16786_v51 = vand.u32 4294901760, %v5798_v12  ;;  %v20974_v24 = vld [vmem:[#allocation242_spill] sm:$0xff] }
 0x536   :  { %6829 = vmatpush.msra.mxu2 %v20956_v37  ;;  %6786 = vmatpush.msra.mxu1 %v20895_v36  ;;  %v20963_v36 = vld [vmem:[#allocation261_spill] sm:$0xff] }
 0x537   :  { %6892 = vmatpush.msra.mxu3 %v20957_v56  ;;  %6739 = vmatpush.msra.mxu0 %v20958_v30  ;;  %v16797_v56 = vsub.f32 %v5798_v12, %v16786_v51  ;;  %v20977_v30 = vld [vmem:[#allocation247_spill] sm:$0xff]  ;;  %v20982_v12 = vld [vmem:[#allocation218_spill] sm:$0xff] }
 0x538   :  { %6831 = vmatpush.msra.mxu2 %v20959_v14  ;;  %6788 = vmatpush.msra.mxu1 %v20897_v35  ;;  %v20966_v35 = vld [vmem:[#allocation265_spill] sm:$0xff] }
 0x539   :  { %6898 = vmatpush.msra.mxu3 %v20960_v54  ;;  %6743 = vmatpush.msra.mxu0 %v20961_v7  ;;  %v20979_v54 = vld [vmem:[#allocation212_spill] sm:$0xff] }
 0x53a   :  { %6833 = vmatpush.msra.mxu2 %v20962_v52  ;;  %6790 = vmatpush.msra.mxu1 %v20899_v44  ;;  %v20969_v44 = vld [vmem:[#allocation269_spill] sm:$0xff]  ;;  %v20980_v7 = vld [vmem:[#allocation252_spill] sm:$0xff] }
 0x53b   :  { %6904 = vmatpush.msra.mxu3 %v20963_v36  ;;  %6747 = vmatpush.msra.mxu0 %v20964_v11  ;;  %v20981_v36 = vld [vmem:[#allocation281_spill] sm:$0xff]  ;;  %v20983_v11 = vld [vmem:[#allocation256_spill] sm:$0xff] }
 0x53c   :  { %6835 = vmatpush.msra.mxu2 %v20965_v53  ;;  %6792 = vmatpush.msra.mxu1 %v20901_v45  ;;  %v20973_v45 = vld [vmem:[#allocation200_spill] sm:$0xff] }
 0x53d   :  { %6910 = vmatpush.msra.mxu3 %v20966_v35  ;;  %6751 = vmatpush.msra.mxu0 %v20967_v55  ;;  %v20985_v35 = vld [vmem:[#allocation224_spill] sm:$0xff] }
 0x53e   :  { %6837 = vmatpush.msra.mxu2 %v20968_v39  ;;  %6794 = vmatpush.msra.mxu1 %v20903_v5  ;;  %v20975_v5 = vld [vmem:[#allocation276_spill] sm:$0xff] }
 0x53f   :  { %6916 = vmatpush.msra.mxu3 %v20969_v44  ;;  %6755 = vmatpush.msra.mxu0 %v20970_v20  ;;  %v20986_v55 = vld [vmem:[#allocation260_spill] sm:$0xff]  ;;  %v20988_v20 = vld [vmem:[#allocation233_spill] sm:$0xff] }
 0x540   :  { %6839 = vmatpush.msra.mxu2 %v20971_v19  ;;  %6796 = vmatpush.msra.mxu1 %v20906_v43  ;;  %v20978_v43 = vld [vmem:[#allocation278_spill] sm:$0xff] }
 0x541   :  { %6922 = vmatpush.msra.mxu3 %v20972_v9  ;;  %6759 = vmatpush.msra.mxu0 %v20973_v45  ;;  %v20989_v9 = vld [vmem:[#allocation264_spill] sm:$0xff]  ;;  %v20991_v45 = vld [vmem:[#allocation197_spill] sm:$0xff] }
 0x542   :  { %6841 = vmatpush.msra.mxu2 %v20974_v24  ;;  %6798 = vmatpush.msra.mxu1 %v20909_v22  ;;  %v16810_v22 = vand.u32 4294901760, %v16797_v56 }
 0x543   :  { %6928 = vmatpush.msra.mxu3 %v20975_v5  ;;  %6763 = vmatpush.msra.mxu0 %v20976_v1  ;;  %v20992_v5 = vld [vmem:[#allocation268_spill] sm:$0xff]  ;;  %v20993_v1 = vld [vmem:[#allocation202_spill] sm:$0xff] }
 0x544   :  { %6843 = vmatpush.msra.mxu2 %v20977_v30  ;;  %6800 = vmatpush.msra.mxu1 %v20912_v33  ;;  %v20984_v33 = vld [vmem:[#allocation282_spill] sm:$0xff]  ;;  %v6857_v44 = vsub.f32 %v16797_v56, %v16810_v22 }
 0x545   :  { %6934 = vmatpush.msra.mxu3 %v20978_v43  ;;  %6767 = vmatpush.msra.mxu0 %v20979_v54  ;;  %v20995_v43 = vld [vmem:[#allocation215_spill] sm:$0xff]  ;;  %v20996_v54 = vld [vmem:[#allocation214_spill] sm:$0xff] }
 0x546   :  { %6845 = vmatpush.msra.mxu2 %v20980_v7  ;;  %6802 = vmatpush.msra.mxu1 %v20915_v41  ;;  %v20987_v41 = vld [vmem:[#allocation284_spill] sm:$0xff] }
 0x547   :  { %6940 = vmatpush.msra.mxu3 %v20981_v36  ;;  %6771 = vmatpush.msra.mxu0 %v20982_v12  ;;  %v20998_v36 = vld [vmem:[#allocation223_spill] sm:$0xff]  ;;  %v20999_v12 = vld [vmem:[#allocation228_spill] sm:$0xff] }
 0x548   :  { %6847 = vmatpush.msra.mxu2 %v20983_v11  ;;  %6804 = vmatpush.msra.mxu1 %v20918_v48  ;;  %v20990_v48 = vld [vmem:[#allocation285_spill] sm:$0xff] }
 0x549   :  { %6946 = vmatpush.msra.mxu3 %v20984_v33  ;;  %6775 = vmatpush.msra.mxu0 %v20985_v35  ;;  %v21001_v33 = vld [vmem:[#allocation234_spill] sm:$0xff]  ;;  %v21003_v35 = vld [vmem:[#allocation236_spill] sm:$0xff] }
 0x54a   :  { %6849 = vmatpush.msra.mxu2 %v20986_v55  ;;  %6806 = vmatpush.msra.mxu1 %v20921_v50  ;;  %v16830_v50 = vand.u32 4294901760, %v6857_v44  ;;  %v21007_v44 = vld [vmem:[#allocation246_spill] sm:$0xff] }
 0x54b   :  { %6952 = vmatpush.msra.mxu3 %v20987_v41  ;;  %6779 = vmatpush.msra.mxu0 %v20988_v20  ;;  %v21005_v41 = vld [vmem:[#allocation240_spill] sm:$0xff]  ;;  %v21009_v20 = vld [vmem:[#allocation251_spill] sm:$0xff] }
 0x54c   :  { %6851 = vmatpush.msra.mxu2 %v20989_v9  ;;  %6808 = vmatpush.msra.mxu1 %v20924_v57  ;;  %v20994_v57 = vld [vmem:[#allocation208_spill] sm:$0xff] }
 0x54d   :  { %6958 = vmatpush.msra.mxu3 %v20990_v48  ;;  %6781 = vmatmul.f32.vlgmr.msra.gmra.mxu0 %v16696_v16  ;;  %v21011_v48 = vld [vmem:[#allocation255_spill] sm:$0xff] }
 0x54e   :  { %6960 = vmatmul.f32.vlgmr.msra.gmra.mxu3 %v16786_v51  ;;  %6966 = vmatpush.msrb.mxu0 %v20991_v45  ;;  %v21013_v45 = vld [vmem:[#allocation259_spill] sm:$0xff] }
 0x54f   :  { %7127 = vmatpush.msrb.mxu3 %v20944_v34  ;;  %6810 = vmatpush.msra.mxu1 %v20927_v23  ;;  %v20997_v23 = vld [vmem:[#allocation219_spill] sm:$0xff] }
 0x550   :  { %6853 = vmatpush.msra.mxu2 %v20992_v5  ;;  %6969 = vmatpush.msrb.mxu0 %v20993_v1  ;;  %v21015_v1 = vld [vmem:[#allocation263_spill] sm:$0xff] }
 0x551   :  { %6859 = vmatmul.f32.vlgmr.msra.gmra.mxu2 %v16830_v50  ;;  %7129 = vmatpush.msrb.mxu3 %v20948_v63 }
 0x552   :  { %7060 = vmatpush.msrb.mxu2 %v20994_v57  ;;  %6812 = vmatpush.msra.mxu1 %v20930_v13  ;;  %v21000_v13 = vld [vmem:[#allocation230_spill] sm:$0xff]  ;;  %v21017_v57 = vld [vmem:[#allocation267_spill] sm:$0xff] }
 0x553   :  { %6972 = vmatpush.msrb.mxu0 %v20995_v43  ;;  %7131 = vmatpush.msrb.mxu3 %v20952_v18  ;;  %v21019_v43 = vld [vmem:[#allocation271_spill] sm:$0xff] }
 0x554   :  { %7064 = vmatpush.msrb.mxu2 %v20996_v54  ;;  %6814 = vmatpush.msra.mxu1 %v20933_v27  ;;  %v21002_v27 = vld [vmem:[#allocation237_spill] sm:$0xff]  ;;  %v21021_v54 = vld [vmem:[#allocation274_spill] sm:$0xff] }
 0x555   :  { %6975 = vmatpush.msrb.mxu0 %v20997_v23  ;;  %7133 = vmatpush.msrb.mxu3 %v20956_v37  ;;  %v21025_v23 = vld [vmem:[#allocation288_spill] sm:$0xff] }
 0x556   :  { %7068 = vmatpush.msrb.mxu2 %v20998_v36  ;;  %6816 = vmatpush.msra.mxu1 %v20936_v15  ;;  %v21004_v15 = vld [vmem:[#allocation241_spill] sm:$0xff] }
 0x557   :  { %6978 = vmatpush.msrb.mxu0 %v20999_v12  ;;  %6818 = vmatmul.f32.vlgmr.msra.gmra.mxu1 %v16696_v16  ;;  %v21026_v36 = vld [vmem:[#allocation289_spill] sm:$0xff]  ;;  %v21028_v12 = vld [vmem:[#allocation291_spill] sm:$0xff] }
 0x558   :  { %7072 = vmatpush.msrb.mxu2 %v21000_v13  ;;  %7019 = vmatpush.msrb.mxu1 %v20944_v34  ;;  %v21006_v34 = vld [vmem:[#allocation245_spill] sm:$0xff] }
 0x559   :  { %7135 = vmatpush.msrb.mxu3 %v20959_v14  ;;  %6981 = vmatpush.msrb.mxu0 %v21001_v33  ;;  %v21030_v13 = vld [vmem:[#allocation293_spill] sm:$0xff]  ;;  %v21031_v33 = vld [vmem:[#allocation294_spill] sm:$0xff] }
 0x55a   :  { %7076 = vmatpush.msrb.mxu2 %v21002_v27  ;;  %7021 = vmatpush.msrb.mxu1 %v20948_v63  ;;  %v21008_v63 = vld [vmem:[#allocation249_spill] sm:$0xff]  ;;  %v21033_v27 = vld [vmem:[#allocation306_spill] sm:$0xff] }
 0x55b   :  { %7137 = vmatpush.msrb.mxu3 %v20962_v52  ;;  %6984 = vmatpush.msrb.mxu0 %v21003_v35  ;;  %v21034_v35 = vld [vmem:[#allocation297_spill] sm:$0xff] }
 0x55c   :  { %7080 = vmatpush.msrb.mxu2 %v21004_v15  ;;  %7023 = vmatpush.msrb.mxu1 %v20952_v18  ;;  %v21010_v18 = vld [vmem:[#allocation254_spill] sm:$0xff] }
 0x55d   :  { %7139 = vmatpush.msrb.mxu3 %v20965_v53  ;;  %6987 = vmatpush.msrb.mxu0 %v21005_v41  ;;  %v21036_v15 = vld [vmem:[#allocation310_spill] sm:$0xff]  ;;  %v21037_v41 = vld [vmem:[#allocation300_spill] sm:$0xff] }
 0x55e   :  { %7084 = vmatpush.msrb.mxu2 %v21006_v34  ;;  %7025 = vmatpush.msrb.mxu1 %v20956_v37  ;;  %v21012_v37 = vld [vmem:[#allocation258_spill] sm:$0xff] }
 0x55f   :  { %7141 = vmatpush.msrb.mxu3 %v20968_v39  ;;  %6990 = vmatpush.msrb.mxu0 %v21007_v44  ;;  %v21039_v34 = vld [vmem:[#allocation314_spill] sm:$0xff]  ;;  %v21040_v44 = vld [vmem:[#allocation303_spill] sm:$0xff] }
 0x560   :  { %7088 = vmatpush.msrb.mxu2 %v21008_v63  ;;  %7027 = vmatpush.msrb.mxu1 %v20959_v14  ;;  %v21014_v14 = vld [vmem:[#allocation262_spill] sm:$0xff]  ;;  %v21041_v63 = vld [vmem:[#allocation307_spill] sm:$0xff] }
 0x561   :  { %7143 = vmatpush.msrb.mxu3 %v20971_v19  ;;  %6993 = vmatpush.msrb.mxu0 %v21009_v20  ;;  %v21042_v20 = vld [vmem:[#allocation318_spill] sm:$0xff] }
 0x562   :  { %7092 = vmatpush.msrb.mxu2 %v21010_v18  ;;  %7029 = vmatpush.msrb.mxu1 %v20962_v52  ;;  %v21016_v52 = vld [vmem:[#allocation266_spill] sm:$0xff]  ;;  %v21043_v18 = vld [vmem:[#allocation305_spill] sm:$0xff] }
 0x563   :  { %7145 = vmatpush.msrb.mxu3 %v20974_v24  ;;  %6996 = vmatpush.msrb.mxu0 %v21011_v48  ;;  %v21044_v48 = vld [vmem:[#allocation311_spill] sm:$0xff] }
 0x564   :  { %7096 = vmatpush.msrb.mxu2 %v21012_v37  ;;  %7031 = vmatpush.msrb.mxu1 %v20965_v53  ;;  %v21018_v53 = vld [vmem:[#allocation270_spill] sm:$0xff]  ;;  %v21045_v37 = vld [vmem:[#allocation323_spill] sm:$0xff] }
 0x565   :  { %7147 = vmatpush.msrb.mxu3 %v20977_v30  ;;  %6999 = vmatpush.msrb.mxu0 %v21013_v45  ;;  %v21046_v45 = vld [vmem:[#allocation309_spill] sm:$0xff] }
 0x566   :  { %7100 = vmatpush.msrb.mxu2 %v21014_v14  ;;  %7033 = vmatpush.msrb.mxu1 %v20968_v39  ;;  %v21020_v39 = vld [vmem:[#allocation273_spill] sm:$0xff] }
 0x567   :  { %7149 = vmatpush.msrb.mxu3 %v20980_v7  ;;  %7002 = vmatpush.msrb.mxu0 %v21015_v1  ;;  %v21047_v14 = vld [vmem:[#allocation313_spill] sm:$0xff]  ;;  %v21048_v1 = vld [vmem:[#allocation328_spill] sm:$0xff] }
 0x568   :  { %7104 = vmatpush.msrb.mxu2 %v21016_v52  ;;  %7035 = vmatpush.msrb.mxu1 %v20971_v19  ;;  %v21022_v19 = vld [vmem:[#allocation277_spill] sm:$0xff]  ;;  %v21049_v52 = vld [vmem:[#allocation315_spill] sm:$0xff] }
 0x569   :  { %7151 = vmatpush.msrb.mxu3 %v20983_v11  ;;  %7005 = vmatpush.msrb.mxu0 %v21017_v57  ;;  %v21050_v57 = vld [vmem:[#allocation317_spill] sm:$0xff] }
 0x56a   :  { %7108 = vmatpush.msrb.mxu2 %v21018_v53  ;;  %7037 = vmatpush.msrb.mxu1 %v20974_v24  ;;  %v21023_v24 = vld [vmem:[#allocation287_spill] sm:$0xff]  ;;  %v21051_v53 = vld [vmem:[#allocation333_spill] sm:$0xff] }
 0x56b   :  { %7153 = vmatpush.msrb.mxu3 %v20986_v55  ;;  %7008 = vmatpush.msrb.mxu0 %v21019_v43  ;;  %v21052_v43 = vld [vmem:[#allocation319_spill] sm:$0xff] }
 0x56c   :  { %7112 = vmatpush.msrb.mxu2 %v21020_v39  ;;  %7039 = vmatpush.msrb.mxu1 %v20977_v30  ;;  %v21024_v30 = vld [vmem:[#allocation279_spill] sm:$0xff]  ;;  %v21053_v39 = vld [vmem:[#allocation324_spill] sm:$0xff] }
 0x56d   :  { %7155 = vmatpush.msrb.mxu3 %v20989_v9  ;;  %7011 = vmatpush.msrb.mxu0 %v21021_v54  ;;  %v21054_v54 = vld [vmem:[#allocation339_spill] sm:$0xff] }
 0x56e   :  { %7116 = vmatpush.msrb.mxu2 %v21022_v19  ;;  %7041 = vmatpush.msrb.mxu1 %v20980_v7  ;;  %v21027_v7 = vld [vmem:[#allocation290_spill] sm:$0xff]  ;;  %v21055_v19 = vld [vmem:[#allocation325_spill] sm:$0xff] }
 0x56f   :  { %7157 = vmatpush.msrb.mxu3 %v20992_v5  ;;  %7014 = vmatmul.f32.vlgmr.msrb.gmra.mxu0 %v16797_v56 }
 0x570   :  { %7159 = vmatmul.f32.vlgmr.msrb.gmra.mxu3 %v16786_v51  ;;  %7164 = vmatpush.msra.mxu0 %v21023_v24 }
 0x571   :  { %7360 = vmatpush.msra.mxu3 %v21023_v24  ;;  %7043 = vmatpush.msrb.mxu1 %v20983_v11  ;;  %v21029_v11 = vld [vmem:[#allocation292_spill] sm:$0xff] }
 0x572   :  { %7120 = vmatpush.msrb.mxu2 %v21024_v30  ;;  %7166 = vmatpush.msra.mxu0 %v21025_v23  ;;  %v21056_v30 = vld [vmem:[#allocation329_spill] sm:$0xff] }
 0x573   :  { %7122 = vmatmul.f32.vlgmr.msrb.gmra.mxu2 %v16786_v51  ;;  %7362 = vmatpush.msra.mxu3 %v21025_v23 }
 0x574   :  { %7307 = vmatpush.msra.mxu2 %v21026_v36  ;;  %7045 = vmatpush.msrb.mxu1 %v20986_v55  ;;  %v21032_v55 = vld [vmem:[#allocation296_spill] sm:$0xff]  ;;  %v21057_v36 = vld [vmem:[#allocation343_spill] sm:$0xff] }
 0x575   :  { %7168 = vmatpush.msra.mxu0 %v21027_v7  ;;  %7364 = vmatpush.msra.mxu3 %v21027_v7 }
 0x576   :  { %7310 = vmatpush.msra.mxu2 %v21028_v12  ;;  %7047 = vmatpush.msrb.mxu1 %v20989_v9  ;;  %v21035_v9 = vld [vmem:[#allocation299_spill] sm:$0xff]  ;;  %v21058_v12 = vld [vmem:[#allocation330_spill] sm:$0xff] }
 0x577   :  { %7170 = vmatpush.msra.mxu0 %v21029_v11  ;;  %7366 = vmatpush.msra.mxu3 %v21029_v11 }
 0x578   :  { %7313 = vmatpush.msra.mxu2 %v21030_v13  ;;  %7049 = vmatpush.msrb.mxu1 %v20992_v5  ;;  %v21038_v5 = vld [vmem:[#allocation302_spill] sm:$0xff] }
 0x579   :  { %7172 = vmatpush.msra.mxu0 %v21031_v33  ;;  %7053 = vmatmul.f32.vlgmr.msrb.gmra.mxu1 %v16810_v22  ;;  %v21059_v13 = vld [vmem:[#allocation334_spill] sm:$0xff] }
 0x57a   :  { %7316 = vmatpush.msra.mxu2 %v21032_v55  ;;  %7209 = vmatpush.msra.mxu1 %v21033_v27  ;;  %v21060_v55 = vld [vmem:[#allocation349_spill] sm:$0xff]  ;;  %v21061_v27 = vld [vmem:[#allocation331_spill] sm:$0xff] }
 0x57b   :  { %7368 = vmatpush.msra.mxu3 %v21031_v33  ;;  %7174 = vmatpush.msra.mxu0 %v21034_v35 }
 0x57c   :  { %7319 = vmatpush.msra.mxu2 %v21035_v9  ;;  %7215 = vmatpush.msra.mxu1 %v21036_v15  ;;  %v21062_v9 = vld [vmem:[#allocation340_spill] sm:$0xff]  ;;  %v21063_v15 = vld [vmem:[#allocation357_spill] sm:$0xff] }
 0x57d   :  { %7370 = vmatpush.msra.mxu3 %v21034_v35  ;;  %7176 = vmatpush.msra.mxu0 %v21037_v41 }
 0x57e   :  { %7322 = vmatpush.msra.mxu2 %v21038_v5  ;;  %7221 = vmatpush.msra.mxu1 %v21039_v34  ;;  %v21064_v5 = vld [vmem:[#allocation337_spill] sm:$0xff]  ;;  %v21065_v34 = vld [vmem:[#allocation344_spill] sm:$0xff] }
 0x57f   :  { %7372 = vmatpush.msra.mxu3 %v21037_v41  ;;  %7178 = vmatpush.msra.mxu0 %v21040_v44 }
 0x580   :  { %7325 = vmatpush.msra.mxu2 %v21041_v63  ;;  %7227 = vmatpush.msra.mxu1 %v21042_v20  ;;  %v21066_v63 = vld [vmem:[#allocation362_spill] sm:$0xff]  ;;  %v21067_v20 = vld [vmem:[#allocation295_spill] sm:$0xff] }
 0x581   :  { %7374 = vmatpush.msra.mxu3 %v21040_v44  ;;  %7180 = vmatpush.msra.mxu0 %v21043_v18 }
 0x582   :  { %7328 = vmatpush.msra.mxu2 %v21044_v48  ;;  %7233 = vmatpush.msra.mxu1 %v21045_v37  ;;  %v21068_v48 = vld [vmem:[#allocation365_spill] sm:$0xff]  ;;  %v21069_v37 = vld [vmem:[#allocation367_spill] sm:$0xff] }
 0x583   :  { %7376 = vmatpush.msra.mxu3 %v21043_v18  ;;  %7182 = vmatpush.msra.mxu0 %v21046_v45 }
 0x584   :  { %7331 = vmatpush.msra.mxu2 %v21047_v14  ;;  %7239 = vmatpush.msra.mxu1 %v21048_v1  ;;  %v21070_v14 = vld [vmem:[#allocation350_spill] sm:$0xff] }
 0x585   :  { %7378 = vmatpush.msra.mxu3 %v21046_v45  ;;  %7184 = vmatpush.msra.mxu0 %v21049_v52  ;;  %v21071_v1 = vld [vmem:[#allocation298_spill] sm:$0xff] }
 0x586   :  { %7334 = vmatpush.msra.mxu2 %v21050_v57  ;;  %7245 = vmatpush.msra.mxu1 %v21051_v53  ;;  %v21072_v57 = vld [vmem:[#allocation322_spill] sm:$0xff] }
 0x587   :  { %7380 = vmatpush.msra.mxu3 %v21049_v52  ;;  %7186 = vmatpush.msra.mxu0 %v21052_v43  ;;  %v21073_v53 = vld [vmem:[#allocation370_spill] sm:$0xff] }
 0x588   :  { %7337 = vmatpush.msra.mxu2 %v21053_v39  ;;  %7251 = vmatpush.msra.mxu1 %v21054_v54  ;;  %v21074_v39 = vld [vmem:[#allocation372_spill] sm:$0xff]  ;;  %v21075_v54 = vld [vmem:[#allocation301_spill] sm:$0xff] }
 0x589   :  { %7382 = vmatpush.msra.mxu3 %v21052_v43  ;;  %7188 = vmatpush.msra.mxu0 %v21055_v19 }
 0x58a   :  { %7340 = vmatpush.msra.mxu2 %v21056_v30  ;;  %7257 = vmatpush.msra.mxu1 %v21057_v36  ;;  %v21076_v30 = vld [vmem:[#allocation327_spill] sm:$0xff]  ;;  %v21077_v36 = vld [vmem:[#allocation377_spill] sm:$0xff] }
 0x58b   :  { %7384 = vmatpush.msra.mxu3 %v21055_v19  ;;  %7190 = vmatpush.msra.mxu0 %v21058_v12 }
 0x58c   :  { %7343 = vmatpush.msra.mxu2 %v21059_v13  ;;  %7263 = vmatpush.msra.mxu1 %v21060_v55  ;;  %v21078_v13 = vld [vmem:[#allocation375_spill] sm:$0xff]  ;;  %v21079_v55 = vld [vmem:[#allocation304_spill] sm:$0xff] }
 0x58d   :  { %7386 = vmatpush.msra.mxu3 %v21058_v12  ;;  %7192 = vmatpush.msra.mxu0 %v21061_v27 }
 0x58e   :  { %7346 = vmatpush.msra.mxu2 %v21062_v9  ;;  %7269 = vmatpush.msra.mxu1 %v21063_v15  ;;  %v21080_v9 = vld [vmem:[#allocation336_spill] sm:$0xff]  ;;  %v21081_v15 = vld [vmem:[#allocation382_spill] sm:$0xff] }
 0x58f   :  { %7388 = vmatpush.msra.mxu3 %v21061_v27  ;;  %7194 = vmatpush.msra.mxu0 %v21064_v5 }
 0x590   :  { %7349 = vmatpush.msra.mxu2 %v21065_v34  ;;  %7275 = vmatpush.msra.mxu1 %v21066_v63  ;;  %v21082_v34 = vld [vmem:[#allocation380_spill] sm:$0xff] }
 0x591   :  { %7390 = vmatpush.msra.mxu3 %v21064_v5  ;;  %7200 = vmatmul.f32.vlgmr.msra.gmra.mxu0 %v16446_v60  ;;  %v21083_v63 = vld [vmem:[#allocation308_spill] sm:$0xff] }
 0x592   :  { %7394 = vmatmul.f32.vlgmr.msra.gmra.mxu3 %v16424_v4  ;;  %7401 = vmatpush.msrb.mxu0 %v21067_v20  ;;  %v21084_v20 = vld [vmem:[#allocation342_spill] sm:$0xff] }
 0x593   :  { %7550 = vmatpush.msrb.mxu3 %v21068_v48  ;;  %7281 = vmatpush.msra.mxu1 %v21069_v37  ;;  %v21085_v48 = vld [vmem:[#allocation385_spill] sm:$0xff]  ;;  %v21086_v37 = vld [vmem:[#allocation312_spill] sm:$0xff] }
 0x594   :  { %7352 = vmatpush.msra.mxu2 %v21070_v14  ;;  %7405 = vmatpush.msrb.mxu0 %v21071_v1  ;;  %v21087_v14 = vld [vmem:[#allocation348_spill] sm:$0xff]  ;;  %v21088_v1 = vld [vmem:[#allocation389_spill] sm:$0xff] }
 0x595   :  { %7355 = vmatmul.f32.vlgmr.msra.gmra.mxu2 %v16411_v38  ;;  %7556 = vmatpush.msrb.mxu3 %v21073_v53  ;;  %v21089_v53 = vld [vmem:[#allocation316_spill] sm:$0xff] }
 0x596   :  { %7505 = vmatpush.msrb.mxu2 %v21072_v57  ;;  %7287 = vmatpush.msra.mxu1 %v21074_v39  ;;  %v21090_v39 = vld [vmem:[#allocation354_spill] sm:$0xff] }
 0x597   :  { %7409 = vmatpush.msrb.mxu0 %v21075_v54  ;;  %7562 = vmatpush.msrb.mxu3 %v21077_v36  ;;  %v21091_v54 = vld [vmem:[#allocation393_spill] sm:$0xff]  ;;  %v21092_v36 = vld [vmem:[#allocation320_spill] sm:$0xff] }
 0x598   :  { %7507 = vmatpush.msrb.mxu2 %v21076_v30  ;;  %7293 = vmatpush.msra.mxu1 %v21078_v13  ;;  %v21094_v13 = vld [vmem:[#allocation397_spill] sm:$0xff] }
 0x599   :  { %7413 = vmatpush.msrb.mxu0 %v21079_v55  ;;  %7568 = vmatpush.msrb.mxu3 %v21081_v15  ;;  %v21095_v55 = vld [vmem:[#allocation321_spill] sm:$0xff] }
 0x59a   :  { %7509 = vmatpush.msrb.mxu2 %v21080_v9  ;;  %7299 = vmatpush.msra.mxu1 %v21082_v34  ;;  %v21097_v15 = vld [vmem:[#allocation401_spill] sm:$0xff]  ;;  %v21098_v34 = vld [vmem:[#allocation326_spill] sm:$0xff] }
 0x59b   :  { %7417 = vmatpush.msrb.mxu0 %v21083_v63  ;;  %7301 = vmatmul.f32.vlgmr.msra.gmra.mxu1 %v16398_v49  ;;  %v21100_v63 = vld [vmem:[#allocation404_spill] sm:$0xff] }
 0x59c   :  { %7511 = vmatpush.msrb.mxu2 %v21084_v20  ;;  %7468 = vmatpush.msrb.mxu1 %v21023_v24  ;;  %v21093_v24 = vld [vmem:[#allocation356_spill] sm:$0xff] }
 0x59d   :  { %7574 = vmatpush.msrb.mxu3 %v21085_v48  ;;  %7421 = vmatpush.msrb.mxu0 %v21086_v37  ;;  %v21101_v48 = vld [vmem:[#allocation335_spill] sm:$0xff] }
 0x59e   :  { %7513 = vmatpush.msrb.mxu2 %v21087_v14  ;;  %7470 = vmatpush.msrb.mxu1 %v21025_v23  ;;  %v21096_v23 = vld [vmem:[#allocation361_spill] sm:$0xff]  ;;  %v21103_v37 = vld [vmem:[#allocation407_spill] sm:$0xff] }
 0x59f   :  { %7580 = vmatpush.msrb.mxu3 %v21088_v1  ;;  %7425 = vmatpush.msrb.mxu0 %v21089_v53  ;;  %v21104_v1 = vld [vmem:[#allocation341_spill] sm:$0xff] }
 0x5a0   :  { %7515 = vmatpush.msrb.mxu2 %v21090_v39  ;;  %7472 = vmatpush.msrb.mxu1 %v21027_v7  ;;  %v21099_v7 = vld [vmem:[#allocation369_spill] sm:$0xff] }
 0x5a1   :  { %7586 = vmatpush.msrb.mxu3 %v21091_v54  ;;  %7429 = vmatpush.msrb.mxu0 %v21092_v36  ;;  %v21106_v53 = vld [vmem:[#allocation409_spill] sm:$0xff]  ;;  %v21107_v54 = vld [vmem:[#allocation346_spill] sm:$0xff]  ;;  %v21109_v36 = vld [vmem:[#allocation411_spill] sm:$0xff] }
 0x5a2   :  { %7517 = vmatpush.msrb.mxu2 %v21093_v24  ;;  %7474 = vmatpush.msrb.mxu1 %v21029_v11  ;;  %v21102_v11 = vld [vmem:[#allocation374_spill] sm:$0xff] }
 0x5a3   :  { %7592 = vmatpush.msrb.mxu3 %v21094_v13  ;;  %7433 = vmatpush.msrb.mxu0 %v21095_v55  ;;  %v21110_v13 = vld [vmem:[#allocation352_spill] sm:$0xff] }
 0x5a4   :  { %7519 = vmatpush.msrb.mxu2 %v21096_v23  ;;  %7476 = vmatpush.msrb.mxu1 %v21031_v33  ;;  %v21105_v33 = vld [vmem:[#allocation379_spill] sm:$0xff]  ;;  %v21112_v55 = vld [vmem:[#allocation412_spill] sm:$0xff] }
 0x5a5   :  { %7598 = vmatpush.msrb.mxu3 %v21097_v15  ;;  %7437 = vmatpush.msrb.mxu0 %v21098_v34  ;;  %v21113_v15 = vld [vmem:[#allocation355_spill] sm:$0xff]  ;;  %v21115_v34 = vld [vmem:[#allocation413_spill] sm:$0xff] }
 0x5a6   :  { %7521 = vmatpush.msrb.mxu2 %v21099_v7  ;;  %7478 = vmatpush.msrb.mxu1 %v21034_v35  ;;  %v21108_v35 = vld [vmem:[#allocation384_spill] sm:$0xff] }
 0x5a7   :  { %7604 = vmatpush.msrb.mxu3 %v21100_v63  ;;  %7441 = vmatpush.msrb.mxu0 %v21101_v48  ;;  %v21116_v63 = vld [vmem:[#allocation360_spill] sm:$0xff]  ;;  %v21118_v48 = vld [vmem:[#allocation414_spill] sm:$0xff] }
 0x5a8   :  { %7523 = vmatpush.msrb.mxu2 %v21102_v11  ;;  %7480 = vmatpush.msrb.mxu1 %v21037_v41  ;;  %v21111_v41 = vld [vmem:[#allocation388_spill] sm:$0xff] }
 0x5a9   :  { %7610 = vmatpush.msrb.mxu3 %v21103_v37  ;;  %7445 = vmatpush.msrb.mxu0 %v21104_v1  ;;  %v5837_v37 = vpop.f32.mrf.mxu0  ;;  %v21121_v1 = vld [vmem:[#allocation338_spill] sm:$0xff] }
 0x5aa   :  { %7525 = vmatpush.msrb.mxu2 %v21105_v33  ;;  %7482 = vmatpush.msrb.mxu1 %v21040_v44  ;;  %v21114_v44 = vld [vmem:[#allocation392_spill] sm:$0xff] }
 0x5ab   :  { %7616 = vmatpush.msrb.mxu3 %v21106_v53  ;;  %7449 = vmatpush.msrb.mxu0 %v21107_v54  ;;  %v5938_v53 = vpop.f32.mrf.mxu1  ;;  %v21123_v54 = vld [vmem:[#allocation347_spill] sm:$0xff] }
 0x5ac   :  { %7527 = vmatpush.msrb.mxu2 %v21108_v35  ;;  %7484 = vmatpush.msrb.mxu1 %v21043_v18  ;;  %v21117_v18 = vld [vmem:[#allocation396_spill] sm:$0xff] }
 0x5ad   :  { %7622 = vmatpush.msrb.mxu3 %v21109_v36  ;;  %7453 = vmatpush.msrb.mxu0 %v21110_v13  ;;  %v5838_v36 = vadd.f32 1e-05, %v5837_v37  ;;  %v21124_v13 = vld [vmem:[#allocation351_spill] sm:$0xff]  ;;  %v21132_v37 = vld [vmem:[#allocation373_spill] sm:$0xff] }
 0x5ae   :  { %7529 = vmatpush.msrb.mxu2 %v21111_v41  ;;  %7486 = vmatpush.msrb.mxu1 %v21046_v45  ;;  %v21119_v45 = vld [vmem:[#allocation332_spill] sm:$0xff] }
 0x5af   :  { %7628 = vmatpush.msrb.mxu3 %v21112_v55  ;;  %7457 = vmatpush.msrb.mxu0 %v21113_v15  ;;  %v5939_v55 = vadd.f32 %v5938_v53, %v5838_v36  ;;  %v21126_v15 = vld [vmem:[#allocation358_spill] sm:$0xff]  ;;  %v21133_v53 = vld [vmem:[#allocation371_spill] sm:$0xff] }
 0x5b0   :  { %7531 = vmatpush.msrb.mxu2 %v21114_v44  ;;  %7488 = vmatpush.msrb.mxu1 %v21049_v52  ;;  %v21120_v52 = vld [vmem:[#allocation400_spill] sm:$0xff] }
 0x5b1   :  { %7634 = vmatpush.msrb.mxu3 %v21115_v34  ;;  %7461 = vmatpush.msrb.mxu0 %v21116_v63  ;;  %v21127_v34 = vld [vmem:[#allocation359_spill] sm:$0xff]  ;;  %v5992_v63 = vpop.f32.mrf.mxu2 }
 0x5b2   :  { %7533 = vmatpush.msrb.mxu2 %v21117_v18  ;;  %7490 = vmatpush.msrb.mxu1 %v21052_v43  ;;  %v21122_v43 = vld [vmem:[#allocation345_spill] sm:$0xff] }
 0x5b3   :  { %7640 = vmatpush.msrb.mxu3 %v21118_v48  ;;  %7463 = vmatmul.f32.vlgmr.msrb.gmra.mxu0 %v16398_v49  ;;  %v21129_v48 = vld [vmem:[#allocation364_spill] sm:$0xff]  ;;  %v6137_v36 = vpop.f32.mrf.mxu1 }
 0x5b4   :  { %7642 = vmatmul.f32.vlgmr.msrb.gmra.mxu3 %v16514_v40  ;;  %7648 = vmatpush.msra.mxu0 %v21119_v45  ;;  %v21130_v45 = vld [vmem:[#allocation368_spill] sm:$0xff] }
 0x5b5   :  { %7809 = vmatpush.msra.mxu3 %v21072_v57  ;;  %7492 = vmatpush.msrb.mxu1 %v21055_v19  ;;  %v21125_v19 = vld [vmem:[#allocation353_spill] sm:$0xff] }
 0x5b6   :  { %7535 = vmatpush.msrb.mxu2 %v21120_v52  ;;  %7651 = vmatpush.msra.mxu0 %v21121_v1  ;;  %v6031_v1 = vpop.f32.mrf.mxu3 }
 0x5b7   :  { %7541 = vmatmul.f32.vlgmr.msrb.gmra.mxu2 %v16581_v10  ;;  %7811 = vmatpush.msra.mxu3 %v21076_v30 }
 0x5b8   :  { %7742 = vmatpush.msra.mxu2 %v21122_v43  ;;  %7494 = vmatpush.msrb.mxu1 %v21058_v12  ;;  %v21128_v12 = vld [vmem:[#allocation363_spill] sm:$0xff]  ;;  %v6100_v43 = vpop.f32.mrf.mxu0 }
 0x5b9   :  { %7654 = vmatpush.msra.mxu0 %v21123_v54  ;;  %7813 = vmatpush.msra.mxu3 %v21080_v9  ;;  %v21134_v54 = vld [vmem:[#allocation376_spill] sm:$0xff] }
 0x5ba   :  { %7746 = vmatpush.msra.mxu2 %v21124_v13  ;;  %7496 = vmatpush.msrb.mxu1 %v21061_v27  ;;  %v5993_v27 = vadd.f32 %v5992_v63, %v5939_v55  ;;  %v21135_v13 = vld [vmem:[#allocation378_spill] sm:$0xff]  ;;  %v21137_v55 = vld [vmem:[#allocation383_spill] sm:$0xff] }
 0x5bb   :  { %7657 = vmatpush.msra.mxu0 %v21125_v19  ;;  %7815 = vmatpush.msra.mxu3 %v21084_v20  ;;  %v21136_v19 = vld [vmem:[#allocation381_spill] sm:$0xff]  ;;  %v21141_v63 = vld [vmem:[#allocation391_spill] sm:$0xff] }
 0x5bc   :  { %7750 = vmatpush.msra.mxu2 %v21126_v15  ;;  %7498 = vmatpush.msrb.mxu1 %v21064_v5  ;;  %v21131_v5 = vld [vmem:[#allocation366_spill] sm:$0xff] }
 0x5bd   :  { %7660 = vmatpush.msra.mxu0 %v21127_v34  ;;  %7500 = vmatmul.f32.vlgmr.msrb.gmra.mxu1 %v16398_v49  ;;  %v21138_v15 = vld [vmem:[#allocation386_spill] sm:$0xff] }
 0x5be   :  { %7754 = vmatpush.msra.mxu2 %v21128_v12  ;;  %7701 = vmatpush.msra.mxu1 %v21072_v57  ;;  %v6032_v57 = vadd.f32 %v6031_v1, %v5993_v27  ;;  %v21140_v34 = vld [vmem:[#allocation390_spill] sm:$0xff]  ;;  %v6178_v12 = vpop.f32.mrf.mxu2 }
 0x5bf   :  { %7817 = vmatpush.msra.mxu3 %v21087_v14  ;;  %7663 = vmatpush.msra.mxu0 %v21129_v48  ;;  %v21142_v27 = vld [vmem:[#allocation394_spill] sm:$0xff] }
 0x5c0   :  { %7758 = vmatpush.msra.mxu2 %v21130_v45  ;;  %7703 = vmatpush.msra.mxu1 %v21076_v30  ;;  %v6101_v30 = vadd.f32 %v6100_v43, %v6032_v57  ;;  %v21144_v48 = vld [vmem:[#allocation398_spill] sm:$0xff]  ;;  %v6279_v45 = vpop.f32.mrf.mxu3  ;;  %v6372_v43 = vpop.f32.mrf.mxu1  ;;  %v21147_v57 = vld [vmem:[#allocation403_spill] sm:$0xff] }
 0x5c1   :  { %7819 = vmatpush.msra.mxu3 %v21090_v39  ;;  %7666 = vmatpush.msra.mxu0 %v21131_v5  ;;  %v6333_v5 = vpop.f32.mrf.mxu0  ;;  %v21146_v1 = vld [vmem:[#allocation402_spill] sm:$0xff] }
 0x5c2   :  { %7762 = vmatpush.msra.mxu2 %v21132_v37  ;;  %7705 = vmatpush.msra.mxu1 %v21080_v9  ;;  %v6138_v9 = vadd.f32 %v6137_v36, %v6101_v30  ;;  %v21145_v37 = vld [vmem:[#allocation399_spill] sm:$0xff]  ;;  %v21150_v36 = vld [vmem:[#allocation408_spill] sm:$0xff] }
 0x5c3   :  { %7821 = vmatpush.msra.mxu3 %v21093_v24  ;;  %7669 = vmatpush.msra.mxu0 %v21133_v53  ;;  %v21148_v53 = vld [vmem:[#allocation405_spill] sm:$0xff]  ;;  %v21151_v30 = vld [vmem:[#allocation415_spill] sm:$0xff] }
 0x5c4   :  { %7766 = vmatpush.msra.mxu2 %v21134_v54  ;;  %7707 = vmatpush.msra.mxu1 %v21084_v20  ;;  %v21139_v20 = vld [vmem:[#allocation387_spill] sm:$0xff]  ;;  %v21149_v54 = vld [vmem:[#allocation406_spill] sm:$0xff] }
 0x5c5   :  { %7823 = vmatpush.msra.mxu3 %v21096_v23  ;;  %7672 = vmatpush.msra.mxu0 %v21135_v13  ;;  %v21152_v13 = vld [vmem:[#allocation410_spill] sm:$0xff] }
 0x5c6   :  { %7770 = vmatpush.msra.mxu2 %v21136_v19  ;;  %7709 = vmatpush.msra.mxu1 %v21087_v14  ;;  %v6179_v14 = vadd.f32 %v6178_v12, %v6138_v9  ;;  %v21153_v19 = vld [vmem:[#allocation416_spill] sm:$0xff]  ;;  %v21157_v12 = vld [vmem:[#allocation419_spill] sm:$0xff] }
 0x5c7   :  { %7825 = vmatpush.msra.mxu3 %v21099_v7  ;;  %7675 = vmatpush.msra.mxu0 %v21137_v55 }
 0x5c8   :  { %7774 = vmatpush.msra.mxu2 %v21138_v15  ;;  %7711 = vmatpush.msra.mxu1 %v21090_v39  ;;  %v21143_v39 = vld [vmem:[#allocation395_spill] sm:$0xff]  ;;  %v6478_v9 = vpop.f32.mrf.mxu3  ;;  %v21155_v15 = vld [vmem:[#allocation418_spill] sm:$0xff] }
 0x5c9   :  { %7827 = vmatpush.msra.mxu3 %v21102_v11  ;;  %7678 = vmatpush.msra.mxu0 %v21139_v20  ;;  %v6519_v55 = vpop.f32.mrf.mxu0 }
 0x5ca   :  { %7778 = vmatpush.msra.mxu2 %v21140_v34  ;;  %7713 = vmatpush.msra.mxu1 %v21093_v24  ;;  %v6280_v24 = vadd.f32 %v6279_v45, %v6179_v14  ;;  %v21156_v34 = vld [vmem:[#allocation420_spill] sm:$0xff]  ;;  %v21163_v45 = vld [vmem:[#allocation427_spill] sm:$0xff] }
 0x5cb   :  { %7829 = vmatpush.msra.mxu3 %v21105_v33  ;;  %7681 = vmatpush.msra.mxu0 %v21141_v63  ;;  %v21158_v63 = vld [vmem:[#allocation422_spill] sm:$0xff] }
 0x5cc   :  { %7782 = vmatpush.msra.mxu2 %v21142_v27  ;;  %7715 = vmatpush.msra.mxu1 %v21096_v23  ;;  %v6334_v23 = vadd.f32 %v6333_v5, %v6280_v24  ;;  %v21164_v24 = vld [vmem:[#allocation437_spill] sm:$0xff] }
 0x5cd   :  { %7831 = vmatpush.msra.mxu3 %v21108_v35  ;;  %7684 = vmatpush.msra.mxu0 %v21143_v39  ;;  %v21160_v39 = vld [vmem:[#allocation424_spill] sm:$0xff] }
 0x5ce   :  { %7786 = vmatpush.msra.mxu2 %v21144_v48  ;;  %7717 = vmatpush.msra.mxu1 %v21099_v7  ;;  %v6373_v7 = vadd.f32 %v6372_v43, %v6334_v23  ;;  %v21161_v48 = vld [vmem:[#allocation434_spill] sm:$0xff]  ;;  %v21167_v43 = vld [vmem:[#allocation441_spill] sm:$0xff]  ;;  %v21168_v23 = vld [vmem:[#allocation432_spill] sm:$0xff] }
 0x5cf   :  { %7833 = vmatpush.msra.mxu3 %v21111_v41  ;;  %7687 = vmatpush.msra.mxu0 %v21145_v37  ;;  %v21165_v37 = vld [vmem:[#allocation428_spill] sm:$0xff] }
 0x5d0   :  { %7790 = vmatpush.msra.mxu2 %v21146_v1  ;;  %7719 = vmatpush.msra.mxu1 %v21102_v11  ;;  %v6441_v11 = vpop.f32.mrf.mxu2  ;;  %v21166_v1 = vld [vmem:[#allocation431_spill] sm:$0xff] }
 0x5d1   :  { %7835 = vmatpush.msra.mxu3 %v21114_v44  ;;  %7690 = vmatpush.msra.mxu0 %v21147_v57  ;;  %v21169_v57 = vld [vmem:[#allocation435_spill] sm:$0xff] }
 0x5d2   :  { %7794 = vmatpush.msra.mxu2 %v21148_v53  ;;  %7721 = vmatpush.msra.mxu1 %v21105_v33  ;;  %v6442_v33 = vadd.f32 %v6441_v11, %v6373_v7  ;;  %v6713_v53 = vpop.f32.mrf.mxu3  ;;  %v6782_v7 = vpop.f32.mrf.mxu0  ;;  %v21171_v11 = vld [vmem:[#allocation436_spill] sm:$0xff] }
 0x5d3   :  { %7837 = vmatpush.msra.mxu3 %v21117_v18  ;;  %7693 = vmatpush.msra.mxu0 %v21149_v54  ;;  %v21170_v54 = vld [vmem:[#allocation445_spill] sm:$0xff] }
 0x5d4   :  { %7798 = vmatpush.msra.mxu2 %v21150_v36  ;;  %7723 = vmatpush.msra.mxu1 %v21108_v35  ;;  %v21154_v35 = vld [vmem:[#allocation417_spill] sm:$0xff]  ;;  %v6479_v20 = vadd.f32 %v6478_v9, %v6442_v33  ;;  %v21172_v33 = vld [vmem:[#allocation438_spill] sm:$0xff] }
 0x5d5   :  { %7839 = vmatpush.msra.mxu3 %v21120_v52  ;;  %7696 = vmatmul.f32.vlgmr.msra.gmra.mxu0 %v16532_v59 }
 0x5d6   :  { %7841 = vmatmul.f32.vlgmr.msra.gmra.mxu3 %v16514_v40  ;;  %7846 = vmatpush.msrb.mxu0 %v21151_v30  ;;  %v6520_v14 = vadd.f32 %v6519_v55, %v6479_v20  ;;  %v21174_v55 = vld [vmem:[#allocation439_spill] sm:$0xff]  ;;  %v21175_v20 = vld [vmem:[#allocation442_spill] sm:$0xff] }
 0x5d7   :  { %8042 = vmatpush.msrb.mxu3 %v21151_v30  ;;  %7725 = vmatpush.msra.mxu1 %v21111_v41  ;;  %v6620_v41 = vpop.f32.mrf.mxu1 }
 0x5d8   :  { %7802 = vmatpush.msra.mxu2 %v21152_v13  ;;  %7848 = vmatpush.msrb.mxu0 %v21153_v19  ;;  %v6621_v27 = vadd.f32 %v6620_v41, %v6520_v14  ;;  %v6674_v5 = vpop.f32.mrf.mxu2  ;;  %v21177_v14 = vld [vmem:[#allocation443_spill] sm:$0xff] }
 0x5d9   :  { %7804 = vmatmul.f32.vlgmr.msra.gmra.mxu2 %v16514_v40  ;;  %8044 = vmatpush.msrb.mxu3 %v21153_v19 }
 0x5da   :  { %7989 = vmatpush.msrb.mxu2 %v21154_v35  ;;  %7727 = vmatpush.msra.mxu1 %v21114_v44  ;;  %v21159_v44 = vld [vmem:[#allocation421_spill] sm:$0xff] }
 0x5db   :  { %7850 = vmatpush.msrb.mxu0 %v21155_v15  ;;  %8046 = vmatpush.msrb.mxu3 %v21155_v15  ;;  %v21173_v35 = vld [vmem:[#allocation449_spill] sm:$0xff] }
 0x5dc   :  { %7992 = vmatpush.msrb.mxu2 %v21156_v34  ;;  %7729 = vmatpush.msra.mxu1 %v21117_v18  ;;  %v21162_v18 = vld [vmem:[#allocation425_spill] sm:$0xff]  ;;  %v21176_v34 = vld [vmem:[#allocation455_spill] sm:$0xff] }
 0x5dd   :  { %7852 = vmatpush.msrb.mxu0 %v21157_v12  ;;  %8048 = vmatpush.msrb.mxu3 %v21157_v12 }
 0x5de   :  { %7995 = vmatpush.msrb.mxu2 %v21158_v63  ;;  %7731 = vmatpush.msra.mxu1 %v21120_v52  ;;  %v6675_v52 = vadd.f32 %v6674_v5, %v6621_v27  ;;  %v21178_v63 = vld [vmem:[#allocation446_spill] sm:$0xff]  ;;  %v21179_v27 = vld [vmem:[#allocation460_spill] sm:$0xff] }
 0x5df   :  { %7854 = vmatpush.msrb.mxu0 %v21159_v44  ;;  %7735 = vmatmul.f32.vlgmr.msra.gmra.mxu1 %v16553_v21  ;;  %v6819_v13 = vpop.f32.mrf.mxu1  ;;  %v21182_v5 = vld [vmem:[#allocation466_spill] sm:$0xff] }
 0x5e0   :  { %7998 = vmatpush.msrb.mxu2 %v21160_v39  ;;  %7891 = vmatpush.msrb.mxu1 %v21161_v48  ;;  %v6714_v36 = vadd.f32 %v6713_v53, %v6675_v52  ;;  %v21180_v39 = vld [vmem:[#allocation447_spill] sm:$0xff]  ;;  %v21183_v52 = vld [vmem:[#allocation452_spill] sm:$0xff]  ;;  %v21187_v53 = vld [vmem:[#allocation461_spill] sm:$0xff] }
 0x5e1   :  { %8050 = vmatpush.msrb.mxu3 %v21159_v44  ;;  %7856 = vmatpush.msrb.mxu0 %v21162_v18  ;;  %v21181_v48 = vld [vmem:[#allocation451_spill] sm:$0xff] }
 0x5e2   :  { %8001 = vmatpush.msrb.mxu2 %v21163_v45  ;;  %7897 = vmatpush.msrb.mxu1 %v21164_v24  ;;  %v6783_v9 = vadd.f32 %v6782_v7, %v6714_v36  ;;  %v6860_v45 = vpop.f32.mrf.mxu2  ;;  %v6961_v7 = vpop.f32.mrf.mxu3 }
 0x5e3   :  { %8052 = vmatpush.msrb.mxu3 %v21162_v18  ;;  %7858 = vmatpush.msrb.mxu0 %v21165_v37 }
 0x5e4   :  { %8004 = vmatpush.msrb.mxu2 %v21166_v1  ;;  %7903 = vmatpush.msrb.mxu1 %v21167_v43  ;;  %v6820_v41 = vadd.f32 %v6819_v13, %v6783_v9  ;;  %v21184_v1 = vld [vmem:[#allocation456_spill] sm:$0xff]  ;;  %v21185_v43 = vld [vmem:[#allocation471_spill] sm:$0xff]  ;;  %v21191_v9 = vld [vmem:[#allocation481_spill] sm:$0xff] }
 0x5e5   :  { %8054 = vmatpush.msrb.mxu3 %v21165_v37  ;;  %7860 = vmatpush.msrb.mxu0 %v21168_v23  ;;  %v21190_v13 = vld [vmem:[#allocation468_spill] sm:$0xff] }
 0x5e6   :  { %8007 = vmatpush.msrb.mxu2 %v21169_v57  ;;  %7909 = vmatpush.msrb.mxu1 %v21170_v54  ;;  %v6861_v24 = vadd.f32 %v6860_v45, %v6820_v41  ;;  %v21186_v57 = vld [vmem:[#allocation458_spill] sm:$0xff]  ;;  %v21188_v54 = vld [vmem:[#allocation477_spill] sm:$0xff]  ;;  %v21195_v45 = vld [vmem:[#allocation423_spill] sm:$0xff] }
 0x5e7   :  { %8056 = vmatpush.msrb.mxu3 %v21168_v23  ;;  %7862 = vmatpush.msrb.mxu0 %v21171_v11 }
 0x5e8   :  { %8010 = vmatpush.msrb.mxu2 %v21172_v33  ;;  %7915 = vmatpush.msrb.mxu1 %v21173_v35  ;;  %v21189_v33 = vld [vmem:[#allocation463_spill] sm:$0xff]  ;;  %v6962_v35 = vadd.f32 %v6961_v7, %v6861_v24  ;;  %v21199_v7 = vld [vmem:[#allocation426_spill] sm:$0xff] }
 0x5e9   :  { %8058 = vmatpush.msrb.mxu3 %v21171_v11  ;;  %7864 = vmatpush.msrb.mxu0 %v21174_v55 }
 0x5ea   :  { %8013 = vmatpush.msrb.mxu2 %v21175_v20  ;;  %7921 = vmatpush.msrb.mxu1 %v21176_v34  ;;  %v21192_v20 = vld [vmem:[#allocation472_spill] sm:$0xff]  ;;  %v21193_v34 = vld [vmem:[#allocation474_spill] sm:$0xff] }
 0x5eb   :  { %8060 = vmatpush.msrb.mxu3 %v21174_v55  ;;  %7866 = vmatpush.msrb.mxu0 %v21177_v14 }
 0x5ec   :  { %8016 = vmatpush.msrb.mxu2 %v21178_v63  ;;  %7927 = vmatpush.msrb.mxu1 %v21179_v27  ;;  %v7015_v36 = vpop.f32.mrf.mxu0  ;;  %v21194_v63 = vld [vmem:[#allocation487_spill] sm:$0xff] }
 0x5ed   :  { %8062 = vmatpush.msrb.mxu3 %v21177_v14  ;;  %7868 = vmatpush.msrb.mxu0 %v21180_v39  ;;  %v7016_v41 = vadd.f32 %v7015_v36, %v6962_v35  ;;  %v21200_v36 = vld [vmem:[#allocation450_spill] sm:$0xff] }
 0x5ee   :  { %8019 = vmatpush.msrb.mxu2 %v21181_v48  ;;  %7933 = vmatpush.msrb.mxu1 %v21182_v5  ;;  %v21196_v5 = vld [vmem:[#allocation489_spill] sm:$0xff] }
 0x5ef   :  { %8064 = vmatpush.msrb.mxu3 %v21180_v39  ;;  %7870 = vmatpush.msrb.mxu0 %v21183_v52 }
 0x5f0   :  { %8022 = vmatpush.msrb.mxu2 %v21184_v1  ;;  %7939 = vmatpush.msrb.mxu1 %v21185_v43  ;;  %v21197_v1 = vld [vmem:[#allocation492_spill] sm:$0xff]  ;;  %v21198_v43 = vld [vmem:[#allocation482_spill] sm:$0xff] }
 0x5f1   :  { %8066 = vmatpush.msrb.mxu3 %v21183_v52  ;;  %7872 = vmatpush.msrb.mxu0 %v21186_v57 }
 0x5f2   :  { %8025 = vmatpush.msrb.mxu2 %v21187_v53  ;;  %7945 = vmatpush.msrb.mxu1 %v21188_v54 }
 0x5f3   :  { %8068 = vmatpush.msrb.mxu3 %v21186_v57  ;;  %7874 = vmatpush.msrb.mxu0 %v21189_v33  ;;  %v7160_v54 = vpop.f32.mrf.mxu3 }
 0x5f4   :  { %8028 = vmatpush.msrb.mxu2 %v21190_v13  ;;  %7951 = vmatpush.msrb.mxu1 %v21191_v9  ;;  %v21201_v13 = vld [vmem:[#allocation495_spill] sm:$0xff] }
 0x5f5   :  { %8070 = vmatpush.msrb.mxu3 %v21189_v33  ;;  %7876 = vmatpush.msrb.mxu0 %v21192_v20  ;;  %v21202_v9 = vld [vmem:[#allocation499_spill] sm:$0xff] }
 0x5f6   :  { %8031 = vmatpush.msrb.mxu2 %v21193_v34  ;;  %7957 = vmatpush.msrb.mxu1 %v21194_v63  ;;  %v7054_v27 = vpop.f32.mrf.mxu1  ;;  %v7123_v24 = vpop.f32.mrf.mxu2  ;;  %v21203_v34 = vld [vmem:[#allocation429_spill] sm:$0xff]  ;;  %v21205_v63 = vld [vmem:[#allocation503_spill] sm:$0xff] }
 0x5f7   :  { %8072 = vmatpush.msrb.mxu3 %v21192_v20  ;;  %7882 = vmatmul.f32.vlgmr.msrb.gmra.mxu0 %v16740_v61  ;;  %v7055_v48 = vadd.f32 %v7054_v27, %v7016_v41  ;;  %v21204_v41 = vld [vmem:[#allocation454_spill] sm:$0xff]  ;;  %v21206_v27 = vld [vmem:[#allocation504_spill] sm:$0xff] }
 0x5f8   :  { %8076 = vmatmul.f32.vlgmr.msrb.gmra.mxu3 %v16720_v6  ;;  %8083 = vmatpush.msra.mxu0 %v21195_v45  ;;  %v21208_v45 = vld [vmem:[#allocation465_spill] sm:$0xff] }
 0x5f9   :  { %8232 = vmatpush.msra.mxu3 %v21196_v5  ;;  %7963 = vmatpush.msrb.mxu1 %v21197_v1  ;;  %v7124_v53 = vadd.f32 %v7123_v24, %v7055_v48  ;;  %v21207_v48 = vld [vmem:[#allocation430_spill] sm:$0xff]  ;;  %v21209_v5 = vld [vmem:[#allocation508_spill] sm:$0xff]  ;;  %v21211_v1 = vld [vmem:[#allocation433_spill] sm:$0xff] }
 0x5fa   :  { %8034 = vmatpush.msrb.mxu2 %v21198_v43  ;;  %8087 = vmatpush.msra.mxu0 %v21199_v7  ;;  %v21210_v24 = vld [vmem:[#allocation510_spill] sm:$0xff]  ;;  %v21214_v7 = vld [vmem:[#allocation440_spill] sm:$0xff] }
 0x5fb   :  { %8037 = vmatmul.f32.vlgmr.msrb.gmra.mxu2 %v16707_v0  ;;  %8238 = vmatpush.msra.mxu3 %v21201_v13  ;;  %v17178_v35 = vadd.f32 %v7160_v54, %v7124_v53  ;;  %v21212_v43 = vld [vmem:[#allocation470_spill] sm:$0xff]  ;;  %v21213_v53 = vld [vmem:[#allocation513_spill] sm:$0xff] }
 0x5fc   :  { %8187 = vmatpush.msra.mxu2 %v21200_v36  ;;  %7969 = vmatpush.msrb.mxu1 %v21202_v9  ;;  %v21215_v54 = vld [vmem:[#allocation478_spill] sm:$0xff]  ;;  %v21216_v13 = vld [vmem:[#allocation517_spill] sm:$0xff] }
 0x5fd   :  { %8091 = vmatpush.msra.mxu0 %v21203_v34  ;;  %8244 = vmatpush.msra.mxu3 %v21205_v63  ;;  %11357 = vrsqrt.f32 %v17178_v35  ;;  %v21217_v34 = vld [vmem:[#allocation444_spill] sm:$0xff]  ;;  %v21218_v63 = vld [vmem:[#allocation483_spill] sm:$0xff]  ;;  %vm11261_vm1 = vweird.f32 %v17178_v35 }
 0x5fe   :  { %8189 = vmatpush.msra.mxu2 %v21204_v41  ;;  %7975 = vmatpush.msrb.mxu1 %v21206_v27  ;;  %v21219_v27 = vld [vmem:[#allocation521_spill] sm:$0xff] }
 0x5ff   :  { %8095 = vmatpush.msra.mxu0 %v21207_v48  ;;  %8250 = vmatpush.msra.mxu3 %v21209_v5  ;;  %v21221_v48 = vld [vmem:[#allocation486_spill] sm:$0xff] }
 0x600   :  { %8191 = vmatpush.msra.mxu2 %v21208_v45  ;;  %7981 = vmatpush.msrb.mxu1 %v21210_v24  ;;  %v21223_v24 = vld [vmem:[#allocation453_spill] sm:$0xff] }
 0x601   :  { %8099 = vmatpush.msra.mxu0 %v21211_v1  ;;  %7983 = vmatmul.f32.vlgmr.msrb.gmra.mxu1 %v16696_v16  ;;  %v21224_v1 = vld [vmem:[#allocation491_spill] sm:$0xff] }
 0x602   :  { %8193 = vmatpush.msra.mxu2 %v21212_v43  ;;  %8150 = vmatpush.msra.mxu1 %v21151_v30  ;;  %v21220_v30 = vld [vmem:[#allocation448_spill] sm:$0xff] }
 0x603   :  { %8256 = vmatpush.msra.mxu3 %v21213_v53  ;;  %8103 = vmatpush.msra.mxu0 %v21214_v7  ;;  %v17199_v9 = vpop.eup %11357  ;;  %v21226_v53 = vld [vmem:[#allocation457_spill] sm:$0xff]  ;;  %v21227_v7 = vld [vmem:[#allocation498_spill] sm:$0xff] }
 0x604   :  { %8195 = vmatpush.msra.mxu2 %v21215_v54  ;;  %8152 = vmatpush.msra.mxu1 %v21153_v19  ;;  %v11256_v5 = vmul.f32 %v17199_v9, %v17178_v35  ;;  %v21222_v19 = vld [vmem:[#allocation525_spill] sm:$0xff]  ;;  %vm11262_vm0 = vweird.f32 %v17199_v9  ;;  %v21251_v35 = vld [vmem:[#allocation476_spill] sm:$0xff] }
 0x605   :  { %8262 = vmatpush.msra.mxu3 %v21216_v13  ;;  %8107 = vmatpush.msra.mxu0 %v21217_v34  ;;  %v21228_v34 = vld [vmem:[#allocation532_spill] sm:$0xff]  ;;  %vm11263_vm2 = vmor %vm11261_vm1, %vm11262_vm0 }
 0x606   :  { %8197 = vmatpush.msra.mxu2 %v21218_v63  ;;  %8154 = vmatpush.msra.mxu1 %v21155_v15  ;;  %v21225_v15 = vld [vmem:[#allocation529_spill] sm:$0xff]  ;;  %v11257_v13 = vmul.f32 %v17199_v9, %v11256_v5 }
 0x607   :  { %8268 = vmatpush.msra.mxu3 %v21219_v27  ;;  %8111 = vmatpush.msra.mxu0 %v21220_v30  ;;  %v21230_v27 = vld [vmem:[#allocation502_spill] sm:$0xff]  ;;  %v21231_v30 = vld [vmem:[#allocation535_spill] sm:$0xff]  ;;  %v21234_v5 = vld [vmem:[#allocation537_spill] sm:$0xff] }
 0x608   :  { %8199 = vmatpush.msra.mxu2 %v21221_v48  ;;  %8156 = vmatpush.msra.mxu1 %v21157_v12  ;;  %v21229_v12 = vld [vmem:[#allocation462_spill] sm:$0xff] }
 0x609   :  { %8274 = vmatpush.msra.mxu3 %v21222_v19  ;;  %8115 = vmatpush.msra.mxu0 %v21223_v24  ;;  %v21233_v19 = vld [vmem:[#allocation507_spill] sm:$0xff]  ;;  %v11258_v24 = vmul.f32 0.5, %v11257_v13  ;;  %v21240_v13 = vld [vmem:[#allocation540_spill] sm:$0xff] }
 0x60a   :  { %8201 = vmatpush.msra.mxu2 %v21224_v1  ;;  %8158 = vmatpush.msra.mxu1 %v21159_v44  ;;  %v21232_v44 = vld [vmem:[#allocation467_spill] sm:$0xff] }
 0x60b   :  { %8280 = vmatpush.msra.mxu3 %v21225_v15  ;;  %8119 = vmatpush.msra.mxu0 %v21226_v53  ;;  %v21236_v15 = vld [vmem:[#allocation512_spill] sm:$0xff]  ;;  %v21237_v53 = vld [vmem:[#allocation539_spill] sm:$0xff] }
 0x60c   :  { %8203 = vmatpush.msra.mxu2 %v21227_v7  ;;  %8160 = vmatpush.msra.mxu1 %v21162_v18  ;;  %v21235_v18 = vld [vmem:[#allocation473_spill] sm:$0xff] }
 0x60d   :  { %8286 = vmatpush.msra.mxu3 %v21228_v34  ;;  %8123 = vmatpush.msra.mxu0 %v21229_v12  ;;  %v21239_v34 = vld [vmem:[#allocation516_spill] sm:$0xff]  ;;  %v11259_v12 = vsub.f32 1.5, %v11258_v24 }
 0x60e   :  { %8205 = vmatpush.msra.mxu2 %v21230_v27  ;;  %8162 = vmatpush.msra.mxu1 %v21165_v37  ;;  %v21238_v37 = vld [vmem:[#allocation479_spill] sm:$0xff]  ;;  %v21248_v24 = vld [vmem:[#allocation528_spill] sm:$0xff] }
 0x60f   :  { %8292 = vmatpush.msra.mxu3 %v21231_v30  ;;  %8127 = vmatpush.msra.mxu0 %v21232_v44  ;;  %v21242_v30 = vld [vmem:[#allocation520_spill] sm:$0xff]  ;;  %v21243_v44 = vld [vmem:[#allocation541_spill] sm:$0xff] }
 0x610   :  { %8207 = vmatpush.msra.mxu2 %v21233_v19  ;;  %8164 = vmatpush.msra.mxu1 %v21168_v23  ;;  %v21241_v23 = vld [vmem:[#allocation485_spill] sm:$0xff] }
 0x611   :  { %8298 = vmatpush.msra.mxu3 %v21234_v5  ;;  %8131 = vmatpush.msra.mxu0 %v21235_v18  ;;  %v21245_v5 = vld [vmem:[#allocation524_spill] sm:$0xff]  ;;  %v11260_v18 = vmul.f32 %v17199_v9, %v11259_v12  ;;  %v21250_v12 = vld [vmem:[#allocation469_spill] sm:$0xff] }
 0x612   :  { %8209 = vmatpush.msra.mxu2 %v21236_v15  ;;  %8166 = vmatpush.msra.mxu1 %v21171_v11  ;;  %v21244_v11 = vld [vmem:[#allocation493_spill] sm:$0xff] }
 0x613   :  { %8304 = vmatpush.msra.mxu3 %v21237_v53  ;;  %8135 = vmatpush.msra.mxu0 %v21238_v37  ;;  %v11264_v53 = vsel %vm11263_vm2, %v17199_v9, %v11260_v18  ;;  %v21249_v37 = vld [vmem:[#allocation464_spill] sm:$0xff]  ;;  %v21257_v18 = vld [vmem:[#allocation494_spill] sm:$0xff] }
 0x614   :  { %8211 = vmatpush.msra.mxu2 %v21239_v34  ;;  %8168 = vmatpush.msra.mxu1 %v21174_v55  ;;  %v21246_v55 = vld [vmem:[#allocation542_spill] sm:$0xff]  ;;  %v21253_v9 = vld [vmem:[#allocation480_spill] sm:$0xff] }
 0x615   :  { %8310 = vmatpush.msra.mxu3 %v21240_v13  ;;  %8139 = vmatpush.msra.mxu0 %v21241_v23  ;;  %v21252_v23 = vld [vmem:[#allocation475_spill] sm:$0xff] }
 0x616   :  { %8213 = vmatpush.msra.mxu2 %v21242_v30  ;;  %8170 = vmatpush.msra.mxu1 %v21177_v14  ;;  %v21247_v14 = vld [vmem:[#allocation459_spill] sm:$0xff] }
 0x617   :  { %8316 = vmatpush.msra.mxu3 %v21243_v44  ;;  %8143 = vmatpush.msra.mxu0 %v21244_v11  ;;  %v21254_v44 = vld [vmem:[#allocation484_spill] sm:$0xff] }
 0x618   :  { %8215 = vmatpush.msra.mxu2 %v21245_v5  ;;  %8172 = vmatpush.msra.mxu1 %v21180_v39  ;;  %v17254_v39 = vld [vmem:[#allocation5] sm:$0xf] }
 0x619   :  { %8322 = vmatpush.msra.mxu3 %v21246_v55  ;;  %8145 = vmatmul.f32.vlgmr.msra.gmra.mxu0 %v16696_v16  ;;  %v11301_v13 = vperm.slane %v17254_v39, 0  ;;  %v21258_v55 = vld [vmem:[#allocation497_spill] sm:$0xff] }
 0x61a   :  { %8324 = vmatmul.f32.vlgmr.msra.gmra.mxu3 %v16786_v51  ;;  %8330 = vmatpush.msrb.mxu0 %v21247_v14 }
 0x61b   :  { %8491 = vmatpush.msrb.mxu3 %v21200_v36  ;;  %8174 = vmatpush.msra.mxu1 %v21183_v52  ;;  %v11295_v52 = vmul.f32 %v11264_v53, %v16374_v26  ;;  %v21256_v26 = vld [vmem:[#allocation490_spill] sm:$0xff]  ;;  %v21260_v53 = vld [vmem:[#allocation501_spill] sm:$0xff] }
 0x61c   :  { %8217 = vmatpush.msra.mxu2 %v21248_v24  ;;  %8333 = vmatpush.msrb.mxu0 %v21249_v37 }
 0x61d   :  { %8223 = vmatmul.f32.vlgmr.msra.gmra.mxu2 %v16830_v50  ;;  %8493 = vmatpush.msrb.mxu3 %v21204_v41  ;;  %v11309_v11 = vmul.f32 %v11301_v13, %v11295_v52  ;;  %v21266_v52 = vld [vmem:[#allocation514_spill] sm:$0xff]  ;;  %v21267_v13 = vld [vmem:[#allocation515_spill] sm:$0xff] }
 0x61e   :  { %8424 = vmatpush.msrb.mxu2 %v21250_v12  ;;  %8176 = vmatpush.msra.mxu1 %v21186_v57  ;;  %v21255_v57 = vld [vmem:[#allocation488_spill] sm:$0xff]  ;;  %v21262_v12 = vld [vmem:[#allocation505_spill] sm:$0xff] }
 0x61f   :  { %8336 = vmatpush.msrb.mxu0 %v21251_v35  ;;  %8495 = vmatpush.msrb.mxu3 %v21208_v45  ;;  %v21264_v35 = vld [vmem:[#allocation509_spill] sm:$0xff] }
 0x620   :  { %8428 = vmatpush.msrb.mxu2 %v21252_v23  ;;  %8178 = vmatpush.msra.mxu1 %v21189_v33  ;;  %v17276_v33 = vld [vmem:[#allocation7] sm:$0xf]  ;;  %v21269_v23 = vld [vmem:[#allocation519_spill] sm:$0xff] }
 0x621   :  { %8339 = vmatpush.msrb.mxu0 %v21253_v9  ;;  %8497 = vmatpush.msrb.mxu3 %v21212_v43  ;;  %v11315_v14 = vperm.slane %v17276_v33, 0  ;;  %v21271_v9 = vld [vmem:[#allocation523_spill] sm:$0xff] }
 0x622   :  { %8432 = vmatpush.msrb.mxu2 %v21254_v44  ;;  %8180 = vmatpush.msra.mxu1 %v21192_v20  ;;  %v21259_v20 = vld [vmem:[#allocation496_spill] sm:$0xff]  ;;  %v21273_v44 = vld [vmem:[#allocation527_spill] sm:$0xff] }
 0x623   :  { %8342 = vmatpush.msrb.mxu0 %v21255_v57  ;;  %8182 = vmatmul.f32.vlgmr.msra.gmra.mxu1 %v16696_v16  ;;  %v11323_v37 = vadd.f32 %v11315_v14, %v11309_v11  ;;  %v21275_v57 = vld [vmem:[#allocation531_spill] sm:$0xff]  ;;  %v21277_v11 = vld [vmem:[#allocation534_spill] sm:$0xff]  ;;  %v21286_v14 = vld [vmem:[#allocation549_spill] sm:$0xff] }
 0x624   :  { %8436 = vmatpush.msrb.mxu2 %v21256_v26  ;;  %8383 = vmatpush.msrb.mxu1 %v21200_v36  ;;  %v21261_v36 = vld [vmem:[#allocation500_spill] sm:$0xff] }
 0x625   :  { %8499 = vmatpush.msrb.mxu3 %v21215_v54  ;;  %8345 = vmatpush.msrb.mxu0 %v21257_v18  ;;  %11327 = vst [vmem:[#allocation10] sm:$0xff] %v11323_v37  ;;  %v21281_v26 = vld [vmem:[#allocation544_spill] sm:$0xff]  ;;  %v21282_v18 = vld [vmem:[#allocation545_spill] sm:$0xff] }
 0x626   :  { %8440 = vmatpush.msrb.mxu2 %v21258_v55  ;;  %8385 = vmatpush.msrb.mxu1 %v21204_v41  ;;  %v21263_v41 = vld [vmem:[#allocation506_spill] sm:$0xff]  ;;  %v21284_v55 = vld [vmem:[#allocation547_spill] sm:$0xff]  ;;  %v21290_v37 = vld [vmem:[#allocation553_spill] sm:$0xff] }
 0x627   :  { %8501 = vmatpush.msrb.mxu3 %v21218_v63  ;;  %8348 = vmatpush.msrb.mxu0 %v21259_v20  ;;  %v21287_v20 = vld [vmem:[#allocation550_spill] sm:$0xff] }
 0x628   :  { %8444 = vmatpush.msrb.mxu2 %v21260_v53  ;;  %8387 = vmatpush.msrb.mxu1 %v21208_v45  ;;  %v21265_v45 = vld [vmem:[#allocation511_spill] sm:$0xff]  ;;  %v21289_v53 = vld [vmem:[#allocation562_spill] sm:$0xff] }
 0x629   :  { %8503 = vmatpush.msrb.mxu3 %v21221_v48  ;;  %8351 = vmatpush.msrb.mxu0 %v21261_v36  ;;  %v21292_v36 = vld [vmem:[#allocation566_spill] sm:$0xff] }
 0x62a   :  { %8448 = vmatpush.msrb.mxu2 %v21262_v12  ;;  %8389 = vmatpush.msrb.mxu1 %v21212_v43  ;;  %v21268_v43 = vld [vmem:[#allocation518_spill] sm:$0xff]  ;;  %v21293_v12 = vld [vmem:[#allocation556_spill] sm:$0xff] }
 0x62b   :  { %8505 = vmatpush.msrb.mxu3 %v21224_v1  ;;  %8354 = vmatpush.msrb.mxu0 %v21263_v41  ;;  %v21295_v41 = vld [vmem:[#allocation570_spill] sm:$0xff] }
 0x62c   :  { %8452 = vmatpush.msrb.mxu2 %v21264_v35  ;;  %8391 = vmatpush.msrb.mxu1 %v21215_v54  ;;  %v21270_v54 = vld [vmem:[#allocation522_spill] sm:$0xff]  ;;  %v21296_v35 = vld [vmem:[#allocation559_spill] sm:$0xff] }
 0x62d   :  { %8507 = vmatpush.msrb.mxu3 %v21227_v7  ;;  %8357 = vmatpush.msrb.mxu0 %v21265_v45  ;;  %v21297_v45 = vld [vmem:[#allocation563_spill] sm:$0xff] }
 0x62e   :  { %8456 = vmatpush.msrb.mxu2 %v21266_v52  ;;  %8393 = vmatpush.msrb.mxu1 %v21218_v63  ;;  %v21272_v63 = vld [vmem:[#allocation526_spill] sm:$0xff] }
 0x62f   :  { %8509 = vmatpush.msrb.mxu3 %v21230_v27  ;;  %8360 = vmatpush.msrb.mxu0 %v21267_v13  ;;  %v21298_v52 = vld [vmem:[#allocation574_spill] sm:$0xff]  ;;  %v21299_v13 = vld [vmem:[#allocation561_spill] sm:$0xff] }
 0x630   :  { %8460 = vmatpush.msrb.mxu2 %v21268_v43  ;;  %8395 = vmatpush.msrb.mxu1 %v21221_v48  ;;  %v21274_v48 = vld [vmem:[#allocation530_spill] sm:$0xff]  ;;  %v21300_v43 = vld [vmem:[#allocation567_spill] sm:$0xff] }
 0x631   :  { %8511 = vmatpush.msrb.mxu3 %v21233_v19  ;;  %8363 = vmatpush.msrb.mxu0 %v21269_v23  ;;  %v21301_v23 = vld [vmem:[#allocation579_spill] sm:$0xff] }
 0x632   :  { %8464 = vmatpush.msrb.mxu2 %v21270_v54  ;;  %8397 = vmatpush.msrb.mxu1 %v21224_v1  ;;  %v21276_v1 = vld [vmem:[#allocation533_spill] sm:$0xff] }
 0x633   :  { %8513 = vmatpush.msrb.mxu3 %v21236_v15  ;;  %8366 = vmatpush.msrb.mxu0 %v21271_v9  ;;  %v21302_v54 = vld [vmem:[#allocation565_spill] sm:$0xff] }
 0x634   :  { %8468 = vmatpush.msrb.mxu2 %v21272_v63  ;;  %8399 = vmatpush.msrb.mxu1 %v21227_v7  ;;  %v21278_v7 = vld [vmem:[#allocation536_spill] sm:$0xff]  ;;  %v21303_v9 = vld [vmem:[#allocation569_spill] sm:$0xff] }
 0x635   :  { %8515 = vmatpush.msrb.mxu3 %v21239_v34  ;;  %8369 = vmatpush.msrb.mxu0 %v21273_v44  ;;  %v21304_v63 = vld [vmem:[#allocation584_spill] sm:$0xff]  ;;  %v21305_v44 = vld [vmem:[#allocation571_spill] sm:$0xff] }
 0x636   :  { %8472 = vmatpush.msrb.mxu2 %v21274_v48  ;;  %8401 = vmatpush.msrb.mxu1 %v21230_v27  ;;  %v21279_v27 = vld [vmem:[#allocation543_spill] sm:$0xff]  ;;  %v21306_v48 = vld [vmem:[#allocation573_spill] sm:$0xff] }
 0x637   :  { %8517 = vmatpush.msrb.mxu3 %v21242_v30  ;;  %8372 = vmatpush.msrb.mxu0 %v21275_v57  ;;  %v21307_v57 = vld [vmem:[#allocation589_spill] sm:$0xff] }
 0x638   :  { %8476 = vmatpush.msrb.mxu2 %v21276_v1  ;;  %8403 = vmatpush.msrb.mxu1 %v21233_v19  ;;  %v21280_v19 = vld [vmem:[#allocation538_spill] sm:$0xff]  ;;  %v21308_v1 = vld [vmem:[#allocation575_spill] sm:$0xff] }
 0x639   :  { %8519 = vmatpush.msrb.mxu3 %v21245_v5  ;;  %8375 = vmatpush.msrb.mxu0 %v21277_v11  ;;  %v21309_v11 = vld [vmem:[#allocation580_spill] sm:$0xff] }
 0x63a   :  { %8480 = vmatpush.msrb.mxu2 %v21278_v7  ;;  %8405 = vmatpush.msrb.mxu1 %v21236_v15  ;;  %v21283_v15 = vld [vmem:[#allocation546_spill] sm:$0xff]  ;;  %v21310_v7 = vld [vmem:[#allocation595_spill] sm:$0xff] }
 0x63b   :  { %8521 = vmatpush.msrb.mxu3 %v21248_v24  ;;  %8378 = vmatmul.f32.vlgmr.msrb.gmra.mxu0 %v16797_v56 }
 0x63c   :  { %8523 = vmatmul.f32.vlgmr.msrb.gmra.mxu3 %v16786_v51  ;;  %8528 = vmatpush.msra.mxu0 %v21279_v27 }
 0x63d   :  { %8724 = vmatpush.msra.mxu3 %v21279_v27  ;;  %8407 = vmatpush.msrb.mxu1 %v21239_v34  ;;  %v21285_v34 = vld [vmem:[#allocation548_spill] sm:$0xff] }
 0x63e   :  { %8484 = vmatpush.msrb.mxu2 %v21280_v19  ;;  %8530 = vmatpush.msra.mxu0 %v21281_v26  ;;  %v21311_v19 = vld [vmem:[#allocation581_spill] sm:$0xff] }
 0x63f   :  { %8486 = vmatmul.f32.vlgmr.msrb.gmra.mxu2 %v16786_v51  ;;  %8726 = vmatpush.msra.mxu3 %v21281_v26 }
 0x640   :  { %8671 = vmatpush.msra.mxu2 %v21282_v18  ;;  %8409 = vmatpush.msrb.mxu1 %v21242_v30  ;;  %v21288_v30 = vld [vmem:[#allocation552_spill] sm:$0xff]  ;;  %v21312_v18 = vld [vmem:[#allocation585_spill] sm:$0xff] }
 0x641   :  { %8532 = vmatpush.msra.mxu0 %v21283_v15  ;;  %8728 = vmatpush.msra.mxu3 %v21283_v15 }
 0x642   :  { %8674 = vmatpush.msra.mxu2 %v21284_v55  ;;  %8411 = vmatpush.msrb.mxu1 %v21245_v5  ;;  %v21291_v5 = vld [vmem:[#allocation555_spill] sm:$0xff] }
 0x643   :  { %8534 = vmatpush.msra.mxu0 %v21285_v34  ;;  %8730 = vmatpush.msra.mxu3 %v21285_v34  ;;  %v21313_v55 = vld [vmem:[#allocation599_spill] sm:$0xff] }
 0x644   :  { %8677 = vmatpush.msra.mxu2 %v21286_v14  ;;  %8413 = vmatpush.msrb.mxu1 %v21248_v24  ;;  %v21294_v24 = vld [vmem:[#allocation558_spill] sm:$0xff] }
 0x645   :  { %8536 = vmatpush.msra.mxu0 %v21287_v20  ;;  %8417 = vmatmul.f32.vlgmr.msrb.gmra.mxu1 %v16810_v22  ;;  %v21314_v14 = vld [vmem:[#allocation586_spill] sm:$0xff] }
 0x646   :  { %8680 = vmatpush.msra.mxu2 %v21288_v30  ;;  %8573 = vmatpush.msra.mxu1 %v21289_v53  ;;  %v21315_v30 = vld [vmem:[#allocation590_spill] sm:$0xff]  ;;  %v21316_v53 = vld [vmem:[#allocation605_spill] sm:$0xff] }
 0x647   :  { %8732 = vmatpush.msra.mxu3 %v21287_v20  ;;  %8538 = vmatpush.msra.mxu0 %v21290_v37 }
 0x648   :  { %8683 = vmatpush.msra.mxu2 %v21291_v5  ;;  %8579 = vmatpush.msra.mxu1 %v21292_v36  ;;  %v21317_v5 = vld [vmem:[#allocation587_spill] sm:$0xff]  ;;  %v21318_v36 = vld [vmem:[#allocation596_spill] sm:$0xff] }
 0x649   :  { %8734 = vmatpush.msra.mxu3 %v21290_v37  ;;  %8540 = vmatpush.msra.mxu0 %v21293_v12 }
 0x64a   :  { %8686 = vmatpush.msra.mxu2 %v21294_v24  ;;  %8585 = vmatpush.msra.mxu1 %v21295_v41  ;;  %v21319_v24 = vld [vmem:[#allocation613_spill] sm:$0xff] }
 0x64b   :  { %8736 = vmatpush.msra.mxu3 %v21293_v12  ;;  %8542 = vmatpush.msra.mxu0 %v21296_v35  ;;  %v21320_v41 = vld [vmem:[#allocation593_spill] sm:$0xff] }
 0x64c   :  { %8689 = vmatpush.msra.mxu2 %v21297_v45  ;;  %8591 = vmatpush.msra.mxu1 %v21298_v52  ;;  %v21321_v45 = vld [vmem:[#allocation600_spill] sm:$0xff]  ;;  %v21322_v52 = vld [vmem:[#allocation618_spill] sm:$0xff] }
 0x64d   :  { %8738 = vmatpush.msra.mxu3 %v21296_v35  ;;  %8544 = vmatpush.msra.mxu0 %v21299_v13 }
 0x64e   :  { %8692 = vmatpush.msra.mxu2 %v21300_v43  ;;  %8597 = vmatpush.msra.mxu1 %v21301_v23  ;;  %v21323_v43 = vld [vmem:[#allocation551_spill] sm:$0xff]  ;;  %v21324_v23 = vld [vmem:[#allocation621_spill] sm:$0xff] }
 0x64f   :  { %8740 = vmatpush.msra.mxu3 %v21299_v13  ;;  %8546 = vmatpush.msra.mxu0 %v21302_v54 }
 0x650   :  { %8695 = vmatpush.msra.mxu2 %v21303_v9  ;;  %8603 = vmatpush.msra.mxu1 %v21304_v63  ;;  %v21325_v9 = vld [vmem:[#allocation623_spill] sm:$0xff]  ;;  %v21326_v63 = vld [vmem:[#allocation606_spill] sm:$0xff] }
 0x651   :  { %8742 = vmatpush.msra.mxu3 %v21302_v54  ;;  %8548 = vmatpush.msra.mxu0 %v21305_v44 }
 0x652   :  { %8698 = vmatpush.msra.mxu2 %v21306_v48  ;;  %8609 = vmatpush.msra.mxu1 %v21307_v57  ;;  %v21327_v48 = vld [vmem:[#allocation554_spill] sm:$0xff] }
 0x653   :  { %8744 = vmatpush.msra.mxu3 %v21305_v44  ;;  %8550 = vmatpush.msra.mxu0 %v21308_v1  ;;  %v21328_v57 = vld [vmem:[#allocation578_spill] sm:$0xff] }
 0x654   :  { %8701 = vmatpush.msra.mxu2 %v21309_v11  ;;  %8615 = vmatpush.msra.mxu1 %v21310_v7  ;;  %v21329_v11 = vld [vmem:[#allocation626_spill] sm:$0xff]  ;;  %v21330_v7 = vld [vmem:[#allocation628_spill] sm:$0xff] }
 0x655   :  { %8746 = vmatpush.msra.mxu3 %v21308_v1  ;;  %8552 = vmatpush.msra.mxu0 %v21311_v19 }
 0x656   :  { %8704 = vmatpush.msra.mxu2 %v21312_v18  ;;  %8621 = vmatpush.msra.mxu1 %v21313_v55  ;;  %v21331_v18 = vld [vmem:[#allocation557_spill] sm:$0xff]  ;;  %v21332_v55 = vld [vmem:[#allocation583_spill] sm:$0xff] }
 0x657   :  { %8748 = vmatpush.msra.mxu3 %v21311_v19  ;;  %8554 = vmatpush.msra.mxu0 %v21314_v14 }
 0x658   :  { %8707 = vmatpush.msra.mxu2 %v21315_v30  ;;  %8627 = vmatpush.msra.mxu1 %v21316_v53  ;;  %v21333_v30 = vld [vmem:[#allocation633_spill] sm:$0xff]  ;;  %v21334_v53 = vld [vmem:[#allocation631_spill] sm:$0xff] }
 0x659   :  { %8750 = vmatpush.msra.mxu3 %v21314_v14  ;;  %8556 = vmatpush.msra.mxu0 %v21317_v5 }
 0x65a   :  { %8710 = vmatpush.msra.mxu2 %v21318_v36  ;;  %8633 = vmatpush.msra.mxu1 %v21319_v24  ;;  %v21335_v36 = vld [vmem:[#allocation560_spill] sm:$0xff] }
 0x65b   :  { %8752 = vmatpush.msra.mxu3 %v21317_v5  ;;  %8558 = vmatpush.msra.mxu0 %v21320_v41  ;;  %v21336_v24 = vld [vmem:[#allocation592_spill] sm:$0xff] }
 0x65c   :  { %8713 = vmatpush.msra.mxu2 %v21321_v45  ;;  %8639 = vmatpush.msra.mxu1 %v21322_v52  ;;  %v21337_v45 = vld [vmem:[#allocation638_spill] sm:$0xff]  ;;  %v21338_v52 = vld [vmem:[#allocation636_spill] sm:$0xff] }
 0x65d   :  { %8754 = vmatpush.msra.mxu3 %v21320_v41  ;;  %8564 = vmatmul.f32.vlgmr.msra.gmra.mxu0 %v16446_v60 }
 0x65e   :  { %8758 = vmatmul.f32.vlgmr.msra.gmra.mxu3 %v16424_v4  ;;  %8765 = vmatpush.msrb.mxu0 %v21323_v43  ;;  %v21339_v43 = vld [vmem:[#allocation564_spill] sm:$0xff] }
 0x65f   :  { %8914 = vmatpush.msrb.mxu3 %v21324_v23  ;;  %8645 = vmatpush.msra.mxu1 %v21325_v9  ;;  %v21340_v23 = vld [vmem:[#allocation598_spill] sm:$0xff]  ;;  %v21341_v9 = vld [vmem:[#allocation641_spill] sm:$0xff] }
 0x660   :  { %8716 = vmatpush.msra.mxu2 %v21326_v63  ;;  %8769 = vmatpush.msrb.mxu0 %v21327_v48  ;;  %v21342_v63 = vld [vmem:[#allocation568_spill] sm:$0xff] }
 0x661   :  { %8719 = vmatmul.f32.vlgmr.msra.gmra.mxu2 %v16411_v38  ;;  %8920 = vmatpush.msrb.mxu3 %v21329_v11  ;;  %v21343_v48 = vld [vmem:[#allocation604_spill] sm:$0xff]  ;;  %v21344_v11 = vld [vmem:[#allocation645_spill] sm:$0xff] }
 0x662   :  { %8869 = vmatpush.msrb.mxu2 %v21328_v57  ;;  %8651 = vmatpush.msra.mxu1 %v21330_v7  ;;  %v21345_v7 = vld [vmem:[#allocation572_spill] sm:$0xff] }
 0x663   :  { %8773 = vmatpush.msrb.mxu0 %v21331_v18  ;;  %8926 = vmatpush.msrb.mxu3 %v21333_v30  ;;  %v21346_v18 = vld [vmem:[#allocation610_spill] sm:$0xff]  ;;  %v21347_v30 = vld [vmem:[#allocation649_spill] sm:$0xff] }
 0x664   :  { %8871 = vmatpush.msrb.mxu2 %v21332_v55  ;;  %8657 = vmatpush.msra.mxu1 %v21334_v53  ;;  %v21348_v53 = vld [vmem:[#allocation576_spill] sm:$0xff] }
 0x665   :  { %8777 = vmatpush.msrb.mxu0 %v21335_v36  ;;  %8932 = vmatpush.msrb.mxu3 %v21337_v45  ;;  %v21350_v36 = vld [vmem:[#allocation653_spill] sm:$0xff] }
 0x666   :  { %8873 = vmatpush.msrb.mxu2 %v21336_v24  ;;  %8663 = vmatpush.msra.mxu1 %v21338_v52  ;;  %v21351_v45 = vld [vmem:[#allocation577_spill] sm:$0xff] }
 0x667   :  { %8781 = vmatpush.msrb.mxu0 %v21339_v43  ;;  %8665 = vmatmul.f32.vlgmr.msra.gmra.mxu1 %v16398_v49  ;;  %v21353_v52 = vld [vmem:[#allocation657_spill] sm:$0xff]  ;;  %v21354_v43 = vld [vmem:[#allocation582_spill] sm:$0xff] }
 0x668   :  { %8875 = vmatpush.msrb.mxu2 %v21340_v23  ;;  %8832 = vmatpush.msrb.mxu1 %v21279_v27  ;;  %v21349_v27 = vld [vmem:[#allocation612_spill] sm:$0xff] }
 0x669   :  { %8938 = vmatpush.msrb.mxu3 %v21341_v9  ;;  %8785 = vmatpush.msrb.mxu0 %v21342_v63  ;;  %v21356_v9 = vld [vmem:[#allocation660_spill] sm:$0xff]  ;;  %v21357_v63 = vld [vmem:[#allocation591_spill] sm:$0xff] }
 0x66a   :  { %8877 = vmatpush.msrb.mxu2 %v21343_v48  ;;  %8834 = vmatpush.msrb.mxu1 %v21281_v26  ;;  %v21352_v26 = vld [vmem:[#allocation617_spill] sm:$0xff] }
 0x66b   :  { %8944 = vmatpush.msrb.mxu3 %v21344_v11  ;;  %8789 = vmatpush.msrb.mxu0 %v21345_v7  ;;  %v21359_v11 = vld [vmem:[#allocation663_spill] sm:$0xff]  ;;  %v21360_v7 = vld [vmem:[#allocation597_spill] sm:$0xff] }
 0x66c   :  { %8879 = vmatpush.msrb.mxu2 %v21346_v18  ;;  %8836 = vmatpush.msrb.mxu1 %v21283_v15  ;;  %v21355_v15 = vld [vmem:[#allocation625_spill] sm:$0xff] }
 0x66d   :  { %8950 = vmatpush.msrb.mxu3 %v21347_v30  ;;  %8793 = vmatpush.msrb.mxu0 %v21348_v53  ;;  %v21362_v30 = vld [vmem:[#allocation665_spill] sm:$0xff]  ;;  %v21363_v53 = vld [vmem:[#allocation602_spill] sm:$0xff] }
 0x66e   :  { %8881 = vmatpush.msrb.mxu2 %v21349_v27  ;;  %8838 = vmatpush.msrb.mxu1 %v21285_v34  ;;  %v21358_v34 = vld [vmem:[#allocation630_spill] sm:$0xff] }
 0x66f   :  { %8956 = vmatpush.msrb.mxu3 %v21350_v36  ;;  %8797 = vmatpush.msrb.mxu0 %v21351_v45  ;;  %v21365_v36 = vld [vmem:[#allocation667_spill] sm:$0xff]  ;;  %v21366_v45 = vld [vmem:[#allocation608_spill] sm:$0xff] }
 0x670   :  { %8883 = vmatpush.msrb.mxu2 %v21352_v26  ;;  %8840 = vmatpush.msrb.mxu1 %v21287_v20  ;;  %v21361_v20 = vld [vmem:[#allocation635_spill] sm:$0xff] }
 0x671   :  { %8962 = vmatpush.msrb.mxu3 %v21353_v52  ;;  %8801 = vmatpush.msrb.mxu0 %v21354_v43  ;;  %v21368_v52 = vld [vmem:[#allocation668_spill] sm:$0xff]  ;;  %v21369_v43 = vld [vmem:[#allocation611_spill] sm:$0xff] }
 0x672   :  { %8885 = vmatpush.msrb.mxu2 %v21355_v15  ;;  %8842 = vmatpush.msrb.mxu1 %v21290_v37  ;;  %v21364_v37 = vld [vmem:[#allocation640_spill] sm:$0xff] }
 0x673   :  { %8968 = vmatpush.msrb.mxu3 %v21356_v9  ;;  %8805 = vmatpush.msrb.mxu0 %v21357_v63  ;;  %v21371_v9 = vld [vmem:[#allocation669_spill] sm:$0xff]  ;;  %v21372_v63 = vld [vmem:[#allocation616_spill] sm:$0xff] }
 0x674   :  { %8887 = vmatpush.msrb.mxu2 %v21358_v34  ;;  %8844 = vmatpush.msrb.mxu1 %v21293_v12  ;;  %v21367_v12 = vld [vmem:[#allocation644_spill] sm:$0xff] }
 0x675   :  { %8974 = vmatpush.msrb.mxu3 %v21359_v11  ;;  %8809 = vmatpush.msrb.mxu0 %v21360_v7  ;;  %v21374_v11 = vld [vmem:[#allocation670_spill] sm:$0xff]  ;;  %v7201_v7 = vpop.f32.mrf.mxu0 }
 0x676   :  { %8889 = vmatpush.msrb.mxu2 %v21361_v20  ;;  %8846 = vmatpush.msrb.mxu1 %v21296_v35  ;;  %v21370_v35 = vld [vmem:[#allocation648_spill] sm:$0xff] }
 0x677   :  { %8980 = vmatpush.msrb.mxu3 %v21362_v30  ;;  %8813 = vmatpush.msrb.mxu0 %v21363_v53  ;;  %v21377_v30 = vld [vmem:[#allocation594_spill] sm:$0xff]  ;;  %v7302_v53 = vpop.f32.mrf.mxu1 }
 0x678   :  { %8891 = vmatpush.msrb.mxu2 %v21364_v37  ;;  %8848 = vmatpush.msrb.mxu1 %v21299_v13  ;;  %v21373_v13 = vld [vmem:[#allocation652_spill] sm:$0xff] }
 0x679   :  { %8986 = vmatpush.msrb.mxu3 %v21365_v36  ;;  %8817 = vmatpush.msrb.mxu0 %v21366_v45  ;;  %v21379_v36 = vld [vmem:[#allocation603_spill] sm:$0xff]  ;;  %v7202_v45 = vadd.f32 1e-05, %v7201_v7  ;;  %v21386_v7 = vld [vmem:[#allocation624_spill] sm:$0xff] }
 0x67a   :  { %8893 = vmatpush.msrb.mxu2 %v21367_v12  ;;  %8850 = vmatpush.msrb.mxu1 %v21302_v54  ;;  %v21375_v54 = vld [vmem:[#allocation588_spill] sm:$0xff] }
 0x67b   :  { %8992 = vmatpush.msrb.mxu3 %v21368_v52  ;;  %8821 = vmatpush.msrb.mxu0 %v21369_v43  ;;  %v21380_v52 = vld [vmem:[#allocation607_spill] sm:$0xff]  ;;  %v7303_v43 = vadd.f32 %v7302_v53, %v7202_v45  ;;  %v21390_v45 = vld [vmem:[#allocation632_spill] sm:$0xff] }
 0x67c   :  { %8895 = vmatpush.msrb.mxu2 %v21370_v35  ;;  %8852 = vmatpush.msrb.mxu1 %v21305_v44  ;;  %v21376_v44 = vld [vmem:[#allocation656_spill] sm:$0xff] }
 0x67d   :  { %8998 = vmatpush.msrb.mxu3 %v21371_v9  ;;  %8825 = vmatpush.msrb.mxu0 %v21372_v63  ;;  %v21382_v9 = vld [vmem:[#allocation614_spill] sm:$0xff]  ;;  %v21383_v63 = vld [vmem:[#allocation615_spill] sm:$0xff]  ;;  %v7464_v53 = vpop.f32.mrf.mxu0 }
 0x67e   :  { %8897 = vmatpush.msrb.mxu2 %v21373_v13  ;;  %8854 = vmatpush.msrb.mxu1 %v21308_v1  ;;  %v21378_v1 = vld [vmem:[#allocation601_spill] sm:$0xff] }
 0x67f   :  { %9004 = vmatpush.msrb.mxu3 %v21374_v11  ;;  %8827 = vmatmul.f32.vlgmr.msrb.gmra.mxu0 %v16398_v49  ;;  %v7356_v11 = vpop.f32.mrf.mxu2 }
 0x680   :  { %9006 = vmatmul.f32.vlgmr.msrb.gmra.mxu3 %v16514_v40  ;;  %9012 = vmatpush.msra.mxu0 %v21375_v54  ;;  %v21385_v54 = vld [vmem:[#allocation620_spill] sm:$0xff] }
 0x681   :  { %9173 = vmatpush.msra.mxu3 %v21328_v57  ;;  %8856 = vmatpush.msrb.mxu1 %v21311_v19  ;;  %v21381_v19 = vld [vmem:[#allocation609_spill] sm:$0xff] }
 0x682   :  { %8899 = vmatpush.msrb.mxu2 %v21376_v44  ;;  %9015 = vmatpush.msra.mxu0 %v21377_v30  ;;  %v21388_v30 = vld [vmem:[#allocation629_spill] sm:$0xff] }
 0x683   :  { %8905 = vmatmul.f32.vlgmr.msrb.gmra.mxu2 %v16581_v10  ;;  %9175 = vmatpush.msra.mxu3 %v21332_v55 }
 0x684   :  { %9106 = vmatpush.msra.mxu2 %v21378_v1  ;;  %8858 = vmatpush.msrb.mxu1 %v21314_v14  ;;  %v21384_v14 = vld [vmem:[#allocation619_spill] sm:$0xff]  ;;  %v7395_v1 = vpop.f32.mrf.mxu3 }
 0x685   :  { %9018 = vmatpush.msra.mxu0 %v21379_v36  ;;  %9177 = vmatpush.msra.mxu3 %v21336_v24  ;;  %v21389_v36 = vld [vmem:[#allocation627_spill] sm:$0xff] }
 0x686   :  { %9110 = vmatpush.msra.mxu2 %v21380_v52  ;;  %8860 = vmatpush.msrb.mxu1 %v21317_v5  ;;  %v7357_v5 = vadd.f32 %v7356_v11, %v7303_v43  ;;  %v7501_v52 = vpop.f32.mrf.mxu1  ;;  %v21392_v43 = vld [vmem:[#allocation637_spill] sm:$0xff] }
 0x687   :  { %9021 = vmatpush.msra.mxu0 %v21381_v19  ;;  %9179 = vmatpush.msra.mxu3 %v21340_v23  ;;  %v21391_v19 = vld [vmem:[#allocation634_spill] sm:$0xff]  ;;  %v7542_v11 = vpop.f32.mrf.mxu2 }
 0x688   :  { %9114 = vmatpush.msra.mxu2 %v21382_v9  ;;  %8862 = vmatpush.msrb.mxu1 %v21320_v41  ;;  %v21387_v41 = vld [vmem:[#allocation622_spill] sm:$0xff]  ;;  %v21393_v9 = vld [vmem:[#allocation639_spill] sm:$0xff] }
 0x689   :  { %9024 = vmatpush.msra.mxu0 %v21383_v63  ;;  %8864 = vmatmul.f32.vlgmr.msrb.gmra.mxu1 %v16398_v49  ;;  %v21394_v63 = vld [vmem:[#allocation642_spill] sm:$0xff] }
 0x68a   :  { %9118 = vmatpush.msra.mxu2 %v21384_v14  ;;  %9065 = vmatpush.msra.mxu1 %v21328_v57  ;;  %v7396_v57 = vadd.f32 %v7395_v1, %v7357_v5  ;;  %v21396_v14 = vld [vmem:[#allocation646_spill] sm:$0xff]  ;;  %v21397_v5 = vld [vmem:[#allocation647_spill] sm:$0xff] }
 0x68b   :  { %9181 = vmatpush.msra.mxu3 %v21343_v48  ;;  %9027 = vmatpush.msra.mxu0 %v21385_v54  ;;  %v21398_v54 = vld [vmem:[#allocation650_spill] sm:$0xff]  ;;  %v21401_v1 = vld [vmem:[#allocation655_spill] sm:$0xff] }
 0x68c   :  { %9122 = vmatpush.msra.mxu2 %v21386_v7  ;;  %9067 = vmatpush.msra.mxu1 %v21332_v55  ;;  %v7465_v55 = vadd.f32 %v7464_v53, %v7396_v57  ;;  %v21400_v7 = vld [vmem:[#allocation654_spill] sm:$0xff] }
 0x68d   :  { %9183 = vmatpush.msra.mxu3 %v21346_v18  ;;  %9030 = vmatpush.msra.mxu0 %v21387_v41  ;;  %v7643_v41 = vpop.f32.mrf.mxu3  ;;  %v21402_v53 = vld [vmem:[#allocation658_spill] sm:$0xff] }
 0x68e   :  { %9126 = vmatpush.msra.mxu2 %v21388_v30  ;;  %9069 = vmatpush.msra.mxu1 %v21336_v24  ;;  %v7502_v24 = vadd.f32 %v7501_v52, %v7465_v55  ;;  %v7697_v30 = vpop.f32.mrf.mxu0  ;;  %v7736_v57 = vpop.f32.mrf.mxu1  ;;  %v21405_v52 = vld [vmem:[#allocation662_spill] sm:$0xff]  ;;  %v21406_v55 = vld [vmem:[#allocation664_spill] sm:$0xff] }
 0x68f   :  { %9185 = vmatpush.msra.mxu3 %v21349_v27  ;;  %9033 = vmatpush.msra.mxu0 %v21389_v36  ;;  %v21403_v36 = vld [vmem:[#allocation659_spill] sm:$0xff] }
 0x690   :  { %9130 = vmatpush.msra.mxu2 %v21390_v45  ;;  %9071 = vmatpush.msra.mxu1 %v21340_v23  ;;  %v21395_v23 = vld [vmem:[#allocation643_spill] sm:$0xff]  ;;  %v21404_v45 = vld [vmem:[#allocation661_spill] sm:$0xff] }
 0x691   :  { %9187 = vmatpush.msra.mxu3 %v21352_v26  ;;  %9036 = vmatpush.msra.mxu0 %v21391_v19  ;;  %v21407_v19 = vld [vmem:[#allocation671_spill] sm:$0xff] }
 0x692   :  { %9134 = vmatpush.msra.mxu2 %v21392_v43  ;;  %9073 = vmatpush.msra.mxu1 %v21343_v48  ;;  %v7543_v48 = vadd.f32 %v7542_v11, %v7502_v24  ;;  %v21408_v43 = vld [vmem:[#allocation666_spill] sm:$0xff]  ;;  %v21409_v24 = vld [vmem:[#allocation672_spill] sm:$0xff] }
 0x693   :  { %9189 = vmatpush.msra.mxu3 %v21355_v15  ;;  %9039 = vmatpush.msra.mxu0 %v21393_v9  ;;  %v21412_v11 = vld [vmem:[#allocation676_spill] sm:$0xff] }
 0x694   :  { %9138 = vmatpush.msra.mxu2 %v21394_v63  ;;  %9075 = vmatpush.msra.mxu1 %v21346_v18  ;;  %v21399_v18 = vld [vmem:[#allocation651_spill] sm:$0xff] }
 0x695   :  { %9191 = vmatpush.msra.mxu3 %v21358_v34  ;;  %9042 = vmatpush.msra.mxu0 %v21395_v23  ;;  %v7842_v9 = vpop.f32.mrf.mxu3  ;;  %v21411_v23 = vld [vmem:[#allocation674_spill] sm:$0xff] }
 0x696   :  { %9142 = vmatpush.msra.mxu2 %v21396_v14  ;;  %9077 = vmatpush.msra.mxu1 %v21349_v27  ;;  %v7644_v27 = vadd.f32 %v7643_v41, %v7543_v48  ;;  %v7883_v63 = vpop.f32.mrf.mxu0  ;;  %v21413_v48 = vld [vmem:[#allocation675_spill] sm:$0xff]  ;;  %v21417_v41 = vld [vmem:[#allocation690_spill] sm:$0xff] }
 0x697   :  { %9193 = vmatpush.msra.mxu3 %v21361_v20  ;;  %9045 = vmatpush.msra.mxu0 %v21397_v5 }
 0x698   :  { %9146 = vmatpush.msra.mxu2 %v21398_v54  ;;  %9079 = vmatpush.msra.mxu1 %v21352_v26  ;;  %v7698_v26 = vadd.f32 %v7697_v30, %v7644_v27  ;;  %v21414_v54 = vld [vmem:[#allocation678_spill] sm:$0xff]  ;;  %v21419_v30 = vld [vmem:[#allocation683_spill] sm:$0xff] }
 0x699   :  { %9195 = vmatpush.msra.mxu3 %v21364_v37  ;;  %9048 = vmatpush.msra.mxu0 %v21399_v18 }
 0x69a   :  { %9150 = vmatpush.msra.mxu2 %v21400_v7  ;;  %9081 = vmatpush.msra.mxu1 %v21355_v15  ;;  %v7737_v15 = vadd.f32 %v7736_v57, %v7698_v26  ;;  %v21416_v7 = vld [vmem:[#allocation680_spill] sm:$0xff]  ;;  %v21422_v57 = vld [vmem:[#allocation687_spill] sm:$0xff]  ;;  %v21423_v26 = vld [vmem:[#allocation697_spill] sm:$0xff] }
 0x69b   :  { %9197 = vmatpush.msra.mxu3 %v21367_v12  ;;  %9051 = vmatpush.msra.mxu0 %v21401_v1  ;;  %v21420_v1 = vld [vmem:[#allocation693_spill] sm:$0xff] }
 0x69c   :  { %9154 = vmatpush.msra.mxu2 %v21402_v53  ;;  %9083 = vmatpush.msra.mxu1 %v21358_v34  ;;  %v7805_v34 = vpop.f32.mrf.mxu2  ;;  %v21421_v53 = vld [vmem:[#allocation684_spill] sm:$0xff] }
 0x69d   :  { %9199 = vmatpush.msra.mxu3 %v21370_v35  ;;  %9054 = vmatpush.msra.mxu0 %v21403_v36  ;;  %v21424_v36 = vld [vmem:[#allocation688_spill] sm:$0xff] }
 0x69e   :  { %9158 = vmatpush.msra.mxu2 %v21404_v45  ;;  %9085 = vmatpush.msra.mxu1 %v21361_v20  ;;  %v7806_v20 = vadd.f32 %v7805_v34, %v7737_v15  ;;  %v21425_v45 = vld [vmem:[#allocation691_spill] sm:$0xff]  ;;  %v8077_v15 = vpop.f32.mrf.mxu3 }
 0x69f   :  { %9201 = vmatpush.msra.mxu3 %v21373_v13  ;;  %9057 = vmatpush.msra.mxu0 %v21405_v52  ;;  %v8146_v52 = vpop.f32.mrf.mxu0 }
 0x6a0   :  { %9162 = vmatpush.msra.mxu2 %v21406_v55  ;;  %9087 = vmatpush.msra.mxu1 %v21364_v37  ;;  %v21410_v37 = vld [vmem:[#allocation673_spill] sm:$0xff]  ;;  %v7843_v14 = vadd.f32 %v7842_v9, %v7806_v20  ;;  %v21427_v20 = vld [vmem:[#allocation692_spill] sm:$0xff] }
 0x6a1   :  { %9203 = vmatpush.msra.mxu3 %v21376_v44  ;;  %9060 = vmatmul.f32.vlgmr.msra.gmra.mxu0 %v16532_v59  ;;  %v21426_v55 = vld [vmem:[#allocation701_spill] sm:$0xff] }
 0x6a2   :  { %9205 = vmatmul.f32.vlgmr.msra.gmra.mxu3 %v16514_v40  ;;  %9210 = vmatpush.msrb.mxu0 %v21407_v19  ;;  %v7884_v5 = vadd.f32 %v7883_v63, %v7843_v14  ;;  %v21429_v9 = vld [vmem:[#allocation705_spill] sm:$0xff]  ;;  %v21430_v14 = vld [vmem:[#allocation695_spill] sm:$0xff] }
 0x6a3   :  { %9406 = vmatpush.msrb.mxu3 %v21407_v19  ;;  %9089 = vmatpush.msra.mxu1 %v21367_v12  ;;  %v7984_v12 = vpop.f32.mrf.mxu1 }
 0x6a4   :  { %9166 = vmatpush.msra.mxu2 %v21408_v43  ;;  %9212 = vmatpush.msrb.mxu0 %v21409_v24  ;;  %v7985_v18 = vadd.f32 %v7984_v12, %v7884_v5  ;;  %v8038_v27 = vpop.f32.mrf.mxu2  ;;  %v21428_v43 = vld [vmem:[#allocation694_spill] sm:$0xff]  ;;  %v21432_v12 = vld [vmem:[#allocation711_spill] sm:$0xff] }
 0x6a5   :  { %9168 = vmatmul.f32.vlgmr.msra.gmra.mxu2 %v16514_v40  ;;  %9408 = vmatpush.msrb.mxu3 %v21409_v24 }
 0x6a6   :  { %9353 = vmatpush.msrb.mxu2 %v21410_v37  ;;  %9091 = vmatpush.msra.mxu1 %v21370_v35  ;;  %v21415_v35 = vld [vmem:[#allocation677_spill] sm:$0xff] }
 0x6a7   :  { %9214 = vmatpush.msrb.mxu0 %v21411_v23  ;;  %9410 = vmatpush.msrb.mxu3 %v21411_v23 }
 0x6a8   :  { %9356 = vmatpush.msrb.mxu2 %v21412_v11  ;;  %9093 = vmatpush.msra.mxu1 %v21373_v13  ;;  %v21418_v13 = vld [vmem:[#allocation681_spill] sm:$0xff]  ;;  %v21431_v11 = vld [vmem:[#allocation698_spill] sm:$0xff] }
 0x6a9   :  { %9216 = vmatpush.msrb.mxu0 %v21413_v48  ;;  %9412 = vmatpush.msrb.mxu3 %v21413_v48 }
 0x6aa   :  { %9359 = vmatpush.msrb.mxu2 %v21414_v54  ;;  %9095 = vmatpush.msra.mxu1 %v21376_v44  ;;  %v8039_v44 = vadd.f32 %v8038_v27, %v7985_v18  ;;  %v21433_v54 = vld [vmem:[#allocation699_spill] sm:$0xff]  ;;  %v21434_v18 = vld [vmem:[#allocation702_spill] sm:$0xff] }
 0x6ab   :  { %9218 = vmatpush.msrb.mxu0 %v21415_v35  ;;  %9099 = vmatmul.f32.vlgmr.msra.gmra.mxu1 %v16553_v21  ;;  %v8183_v37 = vpop.f32.mrf.mxu1 }
 0x6ac   :  { %9362 = vmatpush.msrb.mxu2 %v21416_v7  ;;  %9255 = vmatpush.msrb.mxu1 %v21417_v41  ;;  %v8078_v34 = vadd.f32 %v8077_v15, %v8039_v44  ;;  %v21435_v7 = vld [vmem:[#allocation716_spill] sm:$0xff]  ;;  %v21436_v41 = vld [vmem:[#allocation703_spill] sm:$0xff]  ;;  %v8224_v27 = vpop.f32.mrf.mxu2  ;;  %v21442_v15 = vld [vmem:[#allocation714_spill] sm:$0xff] }
 0x6ad   :  { %9414 = vmatpush.msrb.mxu3 %v21415_v35  ;;  %9220 = vmatpush.msrb.mxu0 %v21418_v13 }
 0x6ae   :  { %9365 = vmatpush.msrb.mxu2 %v21419_v30  ;;  %9261 = vmatpush.msrb.mxu1 %v21420_v1  ;;  %v8147_v63 = vadd.f32 %v8146_v52, %v8078_v34  ;;  %v21437_v30 = vld [vmem:[#allocation707_spill] sm:$0xff]  ;;  %v21438_v1 = vld [vmem:[#allocation722_spill] sm:$0xff]  ;;  %v21443_v52 = vld [vmem:[#allocation717_spill] sm:$0xff] }
 0x6af   :  { %9416 = vmatpush.msrb.mxu3 %v21418_v13  ;;  %9222 = vmatpush.msrb.mxu0 %v21421_v53  ;;  %v21444_v34 = vld [vmem:[#allocation733_spill] sm:$0xff] }
 0x6b0   :  { %9368 = vmatpush.msrb.mxu2 %v21422_v57  ;;  %9267 = vmatpush.msrb.mxu1 %v21423_v26  ;;  %v8184_v5 = vadd.f32 %v8183_v37, %v8147_v63  ;;  %v21439_v57 = vld [vmem:[#allocation708_spill] sm:$0xff]  ;;  %v21445_v37 = vld [vmem:[#allocation719_spill] sm:$0xff] }
 0x6b1   :  { %9418 = vmatpush.msrb.mxu3 %v21421_v53  ;;  %9224 = vmatpush.msrb.mxu0 %v21424_v36  ;;  %v21440_v26 = vld [vmem:[#allocation712_spill] sm:$0xff] }
 0x6b2   :  { %9371 = vmatpush.msrb.mxu2 %v21425_v45  ;;  %9273 = vmatpush.msrb.mxu1 %v21426_v55  ;;  %v8225_v44 = vadd.f32 %v8224_v27, %v8184_v5  ;;  %v21441_v45 = vld [vmem:[#allocation727_spill] sm:$0xff]  ;;  %v8325_v55 = vpop.f32.mrf.mxu3  ;;  %v21449_v5 = vld [vmem:[#allocation730_spill] sm:$0xff] }
 0x6b3   :  { %9420 = vmatpush.msrb.mxu3 %v21424_v36  ;;  %9226 = vmatpush.msrb.mxu0 %v21427_v20 }
 0x6b4   :  { %9374 = vmatpush.msrb.mxu2 %v21428_v43  ;;  %9279 = vmatpush.msrb.mxu1 %v21429_v9  ;;  %v21446_v9 = vld [vmem:[#allocation724_spill] sm:$0xff]  ;;  %v8326_v63 = vadd.f32 %v8325_v55, %v8225_v44  ;;  %v21452_v44 = vld [vmem:[#allocation745_spill] sm:$0xff] }
 0x6b5   :  { %9422 = vmatpush.msrb.mxu3 %v21427_v20  ;;  %9228 = vmatpush.msrb.mxu0 %v21430_v14 }
 0x6b6   :  { %9377 = vmatpush.msrb.mxu2 %v21431_v11  ;;  %9285 = vmatpush.msrb.mxu1 %v21432_v12  ;;  %v21447_v11 = vld [vmem:[#allocation737_spill] sm:$0xff]  ;;  %v21448_v12 = vld [vmem:[#allocation728_spill] sm:$0xff] }
 0x6b7   :  { %9424 = vmatpush.msrb.mxu3 %v21430_v14  ;;  %9230 = vmatpush.msrb.mxu0 %v21433_v54 }
 0x6b8   :  { %9380 = vmatpush.msrb.mxu2 %v21434_v18  ;;  %9291 = vmatpush.msrb.mxu1 %v21435_v7  ;;  %v8379_v43 = vpop.f32.mrf.mxu0  ;;  %v21450_v7 = vld [vmem:[#allocation743_spill] sm:$0xff] }
 0x6b9   :  { %9426 = vmatpush.msrb.mxu3 %v21433_v54  ;;  %9232 = vmatpush.msrb.mxu0 %v21436_v41  ;;  %v8380_v18 = vadd.f32 %v8379_v43, %v8326_v63  ;;  %v21457_v63 = vld [vmem:[#allocation751_spill] sm:$0xff] }
 0x6ba   :  { %9383 = vmatpush.msrb.mxu2 %v21437_v30  ;;  %9297 = vmatpush.msrb.mxu1 %v21438_v1  ;;  %v21451_v1 = vld [vmem:[#allocation679_spill] sm:$0xff] }
 0x6bb   :  { %9428 = vmatpush.msrb.mxu3 %v21436_v41  ;;  %9234 = vmatpush.msrb.mxu0 %v21439_v57 }
 0x6bc   :  { %9386 = vmatpush.msrb.mxu2 %v21440_v26  ;;  %9303 = vmatpush.msrb.mxu1 %v21441_v45  ;;  %v21453_v45 = vld [vmem:[#allocation748_spill] sm:$0xff] }
 0x6bd   :  { %9430 = vmatpush.msrb.mxu3 %v21439_v57  ;;  %9236 = vmatpush.msrb.mxu0 %v21442_v15 }
 0x6be   :  { %9389 = vmatpush.msrb.mxu2 %v21443_v52  ;;  %9309 = vmatpush.msrb.mxu1 %v21444_v34  ;;  %v21454_v52 = vld [vmem:[#allocation738_spill] sm:$0xff] }
 0x6bf   :  { %9432 = vmatpush.msrb.mxu3 %v21442_v15  ;;  %9238 = vmatpush.msrb.mxu0 %v21445_v37  ;;  %v21455_v34 = vld [vmem:[#allocation682_spill] sm:$0xff]  ;;  %v8524_v43 = vpop.f32.mrf.mxu3 }
 0x6c0   :  { %9392 = vmatpush.msrb.mxu2 %v21446_v9  ;;  %9315 = vmatpush.msrb.mxu1 %v21447_v11  ;;  %v21456_v9 = vld [vmem:[#allocation706_spill] sm:$0xff] }
 0x6c1   :  { %9434 = vmatpush.msrb.mxu3 %v21445_v37  ;;  %9240 = vmatpush.msrb.mxu0 %v21448_v12 }
 0x6c2   :  { %9395 = vmatpush.msrb.mxu2 %v21449_v5  ;;  %9321 = vmatpush.msrb.mxu1 %v21450_v7  ;;  %v8418_v30 = vpop.f32.mrf.mxu1  ;;  %v8487_v26 = vpop.f32.mrf.mxu2  ;;  %v21458_v5 = vld [vmem:[#allocation755_spill] sm:$0xff]  ;;  %v21460_v7 = vld [vmem:[#allocation710_spill] sm:$0xff] }
 0x6c3   :  { %9436 = vmatpush.msrb.mxu3 %v21448_v12  ;;  %9246 = vmatmul.f32.vlgmr.msrb.gmra.mxu0 %v16740_v61  ;;  %v8419_v27 = vadd.f32 %v8418_v30, %v8380_v18  ;;  %v21459_v18 = vld [vmem:[#allocation685_spill] sm:$0xff]  ;;  %v21461_v30 = vld [vmem:[#allocation759_spill] sm:$0xff] }
 0x6c4   :  { %9440 = vmatmul.f32.vlgmr.msrb.gmra.mxu3 %v16720_v6  ;;  %9447 = vmatpush.msra.mxu0 %v21451_v1  ;;  %v21463_v1 = vld [vmem:[#allocation686_spill] sm:$0xff] }
 0x6c5   :  { %9596 = vmatpush.msra.mxu3 %v21452_v44  ;;  %9327 = vmatpush.msrb.mxu1 %v21453_v45  ;;  %v8488_v55 = vadd.f32 %v8487_v26, %v8419_v27  ;;  %v21462_v27 = vld [vmem:[#allocation760_spill] sm:$0xff]  ;;  %v21464_v44 = vld [vmem:[#allocation721_spill] sm:$0xff]  ;;  %v21466_v45 = vld [vmem:[#allocation766_spill] sm:$0xff] }
 0x6c6   :  { %9398 = vmatpush.msrb.mxu2 %v21454_v52  ;;  %9451 = vmatpush.msra.mxu0 %v21455_v34  ;;  %v21465_v26 = vld [vmem:[#allocation764_spill] sm:$0xff]  ;;  %v21467_v52 = vld [vmem:[#allocation689_spill] sm:$0xff] }
 0x6c7   :  { %9401 = vmatmul.f32.vlgmr.msrb.gmra.mxu2 %v16707_v0  ;;  %9602 = vmatpush.msra.mxu3 %v21457_v63  ;;  %v8525_v11 = vadd.f32 %v8524_v43, %v8488_v55  ;;  %v21468_v55 = vld [vmem:[#allocation726_spill] sm:$0xff]  ;;  %v21469_v34 = vld [vmem:[#allocation769_spill] sm:$0xff]  ;;  %v21470_v63 = vld [vmem:[#allocation696_spill] sm:$0xff] }
 0x6c8   :  { %9551 = vmatpush.msra.mxu2 %v21456_v9  ;;  %9333 = vmatpush.msrb.mxu1 %v21458_v5  ;;  %v21471_v5 = vld [vmem:[#allocation734_spill] sm:$0xff] }
 0x6c9   :  { %9455 = vmatpush.msra.mxu0 %v21459_v18  ;;  %9608 = vmatpush.msra.mxu3 %v21461_v30  ;;  %11359 = vrsqrt.f32 %v8525_v11  ;;  %v21472_v30 = vld [vmem:[#allocation773_spill] sm:$0xff]  ;;  %vm11271_vm4 = vweird.f32 %v8525_v11 }
 0x6ca   :  { %9553 = vmatpush.msra.mxu2 %v21460_v7  ;;  %9339 = vmatpush.msrb.mxu1 %v21462_v27  ;;  %v21473_v27 = vld [vmem:[#allocation700_spill] sm:$0xff] }
 0x6cb   :  { %9459 = vmatpush.msra.mxu0 %v21463_v1  ;;  %9614 = vmatpush.msra.mxu3 %v21465_v26  ;;  %v21474_v1 = vld [vmem:[#allocation739_spill] sm:$0xff] }
 0x6cc   :  { %9555 = vmatpush.msra.mxu2 %v21464_v44  ;;  %9345 = vmatpush.msrb.mxu1 %v21466_v45  ;;  %v21476_v45 = vld [vmem:[#allocation704_spill] sm:$0xff] }
 0x6cd   :  { %9463 = vmatpush.msra.mxu0 %v21467_v52  ;;  %9347 = vmatmul.f32.vlgmr.msrb.gmra.mxu1 %v16696_v16  ;;  %v21477_v52 = vld [vmem:[#allocation742_spill] sm:$0xff] }
 0x6ce   :  { %9557 = vmatpush.msra.mxu2 %v21468_v55  ;;  %9514 = vmatpush.msra.mxu1 %v21407_v19  ;;  %v21475_v19 = vld [vmem:[#allocation777_spill] sm:$0xff] }
 0x6cf   :  { %9620 = vmatpush.msra.mxu3 %v21469_v34  ;;  %v11360_v43 = vpop.eup %11359  ;;  %9467 = vmatpush.msra.mxu0 %v21470_v63  ;;  %v21478_v63 = vld [vmem:[#allocation781_spill] sm:$0xff] }
 0x6d0   :  { %9559 = vmatpush.msra.mxu2 %v21471_v5  ;;  %v11266_v18 = vmul.f32 %v11360_v43, %v8525_v11  ;;  %9516 = vmatpush.msra.mxu1 %v21409_v24  ;;  %v21479_v24 = vld [vmem:[#allocation709_spill] sm:$0xff]  ;;  %vm11272_vm3 = vweird.f32 %v11360_v43  ;;  %v21489_v11 = vld [vmem:[#allocation763_spill] sm:$0xff] }
 0x6d1   :  { %9626 = vmatpush.msra.mxu3 %v21472_v30  ;;  %9471 = vmatpush.msra.mxu0 %v21473_v27  ;;  %v21480_v30 = vld [vmem:[#allocation747_spill] sm:$0xff]  ;;  %vm11273_vm5 = vmor %vm11271_vm4, %vm11272_vm3 }
 0x6d2   :  { %9561 = vmatpush.msra.mxu2 %v21474_v1  ;;  %v11267_v26 = vmul.f32 %v11360_v43, %v11266_v18  ;;  %9518 = vmatpush.msra.mxu1 %v21411_v23  ;;  %v21481_v23 = vld [vmem:[#allocation785_spill] sm:$0xff] }
 0x6d3   :  { %9632 = vmatpush.msra.mxu3 %v21475_v19  ;;  %9475 = vmatpush.msra.mxu0 %v21476_v45  ;;  %v21482_v18 = vld [vmem:[#allocation713_spill] sm:$0xff]  ;;  %v21483_v19 = vld [vmem:[#allocation754_spill] sm:$0xff] }
 0x6d4   :  { %9563 = vmatpush.msra.mxu2 %v21477_v52  ;;  %v11268_v34 = vmul.f32 0.5, %v11267_v26  ;;  %9520 = vmatpush.msra.mxu1 %v21413_v48  ;;  %v21484_v48 = vld [vmem:[#allocation788_spill] sm:$0xff]  ;;  %v11302_v26 = vperm.slane %v17254_v39, 1 }
 0x6d5   :  { %9638 = vmatpush.msra.mxu3 %v21478_v63  ;;  %9479 = vmatpush.msra.mxu0 %v21479_v24  ;;  %v21485_v63 = vld [vmem:[#allocation718_spill] sm:$0xff]  ;;  %v21487_v24 = vld [vmem:[#allocation791_spill] sm:$0xff] }
 0x6d6   :  { %9565 = vmatpush.msra.mxu2 %v21480_v30  ;;  %v11269_v27 = vsub.f32 1.5, %v11268_v34  ;;  %9522 = vmatpush.msra.mxu1 %v21415_v35  ;;  %v21486_v34 = vld [vmem:[#allocation758_spill] sm:$0xff] }
 0x6d7   :  { %9644 = vmatpush.msra.mxu3 %v21481_v23  ;;  %9483 = vmatpush.msra.mxu0 %v21482_v18  ;;  %v21491_v18 = vld [vmem:[#allocation729_spill] sm:$0xff] }
 0x6d8   :  { %9567 = vmatpush.msra.mxu2 %v21483_v19  ;;  %v11270_v45 = vmul.f32 %v11360_v43, %v11269_v27  ;;  %9524 = vmatpush.msra.mxu1 %v21418_v13  ;;  %v21488_v27 = vld [vmem:[#allocation723_spill] sm:$0xff]  ;;  %v21490_v13 = vld [vmem:[#allocation793_spill] sm:$0xff] }
 0x6d9   :  { %9650 = vmatpush.msra.mxu3 %v21484_v48  ;;  %9487 = vmatpush.msra.mxu0 %v21485_v63  ;;  %v21492_v48 = vld [vmem:[#allocation768_spill] sm:$0xff]  ;;  %v21497_v63 = vld [vmem:[#allocation741_spill] sm:$0xff] }
 0x6da   :  { %9569 = vmatpush.msra.mxu2 %v21486_v34  ;;  %v11274_v35 = vsel %vm11273_vm5, %v11360_v43, %v11270_v45  ;;  %9526 = vmatpush.msra.mxu1 %v21421_v53  ;;  %v21493_v53 = vld [vmem:[#allocation795_spill] sm:$0xff]  ;;  %v11316_v45 = vperm.slane %v17276_v33, 1  ;;  %v21502_v33 = vld [vmem:[#allocation798_spill] sm:$0xff] }
 0x6db   :  { %9656 = vmatpush.msra.mxu3 %v21487_v24  ;;  %v11296_v23 = vmul.f32 %v11274_v35, %v16485_v46  ;;  %9491 = vmatpush.msra.mxu0 %v21488_v27  ;;  %v21494_v43 = vld [vmem:[#allocation735_spill] sm:$0xff]  ;;  %v21495_v46 = vld [vmem:[#allocation772_spill] sm:$0xff]  ;;  %v21500_v24 = vld [vmem:[#allocation749_spill] sm:$0xff] }
 0x6dc   :  { %9571 = vmatpush.msra.mxu2 %v21489_v11  ;;  %9528 = vmatpush.msra.mxu1 %v21424_v36  ;;  %v21496_v36 = vld [vmem:[#allocation796_spill] sm:$0xff] }
 0x6dd   :  { %9662 = vmatpush.msra.mxu3 %v21490_v13  ;;  %v11310_v39 = vmul.f32 %v11302_v26, %v11296_v23  ;;  %9495 = vmatpush.msra.mxu0 %v21491_v18  ;;  %v21498_v26 = vld [vmem:[#allocation776_spill] sm:$0xff]  ;;  %v21506_v13 = vld [vmem:[#allocation725_spill] sm:$0xff] }
 0x6de   :  { %9573 = vmatpush.msra.mxu2 %v21492_v48  ;;  %9530 = vmatpush.msra.mxu1 %v21427_v20  ;;  %v21499_v20 = vld [vmem:[#allocation797_spill] sm:$0xff]  ;;  %v21501_v23 = vld [vmem:[#allocation780_spill] sm:$0xff] }
 0x6df   :  { %9668 = vmatpush.msra.mxu3 %v21493_v53  ;;  %9499 = vmatpush.msra.mxu0 %v21494_v43  ;;  %v11324_v35 = vadd.f32 %v11316_v45, %v11310_v39  ;;  %v21505_v27 = vld [vmem:[#allocation720_spill] sm:$0xff]  ;;  %v21508_v39 = vld [vmem:[#allocation731_spill] sm:$0xff]  ;;  %v21513_v43 = vld [vmem:[#allocation750_spill] sm:$0xff] }
 0x6e0   :  { %9575 = vmatpush.msra.mxu2 %v21495_v46  ;;  %9532 = vmatpush.msra.mxu1 %v21430_v14  ;;  %v21503_v14 = vld [vmem:[#allocation715_spill] sm:$0xff]  ;;  %v21510_v18 = vld [vmem:[#allocation740_spill] sm:$0xff] }
 0x6e1   :  { %9674 = vmatpush.msra.mxu3 %v21496_v36  ;;  %9503 = vmatpush.msra.mxu0 %v21497_v63  ;;  %11328 = vst [vmem:[#allocation10 + $0x8] sm:$0xff] %v11324_v35  ;;  %v21511_v53 = vld [vmem:[#allocation744_spill] sm:$0xff]  ;;  %v21519_v63 = vld [vmem:[#allocation762_spill] sm:$0xff]  ;;  %v21521_v35 = vld [vmem:[#allocation767_spill] sm:$0xff] }
 0x6e2   :  { %9577 = vmatpush.msra.mxu2 %v21498_v26  ;;  %9534 = vmatpush.msra.mxu1 %v21433_v54  ;;  %v21504_v54 = vld [vmem:[#allocation784_spill] sm:$0xff] }
 0x6e3   :  { %9680 = vmatpush.msra.mxu3 %v21499_v20  ;;  %9507 = vmatpush.msra.mxu0 %v21500_v24  ;;  %v21515_v45 = vld [vmem:[#allocation752_spill] sm:$0xff]  ;;  %v21523_v20 = vld [vmem:[#allocation771_spill] sm:$0xff] }
 0x6e4   :  { %9579 = vmatpush.msra.mxu2 %v21501_v23  ;;  %9536 = vmatpush.msra.mxu1 %v21436_v41  ;;  %v21507_v41 = vld [vmem:[#allocation732_spill] sm:$0xff]  ;;  %v21525_v24 = vld [vmem:[#allocation775_spill] sm:$0xff] }
 0x6e5   :  { %9686 = vmatpush.msra.mxu3 %v21502_v33  ;;  %9509 = vmatmul.f32.vlgmr.msra.gmra.mxu0 %v16696_v16  ;;  %v21517_v36 = vld [vmem:[#allocation756_spill] sm:$0xff]  ;;  %v21527_v33 = vld [vmem:[#allocation779_spill] sm:$0xff] }
 0x6e6   :  { %9688 = vmatmul.f32.vlgmr.msra.gmra.mxu3 %v16786_v51  ;;  %9694 = vmatpush.msrb.mxu0 %v21503_v14  ;;  %v21529_v14 = vld [vmem:[#allocation783_spill] sm:$0xff] }
 0x6e7   :  { %9855 = vmatpush.msrb.mxu3 %v21456_v9  ;;  %9538 = vmatpush.msra.mxu1 %v21439_v57  ;;  %v21509_v57 = vld [vmem:[#allocation736_spill] sm:$0xff] }
 0x6e8   :  { %9581 = vmatpush.msra.mxu2 %v21504_v54  ;;  %9697 = vmatpush.msrb.mxu0 %v21505_v27  ;;  %v21531_v27 = vld [vmem:[#allocation787_spill] sm:$0xff] }
 0x6e9   :  { %9587 = vmatmul.f32.vlgmr.msra.gmra.mxu2 %v16830_v50  ;;  %9857 = vmatpush.msrb.mxu3 %v21460_v7 }
 0x6ea   :  { %9788 = vmatpush.msrb.mxu2 %v21506_v13  ;;  %9540 = vmatpush.msra.mxu1 %v21442_v15  ;;  %v21512_v15 = vld [vmem:[#allocation746_spill] sm:$0xff] }
 0x6eb   :  { %9700 = vmatpush.msrb.mxu0 %v21507_v41  ;;  %9859 = vmatpush.msrb.mxu3 %v21464_v44  ;;  %v21533_v13 = vld [vmem:[#allocation790_spill] sm:$0xff]  ;;  %v21537_v41 = vld [vmem:[#allocation800_spill] sm:$0xff] }
 0x6ec   :  { %9792 = vmatpush.msrb.mxu2 %v21508_v39  ;;  %9542 = vmatpush.msra.mxu1 %v21445_v37  ;;  %v21514_v37 = vld [vmem:[#allocation753_spill] sm:$0xff] }
 0x6ed   :  { %9703 = vmatpush.msrb.mxu0 %v21509_v57  ;;  %9861 = vmatpush.msrb.mxu3 %v21468_v55  ;;  %v21538_v39 = vld [vmem:[#allocation801_spill] sm:$0xff]  ;;  %v21540_v57 = vld [vmem:[#allocation803_spill] sm:$0xff] }
 0x6ee   :  { %9796 = vmatpush.msrb.mxu2 %v21510_v18  ;;  %9544 = vmatpush.msra.mxu1 %v21448_v12  ;;  %v21516_v12 = vld [vmem:[#allocation757_spill] sm:$0xff] }
 0x6ef   :  { %9706 = vmatpush.msrb.mxu0 %v21511_v53  ;;  %9546 = vmatmul.f32.vlgmr.msra.gmra.mxu1 %v16696_v16  ;;  %v21542_v18 = vld [vmem:[#allocation805_spill] sm:$0xff]  ;;  %v21543_v53 = vld [vmem:[#allocation806_spill] sm:$0xff] }
 0x6f0   :  { %9800 = vmatpush.msrb.mxu2 %v21512_v15  ;;  %9747 = vmatpush.msrb.mxu1 %v21456_v9  ;;  %v21518_v9 = vld [vmem:[#allocation761_spill] sm:$0xff]  ;;  %v21545_v15 = vld [vmem:[#allocation818_spill] sm:$0xff] }
 0x6f1   :  { %9863 = vmatpush.msrb.mxu3 %v21471_v5  ;;  %9709 = vmatpush.msrb.mxu0 %v21513_v43  ;;  %v21546_v43 = vld [vmem:[#allocation809_spill] sm:$0xff] }
 0x6f2   :  { %9804 = vmatpush.msrb.mxu2 %v21514_v37  ;;  %9749 = vmatpush.msrb.mxu1 %v21460_v7  ;;  %v21520_v7 = vld [vmem:[#allocation765_spill] sm:$0xff]  ;;  %v21548_v37 = vld [vmem:[#allocation822_spill] sm:$0xff] }
 0x6f3   :  { %9865 = vmatpush.msrb.mxu3 %v21474_v1  ;;  %9712 = vmatpush.msrb.mxu0 %v21515_v45  ;;  %v21549_v45 = vld [vmem:[#allocation812_spill] sm:$0xff] }
 0x6f4   :  { %9808 = vmatpush.msrb.mxu2 %v21516_v12  ;;  %9751 = vmatpush.msrb.mxu1 %v21464_v44  ;;  %v21522_v44 = vld [vmem:[#allocation770_spill] sm:$0xff] }
 0x6f5   :  { %9867 = vmatpush.msrb.mxu3 %v21477_v52  ;;  %9715 = vmatpush.msrb.mxu0 %v21517_v36  ;;  %v21551_v12 = vld [vmem:[#allocation826_spill] sm:$0xff]  ;;  %v21552_v36 = vld [vmem:[#allocation815_spill] sm:$0xff] }
 0x6f6   :  { %9812 = vmatpush.msrb.mxu2 %v21518_v9  ;;  %9753 = vmatpush.msrb.mxu1 %v21468_v55  ;;  %v21524_v55 = vld [vmem:[#allocation774_spill] sm:$0xff]  ;;  %v21553_v9 = vld [vmem:[#allocation819_spill] sm:$0xff] }
 0x6f7   :  { %9869 = vmatpush.msrb.mxu3 %v21480_v30  ;;  %9718 = vmatpush.msrb.mxu0 %v21519_v63  ;;  %v21554_v63 = vld [vmem:[#allocation830_spill] sm:$0xff] }
 0x6f8   :  { %9816 = vmatpush.msrb.mxu2 %v21520_v7  ;;  %9755 = vmatpush.msrb.mxu1 %v21471_v5  ;;  %v21526_v5 = vld [vmem:[#allocation778_spill] sm:$0xff]  ;;  %v21555_v7 = vld [vmem:[#allocation817_spill] sm:$0xff] }
 0x6f9   :  { %9871 = vmatpush.msrb.mxu3 %v21483_v19  ;;  %9721 = vmatpush.msrb.mxu0 %v21521_v35  ;;  %v21556_v35 = vld [vmem:[#allocation823_spill] sm:$0xff] }
 0x6fa   :  { %9820 = vmatpush.msrb.mxu2 %v21522_v44  ;;  %9757 = vmatpush.msrb.mxu1 %v21474_v1  ;;  %v21528_v1 = vld [vmem:[#allocation782_spill] sm:$0xff]  ;;  %v21557_v44 = vld [vmem:[#allocation835_spill] sm:$0xff] }
 0x6fb   :  { %9873 = vmatpush.msrb.mxu3 %v21486_v34  ;;  %9724 = vmatpush.msrb.mxu0 %v21523_v20  ;;  %v21558_v20 = vld [vmem:[#allocation821_spill] sm:$0xff] }
 0x6fc   :  { %9824 = vmatpush.msrb.mxu2 %v21524_v55  ;;  %9759 = vmatpush.msrb.mxu1 %v21477_v52  ;;  %v21530_v52 = vld [vmem:[#allocation786_spill] sm:$0xff]  ;;  %v21559_v55 = vld [vmem:[#allocation825_spill] sm:$0xff] }
 0x6fd   :  { %9875 = vmatpush.msrb.mxu3 %v21489_v11  ;;  %9727 = vmatpush.msrb.mxu0 %v21525_v24  ;;  %v21560_v24 = vld [vmem:[#allocation840_spill] sm:$0xff] }
 0x6fe   :  { %9828 = vmatpush.msrb.mxu2 %v21526_v5  ;;  %9761 = vmatpush.msrb.mxu1 %v21480_v30  ;;  %v21532_v30 = vld [vmem:[#allocation789_spill] sm:$0xff]  ;;  %v21561_v5 = vld [vmem:[#allocation827_spill] sm:$0xff] }
 0x6ff   :  { %9877 = vmatpush.msrb.mxu3 %v21492_v48  ;;  %9730 = vmatpush.msrb.mxu0 %v21527_v33  ;;  %v21562_v33 = vld [vmem:[#allocation829_spill] sm:$0xff] }
 0x700   :  { %9832 = vmatpush.msrb.mxu2 %v21528_v1  ;;  %9763 = vmatpush.msrb.mxu1 %v21483_v19  ;;  %v21534_v19 = vld [vmem:[#allocation792_spill] sm:$0xff]  ;;  %v21563_v1 = vld [vmem:[#allocation845_spill] sm:$0xff] }
 0x701   :  { %9879 = vmatpush.msrb.mxu3 %v21495_v46  ;;  %9733 = vmatpush.msrb.mxu0 %v21529_v14  ;;  %v21564_v14 = vld [vmem:[#allocation831_spill] sm:$0xff] }
 0x702   :  { %9836 = vmatpush.msrb.mxu2 %v21530_v52  ;;  %9765 = vmatpush.msrb.mxu1 %v21486_v34  ;;  %v21535_v34 = vld [vmem:[#allocation799_spill] sm:$0xff]  ;;  %v21565_v52 = vld [vmem:[#allocation836_spill] sm:$0xff] }
 0x703   :  { %9881 = vmatpush.msrb.mxu3 %v21498_v26  ;;  %9736 = vmatpush.msrb.mxu0 %v21531_v27  ;;  %v21566_v27 = vld [vmem:[#allocation851_spill] sm:$0xff] }
 0x704   :  { %9840 = vmatpush.msrb.mxu2 %v21532_v30  ;;  %9767 = vmatpush.msrb.mxu1 %v21489_v11  ;;  %v21536_v11 = vld [vmem:[#allocation794_spill] sm:$0xff]  ;;  %v21567_v30 = vld [vmem:[#allocation837_spill] sm:$0xff] }
 0x705   :  { %9883 = vmatpush.msrb.mxu3 %v21501_v23  ;;  %9739 = vmatpush.msrb.mxu0 %v21533_v13  ;;  %v21568_v13 = vld [vmem:[#allocation841_spill] sm:$0xff] }
 0x706   :  { %9844 = vmatpush.msrb.mxu2 %v21534_v19  ;;  %9769 = vmatpush.msrb.mxu1 %v21492_v48  ;;  %v21539_v48 = vld [vmem:[#allocation802_spill] sm:$0xff]  ;;  %v21569_v19 = vld [vmem:[#allocation855_spill] sm:$0xff] }
 0x707   :  { %9885 = vmatpush.msrb.mxu3 %v21504_v54  ;;  %9742 = vmatmul.f32.vlgmr.msrb.gmra.mxu0 %v16797_v56 }
 0x708   :  { %9887 = vmatmul.f32.vlgmr.msrb.gmra.mxu3 %v16786_v51  ;;  %9892 = vmatpush.msra.mxu0 %v21535_v34 }
 0x709   :  { %10088 = vmatpush.msra.mxu3 %v21535_v34  ;;  %9771 = vmatpush.msrb.mxu1 %v21495_v46  ;;  %v21541_v46 = vld [vmem:[#allocation804_spill] sm:$0xff] }
 0x70a   :  { %9848 = vmatpush.msrb.mxu2 %v21536_v11  ;;  %9894 = vmatpush.msra.mxu0 %v21537_v41  ;;  %v21570_v11 = vld [vmem:[#allocation842_spill] sm:$0xff] }
 0x70b   :  { %9850 = vmatmul.f32.vlgmr.msrb.gmra.mxu2 %v16786_v51  ;;  %10090 = vmatpush.msra.mxu3 %v21537_v41 }
 0x70c   :  { %10035 = vmatpush.msra.mxu2 %v21538_v39  ;;  %9773 = vmatpush.msrb.mxu1 %v21498_v26  ;;  %v21544_v26 = vld [vmem:[#allocation808_spill] sm:$0xff]  ;;  %v21571_v39 = vld [vmem:[#allocation846_spill] sm:$0xff] }
 0x70d   :  { %9896 = vmatpush.msra.mxu0 %v21539_v48  ;;  %10092 = vmatpush.msra.mxu3 %v21539_v48 }
 0x70e   :  { %10038 = vmatpush.msra.mxu2 %v21540_v57  ;;  %9775 = vmatpush.msrb.mxu1 %v21501_v23  ;;  %v21547_v23 = vld [vmem:[#allocation811_spill] sm:$0xff]  ;;  %v21572_v57 = vld [vmem:[#allocation861_spill] sm:$0xff] }
 0x70f   :  { %9898 = vmatpush.msra.mxu0 %v21541_v46  ;;  %10094 = vmatpush.msra.mxu3 %v21541_v46 }
 0x710   :  { %10041 = vmatpush.msra.mxu2 %v21542_v18  ;;  %9777 = vmatpush.msrb.mxu1 %v21504_v54  ;;  %v21550_v54 = vld [vmem:[#allocation814_spill] sm:$0xff]  ;;  %v21573_v18 = vld [vmem:[#allocation843_spill] sm:$0xff] }
 0x711   :  { %9900 = vmatpush.msra.mxu0 %v21543_v53  ;;  %9781 = vmatmul.f32.vlgmr.msrb.gmra.mxu1 %v16810_v22 }
 0x712   :  { %10044 = vmatpush.msra.mxu2 %v21544_v26  ;;  %9937 = vmatpush.msra.mxu1 %v21545_v15  ;;  %v21574_v26 = vld [vmem:[#allocation852_spill] sm:$0xff]  ;;  %v21575_v15 = vld [vmem:[#allocation869_spill] sm:$0xff] }
 0x713   :  { %10096 = vmatpush.msra.mxu3 %v21543_v53  ;;  %9902 = vmatpush.msra.mxu0 %v21546_v43 }
 0x714   :  { %10047 = vmatpush.msra.mxu2 %v21547_v23  ;;  %9943 = vmatpush.msra.mxu1 %v21548_v37  ;;  %v21576_v23 = vld [vmem:[#allocation849_spill] sm:$0xff]  ;;  %v21577_v37 = vld [vmem:[#allocation856_spill] sm:$0xff] }
 0x715   :  { %10098 = vmatpush.msra.mxu3 %v21546_v43  ;;  %9904 = vmatpush.msra.mxu0 %v21549_v45 }
 0x716   :  { %10050 = vmatpush.msra.mxu2 %v21550_v54  ;;  %9949 = vmatpush.msra.mxu1 %v21551_v12  ;;  %v21578_v54 = vld [vmem:[#allocation874_spill] sm:$0xff]  ;;  %v21579_v12 = vld [vmem:[#allocation807_spill] sm:$0xff] }
 0x717   :  { %10100 = vmatpush.msra.mxu3 %v21549_v45  ;;  %9906 = vmatpush.msra.mxu0 %v21552_v36 }
 0x718   :  { %10053 = vmatpush.msra.mxu2 %v21553_v9  ;;  %9955 = vmatpush.msra.mxu1 %v21554_v63  ;;  %v21580_v9 = vld [vmem:[#allocation877_spill] sm:$0xff]  ;;  %v21581_v63 = vld [vmem:[#allocation879_spill] sm:$0xff] }
 0x719   :  { %10102 = vmatpush.msra.mxu3 %v21552_v36  ;;  %9908 = vmatpush.msra.mxu0 %v21555_v7 }
 0x71a   :  { %10056 = vmatpush.msra.mxu2 %v21556_v35  ;;  %9961 = vmatpush.msra.mxu1 %v21557_v44  ;;  %v21582_v35 = vld [vmem:[#allocation862_spill] sm:$0xff] }
 0x71b   :  { %10104 = vmatpush.msra.mxu3 %v21555_v7  ;;  %9910 = vmatpush.msra.mxu0 %v21558_v20  ;;  %v21583_v44 = vld [vmem:[#allocation810_spill] sm:$0xff] }
 0x71c   :  { %10059 = vmatpush.msra.mxu2 %v21559_v55  ;;  %9967 = vmatpush.msra.mxu1 %v21560_v24  ;;  %v21584_v55 = vld [vmem:[#allocation834_spill] sm:$0xff] }
 0x71d   :  { %10106 = vmatpush.msra.mxu3 %v21558_v20  ;;  %9912 = vmatpush.msra.mxu0 %v21561_v5  ;;  %v21585_v24 = vld [vmem:[#allocation882_spill] sm:$0xff] }
 0x71e   :  { %10062 = vmatpush.msra.mxu2 %v21562_v33  ;;  %9973 = vmatpush.msra.mxu1 %v21563_v1  ;;  %v21586_v33 = vld [vmem:[#allocation884_spill] sm:$0xff]  ;;  %v21589_v1 = vld [vmem:[#allocation889_spill] sm:$0xff] }
 0x71f   :  { %10108 = vmatpush.msra.mxu3 %v21561_v5  ;;  %9914 = vmatpush.msra.mxu0 %v21564_v14 }
 0x720   :  { %10065 = vmatpush.msra.mxu2 %v21565_v52  ;;  %9979 = vmatpush.msra.mxu1 %v21566_v27  ;;  %v21590_v52 = vld [vmem:[#allocation887_spill] sm:$0xff]  ;;  %v21591_v27 = vld [vmem:[#allocation816_spill] sm:$0xff] }
 0x721   :  { %10110 = vmatpush.msra.mxu3 %v21564_v14  ;;  %9916 = vmatpush.msra.mxu0 %v21567_v30 }
 0x722   :  { %10068 = vmatpush.msra.mxu2 %v21568_v13  ;;  %9985 = vmatpush.msra.mxu1 %v21569_v19  ;;  %v21592_v13 = vld [vmem:[#allocation848_spill] sm:$0xff] }
 0x723   :  { %10112 = vmatpush.msra.mxu3 %v21567_v30  ;;  %9918 = vmatpush.msra.mxu0 %v21570_v11  ;;  %v21594_v19 = vld [vmem:[#allocation892_spill] sm:$0xff] }
 0x724   :  { %10071 = vmatpush.msra.mxu2 %v21571_v39  ;;  %9991 = vmatpush.msra.mxu1 %v21572_v57  ;;  %v21595_v39 = vld [vmem:[#allocation820_spill] sm:$0xff]  ;;  %v21596_v57 = vld [vmem:[#allocation854_spill] sm:$0xff] }
 0x725   :  { %10114 = vmatpush.msra.mxu3 %v21570_v11  ;;  %9920 = vmatpush.msra.mxu0 %v21573_v18 }
 0x726   :  { %10074 = vmatpush.msra.mxu2 %v21574_v26  ;;  %9997 = vmatpush.msra.mxu1 %v21575_v15  ;;  %v21597_v26 = vld [vmem:[#allocation897_spill] sm:$0xff]  ;;  %v21598_v15 = vld [vmem:[#allocation824_spill] sm:$0xff] }
 0x727   :  { %10116 = vmatpush.msra.mxu3 %v21573_v18  ;;  %9922 = vmatpush.msra.mxu0 %v21576_v23 }
 0x728   :  { %10077 = vmatpush.msra.mxu2 %v21577_v37  ;;  %10003 = vmatpush.msra.mxu1 %v21578_v54  ;;  %v21599_v37 = vld [vmem:[#allocation860_spill] sm:$0xff]  ;;  %v21600_v54 = vld [vmem:[#allocation901_spill] sm:$0xff] }
 0x729   :  { %10118 = vmatpush.msra.mxu3 %v21576_v23  ;;  %9928 = vmatmul.f32.vlgmr.msra.gmra.mxu0 %v16446_v60  ;;  %v21587_v60 = vld [vmem:[#allocation813_spill] sm:$0xff] }
 0x72a   :  { %10122 = vmatmul.f32.vlgmr.msra.gmra.mxu3 %v16424_v4  ;;  %10129 = vmatpush.msrb.mxu0 %v21579_v12  ;;  %v21588_v4 = vld [vmem:[#allocation839_spill] sm:$0xff]  ;;  %v21601_v12 = vld [vmem:[#allocation828_spill] sm:$0xff] }
 0x72b   :  { %10278 = vmatpush.msrb.mxu3 %v21580_v9  ;;  %10009 = vmatpush.msra.mxu1 %v21581_v63  ;;  %v21602_v9 = vld [vmem:[#allocation866_spill] sm:$0xff]  ;;  %v21603_v63 = vld [vmem:[#allocation905_spill] sm:$0xff] }
 0x72c   :  { %10080 = vmatpush.msra.mxu2 %v21582_v35  ;;  %10133 = vmatpush.msrb.mxu0 %v21583_v44  ;;  %v21604_v35 = vld [vmem:[#allocation832_spill] sm:$0xff]  ;;  %v21606_v44 = vld [vmem:[#allocation909_spill] sm:$0xff] }
 0x72d   :  { %10083 = vmatmul.f32.vlgmr.msra.gmra.mxu2 %v16411_v38  ;;  %10284 = vmatpush.msrb.mxu3 %v21585_v24  ;;  %v21593_v38 = vld [vmem:[#allocation894_spill] sm:$0xff]  ;;  %v21607_v24 = vld [vmem:[#allocation833_spill] sm:$0xff] }
 0x72e   :  { %10233 = vmatpush.msrb.mxu2 %v21584_v55  ;;  %10015 = vmatpush.msra.mxu1 %v21586_v33  ;;  %v21609_v33 = vld [vmem:[#allocation913_spill] sm:$0xff] }
 0x72f   :  { %10137 = vmatpush.msrb.mxu0 %v21587_v60  ;;  %10290 = vmatpush.msrb.mxu3 %v21589_v1  ;;  %v21610_v60 = vld [vmem:[#allocation838_spill] sm:$0xff]  ;;  %v21612_v1 = vld [vmem:[#allocation916_spill] sm:$0xff] }
 0x730   :  { %10235 = vmatpush.msrb.mxu2 %v21588_v4  ;;  %10021 = vmatpush.msra.mxu1 %v21590_v52  ;;  %v21613_v52 = vld [vmem:[#allocation847_spill] sm:$0xff] }
 0x731   :  { %10141 = vmatpush.msrb.mxu0 %v21591_v27  ;;  %10296 = vmatpush.msrb.mxu3 %v21593_v38  ;;  %v21615_v27 = vld [vmem:[#allocation919_spill] sm:$0xff]  ;;  %v21616_v38 = vld [vmem:[#allocation853_spill] sm:$0xff] }
 0x732   :  { %10237 = vmatpush.msrb.mxu2 %v21592_v13  ;;  %10027 = vmatpush.msra.mxu1 %v21594_v19  ;;  %v21618_v19 = vld [vmem:[#allocation921_spill] sm:$0xff] }
 0x733   :  { %10145 = vmatpush.msrb.mxu0 %v21595_v39  ;;  %10029 = vmatmul.f32.vlgmr.msra.gmra.mxu1 %v16398_v49  ;;  %v21619_v39 = vld [vmem:[#allocation858_spill] sm:$0xff] }
 0x734   :  { %10239 = vmatpush.msrb.mxu2 %v21596_v57  ;;  %10196 = vmatpush.msrb.mxu1 %v21535_v34  ;;  %v21605_v34 = vld [vmem:[#allocation868_spill] sm:$0xff] }
 0x735   :  { %10302 = vmatpush.msrb.mxu3 %v21597_v26  ;;  %10149 = vmatpush.msrb.mxu0 %v21598_v15  ;;  %v21621_v26 = vld [vmem:[#allocation923_spill] sm:$0xff]  ;;  %v21622_v15 = vld [vmem:[#allocation864_spill] sm:$0xff] }
 0x736   :  { %10241 = vmatpush.msrb.mxu2 %v21599_v37  ;;  %10198 = vmatpush.msrb.mxu1 %v21537_v41  ;;  %v21608_v41 = vld [vmem:[#allocation873_spill] sm:$0xff] }
 0x737   :  { %10308 = vmatpush.msrb.mxu3 %v21600_v54  ;;  %10153 = vmatpush.msrb.mxu0 %v21601_v12  ;;  %v21624_v54 = vld [vmem:[#allocation924_spill] sm:$0xff]  ;;  %v21625_v12 = vld [vmem:[#allocation867_spill] sm:$0xff] }
 0x738   :  { %10243 = vmatpush.msrb.mxu2 %v21602_v9  ;;  %10200 = vmatpush.msrb.mxu1 %v21539_v48  ;;  %v21611_v48 = vld [vmem:[#allocation881_spill] sm:$0xff] }
 0x739   :  { %10314 = vmatpush.msrb.mxu3 %v21603_v63  ;;  %10157 = vmatpush.msrb.mxu0 %v21604_v35  ;;  %v21627_v63 = vld [vmem:[#allocation925_spill] sm:$0xff]  ;;  %v21628_v35 = vld [vmem:[#allocation872_spill] sm:$0xff] }
 0x73a   :  { %10245 = vmatpush.msrb.mxu2 %v21605_v34  ;;  %10202 = vmatpush.msrb.mxu1 %v21541_v46  ;;  %v21614_v46 = vld [vmem:[#allocation886_spill] sm:$0xff] }
 0x73b   :  { %10320 = vmatpush.msrb.mxu3 %v21606_v44  ;;  %10161 = vmatpush.msrb.mxu0 %v21607_v24  ;;  %v21630_v44 = vld [vmem:[#allocation926_spill] sm:$0xff]  ;;  %v8565_v24 = vpop.f32.mrf.mxu0 }
 0x73c   :  { %10247 = vmatpush.msrb.mxu2 %v21608_v41  ;;  %10204 = vmatpush.msrb.mxu1 %v21543_v53  ;;  %v21617_v53 = vld [vmem:[#allocation891_spill] sm:$0xff] }
 0x73d   :  { %10326 = vmatpush.msrb.mxu3 %v21609_v33  ;;  %10165 = vmatpush.msrb.mxu0 %v21610_v60  ;;  %v21633_v33 = vld [vmem:[#allocation850_spill] sm:$0xff]  ;;  %v8666_v60 = vpop.f32.mrf.mxu1 }
 0x73e   :  { %10249 = vmatpush.msrb.mxu2 %v21611_v48  ;;  %10206 = vmatpush.msrb.mxu1 %v21546_v43  ;;  %v21620_v43 = vld [vmem:[#allocation896_spill] sm:$0xff] }
 0x73f   :  { %10332 = vmatpush.msrb.mxu3 %v21612_v1  ;;  %10169 = vmatpush.msrb.mxu0 %v21613_v52  ;;  %v21635_v1 = vld [vmem:[#allocation859_spill] sm:$0xff]  ;;  %v8566_v52 = vadd.f32 1e-05, %v8565_v24  ;;  %v21648_v24 = vld [vmem:[#allocation893_spill] sm:$0xff] }
 0x740   :  { %10251 = vmatpush.msrb.mxu2 %v21614_v46  ;;  %10208 = vmatpush.msrb.mxu1 %v21549_v45  ;;  %v21623_v45 = vld [vmem:[#allocation900_spill] sm:$0xff] }
 0x741   :  { %10338 = vmatpush.msrb.mxu3 %v21615_v27  ;;  %10173 = vmatpush.msrb.mxu0 %v21616_v38  ;;  %v21636_v27 = vld [vmem:[#allocation863_spill] sm:$0xff]  ;;  %v21638_v38 = vld [vmem:[#allocation870_spill] sm:$0xff] }
 0x742   :  { %10253 = vmatpush.msrb.mxu2 %v21617_v53  ;;  %10210 = vmatpush.msrb.mxu1 %v21552_v36  ;;  %v21626_v36 = vld [vmem:[#allocation904_spill] sm:$0xff] }
 0x743   :  { %10344 = vmatpush.msrb.mxu3 %v21618_v19  ;;  %10177 = vmatpush.msrb.mxu0 %v21619_v39  ;;  %v21639_v19 = vld [vmem:[#allocation871_spill] sm:$0xff]  ;;  %v8720_v39 = vpop.f32.mrf.mxu2 }
 0x744   :  { %10255 = vmatpush.msrb.mxu2 %v21620_v43  ;;  %10212 = vmatpush.msrb.mxu1 %v21555_v7  ;;  %v21629_v7 = vld [vmem:[#allocation908_spill] sm:$0xff] }
 0x745   :  { %10350 = vmatpush.msrb.mxu3 %v21621_v26  ;;  %10181 = vmatpush.msrb.mxu0 %v21622_v15  ;;  %v21641_v26 = vld [vmem:[#allocation876_spill] sm:$0xff] }
 0x746   :  { %10257 = vmatpush.msrb.mxu2 %v21623_v45  ;;  %10214 = vmatpush.msrb.mxu1 %v21558_v20  ;;  %v21631_v20 = vld [vmem:[#allocation844_spill] sm:$0xff] }
 0x747   :  { %10356 = vmatpush.msrb.mxu3 %v21624_v54  ;;  %10185 = vmatpush.msrb.mxu0 %v21625_v12  ;;  %v21642_v15 = vld [vmem:[#allocation880_spill] sm:$0xff]  ;;  %v21644_v54 = vld [vmem:[#allocation885_spill] sm:$0xff]  ;;  %v8828_v12 = vpop.f32.mrf.mxu0 }
 0x748   :  { %10259 = vmatpush.msrb.mxu2 %v21626_v36  ;;  %10216 = vmatpush.msrb.mxu1 %v21561_v5  ;;  %v21632_v5 = vld [vmem:[#allocation912_spill] sm:$0xff] }
 0x749   :  { %10362 = vmatpush.msrb.mxu3 %v21627_v63  ;;  %10189 = vmatpush.msrb.mxu0 %v21628_v35  ;;  %v21645_v63 = vld [vmem:[#allocation883_spill] sm:$0xff]  ;;  %v21646_v35 = vld [vmem:[#allocation888_spill] sm:$0xff] }
 0x74a   :  { %10261 = vmatpush.msrb.mxu2 %v21629_v7  ;;  %10218 = vmatpush.msrb.mxu1 %v21564_v14  ;;  %v21634_v14 = vld [vmem:[#allocation857_spill] sm:$0xff] }
 0x74b   :  { %10368 = vmatpush.msrb.mxu3 %v21630_v44  ;;  %10191 = vmatmul.f32.vlgmr.msrb.gmra.mxu0 %v16398_v49  ;;  %v8865_v44 = vpop.f32.mrf.mxu1 }
 0x74c   :  { %10370 = vmatmul.f32.vlgmr.msrb.gmra.mxu3 %v16514_v40  ;;  %10376 = vmatpush.msra.mxu0 %v21631_v20  ;;  %v21647_v20 = vld [vmem:[#allocation890_spill] sm:$0xff] }
 0x74d   :  { %10537 = vmatpush.msra.mxu3 %v21584_v55  ;;  %10220 = vmatpush.msrb.mxu1 %v21567_v30  ;;  %v21637_v30 = vld [vmem:[#allocation865_spill] sm:$0xff] }
 0x74e   :  { %10263 = vmatpush.msrb.mxu2 %v21632_v5  ;;  %10379 = vmatpush.msra.mxu0 %v21633_v33  ;;  %v21649_v33 = vld [vmem:[#allocation895_spill] sm:$0xff] }
 0x74f   :  { %10269 = vmatmul.f32.vlgmr.msrb.gmra.mxu2 %v16581_v10  ;;  %10539 = vmatpush.msra.mxu3 %v21588_v4  ;;  %v8667_v10 = vadd.f32 %v8666_v60, %v8566_v52  ;;  %v21652_v60 = vld [vmem:[#allocation902_spill] sm:$0xff]  ;;  %v21653_v52 = vld [vmem:[#allocation903_spill] sm:$0xff] }
 0x750   :  { %10470 = vmatpush.msra.mxu2 %v21634_v14  ;;  %10222 = vmatpush.msrb.mxu1 %v21570_v11  ;;  %v21640_v11 = vld [vmem:[#allocation875_spill] sm:$0xff]  ;;  %v21650_v14 = vld [vmem:[#allocation898_spill] sm:$0xff] }
 0x751   :  { %10382 = vmatpush.msra.mxu0 %v21635_v1  ;;  %10541 = vmatpush.msra.mxu3 %v21592_v13  ;;  %v8906_v1 = vpop.f32.mrf.mxu2 }
 0x752   :  { %10474 = vmatpush.msra.mxu2 %v21636_v27  ;;  %10224 = vmatpush.msrb.mxu1 %v21573_v18  ;;  %v8721_v18 = vadd.f32 %v8720_v39, %v8667_v10  ;;  %v21654_v27 = vld [vmem:[#allocation906_spill] sm:$0xff] }
 0x753   :  { %10385 = vmatpush.msra.mxu0 %v21637_v30  ;;  %10543 = vmatpush.msra.mxu3 %v21596_v57  ;;  %v21656_v30 = vld [vmem:[#allocation910_spill] sm:$0xff]  ;;  %v9100_v39 = vpop.f32.mrf.mxu1 }
 0x754   :  { %10478 = vmatpush.msra.mxu2 %v21638_v38  ;;  %10226 = vmatpush.msrb.mxu1 %v21576_v23  ;;  %v21643_v23 = vld [vmem:[#allocation878_spill] sm:$0xff]  ;;  %v9061_v38 = vpop.f32.mrf.mxu0 }
 0x755   :  { %10388 = vmatpush.msra.mxu0 %v21639_v19  ;;  %10228 = vmatmul.f32.vlgmr.msrb.gmra.mxu1 %v16398_v49  ;;  %v8759_v49 = vpop.f32.mrf.mxu3  ;;  %v21657_v19 = vld [vmem:[#allocation911_spill] sm:$0xff] }
 0x756   :  { %10482 = vmatpush.msra.mxu2 %v21640_v11  ;;  %10429 = vmatpush.msra.mxu1 %v21584_v55  ;;  %v8760_v55 = vadd.f32 %v8759_v49, %v8721_v18  ;;  %v21658_v11 = vld [vmem:[#allocation914_spill] sm:$0xff]  ;;  %v21659_v18 = vld [vmem:[#allocation915_spill] sm:$0xff] }
 0x757   :  { %10545 = vmatpush.msra.mxu3 %v21599_v37  ;;  %10391 = vmatpush.msra.mxu0 %v21641_v26  ;;  %v21660_v26 = vld [vmem:[#allocation917_spill] sm:$0xff]  ;;  %v21664_v49 = vld [vmem:[#allocation922_spill] sm:$0xff] }
 0x758   :  { %10486 = vmatpush.msra.mxu2 %v21642_v15  ;;  %10431 = vmatpush.msra.mxu1 %v21588_v4  ;;  %v8829_v4 = vadd.f32 %v8828_v12, %v8760_v55  ;;  %v21661_v15 = vld [vmem:[#allocation918_spill] sm:$0xff]  ;;  %v21665_v12 = vld [vmem:[#allocation141_spill] sm:$0xff] }
 0x759   :  { %10547 = vmatpush.msra.mxu3 %v21602_v9  ;;  %10394 = vmatpush.msra.mxu0 %v21643_v23  ;;  %v21662_v23 = vld [vmem:[#allocation920_spill] sm:$0xff] }
 0x75a   :  { %10490 = vmatpush.msra.mxu2 %v21644_v54  ;;  %10433 = vmatpush.msra.mxu1 %v21592_v13  ;;  %v8866_v13 = vadd.f32 %v8865_v44, %v8829_v4  ;;  %v21663_v54 = vld [vmem:[#allocation147_spill] sm:$0xff] }
 0x75b   :  { %10549 = vmatpush.msra.mxu3 %v21605_v34  ;;  %10397 = vmatpush.msra.mxu0 %v21645_v63  ;;  %v21669_v4 = vld [vmem:[#allocation927_spill] sm:$0xff] }
 0x75c   :  { %10494 = vmatpush.msra.mxu2 %v21646_v35  ;;  %10435 = vmatpush.msra.mxu1 %v21596_v57  ;;  %v21651_v57 = vld [vmem:[#allocation899_spill] sm:$0xff]  ;;  %v9247_v55 = vpop.f32.mrf.mxu0  ;;  %v21667_v35 = vld [vmem:[#allocation150_spill] sm:$0xff] }
 0x75d   :  { %10551 = vmatpush.msra.mxu3 %v21608_v41  ;;  %10400 = vmatpush.msra.mxu0 %v21647_v20  ;;  %v9007_v10 = vpop.f32.mrf.mxu3 }
 0x75e   :  { %10498 = vmatpush.msra.mxu2 %v21648_v24  ;;  %10437 = vmatpush.msra.mxu1 %v21599_v37  ;;  %v8907_v37 = vadd.f32 %v8906_v1, %v8866_v13  ;;  %v21671_v24 = vld [vmem:[#allocation148_spill] sm:$0xff]  ;;  %v21672_v13 = vld [vmem:[#allocation935_spill] sm:$0xff] }
 0x75f   :  { %10553 = vmatpush.msra.mxu3 %v21611_v48  ;;  %10403 = vmatpush.msra.mxu0 %v21649_v33 }
 0x760   :  { %10502 = vmatpush.msra.mxu2 %v21650_v14  ;;  %10439 = vmatpush.msra.mxu1 %v21602_v9  ;;  %v21655_v9 = vld [vmem:[#allocation907_spill] sm:$0xff]  ;;  %v21674_v14 = vld [vmem:[#allocation937_spill] sm:$0xff] }
 0x761   :  { %10555 = vmatpush.msra.mxu3 %v21614_v46  ;;  %10406 = vmatpush.msra.mxu0 %v21651_v57  ;;  %v21675_v57 = vld [vmem:[#allocation933_spill] sm:$0xff] }
 0x762   :  { %10506 = vmatpush.msra.mxu2 %v21652_v60  ;;  %10441 = vmatpush.msra.mxu1 %v21605_v34  ;;  %v9008_v34 = vadd.f32 %v9007_v10, %v8907_v37  ;;  %v21677_v60 = vld [vmem:[#allocation936_spill] sm:$0xff] }
 0x763   :  { %10557 = vmatpush.msra.mxu3 %v21617_v53  ;;  %10409 = vmatpush.msra.mxu0 %v21653_v52  ;;  %v21678_v52 = vld [vmem:[#allocation944_spill] sm:$0xff] }
 0x764   :  { %10510 = vmatpush.msra.mxu2 %v21654_v27  ;;  %10443 = vmatpush.msra.mxu1 %v21608_v41  ;;  %v9062_v41 = vadd.f32 %v9061_v38, %v9008_v34  ;;  %v9510_v37 = vpop.f32.mrf.mxu0  ;;  %v21680_v10 = vld [vmem:[#allocation948_spill] sm:$0xff]  ;;  %v21681_v34 = vld [vmem:[#allocation941_spill] sm:$0xff] }
 0x765   :  { %10559 = vmatpush.msra.mxu3 %v21620_v43  ;;  %10412 = vmatpush.msra.mxu0 %v21655_v9  ;;  %v21679_v9 = vld [vmem:[#allocation938_spill] sm:$0xff] }
 0x766   :  { %10514 = vmatpush.msra.mxu2 %v21656_v30  ;;  %10445 = vmatpush.msra.mxu1 %v21611_v48  ;;  %v9101_v48 = vadd.f32 %v9100_v39, %v9062_v41  ;;  %v21683_v39 = vld [vmem:[#allocation942_spill] sm:$0xff]  ;;  %v21684_v41 = vld [vmem:[#allocation945_spill] sm:$0xff] }
 0x767   :  { %10561 = vmatpush.msra.mxu3 %v21623_v45  ;;  %10415 = vmatpush.msra.mxu0 %v21657_v19  ;;  %v21682_v19 = vld [vmem:[#allocation953_spill] sm:$0xff] }
 0x768   :  { %10518 = vmatpush.msra.mxu2 %v21658_v11  ;;  %10447 = vmatpush.msra.mxu1 %v21614_v46  ;;  %v9169_v46 = vpop.f32.mrf.mxu2 }
 0x769   :  { %10563 = vmatpush.msra.mxu3 %v21626_v36  ;;  %10418 = vmatpush.msra.mxu0 %v21659_v18  ;;  %v21685_v18 = vld [vmem:[#allocation958_spill] sm:$0xff] }
 0x76a   :  { %10522 = vmatpush.msra.mxu2 %v21660_v26  ;;  %10449 = vmatpush.msra.mxu1 %v21617_v53  ;;  %v9170_v53 = vadd.f32 %v9169_v46, %v9101_v48  ;;  %v21686_v26 = vld [vmem:[#allocation946_spill] sm:$0xff] }
 0x76b   :  { %10565 = vmatpush.msra.mxu3 %v21629_v7  ;;  %10421 = vmatpush.msra.mxu0 %v21661_v15  ;;  %v21687_v48 = vld [vmem:[#allocation950_spill] sm:$0xff] }
 0x76c   :  { %10526 = vmatpush.msra.mxu2 %v21662_v23  ;;  %10451 = vmatpush.msra.mxu1 %v21620_v43  ;;  %v21666_v43 = vld [vmem:[#allocation136_spill] sm:$0xff] }
 0x76d   :  { %10567 = vmatpush.msra.mxu3 %v21632_v5  ;;  %10424 = vmatmul.f32.vlgmr.msra.gmra.mxu0 %v16532_v59  ;;  %v9206_v59 = vpop.f32.mrf.mxu3  ;;  %v21688_v23 = vld [vmem:[#allocation964_spill] sm:$0xff] }
 0x76e   :  { %10569 = vmatmul.f32.vlgmr.msra.gmra.mxu3 %v16514_v40  ;;  %10574 = vmatpush.msrb.mxu0 %v21663_v54  ;;  %v9207_v63 = vadd.f32 %v9206_v59, %v9170_v53  ;;  %v21689_v53 = vld [vmem:[#allocation951_spill] sm:$0xff] }
 0x76f   :  { %10770 = vmatpush.msrb.mxu3 %v21663_v54  ;;  %10453 = vmatpush.msra.mxu1 %v21623_v45  ;;  %v9348_v45 = vpop.f32.mrf.mxu1  ;;  %v21692_v59 = vld [vmem:[#allocation959_spill] sm:$0xff] }
 0x770   :  { %10530 = vmatpush.msra.mxu2 %v21664_v49  ;;  %10576 = vmatpush.msrb.mxu0 %v21665_v12  ;;  %v9248_v44 = vadd.f32 %v9247_v55, %v9207_v63  ;;  %v9402_v33 = vpop.f32.mrf.mxu2  ;;  %v21690_v49 = vld [vmem:[#allocation954_spill] sm:$0xff]  ;;  %v21693_v63 = vld [vmem:[#allocation975_spill] sm:$0xff] }
 0x771   :  { %10532 = vmatmul.f32.vlgmr.msra.gmra.mxu2 %v16514_v40  ;;  %10772 = vmatpush.msrb.mxu3 %v21665_v12  ;;  %v21668_v40 = vld [vmem:[#allocation129_spill] sm:$0xff] }
 0x772   :  { %10717 = vmatpush.msrb.mxu2 %v21666_v43  ;;  %10455 = vmatpush.msra.mxu1 %v21626_v36  ;;  %v21670_v36 = vld [vmem:[#allocation144_spill] sm:$0xff]  ;;  %v9349_v20 = vadd.f32 %v9348_v45, %v9248_v44  ;;  %v21691_v43 = vld [vmem:[#allocation969_spill] sm:$0xff]  ;;  %v21694_v45 = vld [vmem:[#allocation966_spill] sm:$0xff] }
 0x773   :  { %10578 = vmatpush.msrb.mxu0 %v15697_v28  ;;  %10774 = vmatpush.msrb.mxu3 %v15697_v28 }
 0x774   :  { %10720 = vmatpush.msrb.mxu2 %v21667_v35  ;;  %10457 = vmatpush.msra.mxu1 %v21629_v7  ;;  %v21673_v7 = vld [vmem:[#allocation930_spill] sm:$0xff] }
 0x775   :  { %10580 = vmatpush.msrb.mxu0 %v21668_v40  ;;  %10776 = vmatpush.msrb.mxu3 %v21668_v40  ;;  %v9441_v1 = vpop.f32.mrf.mxu3 }
 0x776   :  { %10723 = vmatpush.msrb.mxu2 %v21669_v4  ;;  %10459 = vmatpush.msra.mxu1 %v21632_v5  ;;  %v9403_v5 = vadd.f32 %v9402_v33, %v9349_v20  ;;  %v21695_v4 = vld [vmem:[#allocation979_spill] sm:$0xff]  ;;  %v21696_v20 = vld [vmem:[#allocation972_spill] sm:$0xff] }
 0x777   :  { %10582 = vmatpush.msrb.mxu0 %v21670_v36  ;;  %10463 = vmatmul.f32.vlgmr.msra.gmra.mxu1 %v16553_v21  ;;  %v21676_v21 = vld [vmem:[#allocation149_spill] sm:$0xff]  ;;  %v9547_v30 = vpop.f32.mrf.mxu1 }
 0x778   :  { %10726 = vmatpush.msrb.mxu2 %v21671_v24  ;;  %10619 = vmatpush.msrb.mxu1 %v21672_v13  ;;  %v9442_v27 = vadd.f32 %v9441_v1, %v9403_v5  ;;  %v9588_v15 = vpop.f32.mrf.mxu2  ;;  %v21697_v13 = vld [vmem:[#allocation985_spill] sm:$0xff]  ;;  %v21699_v5 = vld [vmem:[#allocation987_spill] sm:$0xff] }
 0x779   :  { %10778 = vmatpush.msrb.mxu3 %v21670_v36  ;;  %10584 = vmatpush.msrb.mxu0 %v15727_v25 }
 0x77a   :  { %10729 = vmatpush.msrb.mxu2 %v21673_v7  ;;  %10625 = vmatpush.msrb.mxu1 %v21674_v14  ;;  %v9511_v38 = vadd.f32 %v9510_v37, %v9442_v27  ;;  %v21698_v14 = vld [vmem:[#allocation928_spill] sm:$0xff]  ;;  %v21702_v37 = vld [vmem:[#allocation929_spill] sm:$0xff]  ;;  %v21704_v27 = vld [vmem:[#allocation227_spill] sm:$0xff] }
 0x77b   :  { %10780 = vmatpush.msrb.mxu3 %v15727_v25  ;;  %10586 = vmatpush.msrb.mxu0 %v15741_v29 }
 0x77c   :  { %10732 = vmatpush.msrb.mxu2 %v21675_v57  ;;  %10631 = vmatpush.msrb.mxu1 %v21676_v21  ;;  %v9548_v11 = vadd.f32 %v9547_v30, %v9511_v38  ;;  %v21700_v21 = vld [vmem:[#allocation990_spill] sm:$0xff]  ;;  %v21706_v30 = vld [vmem:[#allocation1000_spill] sm:$0xff]  ;;  %v21709_v38 = vld [vmem:[#allocation963_spill] sm:$0xff] }
 0x77d   :  { %10782 = vmatpush.msrb.mxu3 %v15741_v29  ;;  %10588 = vmatpush.msrb.mxu0 %v15758_v32  ;;  %v9689_v55 = vpop.f32.mrf.mxu3 }
 0x77e   :  { %10735 = vmatpush.msrb.mxu2 %v21677_v60  ;;  %10637 = vmatpush.msrb.mxu1 %v21678_v52  ;;  %v9589_v46 = vadd.f32 %v9588_v15, %v9548_v11  ;;  %v21701_v60 = vld [vmem:[#allocation980_spill] sm:$0xff]  ;;  %v21712_v11 = vld [vmem:[#allocation934_spill] sm:$0xff] }
 0x77f   :  { %10784 = vmatpush.msrb.mxu3 %v15758_v32  ;;  %10590 = vmatpush.msrb.mxu0 %v15774_v58  ;;  %v21715_v15 = vld [vmem:[#allocation940_spill] sm:$0xff] }
 0x780   :  { %10738 = vmatpush.msrb.mxu2 %v21679_v9  ;;  %10643 = vmatpush.msrb.mxu1 %v21680_v10  ;;  %v9690_v44 = vadd.f32 %v9689_v55, %v9589_v46  ;;  %v21705_v9 = vld [vmem:[#allocation931_spill] sm:$0xff]  ;;  %v21707_v10 = vld [vmem:[#allocation1001_spill] sm:$0xff] }
 0x781   :  { %10786 = vmatpush.msrb.mxu3 %v15774_v58  ;;  %10592 = vmatpush.msrb.mxu0 %v20738_v17 }
 0x782   :  { %10741 = vmatpush.msrb.mxu2 %v21681_v34  ;;  %10649 = vmatpush.msrb.mxu1 %v21682_v19  ;;  %v21710_v34 = vld [vmem:[#allocation195_spill] sm:$0xff]  ;;  %v21711_v19 = vld [vmem:[#allocation1006_spill] sm:$0xff] }
 0x783   :  { %10788 = vmatpush.msrb.mxu3 %v20738_v17  ;;  %10594 = vmatpush.msrb.mxu0 %v21683_v39 }
 0x784   :  { %10744 = vmatpush.msrb.mxu2 %v21684_v41  ;;  %10655 = vmatpush.msrb.mxu1 %v21685_v18  ;;  %v9743_v35 = vpop.f32.mrf.mxu0  ;;  %v21713_v41 = vld [vmem:[#allocation968_spill] sm:$0xff]  ;;  %v21714_v18 = vld [vmem:[#allocation206_spill] sm:$0xff] }
 0x785   :  { %10790 = vmatpush.msrb.mxu3 %v21683_v39  ;;  %10596 = vmatpush.msrb.mxu0 %v21686_v26  ;;  %v9744_v24 = vadd.f32 %v9743_v35, %v9690_v44  ;;  %v21722_v35 = vld [vmem:[#allocation984_spill] sm:$0xff]  ;;  %v21723_v44 = vld [vmem:[#allocation1019_spill] sm:$0xff] }
 0x786   :  { %10747 = vmatpush.msrb.mxu2 %v21687_v48  ;;  %10661 = vmatpush.msrb.mxu1 %v21688_v23  ;;  %v21716_v23 = vld [vmem:[#allocation976_spill] sm:$0xff] }
 0x787   :  { %10792 = vmatpush.msrb.mxu3 %v21686_v26  ;;  %10598 = vmatpush.msrb.mxu0 %v21689_v53 }
 0x788   :  { %10750 = vmatpush.msrb.mxu2 %v21690_v49  ;;  %10667 = vmatpush.msrb.mxu1 %v21691_v43  ;;  %v21717_v49 = vld [vmem:[#allocation1012_spill] sm:$0xff]  ;;  %v21718_v43 = vld [vmem:[#allocation943_spill] sm:$0xff] }
 0x789   :  { %10794 = vmatpush.msrb.mxu3 %v21689_v53  ;;  %10600 = vmatpush.msrb.mxu0 %v20748_v2 }
 0x78a   :  { %10753 = vmatpush.msrb.mxu2 %v21692_v59  ;;  %10673 = vmatpush.msrb.mxu1 %v21693_v63  ;;  %v21719_v59 = vld [vmem:[#allocation981_spill] sm:$0xff]  ;;  %v21721_v63 = vld [vmem:[#allocation947_spill] sm:$0xff] }
 0x78b   :  { %10796 = vmatpush.msrb.mxu3 %v20748_v2  ;;  %10602 = vmatpush.msrb.mxu0 %v20752_v31  ;;  %v9888_v52 = vpop.f32.mrf.mxu3 }
 0x78c   :  { %10756 = vmatpush.msrb.mxu2 %v21694_v45  ;;  %10679 = vmatpush.msrb.mxu1 %v21695_v4  ;;  %v21725_v4 = vld [vmem:[#allocation989_spill] sm:$0xff] }
 0x78d   :  { %10798 = vmatpush.msrb.mxu3 %v20752_v31  ;;  %10604 = vmatpush.msrb.mxu0 %v20756_v3 }
 0x78e   :  { %10759 = vmatpush.msrb.mxu2 %v21696_v20  ;;  %10685 = vmatpush.msrb.mxu1 %v21697_v13  ;;  %v9782_v7 = vpop.f32.mrf.mxu1  ;;  %v9851_v57 = vpop.f32.mrf.mxu2  ;;  %v21728_v13 = vld [vmem:[#allocation996_spill] sm:$0xff] }
 0x78f   :  { %10800 = vmatpush.msrb.mxu3 %v20756_v3  ;;  %10610 = vmatmul.f32.vlgmr.msrb.gmra.mxu0 %v16740_v61  ;;  %v9783_v33 = vadd.f32 %v9782_v7, %v9744_v24  ;;  %v21703_v61 = vld [vmem:[#allocation993_spill] sm:$0xff]  ;;  %v21727_v24 = vld [vmem:[#allocation955_spill] sm:$0xff] }
 0x790   :  { %10804 = vmatmul.f32.vlgmr.msrb.gmra.mxu3 %v16720_v6  ;;  %10811 = vmatpush.msra.mxu0 %v21698_v14 }
 0x791   :  { %10960 = vmatpush.msra.mxu3 %v21699_v5  ;;  %10691 = vmatpush.msrb.mxu1 %v21700_v21  ;;  %v9852_v1 = vadd.f32 %v9851_v57, %v9783_v33  ;;  %v18050_v33 = vld [vmem:[#allocation5] sm:$0xf]  ;;  %v21730_v5 = vld [vmem:[#allocation960_spill] sm:$0xff]  ;;  %v21732_v21 = vld [vmem:[#allocation1029_spill] sm:$0xff] }
 0x792   :  { %10762 = vmatpush.msrb.mxu2 %v21701_v60  ;;  %10815 = vmatpush.msra.mxu0 %v21702_v37  ;;  %v11303_v14 = vperm.slane %v18050_v33, 2  ;;  %v18060_v37 = vld [vmem:[#allocation7] sm:$0xf] }
 0x793   :  { %10765 = vmatmul.f32.vlgmr.msrb.gmra.mxu2 %v16707_v0  ;;  %10966 = vmatpush.msra.mxu3 %v21703_v61  ;;  %v9889_v6 = vadd.f32 %v9888_v52, %v9852_v1  ;;  %v21708_v0 = vld [vmem:[#allocation932_spill] sm:$0xff]  ;;  %v21733_v1 = vld [vmem:[#allocation965_spill] sm:$0xff]  ;;  %v11317_v52 = vperm.slane %v18060_v37, 2  ;;  %v21735_v61 = vld [vmem:[#allocation1031_spill] sm:$0xff] }
 0x794   :  { %10915 = vmatpush.msra.mxu2 %v20743_v42  ;;  %10697 = vmatpush.msrb.mxu1 %v21704_v27  ;;  %v21736_v27 = vld [vmem:[#allocation971_spill] sm:$0xff] }
 0x795   :  { %10819 = vmatpush.msra.mxu0 %v21705_v9  ;;  %10972 = vmatpush.msra.mxu3 %v21706_v30  ;;  %11361 = vrsqrt.f32 %v9889_v6  ;;  %vm11281_vm7 = vweird.f32 %v9889_v6  ;;  %v21739_v9 = vld [vmem:[#allocation977_spill] sm:$0xff]  ;;  %v21740_v30 = vld [vmem:[#allocation1011_spill] sm:$0xff] }
 0x796   :  { %10917 = vmatpush.msra.mxu2 %v15844_v47  ;;  %10703 = vmatpush.msrb.mxu1 %v21707_v10 }
 0x797   :  { %10823 = vmatpush.msra.mxu0 %v21708_v0  ;;  %10978 = vmatpush.msra.mxu3 %v21710_v34  ;;  %v21741_v0 = vld [vmem:[#allocation1034_spill] sm:$0xff]  ;;  %v21743_v34 = vld [vmem:[#allocation1015_spill] sm:$0xff] }
 0x798   :  { %10919 = vmatpush.msra.mxu2 %v21709_v38  ;;  %10709 = vmatpush.msrb.mxu1 %v21711_v19  ;;  %v21744_v19 = vld [vmem:[#allocation1035_spill] sm:$0xff] }
 0x799   :  { %10827 = vmatpush.msra.mxu0 %v21712_v11  ;;  %10711 = vmatmul.f32.vlgmr.msrb.gmra.mxu1 %v16696_v16  ;;  %v21746_v11 = vld [vmem:[#allocation1018_spill] sm:$0xff] }
 0x79a   :  { %10921 = vmatpush.msra.mxu2 %v21713_v41  ;;  %10878 = vmatpush.msra.mxu1 %v21663_v54  ;;  %v21720_v54 = vld [vmem:[#allocation185_spill] sm:$0xff] }
 0x79b   :  { %10984 = vmatpush.msra.mxu3 %v21714_v18  ;;  %v11362_v48 = vpop.eup %11361  ;;  %10831 = vmatpush.msra.mxu0 %v21715_v15  ;;  %v21747_v18 = vld [vmem:[#allocation939_spill] sm:$0xff] }
 0x79c   :  { %10923 = vmatpush.msra.mxu2 %v21716_v23  ;;  %v11276_v46 = vmul.f32 %v11362_v48, %v9889_v6  ;;  %10880 = vmatpush.msra.mxu1 %v21665_v12  ;;  %v21724_v12 = vld [vmem:[#allocation952_spill] sm:$0xff]  ;;  %vm11282_vm6 = vweird.f32 %v11362_v48  ;;  %v21751_v15 = vld [vmem:[#allocation967_spill] sm:$0xff] }
 0x79d   :  { %10990 = vmatpush.msra.mxu3 %v21717_v49  ;;  %10835 = vmatpush.msra.mxu0 %v21718_v43  ;;  %vm11283_vm8 = vmor %vm11281_vm7, %vm11282_vm6  ;;  %v21755_v49 = vld [vmem:[#allocation982_spill] sm:$0xff]  ;;  %v21758_v43 = vld [vmem:[#allocation992_spill] sm:$0xff] }
 0x79e   :  { %10925 = vmatpush.msra.mxu2 %v21719_v59  ;;  %v11277_v55 = vmul.f32 %v11362_v48, %v11276_v46  ;;  %10882 = vmatpush.msra.mxu1 %v15697_v28  ;;  %v21726_v28 = vld [vmem:[#allocation1023_spill] sm:$0xff]  ;;  %v21753_v46 = vld [vmem:[#allocation973_spill] sm:$0xff] }
 0x79f   :  { %10996 = vmatpush.msra.mxu3 %v21720_v54  ;;  %10839 = vmatpush.msra.mxu0 %v21721_v63  ;;  %v21764_v54 = vld [vmem:[#allocation1003_spill] sm:$0xff] }
 0x7a0   :  { %10927 = vmatpush.msra.mxu2 %v21722_v35  ;;  %v11278_v45 = vmul.f32 0.5, %v11277_v55  ;;  %10884 = vmatpush.msra.mxu1 %v21668_v40  ;;  %v21729_v40 = vld [vmem:[#allocation1026_spill] sm:$0xff]  ;;  %v21766_v63 = vld [vmem:[#allocation1007_spill] sm:$0xff] }
 0x7a1   :  { %11002 = vmatpush.msra.mxu3 %v21723_v44  ;;  %10843 = vmatpush.msra.mxu0 %v21724_v12  ;;  %v21760_v55 = vld [vmem:[#allocation994_spill] sm:$0xff]  ;;  %v21772_v12 = vld [vmem:[#allocation1017_spill] sm:$0xff] }
 0x7a2   :  { %10929 = vmatpush.msra.mxu2 %v21725_v4  ;;  %v11279_v20 = vsub.f32 1.5, %v11278_v45  ;;  %10886 = vmatpush.msra.mxu1 %v21670_v36  ;;  %v21731_v36 = vld [vmem:[#allocation999_spill] sm:$0xff]  ;;  %v21768_v45 = vld [vmem:[#allocation1010_spill] sm:$0xff] }
 0x7a3   :  { %11008 = vmatpush.msra.mxu3 %v21726_v28  ;;  %10847 = vmatpush.msra.mxu0 %v21727_v24  ;;  %v21770_v44 = vld [vmem:[#allocation1014_spill] sm:$0xff]  ;;  %v21776_v28 = vld [vmem:[#allocation1025_spill] sm:$0xff]  ;;  %v21778_v24 = vld [vmem:[#allocation1028_spill] sm:$0xff] }
 0x7a4   :  { %10931 = vmatpush.msra.mxu2 %v21728_v13  ;;  %v11280_v7 = vmul.f32 %v11362_v48, %v11279_v20  ;;  %10888 = vmatpush.msra.mxu1 %v15727_v25  ;;  %v21734_v25 = vld [vmem:[#allocation1004_spill] sm:$0xff]  ;;  %v21774_v20 = vld [vmem:[#allocation1021_spill] sm:$0xff] }
 0x7a5   :  { %11014 = vmatpush.msra.mxu3 %v21729_v40  ;;  %10851 = vmatpush.msra.mxu0 %v21730_v5 }
 0x7a6   :  { %10933 = vmatpush.msra.mxu2 %v21731_v36  ;;  %v11284_v57 = vsel %vm11283_vm8, %v11362_v48, %v11280_v7  ;;  %10890 = vmatpush.msra.mxu1 %v15741_v29  ;;  %v21737_v29 = vld [vmem:[#allocation1008_spill] sm:$0xff]  ;;  %v21750_v48 = vld [vmem:[#allocation962_spill] sm:$0xff]  ;;  %v9929_v40 = vpop.f32.mrf.mxu0 }
 0x7a7   :  { %11020 = vmatpush.msra.mxu3 %v21732_v21  ;;  %v11297_v60 = vmul.f32 %v11284_v57, %v16676_v8  ;;  %10855 = vmatpush.msra.mxu0 %v21733_v1  ;;  %v21738_v8 = vld [vmem:[#allocation1033_spill] sm:$0xff]  ;;  %v21780_v7 = vld [vmem:[#allocation1032_spill] sm:$0xff]  ;;  %v9930_v5 = vadd.f32 1e-05, %v9929_v40 }
 0x7a8   :  { %10935 = vmatpush.msra.mxu2 %v21734_v25  ;;  %10892 = vmatpush.msra.mxu1 %v15758_v32  ;;  %v21742_v32 = vld [vmem:[#allocation983_spill] sm:$0xff] }
 0x7a9   :  { %11026 = vmatpush.msra.mxu3 %v21735_v61  ;;  %v11311_v6 = vmul.f32 %v11303_v14, %v11297_v60  ;;  %10859 = vmatpush.msra.mxu0 %v21736_v27 }
 0x7aa   :  { %10937 = vmatpush.msra.mxu2 %v21737_v29  ;;  %10894 = vmatpush.msra.mxu1 %v15774_v58  ;;  %v21745_v58 = vld [vmem:[#allocation991_spill] sm:$0xff] }
 0x7ab   :  { %11032 = vmatpush.msra.mxu3 %v21738_v8  ;;  %10863 = vmatpush.msra.mxu0 %v21739_v9  ;;  %v11325_v10 = vadd.f32 %v11317_v52, %v11311_v6 }
 0x7ac   :  { %10939 = vmatpush.msra.mxu2 %v21740_v30  ;;  %10896 = vmatpush.msra.mxu1 %v20738_v17  ;;  %v21748_v17 = vld [vmem:[#allocation957_spill] sm:$0xff] }
 0x7ad   :  { %11038 = vmatpush.msra.mxu3 %v21741_v0  ;;  %10867 = vmatpush.msra.mxu0 %v21742_v32  ;;  %11329 = vst [vmem:[#allocation10 + $0x10] sm:$0xff] %v11325_v10  ;;  %v10123_v21 = vpop.f32.mrf.mxu3 }
 0x7ae   :  { %10941 = vmatpush.msra.mxu2 %v21743_v34  ;;  %10898 = vmatpush.msra.mxu1 %v21683_v39  ;;  %v21749_v39 = vld [vmem:[#allocation1022_spill] sm:$0xff] }
 0x7af   :  { %11044 = vmatpush.msra.mxu3 %v21744_v19  ;;  %10871 = vmatpush.msra.mxu0 %v21745_v58 }
 0x7b0   :  { %10943 = vmatpush.msra.mxu2 %v21746_v11  ;;  %10900 = vmatpush.msra.mxu1 %v21686_v26  ;;  %v21752_v26 = vld [vmem:[#allocation974_spill] sm:$0xff]  ;;  %v10030_v14 = vpop.f32.mrf.mxu1 }
 0x7b1   :  { %11050 = vmatpush.msra.mxu3 %v21747_v18  ;;  %10873 = vmatmul.f32.vlgmr.msra.gmra.mxu0 %v16696_v16 }
 0x7b2   :  { %11052 = vmatmul.f32.vlgmr.msra.gmra.mxu3 %v16786_v51  ;;  %11058 = vmatpush.msrb.mxu0 %v21748_v17 }
 0x7b3   :  { %11219 = vmatpush.msrb.mxu3 %v20743_v42  ;;  %10902 = vmatpush.msra.mxu1 %v21689_v53  ;;  %v21754_v53 = vld [vmem:[#allocation978_spill] sm:$0xff] }
 0x7b4   :  { %10945 = vmatpush.msra.mxu2 %v21749_v39  ;;  %11061 = vmatpush.msrb.mxu0 %v21750_v48 }
 0x7b5   :  { %10951 = vmatmul.f32.vlgmr.msra.gmra.mxu2 %v16830_v50  ;;  %11221 = vmatpush.msrb.mxu3 %v15844_v47  ;;  %v21756_v50 = vld [vmem:[#allocation986_spill] sm:$0xff] }
 0x7b6   :  { %11152 = vmatpush.msrb.mxu2 %v21751_v15  ;;  %10904 = vmatpush.msra.mxu1 %v20748_v2  ;;  %v21757_v2 = vld [vmem:[#allocation988_spill] sm:$0xff] }
 0x7b7   :  { %11064 = vmatpush.msrb.mxu0 %v21752_v26  ;;  %11223 = vmatpush.msrb.mxu3 %v21709_v38 }
 0x7b8   :  { %11156 = vmatpush.msrb.mxu2 %v21753_v46  ;;  %10906 = vmatpush.msra.mxu1 %v20752_v31  ;;  %v21759_v31 = vld [vmem:[#allocation995_spill] sm:$0xff] }
 0x7b9   :  { %11067 = vmatpush.msrb.mxu0 %v21754_v53  ;;  %11225 = vmatpush.msrb.mxu3 %v21713_v41 }
 0x7ba   :  { %11160 = vmatpush.msrb.mxu2 %v21755_v49  ;;  %10908 = vmatpush.msra.mxu1 %v20756_v3  ;;  %v21761_v3 = vld [vmem:[#allocation998_spill] sm:$0xff] }
 0x7bb   :  { %11070 = vmatpush.msrb.mxu0 %v21756_v50  ;;  %10910 = vmatmul.f32.vlgmr.msra.gmra.mxu1 %v16696_v16  ;;  %v21762_v16 = vld [vmem:[#allocation997_spill] sm:$0xff] }
 0x7bc   :  { %11164 = vmatpush.msrb.mxu2 %v21757_v2  ;;  %11111 = vmatpush.msrb.mxu1 %v20743_v42  ;;  %v21763_v42 = vld [vmem:[#allocation1002_spill] sm:$0xff] }
 0x7bd   :  { %11227 = vmatpush.msrb.mxu3 %v21716_v23  ;;  %11073 = vmatpush.msrb.mxu0 %v21758_v43 }
 0x7be   :  { %11168 = vmatpush.msrb.mxu2 %v21759_v31  ;;  %11113 = vmatpush.msrb.mxu1 %v15844_v47  ;;  %v21765_v47 = vld [vmem:[#allocation1005_spill] sm:$0xff] }
 0x7bf   :  { %11229 = vmatpush.msrb.mxu3 %v21719_v59  ;;  %11076 = vmatpush.msrb.mxu0 %v21760_v55 }
 0x7c0   :  { %11172 = vmatpush.msrb.mxu2 %v21761_v3  ;;  %11115 = vmatpush.msrb.mxu1 %v21709_v38  ;;  %v21767_v38 = vld [vmem:[#allocation1009_spill] sm:$0xff] }
 0x7c1   :  { %11231 = vmatpush.msrb.mxu3 %v21722_v35  ;;  %11079 = vmatpush.msrb.mxu0 %v21762_v16 }
 0x7c2   :  { %11176 = vmatpush.msrb.mxu2 %v21763_v42  ;;  %11117 = vmatpush.msrb.mxu1 %v21713_v41  ;;  %v21769_v41 = vld [vmem:[#allocation1013_spill] sm:$0xff] }
 0x7c3   :  { %11233 = vmatpush.msrb.mxu3 %v21725_v4  ;;  %11082 = vmatpush.msrb.mxu0 %v21764_v54 }
 0x7c4   :  { %11180 = vmatpush.msrb.mxu2 %v21765_v47  ;;  %11119 = vmatpush.msrb.mxu1 %v21716_v23  ;;  %v21771_v23 = vld [vmem:[#allocation1016_spill] sm:$0xff] }
 0x7c5   :  { %11235 = vmatpush.msrb.mxu3 %v21728_v13  ;;  %11085 = vmatpush.msrb.mxu0 %v21766_v63 }
 0x7c6   :  { %11184 = vmatpush.msrb.mxu2 %v21767_v38  ;;  %11121 = vmatpush.msrb.mxu1 %v21719_v59  ;;  %v21773_v59 = vld [vmem:[#allocation1020_spill] sm:$0xff] }
 0x7c7   :  { %11237 = vmatpush.msrb.mxu3 %v21731_v36  ;;  %11088 = vmatpush.msrb.mxu0 %v21768_v45 }
 0x7c8   :  { %11188 = vmatpush.msrb.mxu2 %v21769_v41  ;;  %11123 = vmatpush.msrb.mxu1 %v21722_v35  ;;  %v21775_v35 = vld [vmem:[#allocation1024_spill] sm:$0xff]  ;;  %v10192_v60 = vpop.f32.mrf.mxu0 }
 0x7c9   :  { %11239 = vmatpush.msrb.mxu3 %v21734_v25  ;;  %11091 = vmatpush.msrb.mxu0 %v21770_v44 }
 0x7ca   :  { %11192 = vmatpush.msrb.mxu2 %v21771_v23  ;;  %11125 = vmatpush.msrb.mxu1 %v21725_v4  ;;  %v21777_v4 = vld [vmem:[#allocation1027_spill] sm:$0xff] }
 0x7cb   :  { %11241 = vmatpush.msrb.mxu3 %v21737_v29  ;;  %11094 = vmatpush.msrb.mxu0 %v21772_v12 }
 0x7cc   :  { %11196 = vmatpush.msrb.mxu2 %v21773_v59  ;;  %11127 = vmatpush.msrb.mxu1 %v21728_v13  ;;  %v21779_v13 = vld [vmem:[#allocation1030_spill] sm:$0xff] }
 0x7cd   :  { %11243 = vmatpush.msrb.mxu3 %v21740_v30  ;;  %11097 = vmatpush.msrb.mxu0 %v21774_v20  ;;  %v11304_v20 = vperm.slane %v18050_v33, 3 }
 0x7ce   :  { %11200 = vmatpush.msrb.mxu2 %v21775_v35  ;;  %11129 = vmatpush.msrb.mxu1 %v21731_v36  ;;  %v10084_v36 = vpop.f32.mrf.mxu2 }
 0x7cf   :  { %11245 = vmatpush.msrb.mxu3 %v21743_v34  ;;  %11100 = vmatpush.msrb.mxu0 %v21776_v28  ;;  %v10371_v27 = vpop.f32.mrf.mxu3 }
 0x7d0   :  { %11204 = vmatpush.msrb.mxu2 %v21777_v4  ;;  %11131 = vmatpush.msrb.mxu1 %v21734_v25  ;;  %v11318_v4 = vperm.slane %v18060_v37, 3 }
 0x7d1   :  { %11247 = vmatpush.msrb.mxu3 %v21746_v11  ;;  %11103 = vmatpush.msrb.mxu0 %v21778_v24 }
 0x7d2   :  { %11208 = vmatpush.msrb.mxu2 %v21779_v13  ;;  %11133 = vmatpush.msrb.mxu1 %v21737_v29  ;;  %v10229_v25 = vpop.f32.mrf.mxu1 }
 0x7d3   :  { %11249 = vmatpush.msrb.mxu3 %v21749_v39  ;;  %11106 = vmatmul.f32.vlgmr.msrb.gmra.mxu0 %v16797_v56  ;;  %v10031_v56 = vadd.f32 %v10030_v14, %v9930_v5 }
 0x7d4   :  { %11251 = vmatmul.f32.vlgmr.msrb.gmra.mxu3 %v16786_v51  ;;  %11135 = vmatpush.msrb.mxu1 %v21740_v30 }
 0x7d5   :  { %11212 = vmatpush.msrb.mxu2 %v21780_v7  ;;  %v10085_v57 = vadd.f32 %v10084_v36, %v10031_v56 }
 0x7d6   :  { %11214 = vmatmul.f32.vlgmr.msrb.gmra.mxu2 %v16786_v51  ;;  %11137 = vmatpush.msrb.mxu1 %v21743_v34  ;;  %v10270_v61 = vpop.f32.mrf.mxu2 }
 0x7d7   :  { %v10124_v1 = vadd.f32 %v10123_v21, %v10085_v57 }
 0x7d8   :  { %11139 = vmatpush.msrb.mxu1 %v21746_v11 }
 0x7d9   :  { %v10193_v52 = vadd.f32 %v10192_v60, %v10124_v1 }
 0x7da   :  { %11141 = vmatpush.msrb.mxu1 %v21749_v39 }
 0x7db   :  { %11145 = vmatmul.f32.vlgmr.msrb.gmra.mxu1 %v16810_v22  ;;  %v10230_v51 = vadd.f32 %v10229_v25, %v10193_v52 }
 0x7dd   :  { %v10271_v6 = vadd.f32 %v10270_v61, %v10230_v51 }
 0x7df   :  { %v10372_v8 = vadd.f32 %v10371_v27, %v10271_v6 }
 0x7ea   :  { %v10425_v29 = vpop.f32.mrf.mxu0 }
 0x7eb   :  { %v10426_v30 = vadd.f32 %v10425_v29, %v10372_v8 }
 0x7f1   :  { %v10570_v32 = vpop.f32.mrf.mxu3 }
 0x7f4   :  { %v10464_v9 = vpop.f32.mrf.mxu1  ;;  %v10533_v10 = vpop.f32.mrf.mxu2 }
 0x7f5   :  { %v10465_v22 = vadd.f32 %v10464_v9, %v10426_v30 }
 0x7f7   :  { %v10534_v0 = vadd.f32 %v10533_v10, %v10465_v22 }
 0x7f9   :  { %v10571_v19 = vadd.f32 %v10570_v32, %v10534_v0 }
 0x80c   :  { %v10611_v34 = vpop.f32.mrf.mxu0 }
 0x80d   :  { %v10612_v11 = vadd.f32 %v10611_v34, %v10571_v19 }
 0x813   :  { %v10805_v48 = vpop.f32.mrf.mxu3 }
 0x816   :  { %v10712_v58 = vpop.f32.mrf.mxu1  ;;  %v10766_v17 = vpop.f32.mrf.mxu2 }
 0x817   :  { %v10713_v18 = vadd.f32 %v10712_v58, %v10612_v11 }
 0x819   :  { %v10767_v39 = vadd.f32 %v10766_v17, %v10713_v18 }
 0x81b   :  { %v10806_v26 = vadd.f32 %v10805_v48, %v10767_v39 }
 0x82e   :  { %v10874_v15 = vpop.f32.mrf.mxu0 }
 0x82f   :  { %v10875_v53 = vadd.f32 %v10874_v15, %v10806_v26 }
 0x835   :  { %v11053_v43 = vpop.f32.mrf.mxu3 }
 0x838   :  { %v10911_v46 = vpop.f32.mrf.mxu1  ;;  %v10952_v50 = vpop.f32.mrf.mxu2 }
 0x839   :  { %v10912_v49 = vadd.f32 %v10911_v46, %v10875_v53 }
 0x83b   :  { %v10953_v2 = vadd.f32 %v10952_v50, %v10912_v49 }
 0x83d   :  { %v11054_v55 = vadd.f32 %v11053_v43, %v10953_v2 }
 0x850   :  { %v11107_v31 = vpop.f32.mrf.mxu0 }
 0x851   :  { %v11108_v3 = vadd.f32 %v11107_v31, %v11054_v55 }
 0x857   :  { %v11252_v63 = vpop.f32.mrf.mxu3 }
 0x858   :  { %v11146_v16 = vpop.f32.mrf.mxu1 }
 0x859   :  { %v11147_v42 = vadd.f32 %v11146_v16, %v11108_v3  ;;  %v11215_v54 = vpop.f32.mrf.mxu2 }
 0x85b   :  { %v11216_v47 = vadd.f32 %v11215_v54, %v11147_v42 }
 0x85d   :  { %v11253_v38 = vadd.f32 %v11252_v63, %v11216_v47 }
 0x85f   :  { %11363 = vrsqrt.f32 %v11253_v38  ;;  %vm11291_vm10 = vweird.f32 %v11253_v38 }
 0x865   :  { %v11364_v45 = vpop.eup %11363 }
 0x866   :  { %v11286_v41 = vmul.f32 %v11364_v45, %v11253_v38  ;;  %vm11292_vm9 = vweird.f32 %v11364_v45 }
 0x867   :  { %vm11293_vm11 = vmor %vm11291_vm10, %vm11292_vm9 }
 0x868   :  { %v11287_v44 = vmul.f32 %v11364_v45, %v11286_v41 }
 0x86a   :  { %v11288_v23 = vmul.f32 0.5, %v11287_v44 }
 0x86c   :  { %v11289_v12 = vsub.f32 1.5, %v11288_v23 }
 0x86e   :  { %v11290_v59 = vmul.f32 %v11364_v45, %v11289_v12 }
 0x870   :  { %v11294_v35 = vsel %vm11293_vm11, %v11364_v45, %v11290_v59 }
 0x871   :  { %v11298_v28 = vmul.f32 %v11294_v35, %v16768_v62 }
 0x873   :  { %v11312_v24 = vmul.f32 %v11304_v20, %v11298_v28 }
 0x875   :  { %v11326_v13 = vadd.f32 %v11318_v4, %v11312_v24 }
 0x877   :  { %11330 = vst [vmem:[#allocation10 + $0x18] sm:$0xff] %v11326_v13 }
 0x878   :  { %11341 = dma.vmem_to_hbm [thread:$0]  %s11337_s3, 512, %s11339_s11, [#allocation4]  }
 0x879   :  { %11497 = dma.done.wait [#allocation4], 512  }
 0x87a   :  { %11498 = vsyncadd [#allocation4], 4294966784 }
 0x87b   :  { %11346 = vsyncpa [#allocation3], 1 }
 0x87c   :  { %11347 = vsyncpa [#allocation6], 1 }
 0x87d   :  { %11348 = vsyncpa [#allocation9], 1 }
 0x87e   :  { %11349 = vsyncpa [#allocation4], 1 }

</bundles_post_ra>
